<compile_context>
chip_gen: v7x
topology: tpu7x:2x2x1
jax: 0.10.0
libtpu: 0.0.40
codegen_flags: <defaults>
</compile_context>

<pallas_src>
import functools

import numpy as np

import jax
import jax.numpy as jnp
from jax.experimental import pallas as pl
from jax.experimental.pallas import tpu as pltpu


# ----------------------------- helpers -------------------------------------

def _round_up(x, m):
    return (x + m - 1) // m * m


def _tile(dim, target):
    """Block size + padded extent for one matmul dimension."""
    if dim <= target:
        return dim, dim
    return target, _round_up(dim, target)


@functools.lru_cache(maxsize=None)
def _head_masks_np(C, nh):
    """One-hot channel->head mask (C, nh) used for per-head MXU reductions."""
    ch = np.arange(C) // (C // nh)
    return (ch[:, None] == np.arange(nh)[None, :]).astype(np.float32)


@functools.lru_cache(maxsize=None)
def _window_valid_np(H, W, ws):
    """(w2, L) 0/1 mask: is neighbour offset widx of pixel l inside the image."""
    pad = ws // 2
    L = H * W
    r = np.arange(L) // W
    c = np.arange(L) % W
    cols = []
    for widx in range(ws * ws):
        dh = widx // ws - pad
        dw = widx % ws - pad
        cols.append((r + dh >= 0) & (r + dh < H) & (c + dw >= 0) & (c + dw < W))
    return np.stack(cols, axis=0).astype(np.float32)


# ----------------------------- Pallas kernels -------------------------------

def _linear_kernel(x_ref, w_ref, b_ref, g_ref, bb_ref, o_ref, *, act, ln):
    """Full-K matmul tile with optional LayerNorm prologue + activation epilogue."""
    x = x_ref[...]
    if ln:
        x = x.astype(jnp.float32)
        mu = jnp.mean(x, axis=-1, keepdims=True)
        var = jnp.mean((x - mu) ** 2, axis=-1, keepdims=True)
        x = (x - mu) * jax.lax.rsqrt(var + 1e-5) * g_ref[...] + bb_ref[...]
    y = jnp.dot(x.astype(jnp.bfloat16), w_ref[...],
                preferred_element_type=jnp.float32) + b_ref[...]
    if act == "relu":
        y = jnp.maximum(y, 0.0)
    elif act == "sigmoid":
        y = jax.nn.sigmoid(y)
    o_ref[...] = y.astype(o_ref.dtype)


def linear_pallas(x, w, b=None, *, act=None, ln=None,
                  out_dtype=jnp.float32, tm=256, tn=512):
    """(M, K) @ (K, N) + b with optional fused LayerNorm on the input rows.

    K is kept whole in one block (K <= a few hundred in this model), so no
    accumulator / K grid axis is needed and the LN prologue sees full rows.
    # TODO(synk): re-add a K-split accumulator path for very large K.
    """
    M, K = x.shape
    N = w.shape[1]
    tm_, Mp = _tile(M, tm)
    tn_, Np = _tile(N, tn)

    if ln is None:
        xin = x.astype(jnp.bfloat16)               # bf16 activations -> half DMA
        gamma = jnp.ones((1, K), jnp.float32)
        beta = jnp.zeros((1, K), jnp.float32)
    else:
        xin = x.astype(jnp.float32)                # f32 residual stream for LN stats
        gamma = ln[0].reshape(1, K).astype(jnp.float32)
        beta = ln[1].reshape(1, K).astype(jnp.float32)

    xp = jnp.pad(xin, ((0, Mp - M), (0, 0)))
    wp = jnp.pad(w.astype(jnp.bfloat16), ((0, 0), (0, Np - N)))
    bias = jnp.zeros((N,), jnp.float32) if b is None else b.astype(jnp.float32)
    bp = jnp.pad(bias, (0, Np - N)).reshape(1, Np)

    out = pl.pallas_call(
        functools.partial(_linear_kernel, act=act, ln=ln is not None),
        grid=(Mp // tm_, Np // tn_),
        in_specs=[
            pl.BlockSpec((tm_, K), lambda i, j: (i, 0)),
            pl.BlockSpec((K, tn_), lambda i, j: (0, j)),
            pl.BlockSpec((1, tn_), lambda i, j: (0, j)),
            pl.BlockSpec((1, K), lambda i, j: (0, 0)),
            pl.BlockSpec((1, K), lambda i, j: (0, 0)),
        ],
        out_specs=pl.BlockSpec((tm_, tn_), lambda i, j: (i, j)),
        out_shape=jax.ShapeDtypeStruct((Mp, Np), out_dtype),
        compiler_params=pltpu.CompilerParams(
            dimension_semantics=("parallel", "parallel")),
    )(xp, wp, bp, gamma, beta)
    if Mp != M or Np != N:
        out = out[:M, :N]
    return out


def _layernorm_kernel(x_ref, g_ref, b_ref, o_ref):
    x = x_ref[...]
    mu = jnp.mean(x, axis=-1, keepdims=True)
    var = jnp.mean((x - mu) ** 2, axis=-1, keepdims=True)
    y = (x - mu) * jax.lax.rsqrt(var + 1e-5)
    o_ref[...] = (y * g_ref[...] + b_ref[...]).astype(o_ref.dtype)


def layernorm_pallas(x, gamma, beta, *, tm=1024):
    shp = x.shape
    C = shp[-1]
    x2 = x.reshape(-1, C).astype(jnp.float32)
    M = x2.shape[0]
    tm_, Mp = _tile(M, tm)
    xp = jnp.pad(x2, ((0, Mp - M), (0, 0)))
    out = pl.pallas_call(
        _layernorm_kernel,
        grid=(Mp // tm_,),
        in_specs=[pl.BlockSpec((tm_, C), lambda i: (i, 0)),
                  pl.BlockSpec((1, C), lambda i: (0, 0)),
                  pl.BlockSpec((1, C), lambda i: (0, 0))],
        out_specs=pl.BlockSpec((tm_, C), lambda i: (i, 0)),
        out_shape=jax.ShapeDtypeStruct((Mp, C), jnp.float32),
        compiler_params=pltpu.CompilerParams(dimension_semantics=("parallel",)),
    )(xp, gamma.reshape(1, C).astype(jnp.float32),
      beta.reshape(1, C).astype(jnp.float32))
    if Mp != M:
        out = out[:M]
    return out.reshape(shp)


def _pcw_attn_kernel(q_ref, qp_ref, ks_ref, vs_ref, bias_ref, hm_ref, hmt_ref,
                     pw_ref, pb_ref, o_ref, *, w2, L, C, nh, scale):
    """PCW attention for one batch element, all heads & window offsets at once.

    k/v arrive as a pre-shifted, pre-masked (w2*L, C) bf16 slab (one row per
    (offset, pixel)); every per-head reduction is a single MXU matmul against a
    one-hot (C, nh) head mask.  Softmax is over L (dim=-2 in the reference).
    The output projection is fused into the epilogue.
    """
    f32, bf16 = jnp.float32, jnp.bfloat16
    hm = hm_ref[...]          # (C, nh) bf16 one-hot: channel -> head
    hmt = hmt_ref[...]        # (nh, C)

    # combined query: per-head L2-normalized q * scale + pooled raw-x query
    q = q_ref[0].astype(f32)                                              # (L, C)
    ssq = jnp.dot((q * q).astype(bf16), hm, preferred_element_type=f32)   # (L, nh)
    qinv = 1.0 / jnp.maximum(jnp.sqrt(ssq), 1e-12)
    qc = q * jnp.dot(qinv.astype(bf16), hmt, preferred_element_type=f32) * scale
    qc = qc + qp_ref[0].astype(f32)                                       # (L, C)

    # per-head L2-normalize all w2 shifted copies of k in one pass
    # (masked / zero-padded rows stay exactly zero, matching nn.Unfold).
    ks = ks_ref[0].astype(f32)                                            # (w2*L, C)
    ssk = jnp.dot((ks * ks).astype(bf16), hm, preferred_element_type=f32)
    kinv = 1.0 / jnp.maximum(jnp.sqrt(ssk), 1e-12)
    kn = ks * jnp.dot(kinv.astype(bf16), hmt, preferred_element_type=f32)

    # scores for every (offset, pixel, head) in one MXU call
    qk = kn.reshape(w2, L, C) * qc[None, :, :]
    s = jnp.dot(qk.reshape(w2 * L, C).astype(bf16), hm,
                preferred_element_type=f32).reshape(w2, L, nh)
    s = s + bias_ref[...]                                                 # (w2,1,nh)

    # softmax over L per (offset, head)
    e = jnp.exp(s - jnp.max(s, axis=1, keepdims=True))
    wts = e * pl.reciprocal(jnp.sum(e, axis=1, keepdims=True), approx=True)

    # broadcast per-head weights to channels (one matmul) and aggregate values
    wc = jnp.dot(wts.reshape(w2 * L, nh).astype(bf16), hmt,
                 preferred_element_type=f32)                              # (w2*L, C)
    acc = jnp.sum(vs_ref[0].astype(f32).reshape(w2, L, C) *
                  wc.reshape(w2, L, C), axis=0)                           # (L, C)

    # fused output projection epilogue
    out = jnp.dot(acc.astype(bf16), pw_ref[...],
                  preferred_element_type=f32) + pb_ref[...]
    o_ref[0] = out.astype(o_ref.dtype)


# ------------------------------- model glue ---------------------------------

def pcw_attention(p, x, H, W, nh, ws):
    B, L, C = x.shape
    hd = C // nh
    w2 = ws * ws
    pad = ws // 2
    scale = hd ** (-0.5)

    # fused [q | k | v] projection, bf16 output feeds the attention kernel
    qkv = linear_pallas(x.reshape(B * L, C), p["qkv_w"], p["qkv_b"],
                        out_dtype=jnp.bfloat16).reshape(B, L, 3 * C)
    q = qkv[:, :, :C]
    k = qkv[:, :, C:2 * C]
    v = qkv[:, :, 2 * C:]

    # pooled query = spatial mean of the *raw* attention input (per reference)
    q_pool = jnp.mean(x, axis=1, keepdims=True).astype(jnp.bfloat16)     # (B,1,C)

    # Build the 3x3 neighbourhood once in XLA: flat zero-pad + 9 static slices
    # + validity mask.  The kernel then sees an aligned (w2*L, C) slab (no
    # unaligned sublane slices) and batches all per-offset matmuls.
    P = pad * (W + 1)
    kpad = jnp.pad(k, ((0, 0), (P, P), (0, 0)))
    vpad = jnp.pad(v, ((0, 0), (P, P), (0, 0)))
    valid = jnp.asarray(_window_valid_np(H, W, ws), jnp.bfloat16)        # (w2, L)
    ks_list, vs_list = [], []
    for widx in range(w2):
        dh = widx // ws - pad
        dw = widx % ws - pad
        s = P + dh * W + dw
        ks_list.append(kpad[:, s:s + L, :])
        vs_list.append(vpad[:, s:s + L, :])
    mask = valid[None, :, :, None]
    kshift = (jnp.stack(ks_list, axis=1) * mask).reshape(B, w2 * L, C)
    vshift = (jnp.stack(vs_list, axis=1) * mask).reshape(B, w2 * L, C)

    hm_np = _head_masks_np(C, nh)
    hmask = jnp.asarray(hm_np, jnp.bfloat16)
    hmaskt = jnp.asarray(hm_np.T, jnp.bfloat16)
    bias = p["rpb"].T.reshape(w2, 1, nh).astype(jnp.float32)

    # TODO(synk): for large images add an L-tiling grid axis over q and stream
    # the k/v window rows (re-derive tiles against v7x's 64 MiB VMEM).
    out = pl.pallas_call(
        functools.partial(_pcw_attn_kernel,
                          w2=w2, L=L, C=C, nh=nh, scale=scale),
        grid=(B,),
        in_specs=[
            pl.BlockSpec((1, L, C), lambda b: (b, 0, 0)),
            pl.BlockSpec((1, 1, C), lambda b: (b, 0, 0)),
            pl.BlockSpec((1, w2 * L, C), lambda b: (b, 0, 0)),
            pl.BlockSpec((1, w2 * L, C), lambda b: (b, 0, 0)),
            pl.BlockSpec((w2, 1, nh), lambda b: (0, 0, 0)),
            pl.BlockSpec((C, nh), lambda b: (0, 0)),
            pl.BlockSpec((nh, C), lambda b: (0, 0)),
            pl.BlockSpec((C, C), lambda b: (0, 0)),
            pl.BlockSpec((1, C), lambda b: (0, 0)),
        ],
        out_specs=pl.BlockSpec((1, L, C), lambda b: (b, 0, 0)),
        out_shape=jax.ShapeDtypeStruct((B, L, C), jnp.float32),
        compiler_params=pltpu.CompilerParams(dimension_semantics=("parallel",)),
    )(q, q_pool, kshift, vshift, bias, hmask, hmaskt,
      p["proj_w"].astype(jnp.bfloat16),
      p["proj_b"].reshape(1, C).astype(jnp.float32))
    return out


def block_forward(p, x, H, W, nh, ws):
    B, L, C = x.shape
    shortcut = x

    xn = layernorm_pallas(x, p["norm1_g"], p["norm1_b"])
    sp = xn.transpose(0, 2, 1).reshape(B, C, H, W)

    pool_h = jnp.mean(sp, axis=2)                  # AdaptiveAvgPool2d((1, None))
    pool_w = jnp.mean(sp, axis=3)                  # AdaptiveAvgPool2d((None, 1))
    pool_c_in = jnp.mean(sp, axis=(2, 3))          # AdaptiveAvgPool2d((1, 1))

    # squeeze-excite gate: tiny -> plain JAX (fuses in XLA)
    h1 = jnp.maximum(pool_c_in @ p["fc1_w"], 0.0)
    pool_c = jax.nn.sigmoid(h1 @ p["fc2_w"]).reshape(B, 1, C)

    # bmm(pool_h^T, pool_w).view(B, 1, H, W) -- reproduced exactly (H == W)
    affinity = jnp.einsum("bci,bcj->bij", pool_h, pool_w).reshape(B, 1, H, W)

    # DWConv(1, 1): 3x3 single-channel conv, padding 1 -> tiny, plain JAX
    dw_k = p["dw_w"].reshape(1, 1, 3, 3)
    sw = jax.lax.conv_general_dilated(
        affinity, dw_k, window_strides=(1, 1), padding=((1, 1), (1, 1)),
        dimension_numbers=("NCHW", "OIHW", "NCHW")) + p["dw_b"].reshape(1, 1, 1, 1)
    spatial_weight = sw.reshape(B, L, 1)

    attn_out = pcw_attention(p, x, H, W, nh, ws)   # attention on raw x (per reference)

    # modulate + residual
    x = shortcut + attn_out * spatial_weight * pool_c

    # MLP: fused norm2 + fc1 (bf16 out) -> exact-erf GELU -> fc2
    y = linear_pallas(x.reshape(B * L, C), p["mlp_fc1_w"], p["mlp_fc1_b"],
                      ln=(p["norm2_g"], p["norm2_b"]), out_dtype=jnp.bfloat16)
    # TODO(synk): move exact-erf GELU into the matmul epilogue once erf has a
    # guaranteed Mosaic lowering; kept in plain JAX to preserve nn.GELU exactly.
    y = jax.nn.gelu(y.astype(jnp.float32), approximate=False).astype(jnp.bfloat16)
    y = linear_pallas(y, p["mlp_fc2_w"], p["mlp_fc2_b"]).reshape(B, L, C)
    return x + y


def patch_merging(p, x, H, W):
    B, L, C = x.shape
    xr = x.reshape(B, H, W, C)
    x0 = xr[:, 0::2, 0::2, :]
    x1 = xr[:, 1::2, 0::2, :]
    x2 = xr[:, 0::2, 1::2, :]
    x3 = xr[:, 1::2, 1::2, :]
    xc = jnp.concatenate([x0, x1, x2, x3], axis=-1).reshape(-1, 4 * C)
    # fused LayerNorm prologue + (4C -> 2C) reduction (bias-free)
    out = linear_pallas(xc, p["red_w"], None, ln=(p["norm_g"], p["norm_b"]))
    return out.reshape(B, (H // 2) * (W // 2), 2 * C)


def forward(params, x, cfg):
    B, Cin, Himg, Wimg = x.shape
    ps = cfg["patch_size"]
    E = cfg["embed_dim"]
    Ph, Pw = Himg // ps, Wimg // ps

    # PatchEmbed: non-overlapping strided conv == patch extraction + matmul
    patches = (
        x.reshape(B, Cin, Ph, ps, Pw, ps)
        .transpose(0, 2, 4, 1, 3, 5)
        .reshape(B * Ph * Pw, Cin * ps * ps)
    )
    pe = params["patch_embed"]
    t = linear_pallas(patches, pe["w"], pe["b"]).reshape(B, Ph * Pw, E)
    t = layernorm_pallas(t, pe["ng"], pe["nb"])
    # pos_drop / ape disabled by default

    H, W = Ph, Pw
    for i, layer in enumerate(params["layers"]):
        nh = cfg["num_heads"][i]
        ws = min(H, W) if min(H, W) <= cfg["window_size"] else cfg["window_size"]
        for blk in layer["blocks"]:
            t = block_forward(blk, t, H, W, nh, ws)
        if "downsample" in layer:
            t = patch_merging(layer["downsample"], t, H, W)
            H, W = H // 2, W // 2
    return t


# ------------------------------ parameters ----------------------------------

def init_image_encoder(key, *, img_size, patch_size, in_chans, embed_dim,
                       depths, num_heads, window_size, mlp_ratio):
    keys = iter(jax.random.split(key, 256))

    def dense(shape, std=0.02, dtype=jnp.bfloat16):
        # Matmul weights are pre-cast to bf16 once here (hoisted out of the
        # per-call path); LN params / biases / tiny gate weights stay f32.
        return (jax.random.normal(next(keys), shape, jnp.float32) * std).astype(dtype)

    params = {
        "patch_embed": {
            "w": dense((in_chans * patch_size * patch_size, embed_dim)),
            "b": jnp.zeros((embed_dim,), jnp.float32),
            "ng": jnp.ones((embed_dim,), jnp.float32),
            "nb": jnp.zeros((embed_dim,), jnp.float32),
        }
    }

    base_res = img_size // patch_size
    layers = []
    for i, (depth, nh) in enumerate(zip(depths, num_heads)):
        dim = embed_dim * (2 ** i)
        res = base_res // (2 ** i)
        ws = res if res <= window_size else window_size
        blocks = []
        for _ in range(depth):
            C = dim
            blocks.append({
                "norm1_g": jnp.ones((C,), jnp.float32),
                "norm1_b": jnp.zeros((C,), jnp.float32),
                "fc1_w": dense((C, C // mlp_ratio), dtype=jnp.float32),
                "fc2_w": dense((C // mlp_ratio, C), dtype=jnp.float32),
                "dw_w": dense((3, 3), std=0.1, dtype=jnp.float32),
                "dw_b": jnp.zeros((1,), jnp.float32),
                # fused [q | k | v] projection (q and kv nn.Linear concatenated)
                "qkv_w": dense((C, 3 * C)),
                "qkv_b": jnp.zeros((3 * C,), jnp.float32),
                "proj_w": dense((C, C)),
                "proj_b": jnp.zeros((C,), jnp.float32),
                "rpb": dense((nh, ws * ws), std=0.0004, dtype=jnp.float32),
                "norm2_g": jnp.ones((C,), jnp.float32),
                "norm2_b": jnp.zeros((C,), jnp.float32),
                "mlp_fc1_w": dense((C, C * mlp_ratio)),
                "mlp_fc1_b": jnp.zeros((C * mlp_ratio,), jnp.float32),
                "mlp_fc2_w": dense((C * mlp_ratio, C)),
                "mlp_fc2_b": jnp.zeros((C,), jnp.float32),
            })
        layer = {"blocks": blocks}
        if i < len(depths) - 1:
            layer["downsample"] = {
                "norm_g": jnp.ones((4 * dim,), jnp.float32),
                "norm_b": jnp.zeros((4 * dim,), jnp.float32),
                "red_w": dense((4 * dim, 2 * dim)),
            }
        layers.append(layer)
    params["layers"] = layers
    return params


# --------------------------------- main --------------------------------------

if __name__ == "__main__":
    cfg = dict(img_size=32, patch_size=4, in_chans=3, embed_dim=24,
               depths=(1, 1), num_heads=(3, 6), window_size=3, mlp_ratio=4)

    key = jax.random.PRNGKey(0)
    pkey, xkey = jax.random.split(key)
    params = init_image_encoder(pkey, **cfg)

    x = jax.random.normal(
        xkey, (2, cfg["in_chans"], cfg["img_size"], cfg["img_size"]), jnp.float32)

    fwd = jax.jit(lambda p, xx: forward(p, xx, cfg))
    out = fwd(params, x)
    out = jax.block_until_ready(out)

    # Stage 0: (2, 64, 24) -> PatchMerging -> Stage 1: (2, 16, 48)
    assert out.shape == (2, 16, 48), out.shape
    assert bool(jnp.all(jnp.isfinite(out)))
    print("KERNEL_OK")
</pallas_src>

<mosaic_0001>
module attributes {stable_mosaic.version = 11 : i64} {
  func.func @_linear_kernel(%arg0: i32, %arg1: i32, %arg2: memref<128x48xbf16, #tpu.memory_space<vmem>>, %arg3: memref<48x24xbf16, #tpu.memory_space<vmem>>, %arg4: memref<1x24xf32, #tpu.memory_space<vmem>>, %arg5: memref<1x48xf32, #tpu.memory_space<vmem>>, %arg6: memref<1x48xf32, #tpu.memory_space<vmem>>, %arg7: memref<128x24xf32, #tpu.memory_space<vmem>>) attributes {dimension_semantics = [#tpu.dimension_semantics<parallel>, #tpu.dimension_semantics<parallel>], iteration_bounds = array<i64: 1, 1>, scalar_prefetch = 0 : i64, scratch_operands = 0 : i64, tpu.core_type = #tpu.core_type<tc>, window_params = [{transform_indices = @transform_0, window_bounds = array<i64: 128, 48>}, {transform_indices = @transform_1, window_bounds = array<i64: 48, 24>}, {transform_indices = @transform_2, window_bounds = array<i64: 1, 24>}, {pipeline_mode = #tpu.pipeline_mode<synchronous>, transform_indices = @transform_3, window_bounds = array<i64: 1, 48>}, {pipeline_mode = #tpu.pipeline_mode<synchronous>, transform_indices = @transform_4, window_bounds = array<i64: 1, 48>}, {transform_indices = @transform_5, window_bounds = array<i64: 128, 24>}]} {
    %c0 = arith.constant 0 : index
    %c0_0 = arith.constant 0 : index
    %0 = vector.load %arg2[%c0, %c0_0] : memref<128x48xbf16, #tpu.memory_space<vmem>>, vector<128x48xbf16>
    %c0_1 = arith.constant 0 : index
    %c0_2 = arith.constant 0 : index
    %1 = vector.load %arg3[%c0_1, %c0_2] : memref<48x24xbf16, #tpu.memory_space<vmem>>, vector<48x24xbf16>
    %cst = arith.constant dense<0.000000e+00> : vector<128x24xf32>
    %2 = tpu.matmul %0, %1, %cst {dimension_numbers = #tpu.dot_dimension_numbers<[1], [0], [0], [1], [0, 0, 1, 1], [], []>} : vector<128x48xbf16>, vector<48x24xbf16>, vector<128x24xf32> -> vector<128x24xf32>
    %c0_3 = arith.constant 0 : index
    %c0_4 = arith.constant 0 : index
    %3 = vector.load %arg4[%c0_3, %c0_4] : memref<1x24xf32, #tpu.memory_space<vmem>>, vector<1x24xf32>
    %4 = vector.broadcast %3 : vector<1x24xf32> to vector<128x24xf32>
    %5 = arith.addf %2, %4 : vector<128x24xf32>
    %c0_5 = arith.constant 0 : index
    %c0_6 = arith.constant 0 : index
    %6 = vector.load %arg7[%c0_5, %c0_6] : memref<128x24xf32, #tpu.memory_space<vmem>>, vector<128x24xf32>
    tpu.vector_store %arg7[%c0_5, %c0_6], %5 {strides = array<i32>} : memref<128x24xf32, #tpu.memory_space<vmem>>, vector<128x24xf32>,
    return
  }
  func.func @transform_0(%arg0: i32, %arg1: i32) -> (i32, i32) {
    %c0_i32 = arith.constant 0 : i32
    %c0_i32_0 = arith.constant 0 : i32
    return %arg0, %c0_i32 : i32, i32
  }
  func.func @transform_1(%arg0: i32, %arg1: i32) -> (i32, i32) {
    %c0_i32 = arith.constant 0 : i32
    %c0_i32_0 = arith.constant 0 : i32
    return %c0_i32, %arg1 : i32, i32
  }
  func.func @transform_2(%arg0: i32, %arg1: i32) -> (i32, i32) {
    %c0_i32 = arith.constant 0 : i32
    %c0_i32_0 = arith.constant 0 : i32
    return %c0_i32, %arg1 : i32, i32
  }
  func.func @transform_3(%arg0: i32, %arg1: i32) -> (i32, i32) {
    %c0_i32 = arith.constant 0 : i32
    %c0_i32_0 = arith.constant 0 : i32
    %c0_i32_1 = arith.constant 0 : i32
    return %c0_i32, %c0_i32_0 : i32, i32
  }
  func.func @transform_4(%arg0: i32, %arg1: i32) -> (i32, i32) {
    %c0_i32 = arith.constant 0 : i32
    %c0_i32_0 = arith.constant 0 : i32
    %c0_i32_1 = arith.constant 0 : i32
    return %c0_i32, %c0_i32_0 : i32, i32
  }
  func.func @transform_5(%arg0: i32, %arg1: i32) -> (i32, i32) {
    %c0_i32 = arith.constant 0 : i32
    return %arg0, %arg1 : i32, i32
  }
}

module attributes {stable_mosaic.version = 11 : i64} {
  func.func @_layernorm_kernel(%arg0: i32, %arg1: memref<128x24xf32, #tpu.memory_space<vmem>>, %arg2: memref<1x24xf32, #tpu.memory_space<vmem>>, %arg3: memref<1x24xf32, #tpu.memory_space<vmem>>, %arg4: memref<128x24xf32, #tpu.memory_space<vmem>>) attributes {dimension_semantics = [#tpu.dimension_semantics<parallel>], iteration_bounds = array<i64: 1>, scalar_prefetch = 0 : i64, scratch_operands = 0 : i64, tpu.core_type = #tpu.core_type<tc>, window_params = [{transform_indices = @transform_0, window_bounds = array<i64: 128, 24>}, {pipeline_mode = #tpu.pipeline_mode<synchronous>, transform_indices = @transform_1, window_bounds = array<i64: 1, 24>}, {pipeline_mode = #tpu.pipeline_mode<synchronous>, transform_indices = @transform_2, window_bounds = array<i64: 1, 24>}, {transform_indices = @transform_3, window_bounds = array<i64: 128, 24>}]} {
    %c0 = arith.constant 0 : index
    %c0_0 = arith.constant 0 : index
    %0 = vector.load %arg1[%c0, %c0_0] : memref<128x24xf32, #tpu.memory_space<vmem>>, vector<128x24xf32>
    %cst = arith.constant dense<0.000000e+00> : vector<128xf32>
    %1 = vector.multi_reduction <add>, %0, %cst [1] : vector<128x24xf32> to vector<128xf32>
    %2 = vector.shape_cast %1 : vector<128xf32> to vector<128x1xf32>
    %cst_1 = arith.constant 2.400000e+01 : f32
    %3 = vector.broadcast %cst_1 : f32 to vector<128x1xf32>
    %4 = arith.divf %2, %3 : vector<128x1xf32>
    %5 = vector.broadcast %4 : vector<128x1xf32> to vector<128x24xf32>
    %6 = arith.subf %0, %5 : vector<128x24xf32>
    %7 = arith.mulf %6, %6 : vector<128x24xf32>
    %cst_2 = arith.constant dense<0.000000e+00> : vector<128xf32>
    %8 = vector.multi_reduction <add>, %7, %cst_2 [1] : vector<128x24xf32> to vector<128xf32>
    %9 = vector.shape_cast %8 : vector<128xf32> to vector<128x1xf32>
    %cst_3 = arith.constant 2.400000e+01 : f32
    %10 = vector.broadcast %cst_3 : f32 to vector<128x1xf32>
    %11 = arith.divf %9, %10 : vector<128x1xf32>
    %12 = vector.broadcast %4 : vector<128x1xf32> to vector<128x24xf32>
    %13 = arith.subf %0, %12 : vector<128x24xf32>
    %cst_4 = arith.constant 9.99999974E-6 : f32
    %14 = vector.broadcast %cst_4 : f32 to vector<128x1xf32>
    %15 = arith.addf %11, %14 : vector<128x1xf32>
    %16 = math.rsqrt %15 : vector<128x1xf32>
    %17 = vector.broadcast %16 : vector<128x1xf32> to vector<128x24xf32>
    %18 = arith.mulf %13, %17 : vector<128x24xf32>
    %c0_5 = arith.constant 0 : index
    %c0_6 = arith.constant 0 : index
    %19 = vector.load %arg2[%c0_5, %c0_6] : memref<1x24xf32, #tpu.memory_space<vmem>>, vector<1x24xf32>
    %20 = vector.broadcast %19 : vector<1x24xf32> to vector<128x24xf32>
    %21 = arith.mulf %18, %20 : vector<128x24xf32>
    %c0_7 = arith.constant 0 : index
    %c0_8 = arith.constant 0 : index
    %22 = vector.load %arg3[%c0_7, %c0_8] : memref<1x24xf32, #tpu.memory_space<vmem>>, vector<1x24xf32>
    %23 = vector.broadcast %22 : vector<1x24xf32> to vector<128x24xf32>
    %24 = arith.addf %21, %23 : vector<128x24xf32>
    %c0_9 = arith.constant 0 : index
    %c0_10 = arith.constant 0 : index
    %25 = vector.load %arg4[%c0_9, %c0_10] : memref<128x24xf32, #tpu.memory_space<vmem>>, vector<128x24xf32>
    tpu.vector_store %arg4[%c0_9, %c0_10], %24 {strides = array<i32>} : memref<128x24xf32, #tpu.memory_space<vmem>>, vector<128x24xf32>,
    return
  }
  func.func @transform_0(%arg0: i32) -> (i32, i32) {
    %c0_i32 = arith.constant 0 : i32
    %c0_i32_0 = arith.constant 0 : i32
    return %arg0, %c0_i32 : i32, i32
  }
  func.func @transform_1(%arg0: i32) -> (i32, i32) {
    %c0_i32 = arith.constant 0 : i32
    %c0_i32_0 = arith.constant 0 : i32
    %c0_i32_1 = arith.constant 0 : i32
    return %c0_i32, %c0_i32_0 : i32, i32
  }
  func.func @transform_2(%arg0: i32) -> (i32, i32) {
    %c0_i32 = arith.constant 0 : i32
    %c0_i32_0 = arith.constant 0 : i32
    %c0_i32_1 = arith.constant 0 : i32
    return %c0_i32, %c0_i32_0 : i32, i32
  }
  func.func @transform_3(%arg0: i32) -> (i32, i32) {
    %c0_i32 = arith.constant 0 : i32
    %c0_i32_0 = arith.constant 0 : i32
    return %arg0, %c0_i32 : i32, i32
  }
}

module attributes {stable_mosaic.version = 11 : i64} {
  func.func @_linear_kernel(%arg0: i32, %arg1: i32, %arg2: memref<128x24xbf16, #tpu.memory_space<vmem>>, %arg3: memref<24x72xbf16, #tpu.memory_space<vmem>>, %arg4: memref<1x72xf32, #tpu.memory_space<vmem>>, %arg5: memref<1x24xf32, #tpu.memory_space<vmem>>, %arg6: memref<1x24xf32, #tpu.memory_space<vmem>>, %arg7: memref<128x72xbf16, #tpu.memory_space<vmem>>) attributes {dimension_semantics = [#tpu.dimension_semantics<parallel>, #tpu.dimension_semantics<parallel>], iteration_bounds = array<i64: 1, 1>, scalar_prefetch = 0 : i64, scratch_operands = 0 : i64, tpu.core_type = #tpu.core_type<tc>, window_params = [{transform_indices = @transform_0, window_bounds = array<i64: 128, 24>}, {transform_indices = @transform_1, window_bounds = array<i64: 24, 72>}, {transform_indices = @transform_2, window_bounds = array<i64: 1, 72>}, {pipeline_mode = #tpu.pipeline_mode<synchronous>, transform_indices = @transform_3, window_bounds = array<i64: 1, 24>}, {pipeline_mode = #tpu.pipeline_mode<synchronous>, transform_indices = @transform_4, window_bounds = array<i64: 1, 24>}, {transform_indices = @transform_5, window_bounds = array<i64: 128, 72>}]} {
    %c0 = arith.constant 0 : index
    %c0_0 = arith.constant 0 : index
    %0 = vector.load %arg2[%c0, %c0_0] : memref<128x24xbf16, #tpu.memory_space<vmem>>, vector<128x24xbf16>
    %c0_1 = arith.constant 0 : index
    %c0_2 = arith.constant 0 : index
    %1 = vector.load %arg3[%c0_1, %c0_2] : memref<24x72xbf16, #tpu.memory_space<vmem>>, vector<24x72xbf16>
    %cst = arith.constant dense<0.000000e+00> : vector<128x72xf32>
    %2 = tpu.matmul %0, %1, %cst {dimension_numbers = #tpu.dot_dimension_numbers<[1], [0], [0], [1], [0, 0, 1, 1], [], []>} : vector<128x24xbf16>, vector<24x72xbf16>, vector<128x72xf32> -> vector<128x72xf32>
    %c0_3 = arith.constant 0 : index
    %c0_4 = arith.constant 0 : index
    %3 = vector.load %arg4[%c0_3, %c0_4] : memref<1x72xf32, #tpu.memory_space<vmem>>, vector<1x72xf32>
    %4 = vector.broadcast %3 : vector<1x72xf32> to vector<128x72xf32>
    %5 = arith.addf %2, %4 : vector<128x72xf32>
    %6 = arith.truncf %5 : vector<128x72xf32> to vector<128x72xbf16>
    %c0_5 = arith.constant 0 : index
    %c0_6 = arith.constant 0 : index
    %7 = vector.load %arg7[%c0_5, %c0_6] : memref<128x72xbf16, #tpu.memory_space<vmem>>, vector<128x72xbf16>
    tpu.vector_store %arg7[%c0_5, %c0_6], %6 {strides = array<i32>} : memref<128x72xbf16, #tpu.memory_space<vmem>>, vector<128x72xbf16>,
    return
  }
  func.func @transform_0(%arg0: i32, %arg1: i32) -> (i32, i32) {
    %c0_i32 = arith.constant 0 : i32
    %c0_i32_0 = arith.constant 0 : i32
    return %arg0, %c0_i32 : i32, i32
  }
  func.func @transform_1(%arg0: i32, %arg1: i32) -> (i32, i32) {
    %c0_i32 = arith.constant 0 : i32
    %c0_i32_0 = arith.constant 0 : i32
    return %c0_i32, %arg1 : i32, i32
  }
  func.func @transform_2(%arg0: i32, %arg1: i32) -> (i32, i32) {
    %c0_i32 = arith.constant 0 : i32
    %c0_i32_0 = arith.constant 0 : i32
    return %c0_i32, %arg1 : i32, i32
  }
  func.func @transform_3(%arg0: i32, %arg1: i32) -> (i32, i32) {
    %c0_i32 = arith.constant 0 : i32
    %c0_i32_0 = arith.constant 0 : i32
    %c0_i32_1 = arith.constant 0 : i32
    return %c0_i32, %c0_i32_0 : i32, i32
  }
  func.func @transform_4(%arg0: i32, %arg1: i32) -> (i32, i32) {
    %c0_i32 = arith.constant 0 : i32
    %c0_i32_0 = arith.constant 0 : i32
    %c0_i32_1 = arith.constant 0 : i32
    return %c0_i32, %c0_i32_0 : i32, i32
  }
  func.func @transform_5(%arg0: i32, %arg1: i32) -> (i32, i32) {
    %c0_i32 = arith.constant 0 : i32
    return %arg0, %arg1 : i32, i32
  }
}

module attributes {stable_mosaic.version = 11 : i64} {
  func.func @_pcw_attn_kernel(%arg0: i32, %arg1: memref<1x64x24xbf16, #tpu.memory_space<vmem>>, %arg2: memref<1x1x24xbf16, #tpu.memory_space<vmem>>, %arg3: memref<1x576x24xbf16, #tpu.memory_space<vmem>>, %arg4: memref<1x576x24xbf16, #tpu.memory_space<vmem>>, %arg5: memref<9x1x3xf32, #tpu.memory_space<vmem>>, %arg6: memref<24x3xbf16, #tpu.memory_space<vmem>>, %arg7: memref<3x24xbf16, #tpu.memory_space<vmem>>, %arg8: memref<24x24xbf16, #tpu.memory_space<vmem>>, %arg9: memref<1x24xf32, #tpu.memory_space<vmem>>, %arg10: memref<1x64x24xf32, #tpu.memory_space<vmem>>) attributes {dimension_semantics = [#tpu.dimension_semantics<parallel>], iteration_bounds = array<i64: 2>, scalar_prefetch = 0 : i64, scratch_operands = 0 : i64, tpu.core_type = #tpu.core_type<tc>, window_params = [{transform_indices = @transform_0, window_bounds = array<i64: 1, 64, 24>}, {transform_indices = @transform_1, window_bounds = array<i64: 1, 1, 24>}, {transform_indices = @transform_2, window_bounds = array<i64: 1, 576, 24>}, {transform_indices = @transform_3, window_bounds = array<i64: 1, 576, 24>}, {pipeline_mode = #tpu.pipeline_mode<synchronous>, transform_indices = @transform_4, window_bounds = array<i64: 9, 1, 3>}, {pipeline_mode = #tpu.pipeline_mode<synchronous>, transform_indices = @transform_5, window_bounds = array<i64: 24, 3>}, {pipeline_mode = #tpu.pipeline_mode<synchronous>, transform_indices = @transform_6, window_bounds = array<i64: 3, 24>}, {pipeline_mode = #tpu.pipeline_mode<synchronous>, transform_indices = @transform_7, window_bounds = array<i64: 24, 24>}, {pipeline_mode = #tpu.pipeline_mode<synchronous>, transform_indices = @transform_8, window_bounds = array<i64: 1, 24>}, {transform_indices = @transform_9, window_bounds = array<i64: 1, 64, 24>}]} {
    %c0 = arith.constant 0 : index
    %c0_0 = arith.constant 0 : index
    %0 = vector.load %arg6[%c0, %c0_0] : memref<24x3xbf16, #tpu.memory_space<vmem>>, vector<24x3xbf16>
    %c0_1 = arith.constant 0 : index
    %c0_2 = arith.constant 0 : index
    %1 = vector.load %arg7[%c0_1, %c0_2] : memref<3x24xbf16, #tpu.memory_space<vmem>>, vector<3x24xbf16>
    %c0_3 = arith.constant 0 : index
    %c0_4 = arith.constant 0 : index
    %c0_5 = arith.constant 0 : index
    %2 = vector.load %arg1[%c0_3, %c0_4, %c0_5] : memref<1x64x24xbf16, #tpu.memory_space<vmem>>, vector<1x64x24xbf16>
    %3 = vector.shape_cast %2 : vector<1x64x24xbf16> to vector<64x24xbf16>
    %4 = arith.extf %3 : vector<64x24xbf16> to vector<64x24xf32>
    %5 = arith.mulf %4, %4 : vector<64x24xf32>
    %6 = arith.truncf %5 : vector<64x24xf32> to vector<64x24xbf16>
    %cst = arith.constant dense<0.000000e+00> : vector<64x3xf32>
    %7 = tpu.matmul %6, %0, %cst {dimension_numbers = #tpu.dot_dimension_numbers<[1], [0], [0], [1], [0, 0, 1, 1], [], []>} : vector<64x24xbf16>, vector<24x3xbf16>, vector<64x3xf32> -> vector<64x3xf32>
    %8 = math.sqrt %7 : vector<64x3xf32>
    %cst_6 = arith.constant 9.99999996E-13 : f32
    %9 = vector.broadcast %cst_6 : f32 to vector<64x3xf32>
    %10 = arith.maximumf %8, %9 : vector<64x3xf32>
    %cst_7 = arith.constant 1.000000e+00 : f32
    %11 = vector.broadcast %cst_7 : f32 to vector<64x3xf32>
    %12 = arith.divf %11, %10 : vector<64x3xf32>
    %13 = arith.truncf %12 : vector<64x3xf32> to vector<64x3xbf16>
    %cst_8 = arith.constant dense<0.000000e+00> : vector<64x24xf32>
    %14 = tpu.matmul %13, %1, %cst_8 {dimension_numbers = #tpu.dot_dimension_numbers<[1], [0], [0], [1], [0, 0, 1, 1], [], []>} : vector<64x3xbf16>, vector<3x24xbf16>, vector<64x24xf32> -> vector<64x24xf32>
    %15 = arith.mulf %4, %14 : vector<64x24xf32>
    %cst_9 = arith.constant 0.353553385 : f32
    %16 = vector.broadcast %cst_9 : f32 to vector<64x24xf32>
    %17 = arith.mulf %15, %16 : vector<64x24xf32>
    %c0_10 = arith.constant 0 : index
    %c0_11 = arith.constant 0 : index
    %c0_12 = arith.constant 0 : index
    %18 = vector.load %arg2[%c0_10, %c0_11, %c0_12] : memref<1x1x24xbf16, #tpu.memory_space<vmem>>, vector<1x1x24xbf16>
    %19 = vector.shape_cast %18 : vector<1x1x24xbf16> to vector<1x24xbf16>
    %20 = arith.extf %19 : vector<1x24xbf16> to vector<1x24xf32>
    %21 = vector.broadcast %20 : vector<1x24xf32> to vector<64x24xf32>
    %22 = arith.addf %17, %21 : vector<64x24xf32>
    %c0_13 = arith.constant 0 : index
    %c0_14 = arith.constant 0 : index
    %c0_15 = arith.constant 0 : index
    %23 = vector.load %arg3[%c0_13, %c0_14, %c0_15] : memref<1x576x24xbf16, #tpu.memory_space<vmem>>, vector<1x576x24xbf16>
    %24 = vector.shape_cast %23 : vector<1x576x24xbf16> to vector<576x24xbf16>
    %25 = arith.extf %24 : vector<576x24xbf16> to vector<576x24xf32>
    %26 = arith.mulf %25, %25 : vector<576x24xf32>
    %27 = arith.truncf %26 : vector<576x24xf32> to vector<576x24xbf16>
    %cst_16 = arith.constant dense<0.000000e+00> : vector<576x3xf32>
    %28 = tpu.matmul %27, %0, %cst_16 {dimension_numbers = #tpu.dot_dimension_numbers<[1], [0], [0], [1], [0, 0, 1, 1], [], []>} : vector<576x24xbf16>, vector<24x3xbf16>, vector<576x3xf32> -> vector<576x3xf32>
    %29 = math.sqrt %28 : vector<576x3xf32>
    %cst_17 = arith.constant 9.99999996E-13 : f32
    %30 = vector.broadcast %cst_17 : f32 to vector<576x3xf32>
    %31 = arith.maximumf %29, %30 : vector<576x3xf32>
    %cst_18 = arith.constant 1.000000e+00 : f32
    %32 = vector.broadcast %cst_18 : f32 to vector<576x3xf32>
    %33 = arith.divf %32, %31 : vector<576x3xf32>
    %34 = arith.truncf %33 : vector<576x3xf32> to vector<576x3xbf16>
    %cst_19 = arith.constant dense<0.000000e+00> : vector<576x24xf32>
    %35 = tpu.matmul %34, %1, %cst_19 {dimension_numbers = #tpu.dot_dimension_numbers<[1], [0], [0], [1], [0, 0, 1, 1], [], []>} : vector<576x3xbf16>, vector<3x24xbf16>, vector<576x24xf32> -> vector<576x24xf32>
    %36 = arith.mulf %25, %35 : vector<576x24xf32>
    %37 = vector.shape_cast %36 : vector<576x24xf32> to vector<9x64x24xf32>
    %38 = vector.shape_cast %22 : vector<64x24xf32> to vector<1x64x24xf32>
    %39 = vector.broadcast %38 : vector<1x64x24xf32> to vector<9x64x24xf32>
    %40 = arith.mulf %37, %39 : vector<9x64x24xf32>
    %41 = vector.shape_cast %40 : vector<9x64x24xf32> to vector<576x24xf32>
    %42 = arith.truncf %41 : vector<576x24xf32> to vector<576x24xbf16>
    %cst_20 = arith.constant dense<0.000000e+00> : vector<576x3xf32>
    %43 = tpu.matmul %42, %0, %cst_20 {dimension_numbers = #tpu.dot_dimension_numbers<[1], [0], [0], [1], [0, 0, 1, 1], [], []>} : vector<576x24xbf16>, vector<24x3xbf16>, vector<576x3xf32> -> vector<576x3xf32>
    %44 = vector.shape_cast %43 : vector<576x3xf32> to vector<9x64x3xf32>
    %c0_21 = arith.constant 0 : index
    %c0_22 = arith.constant 0 : index
    %c0_23 = arith.constant 0 : index
    %45 = vector.load %arg5[%c0_21, %c0_22, %c0_23] : memref<9x1x3xf32, #tpu.memory_space<vmem>>, vector<9x1x3xf32>
    %46 = vector.broadcast %45 : vector<9x1x3xf32> to vector<9x64x3xf32>
    %47 = arith.addf %44, %46 : vector<9x64x3xf32>
    %cst_24 = arith.constant dense<0xFF800000> : vector<9x3xf32>
    %48 = vector.multi_reduction <maximumf>, %47, %cst_24 [1] : vector<9x64x3xf32> to vector<9x3xf32>
    %49 = vector.shape_cast %48 : vector<9x3xf32> to vector<9x1x3xf32>
    %50 = vector.broadcast %49 : vector<9x1x3xf32> to vector<9x64x3xf32>
    %51 = arith.subf %47, %50 : vector<9x64x3xf32>
    %52 = math.exp %51 : vector<9x64x3xf32>
    %cst_25 = arith.constant dense<0.000000e+00> : vector<9x3xf32>
    %53 = vector.multi_reduction <add>, %52, %cst_25 [1] : vector<9x64x3xf32> to vector<9x3xf32>
    %54 = vector.shape_cast %53 : vector<9x3xf32> to vector<9x1x3xf32>
    %55 = tpu.reciprocal %54 {approx = true} : vector<9x1x3xf32> -> vector<9x1x3xf32>
    %56 = vector.broadcast %55 : vector<9x1x3xf32> to vector<9x64x3xf32>
    %57 = arith.mulf %52, %56 : vector<9x64x3xf32>
    %58 = vector.shape_cast %57 : vector<9x64x3xf32> to vector<576x3xf32>
    %59 = arith.truncf %58 : vector<576x3xf32> to vector<576x3xbf16>
    %cst_26 = arith.constant dense<0.000000e+00> : vector<576x24xf32>
    %60 = tpu.matmul %59, %1, %cst_26 {dimension_numbers = #tpu.dot_dimension_numbers<[1], [0], [0], [1], [0, 0, 1, 1], [], []>} : vector<576x3xbf16>, vector<3x24xbf16>, vector<576x24xf32> -> vector<576x24xf32>
    %c0_27 = arith.constant 0 : index
    %c0_28 = arith.constant 0 : index
    %c0_29 = arith.constant 0 : index
    %61 = vector.load %arg4[%c0_27, %c0_28, %c0_29] : memref<1x576x24xbf16, #tpu.memory_space<vmem>>, vector<1x576x24xbf16>
    %62 = vector.shape_cast %61 : vector<1x576x24xbf16> to vector<576x24xbf16>
    %63 = arith.extf %62 : vector<576x24xbf16> to vector<576x24xf32>
    %64 = vector.shape_cast %63 : vector<576x24xf32> to vector<9x64x24xf32>
    %65 = vector.shape_cast %60 : vector<576x24xf32> to vector<9x64x24xf32>
    %66 = arith.mulf %64, %65 : vector<9x64x24xf32>
    %cst_30 = arith.constant dense<0.000000e+00> : vector<64x24xf32>
    %67 = vector.multi_reduction <add>, %66, %cst_30 [0] : vector<9x64x24xf32> to vector<64x24xf32>
    %68 = arith.truncf %67 : vector<64x24xf32> to vector<64x24xbf16>
    %c0_31 = arith.constant 0 : index
    %c0_32 = arith.constant 0 : index
    %69 = vector.load %arg8[%c0_31, %c0_32] : memref<24x24xbf16, #tpu.memory_space<vmem>>, vector<24x24xbf16>
    %cst_33 = arith.constant dense<0.000000e+00> : vector<64x24xf32>
    %70 = tpu.matmul %68, %69, %cst_33 {dimension_numbers = #tpu.dot_dimension_numbers<[1], [0], [0], [1], [0, 0, 1, 1], [], []>} : vector<64x24xbf16>, vector<24x24xbf16>, vector<64x24xf32> -> vector<64x24xf32>
    %c0_34 = arith.constant 0 : index
    %c0_35 = arith.constant 0 : index
    %71 = vector.load %arg9[%c0_34, %c0_35] : memref<1x24xf32, #tpu.memory_space<vmem>>, vector<1x24xf32>
    %72 = vector.broadcast %71 : vector<1x24xf32> to vector<64x24xf32>
    %73 = arith.addf %70, %72 : vector<64x24xf32>
    %c0_36 = arith.constant 0 : index
    %c0_37 = arith.constant 0 : index
    %c0_38 = arith.constant 0 : index
    %74 = vector.load %arg10[%c0_36, %c0_37, %c0_38] : memref<1x64x24xf32, #tpu.memory_space<vmem>>, vector<1x64x24xf32>
    %75 = vector.shape_cast %74 : vector<1x64x24xf32> to vector<64x24xf32>
    %76 = vector.shape_cast %73 : vector<64x24xf32> to vector<1x64x24xf32>
    tpu.vector_store %arg10[%c0_36, %c0_37, %c0_38], %76 {strides = array<i32>} : memref<1x64x24xf32, #tpu.memory_space<vmem>>, vector<1x64x24xf32>,
    return
  }
  func.func @transform_0(%arg0: i32) -> (i32, i32, i32) {
    %c0_i32 = arith.constant 0 : i32
    %c0_i32_0 = arith.constant 0 : i32
    %c0_i32_1 = arith.constant 0 : i32
    return %arg0, %c0_i32, %c0_i32_0 : i32, i32, i32
  }
  func.func @transform_1(%arg0: i32) -> (i32, i32, i32) {
    %c0_i32 = arith.constant 0 : i32
    %c0_i32_0 = arith.constant 0 : i32
    %c0_i32_1 = arith.constant 0 : i32
    return %arg0, %c0_i32, %c0_i32_0 : i32, i32, i32
  }
  func.func @transform_2(%arg0: i32) -> (i32, i32, i32) {
    %c0_i32 = arith.constant 0 : i32
    %c0_i32_0 = arith.constant 0 : i32
    %c0_i32_1 = arith.constant 0 : i32
    return %arg0, %c0_i32, %c0_i32_0 : i32, i32, i32
  }
  func.func @transform_3(%arg0: i32) -> (i32, i32, i32) {
    %c0_i32 = arith.constant 0 : i32
    %c0_i32_0 = arith.constant 0 : i32
    %c0_i32_1 = arith.constant 0 : i32
    return %arg0, %c0_i32, %c0_i32_0 : i32, i32, i32
  }
  func.func @transform_4(%arg0: i32) -> (i32, i32, i32) {
    %c0_i32 = arith.constant 0 : i32
    %c0_i32_0 = arith.constant 0 : i32
    %c0_i32_1 = arith.constant 0 : i32
    %c0_i32_2 = arith.constant 0 : i32
    return %c0_i32, %c0_i32_0, %c0_i32_1 : i32, i32, i32
  }
  func.func @transform_5(%arg0: i32) -> (i32, i32) {
    %c0_i32 = arith.constant 0 : i32
    %c0_i32_0 = arith.constant 0 : i32
    %c0_i32_1 = arith.constant 0 : i32
    return %c0_i32, %c0_i32_0 : i32, i32
  }
  func.func @transform_6(%arg0: i32) -> (i32, i32) {
    %c0_i32 = arith.constant 0 : i32
    %c0_i32_0 = arith.constant 0 : i32
    %c0_i32_1 = arith.constant 0 : i32
    return %c0_i32, %c0_i32_0 : i32, i32
  }
  func.func @transform_7(%arg0: i32) -> (i32, i32) {
    %c0_i32 = arith.constant 0 : i32
    %c0_i32_0 = arith.constant 0 : i32
    %c0_i32_1 = arith.constant 0 : i32
    return %c0_i32, %c0_i32_0 : i32, i32
  }
  func.func @transform_8(%arg0: i32) -> (i32, i32) {
    %c0_i32 = arith.constant 0 : i32
    %c0_i32_0 = arith.constant 0 : i32
    %c0_i32_1 = arith.constant 0 : i32
    return %c0_i32, %c0_i32_0 : i32, i32
  }
  func.func @transform_9(%arg0: i32) -> (i32, i32, i32) {
    %c0_i32 = arith.constant 0 : i32
    %c0_i32_0 = arith.constant 0 : i32
    %c0_i32_1 = arith.constant 0 : i32
    return %arg0, %c0_i32, %c0_i32_0 : i32, i32, i32
  }
}

module attributes {stable_mosaic.version = 11 : i64} {
  func.func @_linear_kernel(%arg0: i32, %arg1: i32, %arg2: memref<128x24xf32, #tpu.memory_space<vmem>>, %arg3: memref<24x96xbf16, #tpu.memory_space<vmem>>, %arg4: memref<1x96xf32, #tpu.memory_space<vmem>>, %arg5: memref<1x24xf32, #tpu.memory_space<vmem>>, %arg6: memref<1x24xf32, #tpu.memory_space<vmem>>, %arg7: memref<128x96xbf16, #tpu.memory_space<vmem>>) attributes {dimension_semantics = [#tpu.dimension_semantics<parallel>, #tpu.dimension_semantics<parallel>], iteration_bounds = array<i64: 1, 1>, scalar_prefetch = 0 : i64, scratch_operands = 0 : i64, tpu.core_type = #tpu.core_type<tc>, window_params = [{transform_indices = @transform_0, window_bounds = array<i64: 128, 24>}, {transform_indices = @transform_1, window_bounds = array<i64: 24, 96>}, {transform_indices = @transform_2, window_bounds = array<i64: 1, 96>}, {pipeline_mode = #tpu.pipeline_mode<synchronous>, transform_indices = @transform_3, window_bounds = array<i64: 1, 24>}, {pipeline_mode = #tpu.pipeline_mode<synchronous>, transform_indices = @transform_4, window_bounds = array<i64: 1, 24>}, {transform_indices = @transform_5, window_bounds = array<i64: 128, 96>}]} {
    %c0 = arith.constant 0 : index
    %c0_0 = arith.constant 0 : index
    %0 = vector.load %arg2[%c0, %c0_0] : memref<128x24xf32, #tpu.memory_space<vmem>>, vector<128x24xf32>
    %cst = arith.constant dense<0.000000e+00> : vector<128xf32>
    %1 = vector.multi_reduction <add>, %0, %cst [1] : vector<128x24xf32> to vector<128xf32>
    %2 = vector.shape_cast %1 : vector<128xf32> to vector<128x1xf32>
    %cst_1 = arith.constant 2.400000e+01 : f32
    %3 = vector.broadcast %cst_1 : f32 to vector<128x1xf32>
    %4 = arith.divf %2, %3 : vector<128x1xf32>
    %5 = vector.broadcast %4 : vector<128x1xf32> to vector<128x24xf32>
    %6 = arith.subf %0, %5 : vector<128x24xf32>
    %7 = arith.mulf %6, %6 : vector<128x24xf32>
    %cst_2 = arith.constant dense<0.000000e+00> : vector<128xf32>
    %8 = vector.multi_reduction <add>, %7, %cst_2 [1] : vector<128x24xf32> to vector<128xf32>
    %9 = vector.shape_cast %8 : vector<128xf32> to vector<128x1xf32>
    %cst_3 = arith.constant 2.400000e+01 : f32
    %10 = vector.broadcast %cst_3 : f32 to vector<128x1xf32>
    %11 = arith.divf %9, %10 : vector<128x1xf32>
    %12 = vector.broadcast %4 : vector<128x1xf32> to vector<128x24xf32>
    %13 = arith.subf %0, %12 : vector<128x24xf32>
    %cst_4 = arith.constant 9.99999974E-6 : f32
    %14 = vector.broadcast %cst_4 : f32 to vector<128x1xf32>
    %15 = arith.addf %11, %14 : vector<128x1xf32>
    %16 = math.rsqrt %15 : vector<128x1xf32>
    %17 = vector.broadcast %16 : vector<128x1xf32> to vector<128x24xf32>
    %18 = arith.mulf %13, %17 : vector<128x24xf32>
    %c0_5 = arith.constant 0 : index
    %c0_6 = arith.constant 0 : index
    %19 = vector.load %arg5[%c0_5, %c0_6] : memref<1x24xf32, #tpu.memory_space<vmem>>, vector<1x24xf32>
    %20 = vector.broadcast %19 : vector<1x24xf32> to vector<128x24xf32>
    %21 = arith.mulf %18, %20 : vector<128x24xf32>
    %c0_7 = arith.constant 0 : index
    %c0_8 = arith.constant 0 : index
    %22 = vector.load %arg6[%c0_7, %c0_8] : memref<1x24xf32, #tpu.memory_space<vmem>>, vector<1x24xf32>
    %23 = vector.broadcast %22 : vector<1x24xf32> to vector<128x24xf32>
    %24 = arith.addf %21, %23 : vector<128x24xf32>
    %25 = arith.truncf %24 : vector<128x24xf32> to vector<128x24xbf16>
    %c0_9 = arith.constant 0 : index
    %c0_10 = arith.constant 0 : index
    %26 = vector.load %arg3[%c0_9, %c0_10] : memref<24x96xbf16, #tpu.memory_space<vmem>>, vector<24x96xbf16>
    %cst_11 = arith.constant dense<0.000000e+00> : vector<128x96xf32>
    %27 = tpu.matmul %25, %26, %cst_11 {dimension_numbers = #tpu.dot_dimension_numbers<[1], [0], [0], [1], [0, 0, 1, 1], [], []>} : vector<128x24xbf16>, vector<24x96xbf16>, vector<128x96xf32> -> vector<128x96xf32>
    %c0_12 = arith.constant 0 : index
    %c0_13 = arith.constant 0 : index
    %28 = vector.load %arg4[%c0_12, %c0_13] : memref<1x96xf32, #tpu.memory_space<vmem>>, vector<1x96xf32>
    %29 = vector.broadcast %28 : vector<1x96xf32> to vector<128x96xf32>
    %30 = arith.addf %27, %29 : vector<128x96xf32>
    %31 = arith.truncf %30 : vector<128x96xf32> to vector<128x96xbf16>
    %c0_14 = arith.constant 0 : index
    %c0_15 = arith.constant 0 : index
    %32 = vector.load %arg7[%c0_14, %c0_15] : memref<128x96xbf16, #tpu.memory_space<vmem>>, vector<128x96xbf16>
    tpu.vector_store %arg7[%c0_14, %c0_15], %31 {strides = array<i32>} : memref<128x96xbf16, #tpu.memory_space<vmem>>, vector<128x96xbf16>,
    return
  }
  func.func @transform_0(%arg0: i32, %arg1: i32) -> (i32, i32) {
    %c0_i32 = arith.constant 0 : i32
    %c0_i32_0 = arith.constant 0 : i32
    return %arg0, %c0_i32 : i32, i32
  }
  func.func @transform_1(%arg0: i32, %arg1: i32) -> (i32, i32) {
    %c0_i32 = arith.constant 0 : i32
    %c0_i32_0 = arith.constant 0 : i32
    return %c0_i32, %arg1 : i32, i32
  }
  func.func @transform_2(%arg0: i32, %arg1: i32) -> (i32, i32) {
    %c0_i32 = arith.constant 0 : i32
    %c0_i32_0 = arith.constant 0 : i32
    return %c0_i32, %arg1 : i32, i32
  }
  func.func @transform_3(%arg0: i32, %arg1: i32) -> (i32, i32) {
    %c0_i32 = arith.constant 0 : i32
    %c0_i32_0 = arith.constant 0 : i32
    %c0_i32_1 = arith.constant 0 : i32
    return %c0_i32, %c0_i32_0 : i32, i32
  }
  func.func @transform_4(%arg0: i32, %arg1: i32) -> (i32, i32) {
    %c0_i32 = arith.constant 0 : i32
    %c0_i32_0 = arith.constant 0 : i32
    %c0_i32_1 = arith.constant 0 : i32
    return %c0_i32, %c0_i32_0 : i32, i32
  }
  func.func @transform_5(%arg0: i32, %arg1: i32) -> (i32, i32) {
    %c0_i32 = arith.constant 0 : i32
    return %arg0, %arg1 : i32, i32
  }
}

module attributes {stable_mosaic.version = 11 : i64} {
  func.func @_linear_kernel(%arg0: i32, %arg1: i32, %arg2: memref<128x96xbf16, #tpu.memory_space<vmem>>, %arg3: memref<96x24xbf16, #tpu.memory_space<vmem>>, %arg4: memref<1x24xf32, #tpu.memory_space<vmem>>, %arg5: memref<1x96xf32, #tpu.memory_space<vmem>>, %arg6: memref<1x96xf32, #tpu.memory_space<vmem>>, %arg7: memref<128x24xf32, #tpu.memory_space<vmem>>) attributes {dimension_semantics = [#tpu.dimension_semantics<parallel>, #tpu.dimension_semantics<parallel>], iteration_bounds = array<i64: 1, 1>, scalar_prefetch = 0 : i64, scratch_operands = 0 : i64, tpu.core_type = #tpu.core_type<tc>, window_params = [{transform_indices = @transform_0, window_bounds = array<i64: 128, 96>}, {transform_indices = @transform_1, window_bounds = array<i64: 96, 24>}, {transform_indices = @transform_2, window_bounds = array<i64: 1, 24>}, {pipeline_mode = #tpu.pipeline_mode<synchronous>, transform_indices = @transform_3, window_bounds = array<i64: 1, 96>}, {pipeline_mode = #tpu.pipeline_mode<synchronous>, transform_indices = @transform_4, window_bounds = array<i64: 1, 96>}, {transform_indices = @transform_5, window_bounds = array<i64: 128, 24>}]} {
    %c0 = arith.constant 0 : index
    %c0_0 = arith.constant 0 : index
    %0 = vector.load %arg2[%c0, %c0_0] : memref<128x96xbf16, #tpu.memory_space<vmem>>, vector<128x96xbf16>
    %c0_1 = arith.constant 0 : index
    %c0_2 = arith.constant 0 : index
    %1 = vector.load %arg3[%c0_1, %c0_2] : memref<96x24xbf16, #tpu.memory_space<vmem>>, vector<96x24xbf16>
    %cst = arith.constant dense<0.000000e+00> : vector<128x24xf32>
    %2 = tpu.matmul %0, %1, %cst {dimension_numbers = #tpu.dot_dimension_numbers<[1], [0], [0], [1], [0, 0, 1, 1], [], []>} : vector<128x96xbf16>, vector<96x24xbf16>, vector<128x24xf32> -> vector<128x24xf32>
    %c0_3 = arith.constant 0 : index
    %c0_4 = arith.constant 0 : index
    %3 = vector.load %arg4[%c0_3, %c0_4] : memref<1x24xf32, #tpu.memory_space<vmem>>, vector<1x24xf32>
    %4 = vector.broadcast %3 : vector<1x24xf32> to vector<128x24xf32>
    %5 = arith.addf %2, %4 : vector<128x24xf32>
    %c0_5 = arith.constant 0 : index
    %c0_6 = arith.constant 0 : index
    %6 = vector.load %arg7[%c0_5, %c0_6] : memref<128x24xf32, #tpu.memory_space<vmem>>, vector<128x24xf32>
    tpu.vector_store %arg7[%c0_5, %c0_6], %5 {strides = array<i32>} : memref<128x24xf32, #tpu.memory_space<vmem>>, vector<128x24xf32>,
    return
  }
  func.func @transform_0(%arg0: i32, %arg1: i32) -> (i32, i32) {
    %c0_i32 = arith.constant 0 : i32
    %c0_i32_0 = arith.constant 0 : i32
    return %arg0, %c0_i32 : i32, i32
  }
  func.func @transform_1(%arg0: i32, %arg1: i32) -> (i32, i32) {
    %c0_i32 = arith.constant 0 : i32
    %c0_i32_0 = arith.constant 0 : i32
    return %c0_i32, %arg1 : i32, i32
  }
  func.func @transform_2(%arg0: i32, %arg1: i32) -> (i32, i32) {
    %c0_i32 = arith.constant 0 : i32
    %c0_i32_0 = arith.constant 0 : i32
    return %c0_i32, %arg1 : i32, i32
  }
  func.func @transform_3(%arg0: i32, %arg1: i32) -> (i32, i32) {
    %c0_i32 = arith.constant 0 : i32
    %c0_i32_0 = arith.constant 0 : i32
    %c0_i32_1 = arith.constant 0 : i32
    return %c0_i32, %c0_i32_0 : i32, i32
  }
  func.func @transform_4(%arg0: i32, %arg1: i32) -> (i32, i32) {
    %c0_i32 = arith.constant 0 : i32
    %c0_i32_0 = arith.constant 0 : i32
    %c0_i32_1 = arith.constant 0 : i32
    return %c0_i32, %c0_i32_0 : i32, i32
  }
  func.func @transform_5(%arg0: i32, %arg1: i32) -> (i32, i32) {
    %c0_i32 = arith.constant 0 : i32
    return %arg0, %arg1 : i32, i32
  }
}

module attributes {stable_mosaic.version = 11 : i64} {
  func.func @_linear_kernel(%arg0: i32, %arg1: i32, %arg2: memref<32x96xf32, #tpu.memory_space<vmem>>, %arg3: memref<96x48xbf16, #tpu.memory_space<vmem>>, %arg4: memref<1x48xf32, #tpu.memory_space<vmem>>, %arg5: memref<1x96xf32, #tpu.memory_space<vmem>>, %arg6: memref<1x96xf32, #tpu.memory_space<vmem>>, %arg7: memref<32x48xf32, #tpu.memory_space<vmem>>) attributes {dimension_semantics = [#tpu.dimension_semantics<parallel>, #tpu.dimension_semantics<parallel>], iteration_bounds = array<i64: 1, 1>, scalar_prefetch = 0 : i64, scratch_operands = 0 : i64, tpu.core_type = #tpu.core_type<tc>, window_params = [{transform_indices = @transform_0, window_bounds = array<i64: 32, 96>}, {transform_indices = @transform_1, window_bounds = array<i64: 96, 48>}, {transform_indices = @transform_2, window_bounds = array<i64: 1, 48>}, {pipeline_mode = #tpu.pipeline_mode<synchronous>, transform_indices = @transform_3, window_bounds = array<i64: 1, 96>}, {pipeline_mode = #tpu.pipeline_mode<synchronous>, transform_indices = @transform_4, window_bounds = array<i64: 1, 96>}, {transform_indices = @transform_5, window_bounds = array<i64: 32, 48>}]} {
    %c0 = arith.constant 0 : index
    %c0_0 = arith.constant 0 : index
    %0 = vector.load %arg2[%c0, %c0_0] : memref<32x96xf32, #tpu.memory_space<vmem>>, vector<32x96xf32>
    %cst = arith.constant dense<0.000000e+00> : vector<32xf32>
    %1 = vector.multi_reduction <add>, %0, %cst [1] : vector<32x96xf32> to vector<32xf32>
    %2 = vector.shape_cast %1 : vector<32xf32> to vector<32x1xf32>
    %cst_1 = arith.constant 9.600000e+01 : f32
    %3 = vector.broadcast %cst_1 : f32 to vector<32x1xf32>
    %4 = arith.divf %2, %3 : vector<32x1xf32>
    %5 = vector.broadcast %4 : vector<32x1xf32> to vector<32x96xf32>
    %6 = arith.subf %0, %5 : vector<32x96xf32>
    %7 = arith.mulf %6, %6 : vector<32x96xf32>
    %cst_2 = arith.constant dense<0.000000e+00> : vector<32xf32>
    %8 = vector.multi_reduction <add>, %7, %cst_2 [1] : vector<32x96xf32> to vector<32xf32>
    %9 = vector.shape_cast %8 : vector<32xf32> to vector<32x1xf32>
    %cst_3 = arith.constant 9.600000e+01 : f32
    %10 = vector.broadcast %cst_3 : f32 to vector<32x1xf32>
    %11 = arith.divf %9, %10 : vector<32x1xf32>
    %12 = vector.broadcast %4 : vector<32x1xf32> to vector<32x96xf32>
    %13 = arith.subf %0, %12 : vector<32x96xf32>
    %cst_4 = arith.constant 9.99999974E-6 : f32
    %14 = vector.broadcast %cst_4 : f32 to vector<32x1xf32>
    %15 = arith.addf %11, %14 : vector<32x1xf32>
    %16 = math.rsqrt %15 : vector<32x1xf32>
    %17 = vector.broadcast %16 : vector<32x1xf32> to vector<32x96xf32>
    %18 = arith.mulf %13, %17 : vector<32x96xf32>
    %c0_5 = arith.constant 0 : index
    %c0_6 = arith.constant 0 : index
    %19 = vector.load %arg5[%c0_5, %c0_6] : memref<1x96xf32, #tpu.memory_space<vmem>>, vector<1x96xf32>
    %20 = vector.broadcast %19 : vector<1x96xf32> to vector<32x96xf32>
    %21 = arith.mulf %18, %20 : vector<32x96xf32>
    %c0_7 = arith.constant 0 : index
    %c0_8 = arith.constant 0 : index
    %22 = vector.load %arg6[%c0_7, %c0_8] : memref<1x96xf32, #tpu.memory_space<vmem>>, vector<1x96xf32>
    %23 = vector.broadcast %22 : vector<1x96xf32> to vector<32x96xf32>
    %24 = arith.addf %21, %23 : vector<32x96xf32>
    %25 = arith.truncf %24 : vector<32x96xf32> to vector<32x96xbf16>
    %c0_9 = arith.constant 0 : index
    %c0_10 = arith.constant 0 : index
    %26 = vector.load %arg3[%c0_9, %c0_10] : memref<96x48xbf16, #tpu.memory_space<vmem>>, vector<96x48xbf16>
    %cst_11 = arith.constant dense<0.000000e+00> : vector<32x48xf32>
    %27 = tpu.matmul %25, %26, %cst_11 {dimension_numbers = #tpu.dot_dimension_numbers<[1], [0], [0], [1], [0, 0, 1, 1], [], []>} : vector<32x96xbf16>, vector<96x48xbf16>, vector<32x48xf32> -> vector<32x48xf32>
    %c0_12 = arith.constant 0 : index
    %c0_13 = arith.constant 0 : index
    %28 = vector.load %arg4[%c0_12, %c0_13] : memref<1x48xf32, #tpu.memory_space<vmem>>, vector<1x48xf32>
    %29 = vector.broadcast %28 : vector<1x48xf32> to vector<32x48xf32>
    %30 = arith.addf %27, %29 : vector<32x48xf32>
    %c0_14 = arith.constant 0 : index
    %c0_15 = arith.constant 0 : index
    %31 = vector.load %arg7[%c0_14, %c0_15] : memref<32x48xf32, #tpu.memory_space<vmem>>, vector<32x48xf32>
    tpu.vector_store %arg7[%c0_14, %c0_15], %30 {strides = array<i32>} : memref<32x48xf32, #tpu.memory_space<vmem>>, vector<32x48xf32>,
    return
  }
  func.func @transform_0(%arg0: i32, %arg1: i32) -> (i32, i32) {
    %c0_i32 = arith.constant 0 : i32
    %c0_i32_0 = arith.constant 0 : i32
    return %arg0, %c0_i32 : i32, i32
  }
  func.func @transform_1(%arg0: i32, %arg1: i32) -> (i32, i32) {
    %c0_i32 = arith.constant 0 : i32
    %c0_i32_0 = arith.constant 0 : i32
    return %c0_i32, %arg1 : i32, i32
  }
  func.func @transform_2(%arg0: i32, %arg1: i32) -> (i32, i32) {
    %c0_i32 = arith.constant 0 : i32
    %c0_i32_0 = arith.constant 0 : i32
    return %c0_i32, %arg1 : i32, i32
  }
  func.func @transform_3(%arg0: i32, %arg1: i32) -> (i32, i32) {
    %c0_i32 = arith.constant 0 : i32
    %c0_i32_0 = arith.constant 0 : i32
    %c0_i32_1 = arith.constant 0 : i32
    return %c0_i32, %c0_i32_0 : i32, i32
  }
  func.func @transform_4(%arg0: i32, %arg1: i32) -> (i32, i32) {
    %c0_i32 = arith.constant 0 : i32
    %c0_i32_0 = arith.constant 0 : i32
    %c0_i32_1 = arith.constant 0 : i32
    return %c0_i32, %c0_i32_0 : i32, i32
  }
  func.func @transform_5(%arg0: i32, %arg1: i32) -> (i32, i32) {
    %c0_i32 = arith.constant 0 : i32
    return %arg0, %arg1 : i32, i32
  }
}

module attributes {stable_mosaic.version = 11 : i64} {
  func.func @_layernorm_kernel(%arg0: i32, %arg1: memref<32x48xf32, #tpu.memory_space<vmem>>, %arg2: memref<1x48xf32, #tpu.memory_space<vmem>>, %arg3: memref<1x48xf32, #tpu.memory_space<vmem>>, %arg4: memref<32x48xf32, #tpu.memory_space<vmem>>) attributes {dimension_semantics = [#tpu.dimension_semantics<parallel>], iteration_bounds = array<i64: 1>, scalar_prefetch = 0 : i64, scratch_operands = 0 : i64, tpu.core_type = #tpu.core_type<tc>, window_params = [{transform_indices = @transform_0, window_bounds = array<i64: 32, 48>}, {pipeline_mode = #tpu.pipeline_mode<synchronous>, transform_indices = @transform_1, window_bounds = array<i64: 1, 48>}, {pipeline_mode = #tpu.pipeline_mode<synchronous>, transform_indices = @transform_2, window_bounds = array<i64: 1, 48>}, {transform_indices = @transform_3, window_bounds = array<i64: 32, 48>}]} {
    %c0 = arith.constant 0 : index
    %c0_0 = arith.constant 0 : index
    %0 = vector.load %arg1[%c0, %c0_0] : memref<32x48xf32, #tpu.memory_space<vmem>>, vector<32x48xf32>
    %cst = arith.constant dense<0.000000e+00> : vector<32xf32>
    %1 = vector.multi_reduction <add>, %0, %cst [1] : vector<32x48xf32> to vector<32xf32>
    %2 = vector.shape_cast %1 : vector<32xf32> to vector<32x1xf32>
    %cst_1 = arith.constant 4.800000e+01 : f32
    %3 = vector.broadcast %cst_1 : f32 to vector<32x1xf32>
    %4 = arith.divf %2, %3 : vector<32x1xf32>
    %5 = vector.broadcast %4 : vector<32x1xf32> to vector<32x48xf32>
    %6 = arith.subf %0, %5 : vector<32x48xf32>
    %7 = arith.mulf %6, %6 : vector<32x48xf32>
    %cst_2 = arith.constant dense<0.000000e+00> : vector<32xf32>
    %8 = vector.multi_reduction <add>, %7, %cst_2 [1] : vector<32x48xf32> to vector<32xf32>
    %9 = vector.shape_cast %8 : vector<32xf32> to vector<32x1xf32>
    %cst_3 = arith.constant 4.800000e+01 : f32
    %10 = vector.broadcast %cst_3 : f32 to vector<32x1xf32>
    %11 = arith.divf %9, %10 : vector<32x1xf32>
    %12 = vector.broadcast %4 : vector<32x1xf32> to vector<32x48xf32>
    %13 = arith.subf %0, %12 : vector<32x48xf32>
    %cst_4 = arith.constant 9.99999974E-6 : f32
    %14 = vector.broadcast %cst_4 : f32 to vector<32x1xf32>
    %15 = arith.addf %11, %14 : vector<32x1xf32>
    %16 = math.rsqrt %15 : vector<32x1xf32>
    %17 = vector.broadcast %16 : vector<32x1xf32> to vector<32x48xf32>
    %18 = arith.mulf %13, %17 : vector<32x48xf32>
    %c0_5 = arith.constant 0 : index
    %c0_6 = arith.constant 0 : index
    %19 = vector.load %arg2[%c0_5, %c0_6] : memref<1x48xf32, #tpu.memory_space<vmem>>, vector<1x48xf32>
    %20 = vector.broadcast %19 : vector<1x48xf32> to vector<32x48xf32>
    %21 = arith.mulf %18, %20 : vector<32x48xf32>
    %c0_7 = arith.constant 0 : index
    %c0_8 = arith.constant 0 : index
    %22 = vector.load %arg3[%c0_7, %c0_8] : memref<1x48xf32, #tpu.memory_space<vmem>>, vector<1x48xf32>
    %23 = vector.broadcast %22 : vector<1x48xf32> to vector<32x48xf32>
    %24 = arith.addf %21, %23 : vector<32x48xf32>
    %c0_9 = arith.constant 0 : index
    %c0_10 = arith.constant 0 : index
    %25 = vector.load %arg4[%c0_9, %c0_10] : memref<32x48xf32, #tpu.memory_space<vmem>>, vector<32x48xf32>
    tpu.vector_store %arg4[%c0_9, %c0_10], %24 {strides = array<i32>} : memref<32x48xf32, #tpu.memory_space<vmem>>, vector<32x48xf32>,
    return
  }
  func.func @transform_0(%arg0: i32) -> (i32, i32) {
    %c0_i32 = arith.constant 0 : i32
    %c0_i32_0 = arith.constant 0 : i32
    return %arg0, %c0_i32 : i32, i32
  }
  func.func @transform_1(%arg0: i32) -> (i32, i32) {
    %c0_i32 = arith.constant 0 : i32
    %c0_i32_0 = arith.constant 0 : i32
    %c0_i32_1 = arith.constant 0 : i32
    return %c0_i32, %c0_i32_0 : i32, i32
  }
  func.func @transform_2(%arg0: i32) -> (i32, i32) {
    %c0_i32 = arith.constant 0 : i32
    %c0_i32_0 = arith.constant 0 : i32
    %c0_i32_1 = arith.constant 0 : i32
    return %c0_i32, %c0_i32_0 : i32, i32
  }
  func.func @transform_3(%arg0: i32) -> (i32, i32) {
    %c0_i32 = arith.constant 0 : i32
    %c0_i32_0 = arith.constant 0 : i32
    return %arg0, %c0_i32 : i32, i32
  }
}

module attributes {stable_mosaic.version = 11 : i64} {
  func.func @_linear_kernel(%arg0: i32, %arg1: i32, %arg2: memref<32x48xbf16, #tpu.memory_space<vmem>>, %arg3: memref<48x144xbf16, #tpu.memory_space<vmem>>, %arg4: memref<1x144xf32, #tpu.memory_space<vmem>>, %arg5: memref<1x48xf32, #tpu.memory_space<vmem>>, %arg6: memref<1x48xf32, #tpu.memory_space<vmem>>, %arg7: memref<32x144xbf16, #tpu.memory_space<vmem>>) attributes {dimension_semantics = [#tpu.dimension_semantics<parallel>, #tpu.dimension_semantics<parallel>], iteration_bounds = array<i64: 1, 1>, scalar_prefetch = 0 : i64, scratch_operands = 0 : i64, tpu.core_type = #tpu.core_type<tc>, window_params = [{transform_indices = @transform_0, window_bounds = array<i64: 32, 48>}, {transform_indices = @transform_1, window_bounds = array<i64: 48, 144>}, {transform_indices = @transform_2, window_bounds = array<i64: 1, 144>}, {pipeline_mode = #tpu.pipeline_mode<synchronous>, transform_indices = @transform_3, window_bounds = array<i64: 1, 48>}, {pipeline_mode = #tpu.pipeline_mode<synchronous>, transform_indices = @transform_4, window_bounds = array<i64: 1, 48>}, {transform_indices = @transform_5, window_bounds = array<i64: 32, 144>}]} {
    %c0 = arith.constant 0 : index
    %c0_0 = arith.constant 0 : index
    %0 = vector.load %arg2[%c0, %c0_0] : memref<32x48xbf16, #tpu.memory_space<vmem>>, vector<32x48xbf16>
    %c0_1 = arith.constant 0 : index
    %c0_2 = arith.constant 0 : index
    %1 = vector.load %arg3[%c0_1, %c0_2] : memref<48x144xbf16, #tpu.memory_space<vmem>>, vector<48x144xbf16>
    %cst = arith.constant dense<0.000000e+00> : vector<32x144xf32>
    %2 = tpu.matmul %0, %1, %cst {dimension_numbers = #tpu.dot_dimension_numbers<[1], [0], [0], [1], [0, 0, 1, 1], [], []>} : vector<32x48xbf16>, vector<48x144xbf16>, vector<32x144xf32> -> vector<32x144xf32>
    %c0_3 = arith.constant 0 : index
    %c0_4 = arith.constant 0 : index
    %3 = vector.load %arg4[%c0_3, %c0_4] : memref<1x144xf32, #tpu.memory_space<vmem>>, vector<1x144xf32>
    %4 = vector.broadcast %3 : vector<1x144xf32> to vector<32x144xf32>
    %5 = arith.addf %2, %4 : vector<32x144xf32>
    %6 = arith.truncf %5 : vector<32x144xf32> to vector<32x144xbf16>
    %c0_5 = arith.constant 0 : index
    %c0_6 = arith.constant 0 : index
    %7 = vector.load %arg7[%c0_5, %c0_6] : memref<32x144xbf16, #tpu.memory_space<vmem>>, vector<32x144xbf16>
    tpu.vector_store %arg7[%c0_5, %c0_6], %6 {strides = array<i32>} : memref<32x144xbf16, #tpu.memory_space<vmem>>, vector<32x144xbf16>,
    return
  }
  func.func @transform_0(%arg0: i32, %arg1: i32) -> (i32, i32) {
    %c0_i32 = arith.constant 0 : i32
    %c0_i32_0 = arith.constant 0 : i32
    return %arg0, %c0_i32 : i32, i32
  }
  func.func @transform_1(%arg0: i32, %arg1: i32) -> (i32, i32) {
    %c0_i32 = arith.constant 0 : i32
    %c0_i32_0 = arith.constant 0 : i32
    return %c0_i32, %arg1 : i32, i32
  }
  func.func @transform_2(%arg0: i32, %arg1: i32) -> (i32, i32) {
    %c0_i32 = arith.constant 0 : i32
    %c0_i32_0 = arith.constant 0 : i32
    return %c0_i32, %arg1 : i32, i32
  }
  func.func @transform_3(%arg0: i32, %arg1: i32) -> (i32, i32) {
    %c0_i32 = arith.constant 0 : i32
    %c0_i32_0 = arith.constant 0 : i32
    %c0_i32_1 = arith.constant 0 : i32
    return %c0_i32, %c0_i32_0 : i32, i32
  }
  func.func @transform_4(%arg0: i32, %arg1: i32) -> (i32, i32) {
    %c0_i32 = arith.constant 0 : i32
    %c0_i32_0 = arith.constant 0 : i32
    %c0_i32_1 = arith.constant 0 : i32
    return %c0_i32, %c0_i32_0 : i32, i32
  }
  func.func @transform_5(%arg0: i32, %arg1: i32) -> (i32, i32) {
    %c0_i32 = arith.constant 0 : i32
    return %arg0, %arg1 : i32, i32
  }
}

module attributes {stable_mosaic.version = 11 : i64} {
  func.func @_pcw_attn_kernel(%arg0: i32, %arg1: memref<1x16x48xbf16, #tpu.memory_space<vmem>>, %arg2: memref<1x1x48xbf16, #tpu.memory_space<vmem>>, %arg3: memref<1x144x48xbf16, #tpu.memory_space<vmem>>, %arg4: memref<1x144x48xbf16, #tpu.memory_space<vmem>>, %arg5: memref<9x1x6xf32, #tpu.memory_space<vmem>>, %arg6: memref<48x6xbf16, #tpu.memory_space<vmem>>, %arg7: memref<6x48xbf16, #tpu.memory_space<vmem>>, %arg8: memref<48x48xbf16, #tpu.memory_space<vmem>>, %arg9: memref<1x48xf32, #tpu.memory_space<vmem>>, %arg10: memref<1x16x48xf32, #tpu.memory_space<vmem>>) attributes {dimension_semantics = [#tpu.dimension_semantics<parallel>], iteration_bounds = array<i64: 2>, scalar_prefetch = 0 : i64, scratch_operands = 0 : i64, tpu.core_type = #tpu.core_type<tc>, window_params = [{transform_indices = @transform_0, window_bounds = array<i64: 1, 16, 48>}, {transform_indices = @transform_1, window_bounds = array<i64: 1, 1, 48>}, {transform_indices = @transform_2, window_bounds = array<i64: 1, 144, 48>}, {transform_indices = @transform_3, window_bounds = array<i64: 1, 144, 48>}, {pipeline_mode = #tpu.pipeline_mode<synchronous>, transform_indices = @transform_4, window_bounds = array<i64: 9, 1, 6>}, {pipeline_mode = #tpu.pipeline_mode<synchronous>, transform_indices = @transform_5, window_bounds = array<i64: 48, 6>}, {pipeline_mode = #tpu.pipeline_mode<synchronous>, transform_indices = @transform_6, window_bounds = array<i64: 6, 48>}, {pipeline_mode = #tpu.pipeline_mode<synchronous>, transform_indices = @transform_7, window_bounds = array<i64: 48, 48>}, {pipeline_mode = #tpu.pipeline_mode<synchronous>, transform_indices = @transform_8, window_bounds = array<i64: 1, 48>}, {transform_indices = @transform_9, window_bounds = array<i64: 1, 16, 48>}]} {
    %c0 = arith.constant 0 : index
    %c0_0 = arith.constant 0 : index
    %0 = vector.load %arg6[%c0, %c0_0] : memref<48x6xbf16, #tpu.memory_space<vmem>>, vector<48x6xbf16>
    %c0_1 = arith.constant 0 : index
    %c0_2 = arith.constant 0 : index
    %1 = vector.load %arg7[%c0_1, %c0_2] : memref<6x48xbf16, #tpu.memory_space<vmem>>, vector<6x48xbf16>
    %c0_3 = arith.constant 0 : index
    %c0_4 = arith.constant 0 : index
    %c0_5 = arith.constant 0 : index
    %2 = vector.load %arg1[%c0_3, %c0_4, %c0_5] : memref<1x16x48xbf16, #tpu.memory_space<vmem>>, vector<1x16x48xbf16>
    %3 = vector.shape_cast %2 : vector<1x16x48xbf16> to vector<16x48xbf16>
    %4 = arith.extf %3 : vector<16x48xbf16> to vector<16x48xf32>
    %5 = arith.mulf %4, %4 : vector<16x48xf32>
    %6 = arith.truncf %5 : vector<16x48xf32> to vector<16x48xbf16>
    %cst = arith.constant dense<0.000000e+00> : vector<16x6xf32>
    %7 = tpu.matmul %6, %0, %cst {dimension_numbers = #tpu.dot_dimension_numbers<[1], [0], [0], [1], [0, 0, 1, 1], [], []>} : vector<16x48xbf16>, vector<48x6xbf16>, vector<16x6xf32> -> vector<16x6xf32>
    %8 = math.sqrt %7 : vector<16x6xf32>
    %cst_6 = arith.constant 9.99999996E-13 : f32
    %9 = vector.broadcast %cst_6 : f32 to vector<16x6xf32>
    %10 = arith.maximumf %8, %9 : vector<16x6xf32>
    %cst_7 = arith.constant 1.000000e+00 : f32
    %11 = vector.broadcast %cst_7 : f32 to vector<16x6xf32>
    %12 = arith.divf %11, %10 : vector<16x6xf32>
    %13 = arith.truncf %12 : vector<16x6xf32> to vector<16x6xbf16>
    %cst_8 = arith.constant dense<0.000000e+00> : vector<16x48xf32>
    %14 = tpu.matmul %13, %1, %cst_8 {dimension_numbers = #tpu.dot_dimension_numbers<[1], [0], [0], [1], [0, 0, 1, 1], [], []>} : vector<16x6xbf16>, vector<6x48xbf16>, vector<16x48xf32> -> vector<16x48xf32>
    %15 = arith.mulf %4, %14 : vector<16x48xf32>
    %cst_9 = arith.constant 0.353553385 : f32
    %16 = vector.broadcast %cst_9 : f32 to vector<16x48xf32>
    %17 = arith.mulf %15, %16 : vector<16x48xf32>
    %c0_10 = arith.constant 0 : index
    %c0_11 = arith.constant 0 : index
    %c0_12 = arith.constant 0 : index
    %18 = vector.load %arg2[%c0_10, %c0_11, %c0_12] : memref<1x1x48xbf16, #tpu.memory_space<vmem>>, vector<1x1x48xbf16>
    %19 = vector.shape_cast %18 : vector<1x1x48xbf16> to vector<1x48xbf16>
    %20 = arith.extf %19 : vector<1x48xbf16> to vector<1x48xf32>
    %21 = vector.broadcast %20 : vector<1x48xf32> to vector<16x48xf32>
    %22 = arith.addf %17, %21 : vector<16x48xf32>
    %c0_13 = arith.constant 0 : index
    %c0_14 = arith.constant 0 : index
    %c0_15 = arith.constant 0 : index
    %23 = vector.load %arg3[%c0_13, %c0_14, %c0_15] : memref<1x144x48xbf16, #tpu.memory_space<vmem>>, vector<1x144x48xbf16>
    %24 = vector.shape_cast %23 : vector<1x144x48xbf16> to vector<144x48xbf16>
    %25 = arith.extf %24 : vector<144x48xbf16> to vector<144x48xf32>
    %26 = arith.mulf %25, %25 : vector<144x48xf32>
    %27 = arith.truncf %26 : vector<144x48xf32> to vector<144x48xbf16>
    %cst_16 = arith.constant dense<0.000000e+00> : vector<144x6xf32>
    %28 = tpu.matmul %27, %0, %cst_16 {dimension_numbers = #tpu.dot_dimension_numbers<[1], [0], [0], [1], [0, 0, 1, 1], [], []>} : vector<144x48xbf16>, vector<48x6xbf16>, vector<144x6xf32> -> vector<144x6xf32>
    %29 = math.sqrt %28 : vector<144x6xf32>
    %cst_17 = arith.constant 9.99999996E-13 : f32
    %30 = vector.broadcast %cst_17 : f32 to vector<144x6xf32>
    %31 = arith.maximumf %29, %30 : vector<144x6xf32>
    %cst_18 = arith.constant 1.000000e+00 : f32
    %32 = vector.broadcast %cst_18 : f32 to vector<144x6xf32>
    %33 = arith.divf %32, %31 : vector<144x6xf32>
    %34 = arith.truncf %33 : vector<144x6xf32> to vector<144x6xbf16>
    %cst_19 = arith.constant dense<0.000000e+00> : vector<144x48xf32>
    %35 = tpu.matmul %34, %1, %cst_19 {dimension_numbers = #tpu.dot_dimension_numbers<[1], [0], [0], [1], [0, 0, 1, 1], [], []>} : vector<144x6xbf16>, vector<6x48xbf16>, vector<144x48xf32> -> vector<144x48xf32>
    %36 = arith.mulf %25, %35 : vector<144x48xf32>
    %37 = vector.shape_cast %36 : vector<144x48xf32> to vector<9x16x48xf32>
    %38 = vector.shape_cast %22 : vector<16x48xf32> to vector<1x16x48xf32>
    %39 = vector.broadcast %38 : vector<1x16x48xf32> to vector<9x16x48xf32>
    %40 = arith.mulf %37, %39 : vector<9x16x48xf32>
    %41 = vector.shape_cast %40 : vector<9x16x48xf32> to vector<144x48xf32>
    %42 = arith.truncf %41 : vector<144x48xf32> to vector<144x48xbf16>
    %cst_20 = arith.constant dense<0.000000e+00> : vector<144x6xf32>
    %43 = tpu.matmul %42, %0, %cst_20 {dimension_numbers = #tpu.dot_dimension_numbers<[1], [0], [0], [1], [0, 0, 1, 1], [], []>} : vector<144x48xbf16>, vector<48x6xbf16>, vector<144x6xf32> -> vector<144x6xf32>
    %44 = vector.shape_cast %43 : vector<144x6xf32> to vector<9x16x6xf32>
    %c0_21 = arith.constant 0 : index
    %c0_22 = arith.constant 0 : index
    %c0_23 = arith.constant 0 : index
    %45 = vector.load %arg5[%c0_21, %c0_22, %c0_23] : memref<9x1x6xf32, #tpu.memory_space<vmem>>, vector<9x1x6xf32>
    %46 = vector.broadcast %45 : vector<9x1x6xf32> to vector<9x16x6xf32>
    %47 = arith.addf %44, %46 : vector<9x16x6xf32>
    %cst_24 = arith.constant dense<0xFF800000> : vector<9x6xf32>
    %48 = vector.multi_reduction <maximumf>, %47, %cst_24 [1] : vector<9x16x6xf32> to vector<9x6xf32>
    %49 = vector.shape_cast %48 : vector<9x6xf32> to vector<9x1x6xf32>
    %50 = vector.broadcast %49 : vector<9x1x6xf32> to vector<9x16x6xf32>
    %51 = arith.subf %47, %50 : vector<9x16x6xf32>
    %52 = math.exp %51 : vector<9x16x6xf32>
    %cst_25 = arith.constant dense<0.000000e+00> : vector<9x6xf32>
    %53 = vector.multi_reduction <add>, %52, %cst_25 [1] : vector<9x16x6xf32> to vector<9x6xf32>
    %54 = vector.shape_cast %53 : vector<9x6xf32> to vector<9x1x6xf32>
    %55 = tpu.reciprocal %54 {approx = true} : vector<9x1x6xf32> -> vector<9x1x6xf32>
    %56 = vector.broadcast %55 : vector<9x1x6xf32> to vector<9x16x6xf32>
    %57 = arith.mulf %52, %56 : vector<9x16x6xf32>
    %58 = vector.shape_cast %57 : vector<9x16x6xf32> to vector<144x6xf32>
    %59 = arith.truncf %58 : vector<144x6xf32> to vector<144x6xbf16>
    %cst_26 = arith.constant dense<0.000000e+00> : vector<144x48xf32>
    %60 = tpu.matmul %59, %1, %cst_26 {dimension_numbers = #tpu.dot_dimension_numbers<[1], [0], [0], [1], [0, 0, 1, 1], [], []>} : vector<144x6xbf16>, vector<6x48xbf16>, vector<144x48xf32> -> vector<144x48xf32>
    %c0_27 = arith.constant 0 : index
    %c0_28 = arith.constant 0 : index
    %c0_29 = arith.constant 0 : index
    %61 = vector.load %arg4[%c0_27, %c0_28, %c0_29] : memref<1x144x48xbf16, #tpu.memory_space<vmem>>, vector<1x144x48xbf16>
    %62 = vector.shape_cast %61 : vector<1x144x48xbf16> to vector<144x48xbf16>
    %63 = arith.extf %62 : vector<144x48xbf16> to vector<144x48xf32>
    %64 = vector.shape_cast %63 : vector<144x48xf32> to vector<9x16x48xf32>
    %65 = vector.shape_cast %60 : vector<144x48xf32> to vector<9x16x48xf32>
    %66 = arith.mulf %64, %65 : vector<9x16x48xf32>
    %cst_30 = arith.constant dense<0.000000e+00> : vector<16x48xf32>
    %67 = vector.multi_reduction <add>, %66, %cst_30 [0] : vector<9x16x48xf32> to vector<16x48xf32>
    %68 = arith.truncf %67 : vector<16x48xf32> to vector<16x48xbf16>
    %c0_31 = arith.constant 0 : index
    %c0_32 = arith.constant 0 : index
    %69 = vector.load %arg8[%c0_31, %c0_32] : memref<48x48xbf16, #tpu.memory_space<vmem>>, vector<48x48xbf16>
    %cst_33 = arith.constant dense<0.000000e+00> : vector<16x48xf32>
    %70 = tpu.matmul %68, %69, %cst_33 {dimension_numbers = #tpu.dot_dimension_numbers<[1], [0], [0], [1], [0, 0, 1, 1], [], []>} : vector<16x48xbf16>, vector<48x48xbf16>, vector<16x48xf32> -> vector<16x48xf32>
    %c0_34 = arith.constant 0 : index
    %c0_35 = arith.constant 0 : index
    %71 = vector.load %arg9[%c0_34, %c0_35] : memref<1x48xf32, #tpu.memory_space<vmem>>, vector<1x48xf32>
    %72 = vector.broadcast %71 : vector<1x48xf32> to vector<16x48xf32>
    %73 = arith.addf %70, %72 : vector<16x48xf32>
    %c0_36 = arith.constant 0 : index
    %c0_37 = arith.constant 0 : index
    %c0_38 = arith.constant 0 : index
    %74 = vector.load %arg10[%c0_36, %c0_37, %c0_38] : memref<1x16x48xf32, #tpu.memory_space<vmem>>, vector<1x16x48xf32>
    %75 = vector.shape_cast %74 : vector<1x16x48xf32> to vector<16x48xf32>
    %76 = vector.shape_cast %73 : vector<16x48xf32> to vector<1x16x48xf32>
    tpu.vector_store %arg10[%c0_36, %c0_37, %c0_38], %76 {strides = array<i32>} : memref<1x16x48xf32, #tpu.memory_space<vmem>>, vector<1x16x48xf32>,
    return
  }
  func.func @transform_0(%arg0: i32) -> (i32, i32, i32) {
    %c0_i32 = arith.constant 0 : i32
    %c0_i32_0 = arith.constant 0 : i32
    %c0_i32_1 = arith.constant 0 : i32
    return %arg0, %c0_i32, %c0_i32_0 : i32, i32, i32
  }
  func.func @transform_1(%arg0: i32) -> (i32, i32, i32) {
    %c0_i32 = arith.constant 0 : i32
    %c0_i32_0 = arith.constant 0 : i32
    %c0_i32_1 = arith.constant 0 : i32
    return %arg0, %c0_i32, %c0_i32_0 : i32, i32, i32
  }
  func.func @transform_2(%arg0: i32) -> (i32, i32, i32) {
    %c0_i32 = arith.constant 0 : i32
    %c0_i32_0 = arith.constant 0 : i32
    %c0_i32_1 = arith.constant 0 : i32
    return %arg0, %c0_i32, %c0_i32_0 : i32, i32, i32
  }
  func.func @transform_3(%arg0: i32) -> (i32, i32, i32) {
    %c0_i32 = arith.constant 0 : i32
    %c0_i32_0 = arith.constant 0 : i32
    %c0_i32_1 = arith.constant 0 : i32
    return %arg0, %c0_i32, %c0_i32_0 : i32, i32, i32
  }
  func.func @transform_4(%arg0: i32) -> (i32, i32, i32) {
    %c0_i32 = arith.constant 0 : i32
    %c0_i32_0 = arith.constant 0 : i32
    %c0_i32_1 = arith.constant 0 : i32
    %c0_i32_2 = arith.constant 0 : i32
    return %c0_i32, %c0_i32_0, %c0_i32_1 : i32, i32, i32
  }
  func.func @transform_5(%arg0: i32) -> (i32, i32) {
    %c0_i32 = arith.constant 0 : i32
    %c0_i32_0 = arith.constant 0 : i32
    %c0_i32_1 = arith.constant 0 : i32
    return %c0_i32, %c0_i32_0 : i32, i32
  }
  func.func @transform_6(%arg0: i32) -> (i32, i32) {
    %c0_i32 = arith.constant 0 : i32
    %c0_i32_0 = arith.constant 0 : i32
    %c0_i32_1 = arith.constant 0 : i32
    return %c0_i32, %c0_i32_0 : i32, i32
  }
  func.func @transform_7(%arg0: i32) -> (i32, i32) {
    %c0_i32 = arith.constant 0 : i32
    %c0_i32_0 = arith.constant 0 : i32
    %c0_i32_1 = arith.constant 0 : i32
    return %c0_i32, %c0_i32_0 : i32, i32
  }
  func.func @transform_8(%arg0: i32) -> (i32, i32) {
    %c0_i32 = arith.constant 0 : i32
    %c0_i32_0 = arith.constant 0 : i32
    %c0_i32_1 = arith.constant 0 : i32
    return %c0_i32, %c0_i32_0 : i32, i32
  }
  func.func @transform_9(%arg0: i32) -> (i32, i32, i32) {
    %c0_i32 = arith.constant 0 : i32
    %c0_i32_0 = arith.constant 0 : i32
    %c0_i32_1 = arith.constant 0 : i32
    return %arg0, %c0_i32, %c0_i32_0 : i32, i32, i32
  }
}

module attributes {stable_mosaic.version = 11 : i64} {
  func.func @_linear_kernel(%arg0: i32, %arg1: i32, %arg2: memref<32x48xf32, #tpu.memory_space<vmem>>, %arg3: memref<48x192xbf16, #tpu.memory_space<vmem>>, %arg4: memref<1x192xf32, #tpu.memory_space<vmem>>, %arg5: memref<1x48xf32, #tpu.memory_space<vmem>>, %arg6: memref<1x48xf32, #tpu.memory_space<vmem>>, %arg7: memref<32x192xbf16, #tpu.memory_space<vmem>>) attributes {dimension_semantics = [#tpu.dimension_semantics<parallel>, #tpu.dimension_semantics<parallel>], iteration_bounds = array<i64: 1, 1>, scalar_prefetch = 0 : i64, scratch_operands = 0 : i64, tpu.core_type = #tpu.core_type<tc>, window_params = [{transform_indices = @transform_0, window_bounds = array<i64: 32, 48>}, {transform_indices = @transform_1, window_bounds = array<i64: 48, 192>}, {transform_indices = @transform_2, window_bounds = array<i64: 1, 192>}, {pipeline_mode = #tpu.pipeline_mode<synchronous>, transform_indices = @transform_3, window_bounds = array<i64: 1, 48>}, {pipeline_mode = #tpu.pipeline_mode<synchronous>, transform_indices = @transform_4, window_bounds = array<i64: 1, 48>}, {transform_indices = @transform_5, window_bounds = array<i64: 32, 192>}]} {
    %c0 = arith.constant 0 : index
    %c0_0 = arith.constant 0 : index
    %0 = vector.load %arg2[%c0, %c0_0] : memref<32x48xf32, #tpu.memory_space<vmem>>, vector<32x48xf32>
    %cst = arith.constant dense<0.000000e+00> : vector<32xf32>
    %1 = vector.multi_reduction <add>, %0, %cst [1] : vector<32x48xf32> to vector<32xf32>
    %2 = vector.shape_cast %1 : vector<32xf32> to vector<32x1xf32>
    %cst_1 = arith.constant 4.800000e+01 : f32
    %3 = vector.broadcast %cst_1 : f32 to vector<32x1xf32>
    %4 = arith.divf %2, %3 : vector<32x1xf32>
    %5 = vector.broadcast %4 : vector<32x1xf32> to vector<32x48xf32>
    %6 = arith.subf %0, %5 : vector<32x48xf32>
    %7 = arith.mulf %6, %6 : vector<32x48xf32>
    %cst_2 = arith.constant dense<0.000000e+00> : vector<32xf32>
    %8 = vector.multi_reduction <add>, %7, %cst_2 [1] : vector<32x48xf32> to vector<32xf32>
    %9 = vector.shape_cast %8 : vector<32xf32> to vector<32x1xf32>
    %cst_3 = arith.constant 4.800000e+01 : f32
    %10 = vector.broadcast %cst_3 : f32 to vector<32x1xf32>
    %11 = arith.divf %9, %10 : vector<32x1xf32>
    %12 = vector.broadcast %4 : vector<32x1xf32> to vector<32x48xf32>
    %13 = arith.subf %0, %12 : vector<32x48xf32>
    %cst_4 = arith.constant 9.99999974E-6 : f32
    %14 = vector.broadcast %cst_4 : f32 to vector<32x1xf32>
    %15 = arith.addf %11, %14 : vector<32x1xf32>
    %16 = math.rsqrt %15 : vector<32x1xf32>
    %17 = vector.broadcast %16 : vector<32x1xf32> to vector<32x48xf32>
    %18 = arith.mulf %13, %17 : vector<32x48xf32>
    %c0_5 = arith.constant 0 : index
    %c0_6 = arith.constant 0 : index
    %19 = vector.load %arg5[%c0_5, %c0_6] : memref<1x48xf32, #tpu.memory_space<vmem>>, vector<1x48xf32>
    %20 = vector.broadcast %19 : vector<1x48xf32> to vector<32x48xf32>
    %21 = arith.mulf %18, %20 : vector<32x48xf32>
    %c0_7 = arith.constant 0 : index
    %c0_8 = arith.constant 0 : index
    %22 = vector.load %arg6[%c0_7, %c0_8] : memref<1x48xf32, #tpu.memory_space<vmem>>, vector<1x48xf32>
    %23 = vector.broadcast %22 : vector<1x48xf32> to vector<32x48xf32>
    %24 = arith.addf %21, %23 : vector<32x48xf32>
    %25 = arith.truncf %24 : vector<32x48xf32> to vector<32x48xbf16>
    %c0_9 = arith.constant 0 : index
    %c0_10 = arith.constant 0 : index
    %26 = vector.load %arg3[%c0_9, %c0_10] : memref<48x192xbf16, #tpu.memory_space<vmem>>, vector<48x192xbf16>
    %cst_11 = arith.constant dense<0.000000e+00> : vector<32x192xf32>
    %27 = tpu.matmul %25, %26, %cst_11 {dimension_numbers = #tpu.dot_dimension_numbers<[1], [0], [0], [1], [0, 0, 1, 1], [], []>} : vector<32x48xbf16>, vector<48x192xbf16>, vector<32x192xf32> -> vector<32x192xf32>
    %c0_12 = arith.constant 0 : index
    %c0_13 = arith.constant 0 : index
    %28 = vector.load %arg4[%c0_12, %c0_13] : memref<1x192xf32, #tpu.memory_space<vmem>>, vector<1x192xf32>
    %29 = vector.broadcast %28 : vector<1x192xf32> to vector<32x192xf32>
    %30 = arith.addf %27, %29 : vector<32x192xf32>
    %31 = arith.truncf %30 : vector<32x192xf32> to vector<32x192xbf16>
    %c0_14 = arith.constant 0 : index
    %c0_15 = arith.constant 0 : index
    %32 = vector.load %arg7[%c0_14, %c0_15] : memref<32x192xbf16, #tpu.memory_space<vmem>>, vector<32x192xbf16>
    tpu.vector_store %arg7[%c0_14, %c0_15], %31 {strides = array<i32>} : memref<32x192xbf16, #tpu.memory_space<vmem>>, vector<32x192xbf16>,
    return
  }
  func.func @transform_0(%arg0: i32, %arg1: i32) -> (i32, i32) {
    %c0_i32 = arith.constant 0 : i32
    %c0_i32_0 = arith.constant 0 : i32
    return %arg0, %c0_i32 : i32, i32
  }
  func.func @transform_1(%arg0: i32, %arg1: i32) -> (i32, i32) {
    %c0_i32 = arith.constant 0 : i32
    %c0_i32_0 = arith.constant 0 : i32
    return %c0_i32, %arg1 : i32, i32
  }
  func.func @transform_2(%arg0: i32, %arg1: i32) -> (i32, i32) {
    %c0_i32 = arith.constant 0 : i32
    %c0_i32_0 = arith.constant 0 : i32
    return %c0_i32, %arg1 : i32, i32
  }
  func.func @transform_3(%arg0: i32, %arg1: i32) -> (i32, i32) {
    %c0_i32 = arith.constant 0 : i32
    %c0_i32_0 = arith.constant 0 : i32
    %c0_i32_1 = arith.constant 0 : i32
    return %c0_i32, %c0_i32_0 : i32, i32
  }
  func.func @transform_4(%arg0: i32, %arg1: i32) -> (i32, i32) {
    %c0_i32 = arith.constant 0 : i32
    %c0_i32_0 = arith.constant 0 : i32
    %c0_i32_1 = arith.constant 0 : i32
    return %c0_i32, %c0_i32_0 : i32, i32
  }
  func.func @transform_5(%arg0: i32, %arg1: i32) -> (i32, i32) {
    %c0_i32 = arith.constant 0 : i32
    return %arg0, %arg1 : i32, i32
  }
}

module attributes {stable_mosaic.version = 11 : i64} {
  func.func @_linear_kernel(%arg0: i32, %arg1: i32, %arg2: memref<32x192xbf16, #tpu.memory_space<vmem>>, %arg3: memref<192x48xbf16, #tpu.memory_space<vmem>>, %arg4: memref<1x48xf32, #tpu.memory_space<vmem>>, %arg5: memref<1x192xf32, #tpu.memory_space<vmem>>, %arg6: memref<1x192xf32, #tpu.memory_space<vmem>>, %arg7: memref<32x48xf32, #tpu.memory_space<vmem>>) attributes {dimension_semantics = [#tpu.dimension_semantics<parallel>, #tpu.dimension_semantics<parallel>], iteration_bounds = array<i64: 1, 1>, scalar_prefetch = 0 : i64, scratch_operands = 0 : i64, tpu.core_type = #tpu.core_type<tc>, window_params = [{transform_indices = @transform_0, window_bounds = array<i64: 32, 192>}, {transform_indices = @transform_1, window_bounds = array<i64: 192, 48>}, {transform_indices = @transform_2, window_bounds = array<i64: 1, 48>}, {pipeline_mode = #tpu.pipeline_mode<synchronous>, transform_indices = @transform_3, window_bounds = array<i64: 1, 192>}, {pipeline_mode = #tpu.pipeline_mode<synchronous>, transform_indices = @transform_4, window_bounds = array<i64: 1, 192>}, {transform_indices = @transform_5, window_bounds = array<i64: 32, 48>}]} {
    %c0 = arith.constant 0 : index
    %c0_0 = arith.constant 0 : index
    %0 = vector.load %arg2[%c0, %c0_0] : memref<32x192xbf16, #tpu.memory_space<vmem>>, vector<32x192xbf16>
    %c0_1 = arith.constant 0 : index
    %c0_2 = arith.constant 0 : index
    %1 = vector.load %arg3[%c0_1, %c0_2] : memref<192x48xbf16, #tpu.memory_space<vmem>>, vector<192x48xbf16>
    %cst = arith.constant dense<0.000000e+00> : vector<32x48xf32>
    %2 = tpu.matmul %0, %1, %cst {dimension_numbers = #tpu.dot_dimension_numbers<[1], [0], [0], [1], [0, 0, 1, 1], [], []>} : vector<32x192xbf16>, vector<192x48xbf16>, vector<32x48xf32> -> vector<32x48xf32>
    %c0_3 = arith.constant 0 : index
    %c0_4 = arith.constant 0 : index
    %3 = vector.load %arg4[%c0_3, %c0_4] : memref<1x48xf32, #tpu.memory_space<vmem>>, vector<1x48xf32>
    %4 = vector.broadcast %3 : vector<1x48xf32> to vector<32x48xf32>
    %5 = arith.addf %2, %4 : vector<32x48xf32>
    %c0_5 = arith.constant 0 : index
    %c0_6 = arith.constant 0 : index
    %6 = vector.load %arg7[%c0_5, %c0_6] : memref<32x48xf32, #tpu.memory_space<vmem>>, vector<32x48xf32>
    tpu.vector_store %arg7[%c0_5, %c0_6], %5 {strides = array<i32>} : memref<32x48xf32, #tpu.memory_space<vmem>>, vector<32x48xf32>,
    return
  }
  func.func @transform_0(%arg0: i32, %arg1: i32) -> (i32, i32) {
    %c0_i32 = arith.constant 0 : i32
    %c0_i32_0 = arith.constant 0 : i32
    return %arg0, %c0_i32 : i32, i32
  }
  func.func @transform_1(%arg0: i32, %arg1: i32) -> (i32, i32) {
    %c0_i32 = arith.constant 0 : i32
    %c0_i32_0 = arith.constant 0 : i32
    return %c0_i32, %arg1 : i32, i32
  }
  func.func @transform_2(%arg0: i32, %arg1: i32) -> (i32, i32) {
    %c0_i32 = arith.constant 0 : i32
    %c0_i32_0 = arith.constant 0 : i32
    return %c0_i32, %arg1 : i32, i32
  }
  func.func @transform_3(%arg0: i32, %arg1: i32) -> (i32, i32) {
    %c0_i32 = arith.constant 0 : i32
    %c0_i32_0 = arith.constant 0 : i32
    %c0_i32_1 = arith.constant 0 : i32
    return %c0_i32, %c0_i32_0 : i32, i32
  }
  func.func @transform_4(%arg0: i32, %arg1: i32) -> (i32, i32) {
    %c0_i32 = arith.constant 0 : i32
    %c0_i32_0 = arith.constant 0 : i32
    %c0_i32_1 = arith.constant 0 : i32
    return %c0_i32, %c0_i32_0 : i32, i32
  }
  func.func @transform_5(%arg0: i32, %arg1: i32) -> (i32, i32) {
    %c0_i32 = arith.constant 0 : i32
    return %arg0, %arg1 : i32, i32
  }
}

</mosaic_0001>

<bundles_post_ra>
// kernel: _lambda_.13
= control target key start
LH: loop header
LB: loop body
LE: loop exit
PB: predicated region body
PF: predicated region fallthrough
CT: control target
= control target key end

     0   :  { %vm108_vm0 = vcmask 392192   ;;  %vm230_vm1 = vcmask 195584   ;;  %s459_s1 = inlined_call_operand.vmem [shape: bf16[48,24], index: 1, kind: input, shape index: {}]   ;;  %s460_s3 = inlined_call_operand.vmem [shape: f32[1,48], index: 3, kind: input, shape index: {}]   ;;  %s461_s4 = inlined_call_operand.vmem [shape: f32[1,48], index: 4, kind: input, shape index: {}]   ;;  %s462_s0 = inlined_call_operand.vmem [shape: bf16[128,48], index: 0, kind: input, shape index: {}]   ;;  %s463_s2 = inlined_call_operand.vmem [shape: f32[1,24], index: 2, kind: input, shape index: {}]   ;;  %s464_s5 = inlined_call_operand.vmem [shape: f32[128,24], index: 5, kind: output, shape index: {}]  }
   0x1   :  { %v310_v0 = vld [vmem:[%s459_s1] sm:$0xff]   ;;  %v311_v1 = vld [vmem:[%s459_s1 + $0x8] sm:$0xff]   ;;  %v312_v2 = vld [vmem:[%s459_s1 + $0x10] sm:$0xff]  }
   0x2   :  { %282 = vmatprep.subr.bf16.mxu0 %v310_v0  ;;  %304 = vmatprep.subr.bf16.mxu1 %v310_v0  ;;  %v313_v3 = vld [vmem:[%s462_s0] sm:$0xff]   ;;  %v315_v5 = vld [vmem:[%s462_s0 + $0x8] sm:$0xff]   ;;  %v317_v7 = vld [vmem:[%s462_s0 + $0x10] sm:$0xff]  }
   0x3   :  { %283 = vmatpush3.bf16.msra.mxu0 %v310_v0  ;;  %307 = vmatpush3.bf16.msra.mxu1 %v310_v0  ;;  %v314_v4 = vld [vmem:[%s462_s0 + $0x20] sm:$0xff]   ;;  %v316_v6 = vld [vmem:[%s462_s0 + $0x28] sm:$0xff]   ;;  %v318_v8 = vld [vmem:[%s462_s0 + $0x30] sm:$0xff]  }
   0x4   :  { %284 = vmatprep.subr.bf16.mxu0 %v311_v1  ;;  %305 = vmatprep.subr.bf16.mxu1 %v311_v1  ;;  %v319_v9 = vld [vmem:[%s462_s0 + $0x18] sm:$0xff]   ;;  %v251_v11 = vld [vmem:[%s463_s2] ss:$0 sm:$0xff] }
   0x5   :  { %288 = vmatprep.mubr.msk.bf16.mxu0 %vm108_vm0, %v313_v3  ;;  %296 = vmatprep.mubr.msk.bf16.mxu1 %vm108_vm0, %v314_v4  ;;  %v320_v10 = vld [vmem:[%s462_s0 + $0x38] sm:$0xff]  }
   0x7   :  { %285 = vmatpush3.bf16.msra.mxu0 %v311_v1  ;;  %308 = vmatpush3.bf16.msra.mxu1 %v311_v1 }
   0x8   :  { %286 = vmatprep.subr.bf16.mxu0 %v312_v2  ;;  %306 = vmatprep.subr.bf16.mxu1 %v312_v2 }
   0xb   :  { %287 = vmatpush3.bf16.msra.mxu0 %v312_v2  ;;  %309 = vmatpush3.bf16.msra.mxu1 %v312_v2 }
   0xe   :  { %289 = vmatmul.mubr.msk.bf16.vlgmr.msra.gmra.mrb[0].mxu0 %vm108_vm0, %v315_v5  ;;  %297 = vmatmul.mubr.msk.bf16.vlgmr.msra.gmra.mrb[0].mxu1 %vm108_vm0, %v316_v6 }
   0xf   :  { %292 = vmatprep.mubr.msk.bf16.mxu0 %vm108_vm0, %v317_v7  ;;  %300 = vmatprep.mubr.msk.bf16.mxu1 %vm108_vm0, %v318_v8 }
  0x16   :  { %293 = vmatmul.mubr.msk.bf16.gmra.mrb[4].mxu0 %vm108_vm0, %v319_v9  ;;  %301 = vmatmul.mubr.msk.bf16.gmra.mrb[4].mxu1 %vm108_vm0, %v320_v10 }
  0xe1   :  { %v290_v12 = vpop.f32.mrb[0].mxu0  ;;  %v298_v13 = vpop.f32.mrb[0].mxu1 }
  0xe2   :  { %v176_v14 = vadd.f32 %v290_v12, %v251_v11  ;;  %v208_v15 = vadd.f32 %v298_v13, %v251_v11  ;;  %v167_v16 = vpop.f32.mrb[1].mxu0  ;;  %v199_v17 = vpop.f32.mrb[1].mxu1 }
  0xe3   :  { %v168_v18 = vadd.f32 %v251_v11, %v167_v16  ;;  %v200_v19 = vadd.f32 %v251_v11, %v199_v17  ;;  %v291_v20 = vpop.f32.mrb[2].mxu0  ;;  %v299_v21 = vpop.f32.mrb[2].mxu1 }
  0xe4   :  { %233 = vst.msk [vmem:[%s464_s5 + $0x10] sm:$0xff] %vm230_vm1, %v176_v14  ;;  %241 = vst.msk [vmem:[%s464_s5 + $0x50] sm:$0xff] %vm230_vm1, %v208_v15  ;;  %v179_v22 = vadd.f32 %v291_v20, %v251_v11  ;;  %v211_v23 = vadd.f32 %v299_v21, %v251_v11  ;;  %v170_v24 = vpop.f32.mrb[3].mxu0  ;;  %v202_v25 = vpop.f32.mrb[3].mxu1 }
  0xe5   :  { %231 = vst.msk [vmem:[%s464_s5] sm:$0xff] %vm230_vm1, %v168_v18  ;;  %239 = vst.msk [vmem:[%s464_s5 + $0x40] sm:$0xff] %vm230_vm1, %v200_v19  ;;  %v171_v26 = vadd.f32 %v251_v11, %v170_v24  ;;  %v203_v27 = vadd.f32 %v251_v11, %v202_v25 }
  0xe6   :  { %234 = vst.msk [vmem:[%s464_s5 + $0x18] sm:$0xff] %vm230_vm1, %v179_v22  ;;  %242 = vst.msk [vmem:[%s464_s5 + $0x58] sm:$0xff] %vm230_vm1, %v211_v23 }
  0xe7   :  { %232 = vst.msk [vmem:[%s464_s5 + $0x8] sm:$0xff] %vm230_vm1, %v171_v26  ;;  %240 = vst.msk [vmem:[%s464_s5 + $0x48] sm:$0xff] %vm230_vm1, %v203_v27 }
  0xe9   :  { %v294_v28 = vpop.f32.mrb[4].mxu0  ;;  %v302_v29 = vpop.f32.mrb[4].mxu1 }
  0xea   :  { %v192_v30 = vadd.f32 %v294_v28, %v251_v11  ;;  %v224_v31 = vadd.f32 %v302_v29, %v251_v11  ;;  %v183_v32 = vpop.f32.mrb[5].mxu0  ;;  %v215_v33 = vpop.f32.mrb[5].mxu1 }
  0xeb   :  { %v184_v34 = vadd.f32 %v251_v11, %v183_v32  ;;  %v216_v35 = vadd.f32 %v251_v11, %v215_v33  ;;  %v295_v36 = vpop.f32.mrb[6].mxu0  ;;  %v303_v37 = vpop.f32.mrb[6].mxu1 }
  0xec   :  { %237 = vst.msk [vmem:[%s464_s5 + $0x30] sm:$0xff] %vm230_vm1, %v192_v30  ;;  %245 = vst.msk [vmem:[%s464_s5 + $0x70] sm:$0xff] %vm230_vm1, %v224_v31  ;;  %v195_v38 = vadd.f32 %v295_v36, %v251_v11  ;;  %v227_v39 = vadd.f32 %v303_v37, %v251_v11  ;;  %v186_v40 = vpop.f32.mrb[7].mxu0  ;;  %v218_v41 = vpop.f32.mrb[7].mxu1 }
  0xed   :  { %235 = vst.msk [vmem:[%s464_s5 + $0x20] sm:$0xff] %vm230_vm1, %v184_v34  ;;  %243 = vst.msk [vmem:[%s464_s5 + $0x60] sm:$0xff] %vm230_vm1, %v216_v35  ;;  %v187_v42 = vadd.f32 %v251_v11, %v186_v40  ;;  %v219_v43 = vadd.f32 %v251_v11, %v218_v41 }
  0xee   :  { %238 = vst.msk [vmem:[%s464_s5 + $0x38] sm:$0xff] %vm230_vm1, %v195_v38  ;;  %246 = vst.msk [vmem:[%s464_s5 + $0x78] sm:$0xff] %vm230_vm1, %v227_v39 }
  0xef   :  { %236 = vst.msk [vmem:[%s464_s5 + $0x28] sm:$0xff] %vm230_vm1, %v187_v42  ;;  %244 = vst.msk [vmem:[%s464_s5 + $0x68] sm:$0xff] %vm230_vm1, %v219_v43 }

// kernel: _lambda_.14
= control target key start
LH: loop header
LB: loop body
LE: loop exit
PB: predicated region body
PF: predicated region fallthrough
CT: control target
= control target key end

     0   :  { %vm30_vm0 = vcmask 195584   ;;  %s666_s0 = inlined_call_operand.vmem [shape: f32[128,24], index: 0, kind: input, shape index: {}]   ;;  %s667_s1 = inlined_call_operand.vmem [shape: f32[1,24], index: 1, kind: input, shape index: {}]   ;;  %s668_s2 = inlined_call_operand.vmem [shape: f32[1,24], index: 2, kind: input, shape index: {}]   ;;  %s669_s3 = inlined_call_operand.vmem [shape: f32[128,24], index: 3, kind: output, shape index: {}]  }
   0x1   :  { %v14_v0 = vld [vmem:[%s666_s0] sm:$0xff]  ;;  %v16_v1 = vld [vmem:[%s666_s0 + $0x10] sm:$0xff]  ;;  %v15_v2 = vld [vmem:[%s666_s0 + $0x8] sm:$0xff] }
   0x2   :  { %v31_v3 = vsel %vm30_vm0, %v14_v0, 0.0  ;;  %v37_v4 = vsel %vm30_vm0, %v16_v1, 0.0  ;;  %v17_v5 = vld [vmem:[%s666_s0 + $0x18] sm:$0xff]  ;;  %v34_v6 = vsel %vm30_vm0, %v15_v2, 0.0  ;;  %v18_v8 = vld [vmem:[%s666_s0 + $0x20] sm:$0xff]  ;;  %v19_v9 = vld [vmem:[%s666_s0 + $0x28] sm:$0xff] }
   0x3   :  { %32 = vadd.xlane.f32.xlu0 %v31_v3  ;;  %38 = vadd.xlane.f32.xlu1 %v37_v4  ;;  %v40_v7 = vsel %vm30_vm0, %v17_v5, 0.0  ;;  %v43_v10 = vsel %vm30_vm0, %v18_v8, 0.0  ;;  %v46_v11 = vsel %vm30_vm0, %v19_v9, 0.0  ;;  %v387_v12 = vld [vmem:[%s666_s0 + $0x30] sm:$0xff]  ;;  %v392_v13 = vld [vmem:[%s666_s0 + $0x38] sm:$0xff]  ;;  %v401_v16 = vld [vmem:[%s666_s0 + $0x40] sm:$0xff] }
   0x4   :  { %v49_v14 = vsel %vm30_vm0, %v387_v12, 0.0  ;;  %v52_v15 = vsel %vm30_vm0, %v392_v13, 0.0  ;;  %v406_v17 = vld [vmem:[%s666_s0 + $0x48] sm:$0xff]  ;;  %v55_v18 = vsel %vm30_vm0, %v401_v16, 0.0  ;;  %v415_v20 = vld [vmem:[%s666_s0 + $0x50] sm:$0xff]  ;;  %v420_v21 = vld [vmem:[%s666_s0 + $0x58] sm:$0xff] }
   0x5   :  { %v58_v19 = vsel %vm30_vm0, %v406_v17, 0.0  ;;  %v61_v22 = vsel %vm30_vm0, %v415_v20, 0.0  ;;  %v64_v23 = vsel %vm30_vm0, %v420_v21, 0.0  ;;  %v429_v24 = vld [vmem:[%s666_s0 + $0x60] sm:$0xff]  ;;  %v434_v25 = vld [vmem:[%s666_s0 + $0x68] sm:$0xff]  ;;  %v443_v28 = vld [vmem:[%s666_s0 + $0x70] sm:$0xff] }
   0x6   :  { %v67_v26 = vsel %vm30_vm0, %v429_v24, 0.0  ;;  %v70_v27 = vsel %vm30_vm0, %v434_v25, 0.0  ;;  %v448_v29 = vld [vmem:[%s666_s0 + $0x78] sm:$0xff]  ;;  %v73_v30 = vsel %vm30_vm0, %v443_v28, 0.0 }
   0x7   :  { %35 = vadd.xlane.f32.xlu0 %v34_v6  ;;  %41 = vadd.xlane.f32.xlu1 %v40_v7  ;;  %v76_v31 = vsel %vm30_vm0, %v448_v29, 0.0 }
   0xb   :  { %44 = vadd.xlane.f32.xlu0 %v43_v10  ;;  %47 = vadd.xlane.f32.xlu1 %v46_v11 }
   0xf   :  { %50 = vadd.xlane.f32.xlu0 %v49_v14  ;;  %53 = vadd.xlane.f32.xlu1 %v52_v15 }
  0x13   :  { %56 = vadd.xlane.f32.xlu0 %v55_v18  ;;  %59 = vadd.xlane.f32.xlu1 %v58_v19 }
  0x17   :  { %62 = vadd.xlane.f32.xlu0 %v61_v22  ;;  %65 = vadd.xlane.f32.xlu1 %v64_v23 }
  0x1b   :  { %68 = vadd.xlane.f32.xlu0 %v67_v26  ;;  %71 = vadd.xlane.f32.xlu1 %v70_v27 }
  0x1f   :  { %74 = vadd.xlane.f32.xlu0 %v73_v30  ;;  %77 = vadd.xlane.f32.xlu1 %v76_v31 }
  0x90   :  { %v33_v32 = vpop.xlane.xlu0 %32  ;;  %v39_v33 = vpop.xlane.xlu1 %38 }
  0x91   :  { %v80_v34 = vmul.f32 0.041666668, %v33_v32  ;;  %v82_v35 = vmul.f32 0.041666668, %v39_v33 }
  0x93   :  { %v454_v36 = vsub.f32 %v14_v0, %v80_v34  ;;  %v456_v37 = vsub.f32 %v16_v1, %v82_v35 }
  0x94   :  { %v36_v38 = vpop.xlane.xlu0 %35  ;;  %v42_v39 = vpop.xlane.xlu1 %41 }
  0x95   :  { %v81_v40 = vmul.f32 0.041666668, %v36_v38  ;;  %v83_v41 = vmul.f32 0.041666668, %v42_v39  ;;  %v112_v42 = vmul.f32 %v454_v36, %v454_v36  ;;  %v114_v43 = vmul.f32 %v456_v37, %v456_v37 }
  0x97   :  { %v462_v44 = vsub.f32 %v15_v2, %v81_v40  ;;  %v464_v45 = vsub.f32 %v17_v5, %v83_v41  ;;  %v128_v46 = vsel %vm30_vm0, %v112_v42, 0.0  ;;  %v134_v49 = vsel %vm30_vm0, %v114_v43, 0.0 }
  0x98   :  { %129 = vadd.xlane.f32.xlu0 %v128_v46  ;;  %v45_v47 = vpop.xlane.xlu0 %44  ;;  %v48_v48 = vpop.xlane.xlu1 %47 }
  0x99   :  { %v84_v50 = vmul.f32 0.041666668, %v45_v47  ;;  %v85_v51 = vmul.f32 0.041666668, %v48_v48  ;;  %v113_v52 = vmul.f32 %v462_v44, %v462_v44  ;;  %v115_v53 = vmul.f32 %v464_v45, %v464_v45 }
  0x9b   :  { %v472_v54 = vsub.f32 %v18_v8, %v84_v50  ;;  %v474_v55 = vsub.f32 %v19_v9, %v85_v51  ;;  %v131_v56 = vsel %vm30_vm0, %v113_v52, 0.0  ;;  %v137_v59 = vsel %vm30_vm0, %v115_v53, 0.0 }
  0x9c   :  { %135 = vadd.xlane.f32.xlu0 %v134_v49  ;;  %132 = vadd.xlane.f32.xlu1 %v131_v56  ;;  %v51_v57 = vpop.xlane.xlu0 %50  ;;  %v54_v58 = vpop.xlane.xlu1 %53 }
  0x9d   :  { %v86_v60 = vmul.f32 0.041666668, %v51_v57  ;;  %v87_v61 = vmul.f32 0.041666668, %v54_v58  ;;  %v116_v62 = vmul.f32 %v472_v54, %v472_v54  ;;  %v117_v63 = vmul.f32 %v474_v55, %v474_v55 }
  0x9f   :  { %v483_v0 = vsub.f32 %v387_v12, %v86_v60  ;;  %v486_v1 = vsub.f32 %v392_v13, %v87_v61  ;;  %v140_v2 = vsel %vm30_vm0, %v116_v62, 0.0  ;;  %v143_v5 = vsel %vm30_vm0, %v117_v63, 0.0 }
  0xa0   :  { %138 = vadd.xlane.f32.xlu1 %v137_v59  ;;  %141 = vadd.xlane.f32.xlu0 %v140_v2  ;;  %v57_v3 = vpop.xlane.xlu0 %56  ;;  %v60_v4 = vpop.xlane.xlu1 %59 }
  0xa1   :  { %v88_v6 = vmul.f32 0.041666668, %v57_v3  ;;  %v89_v7 = vmul.f32 0.041666668, %v60_v4  ;;  %v118_v8 = vmul.f32 %v483_v0, %v483_v0  ;;  %v119_v9 = vmul.f32 %v486_v1, %v486_v1 }
  0xa3   :  { %v495_v10 = vsub.f32 %v401_v16, %v88_v6  ;;  %v498_v11 = vsub.f32 %v406_v17, %v89_v7  ;;  %v146_v12 = vsel %vm30_vm0, %v118_v8, 0.0  ;;  %v149_v15 = vsel %vm30_vm0, %v119_v9, 0.0 }
  0xa4   :  { %144 = vadd.xlane.f32.xlu1 %v143_v5  ;;  %147 = vadd.xlane.f32.xlu0 %v146_v12  ;;  %v63_v13 = vpop.xlane.xlu0 %62  ;;  %v66_v14 = vpop.xlane.xlu1 %65 }
  0xa5   :  { %v90_v18 = vmul.f32 0.041666668, %v63_v13  ;;  %v91_v19 = vmul.f32 0.041666668, %v66_v14  ;;  %v120_v22 = vmul.f32 %v495_v10, %v495_v10  ;;  %v121_v16 = vmul.f32 %v498_v11, %v498_v11  ;;  %v547_v14 = vld [vmem:[%s667_s1] ss:$0 sm:$0xff] }
  0xa7   :  { %v507_v23 = vsub.f32 %v415_v20, %v90_v18  ;;  %v510_v17 = vsub.f32 %v420_v21, %v91_v19  ;;  %v152_v26 = vsel %vm30_vm0, %v120_v22, 0.0  ;;  %v155_v31 = vsel %vm30_vm0, %v121_v16, 0.0 }
  0xa8   :  { %150 = vadd.xlane.f32.xlu1 %v149_v15  ;;  %153 = vadd.xlane.f32.xlu0 %v152_v26  ;;  %v69_v27 = vpop.xlane.xlu0 %68  ;;  %v72_v30 = vpop.xlane.xlu1 %71  ;;  %v553_v26 = vld [vmem:[%s668_s2] ss:$0 sm:$0xff] }
  0xa9   :  { %v92_v32 = vmul.f32 0.041666668, %v69_v27  ;;  %v93_v33 = vmul.f32 0.041666668, %v72_v30  ;;  %v122_v34 = vmul.f32 %v507_v23, %v507_v23  ;;  %v123_v20 = vmul.f32 %v510_v17, %v510_v17 }
  0xab   :  { %v519_v35 = vsub.f32 %v429_v24, %v92_v32  ;;  %v522_v21 = vsub.f32 %v434_v25, %v93_v33  ;;  %v158_v38 = vsel %vm30_vm0, %v122_v34, 0.0  ;;  %v161_v41 = vsel %vm30_vm0, %v123_v20, 0.0 }
  0xac   :  { %156 = vadd.xlane.f32.xlu1 %v155_v31  ;;  %159 = vadd.xlane.f32.xlu0 %v158_v38  ;;  %v75_v39 = vpop.xlane.xlu0 %74  ;;  %v78_v40 = vpop.xlane.xlu1 %77 }
  0xad   :  { %v94_v42 = vmul.f32 0.041666668, %v75_v39  ;;  %v95_v43 = vmul.f32 0.041666668, %v78_v40  ;;  %v124_v46 = vmul.f32 %v519_v35, %v519_v35  ;;  %v125_v24 = vmul.f32 %v522_v21, %v522_v21 }
  0xaf   :  { %v531_v47 = vsub.f32 %v443_v28, %v94_v42  ;;  %v534_v25 = vsub.f32 %v448_v29, %v95_v43  ;;  %v164_v48 = vsel %vm30_vm0, %v124_v46, 0.0  ;;  %v167_v49 = vsel %vm30_vm0, %v125_v24, 0.0 }
  0xb0   :  { %162 = vadd.xlane.f32.xlu1 %v161_v41  ;;  %165 = vadd.xlane.f32.xlu0 %v164_v48 }
  0xb1   :  { %v126_v50 = vmul.f32 %v531_v47, %v531_v47  ;;  %v127_v51 = vmul.f32 %v534_v25, %v534_v25 }
  0xb3   :  { %v170_v52 = vsel %vm30_vm0, %v126_v50, 0.0  ;;  %v173_v28 = vsel %vm30_vm0, %v127_v51, 0.0 }
  0xb4   :  { %168 = vadd.xlane.f32.xlu1 %v167_v49  ;;  %171 = vadd.xlane.f32.xlu0 %v170_v52 }
  0xb8   :  { %174 = vadd.xlane.f32.xlu1 %v173_v28 }
 0x125   :  { %v130_v29 = vpop.xlane.xlu0 %129 }
 0x126   :  { %v176_v53 = vmul.f32 0.041666668, %v130_v29 }
 0x128   :  { %v192_v56 = vadd.f32 1e-05, %v176_v53 }
 0x129   :  { %v133_v57 = vpop.xlane.xlu1 %132  ;;  %v136_v58 = vpop.xlane.xlu0 %135 }
 0x12a   :  { %308 = vrsqrt.f32 %v192_v56  ;;  %v177_v59 = vmul.f32 0.041666668, %v133_v57  ;;  %v178_v60 = vmul.f32 0.041666668, %v136_v58 }
 0x12c   :  { %v193_v61 = vadd.f32 1e-05, %v177_v59  ;;  %v194_v62 = vadd.f32 1e-05, %v178_v60 }
 0x12d   :  { %v139_v63 = vpop.xlane.xlu1 %138  ;;  %v142_v2 = vpop.xlane.xlu0 %141 }
 0x12e   :  { %310 = vrsqrt.f32 %v193_v61  ;;  %v179_v3 = vmul.f32 0.041666668, %v139_v63  ;;  %v180_v4 = vmul.f32 0.041666668, %v142_v2 }
 0x12f   :  { %312 = vrsqrt.f32 %v194_v62 }
 0x130   :  { %v195_v5 = vadd.f32 1e-05, %v179_v3  ;;  %v196_v6 = vadd.f32 1e-05, %v180_v4 }
 0x131   :  { %v145_v7 = vpop.xlane.xlu1 %144  ;;  %v148_v8 = vpop.xlane.xlu0 %147 }
 0x132   :  { %314 = vrsqrt.f32 %v195_v5  ;;  %v181_v9 = vmul.f32 0.041666668, %v145_v7  ;;  %v182_v12 = vmul.f32 0.041666668, %v148_v8 }
 0x133   :  { %316 = vrsqrt.f32 %v196_v6 }
 0x134   :  { %v309_v13 = vpop.eup %308  ;;  %v197_v15 = vadd.f32 1e-05, %v181_v9  ;;  %v198_v18 = vadd.f32 1e-05, %v182_v12 }
 0x135   :  { %v224_v19 = vmul.f32 %v309_v13, %v454_v36  ;;  %v151_v22 = vpop.xlane.xlu1 %150  ;;  %v154_v16 = vpop.xlane.xlu0 %153 }
 0x136   :  { %318 = vrsqrt.f32 %v197_v15  ;;  %v183_v27 = vmul.f32 0.041666668, %v151_v22  ;;  %v184_v30 = vmul.f32 0.041666668, %v154_v16 }
 0x137   :  { %v247_v31 = vmul.f32 %v547_v14, %v224_v19  ;;  %320 = vrsqrt.f32 %v198_v18 }
 0x138   :  { %v311_v32 = vpop.eup %310  ;;  %v199_v33 = vadd.f32 1e-05, %v183_v27  ;;  %v200_v34 = vadd.f32 1e-05, %v184_v30 }
 0x139   :  { %v313_v20 = vpop.eup %312  ;;  %v270_v38 = vadd.f32 %v553_v26, %v247_v31  ;;  %v225_v36 = vmul.f32 %v311_v32, %v462_v44  ;;  %v157_v39 = vpop.xlane.xlu1 %156 }
 0x13a   :  { %v160_v40 = vpop.xlane.xlu0 %159  ;;  %v226_v41 = vmul.f32 %v313_v20, %v456_v37  ;;  %322 = vrsqrt.f32 %v199_v33  ;;  %v185_v42 = vmul.f32 0.041666668, %v157_v39 }
 0x13b   :  { %v186_v43 = vmul.f32 0.041666668, %v160_v40  ;;  %286 = vst.msk [vmem:[%s669_s3] sm:$0xff] %vm30_vm0, %v270_v38  ;;  %v248_v46 = vmul.f32 %v547_v14, %v225_v36  ;;  %324 = vrsqrt.f32 %v200_v34 }
 0x13c   :  { %v315_v24 = vpop.eup %314  ;;  %v249_v48 = vmul.f32 %v547_v14, %v226_v41  ;;  %v201_v49 = vadd.f32 1e-05, %v185_v42 }
 0x13d   :  { %v202_v44 = vadd.f32 1e-05, %v186_v43  ;;  %v317_v50 = vpop.eup %316  ;;  %v271_v51 = vadd.f32 %v553_v26, %v248_v46  ;;  %v227_v37 = vmul.f32 %v315_v24, %v464_v45  ;;  %v163_v52 = vpop.xlane.xlu1 %162 }
 0x13e   :  { %v166_v28 = vpop.xlane.xlu0 %165  ;;  %v272_v29 = vadd.f32 %v553_v26, %v249_v48  ;;  %v228_v53 = vmul.f32 %v317_v50, %v472_v54  ;;  %326 = vrsqrt.f32 %v201_v49  ;;  %v187_v56 = vmul.f32 0.041666668, %v163_v52 }
 0x13f   :  { %287 = vst.msk [vmem:[%s669_s3 + $0x8] sm:$0xff] %vm30_vm0, %v271_v51  ;;  %v250_v57 = vmul.f32 %v547_v14, %v227_v37  ;;  %328 = vrsqrt.f32 %v202_v44  ;;  %v188_v58 = vmul.f32 0.041666668, %v166_v28 }
 0x140   :  { %v319_v59 = vpop.eup %318  ;;  %288 = vst.msk [vmem:[%s669_s3 + $0x10] sm:$0xff] %vm30_vm0, %v272_v29  ;;  %v251_v45 = vmul.f32 %v547_v14, %v228_v53  ;;  %v203_v54 = vadd.f32 1e-05, %v187_v56 }
 0x141   :  { %v321_v60 = vpop.eup %320  ;;  %v273_v61 = vadd.f32 %v553_v26, %v250_v57  ;;  %v229_v62 = vmul.f32 %v319_v59, %v474_v55  ;;  %v204_v63 = vadd.f32 1e-05, %v188_v58  ;;  %v169_v2 = vpop.xlane.xlu1 %168 }
 0x142   :  { %v172_v3 = vpop.xlane.xlu0 %171  ;;  %v274_v4 = vadd.f32 %v553_v26, %v251_v45  ;;  %v230_v5 = vmul.f32 %v321_v60, %v483_v0  ;;  %330 = vrsqrt.f32 %v203_v54  ;;  %v189_v6 = vmul.f32 0.041666668, %v169_v2 }
 0x143   :  { %289 = vst.msk [vmem:[%s669_s3 + $0x18] sm:$0xff] %vm30_vm0, %v273_v61  ;;  %v252_v7 = vmul.f32 %v547_v14, %v229_v62  ;;  %332 = vrsqrt.f32 %v204_v63  ;;  %v190_v8 = vmul.f32 0.041666668, %v172_v3 }
 0x144   :  { %v323_v9 = vpop.eup %322  ;;  %290 = vst.msk [vmem:[%s669_s3 + $0x20] sm:$0xff] %vm30_vm0, %v274_v4  ;;  %v253_v55 = vmul.f32 %v547_v14, %v230_v5  ;;  %v205_v0 = vadd.f32 1e-05, %v189_v6 }
 0x145   :  { %v325_v12 = vpop.eup %324  ;;  %v275_v13 = vadd.f32 %v553_v26, %v252_v7  ;;  %v231_v15 = vmul.f32 %v323_v9, %v486_v1  ;;  %v206_v18 = vadd.f32 1e-05, %v190_v8  ;;  %v175_v19 = vpop.xlane.xlu1 %174 }
 0x146   :  { %v276_v22 = vadd.f32 %v553_v26, %v253_v55  ;;  %v232_v16 = vmul.f32 %v325_v12, %v495_v10  ;;  %334 = vrsqrt.f32 %v205_v0  ;;  %v191_v27 = vmul.f32 0.041666668, %v175_v19 }
 0x147   :  { %291 = vst.msk [vmem:[%s669_s3 + $0x28] sm:$0xff] %vm30_vm0, %v275_v13  ;;  %v254_v30 = vmul.f32 %v547_v14, %v231_v15  ;;  %336 = vrsqrt.f32 %v206_v18 }
 0x148   :  { %v327_v31 = vpop.eup %326  ;;  %292 = vst.msk [vmem:[%s669_s3 + $0x30] sm:$0xff] %vm30_vm0, %v276_v22  ;;  %v255_v1 = vmul.f32 %v547_v14, %v232_v16  ;;  %v207_v32 = vadd.f32 1e-05, %v191_v27 }
 0x149   :  { %v329_v10 = vpop.eup %328  ;;  %v277_v33 = vadd.f32 %v553_v26, %v254_v30  ;;  %v233_v34 = vmul.f32 %v327_v31, %v498_v11 }
 0x14a   :  { %v278_v20 = vadd.f32 %v553_v26, %v255_v1  ;;  %v234_v38 = vmul.f32 %v329_v10, %v507_v23  ;;  %338 = vrsqrt.f32 %v207_v32 }
 0x14b   :  { %293 = vst.msk [vmem:[%s669_s3 + $0x38] sm:$0xff] %vm30_vm0, %v277_v33  ;;  %v256_v36 = vmul.f32 %v547_v14, %v233_v34 }
 0x14c   :  { %v331_v39 = vpop.eup %330  ;;  %294 = vst.msk [vmem:[%s669_s3 + $0x40] sm:$0xff] %vm30_vm0, %v278_v20  ;;  %v257_v11 = vmul.f32 %v547_v14, %v234_v38 }
 0x14d   :  { %v333_v40 = vpop.eup %332  ;;  %v279_v41 = vadd.f32 %v553_v26, %v256_v36  ;;  %v235_v23 = vmul.f32 %v331_v39, %v510_v17 }
 0x14e   :  { %v280_v42 = vadd.f32 %v553_v26, %v257_v11  ;;  %v236_v43 = vmul.f32 %v333_v40, %v519_v35 }
 0x14f   :  { %295 = vst.msk [vmem:[%s669_s3 + $0x48] sm:$0xff] %vm30_vm0, %v279_v41  ;;  %v258_v46 = vmul.f32 %v547_v14, %v235_v23 }
 0x150   :  { %v335_v24 = vpop.eup %334  ;;  %296 = vst.msk [vmem:[%s669_s3 + $0x50] sm:$0xff] %vm30_vm0, %v280_v42  ;;  %v259_v48 = vmul.f32 %v547_v14, %v236_v43 }
 0x151   :  { %v337_v17 = vpop.eup %336  ;;  %v281_v49 = vadd.f32 %v553_v26, %v258_v46  ;;  %v237_v35 = vmul.f32 %v335_v24, %v522_v21 }
 0x152   :  { %v282_v44 = vadd.f32 %v553_v26, %v259_v48  ;;  %v238_v50 = vmul.f32 %v337_v17, %v531_v47 }
 0x153   :  { %297 = vst.msk [vmem:[%s669_s3 + $0x58] sm:$0xff] %vm30_vm0, %v281_v49  ;;  %v260_v51 = vmul.f32 %v547_v14, %v237_v35 }
 0x154   :  { %v339_v37 = vpop.eup %338  ;;  %298 = vst.msk [vmem:[%s669_s3 + $0x60] sm:$0xff] %vm30_vm0, %v282_v44  ;;  %v261_v52 = vmul.f32 %v547_v14, %v238_v50 }
 0x155   :  { %v283_v21 = vadd.f32 %v553_v26, %v260_v51  ;;  %v239_v28 = vmul.f32 %v339_v37, %v534_v25 }
 0x156   :  { %v284_v47 = vadd.f32 %v553_v26, %v261_v52 }
 0x157   :  { %299 = vst.msk [vmem:[%s669_s3 + $0x68] sm:$0xff] %vm30_vm0, %v283_v21  ;;  %v262_v29 = vmul.f32 %v547_v14, %v239_v28 }
 0x158   :  { %300 = vst.msk [vmem:[%s669_s3 + $0x70] sm:$0xff] %vm30_vm0, %v284_v47 }
 0x159   :  { %v285_v53 = vadd.f32 %v553_v26, %v262_v29 }
 0x15b   :  { %301 = vst.msk [vmem:[%s669_s3 + $0x78] sm:$0xff] %vm30_vm0, %v285_v53 }

// kernel: _lambda_.16
= control target key start
LH: loop header
LB: loop body
LE: loop exit
PB: predicated region body
PF: predicated region fallthrough
CT: control target
= control target key end

     0   :  { %vm121_vm0 = vcmask 1043456   ;;  %vm96_vm1 = vcmask 195584   ;;  %vm286_vm2 = vcmask 584704   ;;  %s539_s1 = inlined_call_operand.vmem [shape: bf16[24,72], index: 1, kind: input, shape index: {}]   ;;  %s540_s3 = inlined_call_operand.vmem [shape: f32[1,24], index: 3, kind: input, shape index: {}]   ;;  %s541_s4 = inlined_call_operand.vmem [shape: f32[1,24], index: 4, kind: input, shape index: {}]   ;;  %s542_s0 = inlined_call_operand.vmem [shape: bf16[128,24], index: 0, kind: input, shape index: {}]   ;;  %s543_s2 = inlined_call_operand.vmem [shape: f32[1,72], index: 2, kind: input, shape index: {}]   ;;  %s544_s5 = inlined_call_operand.vmem [shape: bf16[128,72], index: 5, kind: output, shape index: {}]  }
   0x1   :  { %v394_v0 = vld [vmem:[%s539_s1] sm:$0xff]   ;;  %v395_v1 = vld [vmem:[%s539_s1 + $0x8] ss:$0 sps:$4 sm:$0xff]   ;;  %v400_v7 = vld [vmem:[%s542_s0 + $0x10] sm:$0xff]  }
   0x2   :  { %368 = vmatprep.subr.bf16.mxu0 %v394_v0  ;;  %388 = vmatprep.subr.bf16.mxu1 %v394_v0  ;;  %v396_v2 = vld [vmem:[%s542_s0] sm:$0xff]   ;;  %v123_v4 = vsel %vm121_vm0, %v395_v1, 0  ;;  %v398_v5 = vld [vmem:[%s542_s0 + $0x8] sm:$0xff]   ;;  %v401_v8 = vld [vmem:[%s542_s0 + $0x30] sm:$0xff]  }
   0x3   :  { %369 = vmatpush3.bf16.msra.mxu0 %v394_v0  ;;  %390 = vmatpush3.bf16.msra.mxu1 %v394_v0  ;;  %v397_v3 = vld [vmem:[%s542_s0 + $0x20] sm:$0xff]   ;;  %v399_v6 = vld [vmem:[%s542_s0 + $0x28] sm:$0xff]   ;;  %v402_v9 = vld [vmem:[%s542_s0 + $0x18] sm:$0xff]  }
   0x4   :  { %392 = vmatprep.subr.msk.bf16.mxu0 %vm121_vm0, %v395_v1  ;;  %393 = vmatprep.subr.msk.bf16.mxu1 %vm121_vm0, %v395_v1  ;;  %v403_v10 = vld [vmem:[%s542_s0 + $0x38] sm:$0xff]   ;;  %v307_v11 = vld [vmem:[%s543_s2] ss:$0 sm:$0xff] }
   0x5   :  { %372 = vmatprep.mubr.msk.bf16.mxu0 %vm96_vm1, %v396_v2  ;;  %380 = vmatprep.mubr.msk.bf16.mxu1 %vm96_vm1, %v397_v3 }
   0x7   :  { %371 = vmatpush3.bf16.msra.mxu0 %v123_v4  ;;  %391 = vmatpush3.bf16.msra.mxu1 %v123_v4 }
   0xa   :  { %373 = vmatmul.mubr.msk.bf16.vlgmr.msra.gmra.mrb[0].mxu0 %vm96_vm1, %v398_v5  ;;  %381 = vmatmul.mubr.msk.bf16.vlgmr.msra.gmra.mrb[0].mxu1 %vm96_vm1, %v399_v6 }
   0xb   :  { %376 = vmatprep.mubr.msk.bf16.mxu0 %vm96_vm1, %v400_v7  ;;  %384 = vmatprep.mubr.msk.bf16.mxu1 %vm96_vm1, %v401_v8 }
  0x12   :  { %377 = vmatmul.mubr.msk.bf16.gmra.mrb[4].mxu0 %vm96_vm1, %v402_v9  ;;  %385 = vmatmul.mubr.msk.bf16.gmra.mrb[4].mxu1 %vm96_vm1, %v403_v10 }
  0xdd   :  { %v374_v12 = vpop.f32.mrb[0].mxu0  ;;  %v382_v13 = vpop.f32.mrb[0].mxu1 }
  0xde   :  { %v168_v14 = vadd.f32 %v374_v12, %v307_v11  ;;  %v200_v15 = vadd.f32 %v382_v13, %v307_v11  ;;  %v159_v16 = vpop.f32.mrb[1].mxu0  ;;  %v191_v17 = vpop.f32.mrb[1].mxu1 }
  0xdf   :  { %v160_v18 = vadd.f32 %v307_v11, %v159_v16  ;;  %v192_v19 = vadd.f32 %v307_v11, %v191_v17  ;;  %v375_v20 = vpop.f32.mrb[2].mxu0  ;;  %v383_v21 = vpop.f32.mrb[2].mxu1 }
  0xe0   :  { %v344_v22 = vpack.c.bf16 %v168_v14, %v168_v14  ;;  %v352_v23 = vpack.c.bf16 %v200_v15, %v200_v15  ;;  %v171_v24 = vadd.f32 %v375_v20, %v307_v11  ;;  %v203_v25 = vadd.f32 %v383_v21, %v307_v11  ;;  %v162_v26 = vpop.f32.mrb[3].mxu0  ;;  %v194_v27 = vpop.f32.mrb[3].mxu1 }
  0xe1   :  { %v342_v28 = vpack.c.bf16 %v160_v18, %v160_v18  ;;  %v350_v29 = vpack.c.bf16 %v192_v19, %v192_v19  ;;  %v163_v30 = vadd.f32 %v307_v11, %v162_v26  ;;  %v195_v31 = vadd.f32 %v307_v11, %v194_v27 }
  0xe2   :  { %289 = vst.msk [vmem:[%s544_s5 + $0x8] sm:$0xf] %vm286_vm2, %v344_v22  ;;  %297 = vst.msk [vmem:[%s544_s5 + $0x28] sm:$0xf] %vm286_vm2, %v352_v23  ;;  %v345_v32 = vpack.c.bf16 %v171_v24, %v171_v24  ;;  %v353_v33 = vpack.c.bf16 %v203_v25, %v203_v25 }
  0xe3   :  { %287 = vst.msk [vmem:[%s544_s5] sm:$0xf] %vm286_vm2, %v342_v28  ;;  %295 = vst.msk [vmem:[%s544_s5 + $0x20] sm:$0xf] %vm286_vm2, %v350_v29  ;;  %v343_v34 = vpack.c.bf16 %v163_v30, %v163_v30  ;;  %v351_v35 = vpack.c.bf16 %v195_v31, %v195_v31 }
  0xe4   :  { %290 = vst.msk [vmem:[%s544_s5 + $0xc] sm:$0xf] %vm286_vm2, %v345_v32  ;;  %298 = vst.msk [vmem:[%s544_s5 + $0x2c] sm:$0xf] %vm286_vm2, %v353_v33 }
  0xe5   :  { %288 = vst.msk [vmem:[%s544_s5 + $0x4] sm:$0xf] %vm286_vm2, %v343_v34  ;;  %296 = vst.msk [vmem:[%s544_s5 + $0x24] sm:$0xf] %vm286_vm2, %v351_v35  ;;  %v378_v36 = vpop.f32.mrb[4].mxu0  ;;  %v386_v37 = vpop.f32.mrb[4].mxu1 }
  0xe6   :  { %v184_v38 = vadd.f32 %v378_v36, %v307_v11  ;;  %v216_v39 = vadd.f32 %v386_v37, %v307_v11  ;;  %v175_v40 = vpop.f32.mrb[5].mxu0  ;;  %v207_v41 = vpop.f32.mrb[5].mxu1 }
  0xe7   :  { %v176_v42 = vadd.f32 %v307_v11, %v175_v40  ;;  %v208_v43 = vadd.f32 %v307_v11, %v207_v41  ;;  %v379_v44 = vpop.f32.mrb[6].mxu0  ;;  %v387_v45 = vpop.f32.mrb[6].mxu1 }
  0xe8   :  { %v348_v46 = vpack.c.bf16 %v184_v38, %v184_v38  ;;  %v356_v47 = vpack.c.bf16 %v216_v39, %v216_v39  ;;  %v187_v48 = vadd.f32 %v379_v44, %v307_v11  ;;  %v219_v49 = vadd.f32 %v387_v45, %v307_v11  ;;  %v178_v50 = vpop.f32.mrb[7].mxu0  ;;  %v210_v51 = vpop.f32.mrb[7].mxu1 }
  0xe9   :  { %v346_v52 = vpack.c.bf16 %v176_v42, %v176_v42  ;;  %v354_v53 = vpack.c.bf16 %v208_v43, %v208_v43  ;;  %v179_v54 = vadd.f32 %v307_v11, %v178_v50  ;;  %v211_v55 = vadd.f32 %v307_v11, %v210_v51 }
  0xea   :  { %293 = vst.msk [vmem:[%s544_s5 + $0x18] sm:$0xf] %vm286_vm2, %v348_v46  ;;  %301 = vst.msk [vmem:[%s544_s5 + $0x38] sm:$0xf] %vm286_vm2, %v356_v47  ;;  %v349_v56 = vpack.c.bf16 %v187_v48, %v187_v48  ;;  %v357_v57 = vpack.c.bf16 %v219_v49, %v219_v49 }
  0xeb   :  { %291 = vst.msk [vmem:[%s544_s5 + $0x10] sm:$0xf] %vm286_vm2, %v346_v52  ;;  %299 = vst.msk [vmem:[%s544_s5 + $0x30] sm:$0xf] %vm286_vm2, %v354_v53  ;;  %v347_v58 = vpack.c.bf16 %v179_v54, %v179_v54  ;;  %v355_v59 = vpack.c.bf16 %v211_v55, %v211_v55 }
  0xec   :  { %294 = vst.msk [vmem:[%s544_s5 + $0x1c] sm:$0xf] %vm286_vm2, %v349_v56  ;;  %302 = vst.msk [vmem:[%s544_s5 + $0x3c] sm:$0xf] %vm286_vm2, %v357_v57 }
  0xed   :  { %292 = vst.msk [vmem:[%s544_s5 + $0x14] sm:$0xf] %vm286_vm2, %v347_v58  ;;  %300 = vst.msk [vmem:[%s544_s5 + $0x34] sm:$0xf] %vm286_vm2, %v355_v59 }

// kernel: _lambda_.18
= control target key start
LH: loop header
LB: loop body
LE: loop exit
PB: predicated region body
PF: predicated region fallthrough
CT: control target
= control target key end

     0   :  { %vm37_vm0 = vcmask 195584   ;;  %vm344_vm1 = vcmask 1043456   ;;  %vm509_vm2 = vcmask 781312   ;;  %s998_s0 = inlined_call_operand.vmem [shape: f32[128,24], index: 0, kind: input, shape index: {}]   ;;  %s999_s1 = inlined_call_operand.vmem [shape: bf16[24,96], index: 1, kind: input, shape index: {}]   ;;  %s1000_s3 = inlined_call_operand.vmem [shape: f32[1,24], index: 3, kind: input, shape index: {}]   ;;  %s1001_s4 = inlined_call_operand.vmem [shape: f32[1,24], index: 4, kind: input, shape index: {}]   ;;  %s1002_s2 = inlined_call_operand.vmem [shape: f32[1,96], index: 2, kind: input, shape index: {}]   ;;  %s1003_s5 = inlined_call_operand.vmem [shape: bf16[128,96], index: 5, kind: output, shape index: {}]  }
   0x1   :  { %v21_v0 = vld [vmem:[%s998_s0] sm:$0xff]  ;;  %v22_v2 = vld [vmem:[%s998_s0 + $0x8] sm:$0xff]  ;;  %v23_v8 = vld [vmem:[%s998_s0 + $0x10] sm:$0xff] }
   0x2   :  { %v29_v1 = vld [vmem:[%s998_s0 + $0x40] sm:$0xff]  ;;  %v38_v3 = vsel %vm37_vm0, %v21_v0, 0.0  ;;  %v30_v5 = vld [vmem:[%s998_s0 + $0x48] sm:$0xff]  ;;  %v41_v6 = vsel %vm37_vm0, %v22_v2, 0.0  ;;  %v24_v9 = vld [vmem:[%s998_s0 + $0x18] sm:$0xff]  ;;  %v44_v10 = vsel %vm37_vm0, %v23_v8, 0.0 }
   0x3   :  { %v62_v4 = vsel %vm37_vm0, %v29_v1, 0.0  ;;  %39 = vadd.xlane.f32.xlu0 %v38_v3  ;;  %v65_v7 = vsel %vm37_vm0, %v30_v5, 0.0  ;;  %v47_v11 = vsel %vm37_vm0, %v24_v9, 0.0  ;;  %v702_v12 = vld [vmem:[%s998_s0 + $0x50] sm:$0xff]  ;;  %v707_v13 = vld [vmem:[%s998_s0 + $0x58] sm:$0xff]  ;;  %v716_v16 = vld [vmem:[%s998_s0 + $0x20] sm:$0xff] }
   0x4   :  { %63 = vadd.xlane.f32.xlu1 %v62_v4  ;;  %v68_v14 = vsel %vm37_vm0, %v702_v12, 0.0  ;;  %v71_v15 = vsel %vm37_vm0, %v707_v13, 0.0  ;;  %v721_v17 = vld [vmem:[%s998_s0 + $0x28] sm:$0xff]  ;;  %v50_v18 = vsel %vm37_vm0, %v716_v16, 0.0  ;;  %v730_v20 = vld [vmem:[%s998_s0 + $0x60] sm:$0xff]  ;;  %v744_v24 = vld [vmem:[%s998_s0 + $0x30] sm:$0xff] }
   0x5   :  { %v53_v19 = vsel %vm37_vm0, %v721_v17, 0.0  ;;  %v735_v21 = vld [vmem:[%s998_s0 + $0x68] sm:$0xff]  ;;  %v74_v22 = vsel %vm37_vm0, %v730_v20, 0.0  ;;  %v749_v25 = vld [vmem:[%s998_s0 + $0x38] sm:$0xff]  ;;  %v56_v26 = vsel %vm37_vm0, %v744_v24, 0.0  ;;  %v758_v28 = vld [vmem:[%s998_s0 + $0x70] sm:$0xff] }
   0x6   :  { %v77_v23 = vsel %vm37_vm0, %v735_v21, 0.0  ;;  %v59_v27 = vsel %vm37_vm0, %v749_v25, 0.0  ;;  %v763_v29 = vld [vmem:[%s998_s0 + $0x78] sm:$0xff]  ;;  %v80_v30 = vsel %vm37_vm0, %v758_v28, 0.0 }
   0x7   :  { %42 = vadd.xlane.f32.xlu0 %v41_v6  ;;  %v83_v31 = vsel %vm37_vm0, %v763_v29, 0.0 }
   0x8   :  { %66 = vadd.xlane.f32.xlu1 %v65_v7 }
   0xb   :  { %45 = vadd.xlane.f32.xlu0 %v44_v10 }
   0xc   :  { %48 = vadd.xlane.f32.xlu1 %v47_v11 }
   0xf   :  { %69 = vadd.xlane.f32.xlu0 %v68_v14 }
  0x10   :  { %72 = vadd.xlane.f32.xlu1 %v71_v15 }
  0x13   :  { %51 = vadd.xlane.f32.xlu0 %v50_v18 }
  0x14   :  { %54 = vadd.xlane.f32.xlu1 %v53_v19 }
  0x17   :  { %75 = vadd.xlane.f32.xlu0 %v74_v22 }
  0x18   :  { %78 = vadd.xlane.f32.xlu1 %v77_v23 }
  0x1b   :  { %57 = vadd.xlane.f32.xlu0 %v56_v26 }
  0x1c   :  { %60 = vadd.xlane.f32.xlu1 %v59_v27 }
  0x1f   :  { %81 = vadd.xlane.f32.xlu0 %v80_v30 }
  0x20   :  { %84 = vadd.xlane.f32.xlu1 %v83_v31 }
  0x90   :  { %v40_v32 = vpop.xlane.xlu0 %39 }
  0x91   :  { %v64_v33 = vpop.xlane.xlu1 %63  ;;  %v87_v34 = vmul.f32 0.041666668, %v40_v32 }
  0x92   :  { %v95_v35 = vmul.f32 0.041666668, %v64_v33 }
  0x93   :  { %v769_v36 = vsub.f32 %v21_v0, %v87_v34 }
  0x94   :  { %v771_v37 = vsub.f32 %v29_v1, %v95_v35  ;;  %v43_v38 = vpop.xlane.xlu0 %42 }
  0x95   :  { %v67_v39 = vpop.xlane.xlu1 %66  ;;  %v88_v40 = vmul.f32 0.041666668, %v43_v38  ;;  %v119_v42 = vmul.f32 %v769_v36, %v769_v36 }
  0x96   :  { %v96_v41 = vmul.f32 0.041666668, %v67_v39  ;;  %v127_v43 = vmul.f32 %v771_v37, %v771_v37 }
  0x97   :  { %v777_v44 = vsub.f32 %v22_v2, %v88_v40  ;;  %v135_v46 = vsel %vm37_vm0, %v119_v42, 0.0 }
  0x98   :  { %v779_v45 = vsub.f32 %v30_v5, %v96_v41  ;;  %136 = vadd.xlane.f32.xlu0 %v135_v46  ;;  %v46_v47 = vpop.xlane.xlu0 %45  ;;  %v159_v49 = vsel %vm37_vm0, %v127_v43, 0.0 }
  0x99   :  { %v49_v48 = vpop.xlane.xlu1 %48  ;;  %v89_v50 = vmul.f32 0.041666668, %v46_v47  ;;  %v120_v52 = vmul.f32 %v777_v44, %v777_v44 }
  0x9a   :  { %v90_v51 = vmul.f32 0.041666668, %v49_v48  ;;  %v128_v53 = vmul.f32 %v779_v45, %v779_v45 }
  0x9b   :  { %v787_v54 = vsub.f32 %v23_v8, %v89_v50  ;;  %v138_v56 = vsel %vm37_vm0, %v120_v52, 0.0 }
  0x9c   :  { %v789_v55 = vsub.f32 %v24_v9, %v90_v51  ;;  %160 = vadd.xlane.f32.xlu0 %v159_v49  ;;  %139 = vadd.xlane.f32.xlu1 %v138_v56  ;;  %v70_v57 = vpop.xlane.xlu0 %69  ;;  %v162_v59 = vsel %vm37_vm0, %v128_v53, 0.0  ;;  %v612_v53 = vld [vmem:[%s999_s1 + $0x8] ss:$0 sps:$4 sm:$0xff]  }
  0x9d   :  { %v73_v58 = vpop.xlane.xlu1 %72  ;;  %v97_v60 = vmul.f32 0.041666668, %v70_v57  ;;  %v121_v62 = vmul.f32 %v787_v54, %v787_v54  ;;  %v346_v56 = vsel %vm344_vm1, %v612_v53, 0 }
  0x9e   :  { %v98_v61 = vmul.f32 0.041666668, %v73_v58  ;;  %v122_v63 = vmul.f32 %v789_v55, %v789_v55 }
  0x9f   :  { %v798_v0 = vsub.f32 %v702_v12, %v97_v60  ;;  %v141_v2 = vsel %vm37_vm0, %v121_v62, 0.0 }
  0xa0   :  { %v801_v1 = vsub.f32 %v707_v13, %v98_v61  ;;  %163 = vadd.xlane.f32.xlu1 %v162_v59  ;;  %142 = vadd.xlane.f32.xlu0 %v141_v2  ;;  %v52_v3 = vpop.xlane.xlu0 %51  ;;  %v144_v5 = vsel %vm37_vm0, %v122_v63, 0.0 }
  0xa1   :  { %v55_v4 = vpop.xlane.xlu1 %54  ;;  %v91_v6 = vmul.f32 0.041666668, %v52_v3  ;;  %v129_v8 = vmul.f32 %v798_v0, %v798_v0 }
  0xa2   :  { %v92_v7 = vmul.f32 0.041666668, %v55_v4  ;;  %v130_v9 = vmul.f32 %v801_v1, %v801_v1 }
  0xa3   :  { %v810_v10 = vsub.f32 %v716_v16, %v91_v6  ;;  %v165_v12 = vsel %vm37_vm0, %v129_v8, 0.0 }
  0xa4   :  { %v813_v11 = vsub.f32 %v721_v17, %v92_v7  ;;  %145 = vadd.xlane.f32.xlu1 %v144_v5  ;;  %166 = vadd.xlane.f32.xlu0 %v165_v12  ;;  %v76_v13 = vpop.xlane.xlu0 %75  ;;  %v168_v15 = vsel %vm37_vm0, %v130_v9, 0.0 }
  0xa5   :  { %v79_v14 = vpop.xlane.xlu1 %78  ;;  %v99_v18 = vmul.f32 0.041666668, %v76_v13  ;;  %v123_v22 = vmul.f32 %v810_v10, %v810_v10 }
  0xa6   :  { %v100_v19 = vmul.f32 0.041666668, %v79_v14  ;;  %v124_v16 = vmul.f32 %v813_v11, %v813_v11 }
  0xa7   :  { %v822_v23 = vsub.f32 %v730_v20, %v99_v18  ;;  %v147_v26 = vsel %vm37_vm0, %v123_v22, 0.0 }
  0xa8   :  { %v825_v17 = vsub.f32 %v735_v21, %v100_v19  ;;  %169 = vadd.xlane.f32.xlu1 %v168_v15  ;;  %148 = vadd.xlane.f32.xlu0 %v147_v26  ;;  %v58_v27 = vpop.xlane.xlu0 %57  ;;  %v150_v31 = vsel %vm37_vm0, %v124_v16, 0.0 }
  0xa9   :  { %v61_v30 = vpop.xlane.xlu1 %60  ;;  %v93_v32 = vmul.f32 0.041666668, %v58_v27  ;;  %v131_v34 = vmul.f32 %v822_v23, %v822_v23 }
  0xaa   :  { %v94_v33 = vmul.f32 0.041666668, %v61_v30  ;;  %v132_v20 = vmul.f32 %v825_v17, %v825_v17 }
  0xab   :  { %v834_v35 = vsub.f32 %v744_v24, %v93_v32  ;;  %v171_v38 = vsel %vm37_vm0, %v131_v34, 0.0  ;;  %v869_v32 = vld [vmem:[%s1000_s3] ss:$0 sm:$0xff] }
  0xac   :  { %v837_v21 = vsub.f32 %v749_v25, %v94_v33  ;;  %151 = vadd.xlane.f32.xlu1 %v150_v31  ;;  %172 = vadd.xlane.f32.xlu0 %v171_v38  ;;  %v82_v39 = vpop.xlane.xlu0 %81  ;;  %v174_v41 = vsel %vm37_vm0, %v132_v20, 0.0 }
  0xad   :  { %v85_v40 = vpop.xlane.xlu1 %84  ;;  %v101_v42 = vmul.f32 0.041666668, %v82_v39  ;;  %v125_v46 = vmul.f32 %v834_v35, %v834_v35 }
  0xae   :  { %v102_v43 = vmul.f32 0.041666668, %v85_v40  ;;  %v126_v24 = vmul.f32 %v837_v21, %v837_v21 }
  0xaf   :  { %v846_v47 = vsub.f32 %v758_v28, %v101_v42  ;;  %v153_v48 = vsel %vm37_vm0, %v125_v46, 0.0  ;;  %v876_v46 = vld [vmem:[%s1001_s4] ss:$0 sm:$0xff] }
  0xb0   :  { %v849_v25 = vsub.f32 %v763_v29, %v102_v43  ;;  %175 = vadd.xlane.f32.xlu1 %v174_v41  ;;  %154 = vadd.xlane.f32.xlu0 %v153_v48  ;;  %v156_v49 = vsel %vm37_vm0, %v126_v24, 0.0  ;;  %v611_v29 = vld [vmem:[%s999_s1] sm:$0xff]  }
  0xb1   :  { %v133_v50 = vmul.f32 %v846_v47, %v846_v47  ;;  %585 = vmatprep.subr.bf16.mxu0 %v611_v29  ;;  %605 = vmatprep.subr.bf16.mxu1 %v611_v29 }
  0xb2   :  { %v134_v51 = vmul.f32 %v849_v25, %v849_v25  ;;  %586 = vmatpush3.bf16.msra.mxu0 %v611_v29  ;;  %607 = vmatpush3.bf16.msra.mxu1 %v611_v29 }
  0xb3   :  { %v177_v52 = vsel %vm37_vm0, %v133_v50, 0.0  ;;  %609 = vmatprep.subr.msk.bf16.mxu0 %vm344_vm1, %v612_v53  ;;  %610 = vmatprep.subr.msk.bf16.mxu1 %vm344_vm1, %v612_v53 }
  0xb4   :  { %157 = vadd.xlane.f32.xlu1 %v156_v49  ;;  %178 = vadd.xlane.f32.xlu0 %v177_v52  ;;  %v180_v28 = vsel %vm37_vm0, %v134_v51, 0.0 }
  0xb6   :  { %588 = vmatpush3.bf16.msra.mxu0 %v346_v56  ;;  %608 = vmatpush3.bf16.msra.mxu1 %v346_v56 }
  0xb8   :  { %181 = vadd.xlane.f32.xlu1 %v180_v28 }
 0x125   :  { %v137_v57 = vpop.xlane.xlu0 %136 }
 0x126   :  { %v183_v58 = vmul.f32 0.041666668, %v137_v57 }
 0x128   :  { %v199_v59 = vadd.f32 1e-05, %v183_v58 }
 0x129   :  { %v140_v60 = vpop.xlane.xlu1 %139  ;;  %v161_v61 = vpop.xlane.xlu0 %160 }
 0x12a   :  { %613 = vrsqrt.f32 %v199_v59  ;;  %v184_v62 = vmul.f32 0.041666668, %v140_v60  ;;  %v191_v63 = vmul.f32 0.041666668, %v161_v61 }
 0x12c   :  { %v200_v2 = vadd.f32 1e-05, %v184_v62  ;;  %v207_v3 = vadd.f32 1e-05, %v191_v63 }
 0x12d   :  { %v164_v4 = vpop.xlane.xlu1 %163  ;;  %v143_v5 = vpop.xlane.xlu0 %142 }
 0x12e   :  { %615 = vrsqrt.f32 %v200_v2  ;;  %v192_v6 = vmul.f32 0.041666668, %v164_v4  ;;  %v185_v7 = vmul.f32 0.041666668, %v143_v5 }
 0x12f   :  { %617 = vrsqrt.f32 %v207_v3 }
 0x130   :  { %v208_v8 = vadd.f32 1e-05, %v192_v6  ;;  %v201_v9 = vadd.f32 1e-05, %v185_v7 }
 0x131   :  { %v146_v12 = vpop.xlane.xlu1 %145  ;;  %v167_v13 = vpop.xlane.xlu0 %166 }
 0x132   :  { %619 = vrsqrt.f32 %v208_v8  ;;  %v186_v14 = vmul.f32 0.041666668, %v146_v12  ;;  %v193_v15 = vmul.f32 0.041666668, %v167_v13 }
 0x133   :  { %621 = vrsqrt.f32 %v201_v9 }
 0x134   :  { %v614_v18 = vpop.eup %613  ;;  %v202_v19 = vadd.f32 1e-05, %v186_v14  ;;  %v209_v22 = vadd.f32 1e-05, %v193_v15 }
 0x135   :  { %v170_v16 = vpop.xlane.xlu1 %169  ;;  %v149_v26 = vpop.xlane.xlu0 %148  ;;  %v231_v27 = vmul.f32 %v614_v18, %v769_v36 }
 0x136   :  { %623 = vrsqrt.f32 %v202_v19  ;;  %v194_v30 = vmul.f32 0.041666668, %v170_v16  ;;  %v187_v31 = vmul.f32 0.041666668, %v149_v26 }
 0x137   :  { %625 = vrsqrt.f32 %v209_v22  ;;  %v254_v42 = vmul.f32 %v869_v32, %v231_v27 }
 0x138   :  { %v616_v33 = vpop.eup %615  ;;  %v210_v34 = vadd.f32 1e-05, %v194_v30  ;;  %v203_v20 = vadd.f32 1e-05, %v187_v31 }
 0x139   :  { %v618_v38 = vpop.eup %617  ;;  %v152_v39 = vpop.xlane.xlu1 %151  ;;  %v232_v41 = vmul.f32 %v616_v33, %v777_v44  ;;  %v277_v29 = vadd.f32 %v876_v46, %v254_v42 }
 0x13a   :  { %v173_v40 = vpop.xlane.xlu0 %172  ;;  %627 = vrsqrt.f32 %v210_v34  ;;  %v188_v36 = vmul.f32 0.041666668, %v152_v39  ;;  %v239_v24 = vmul.f32 %v618_v38, %v771_v37 }
 0x13b   :  { %v195_v43 = vmul.f32 0.041666668, %v173_v40  ;;  %629 = vrsqrt.f32 %v203_v20  ;;  %v255_v48 = vmul.f32 %v869_v32, %v232_v41 }
 0x13c   :  { %v620_v49 = vpop.eup %619  ;;  %v204_v50 = vadd.f32 1e-05, %v188_v36  ;;  %v262_v57 = vmul.f32 %v869_v32, %v239_v24 }
 0x13d   :  { %v211_v51 = vadd.f32 1e-05, %v195_v43  ;;  %v622_v52 = vpop.eup %621  ;;  %v176_v44 = vpop.xlane.xlu1 %175  ;;  %v278_v53 = vadd.f32 %v876_v46, %v255_v48  ;;  %v240_v56 = vmul.f32 %v620_v49, %v779_v45 }
 0x13e   :  { %v155_v28 = vpop.xlane.xlu0 %154  ;;  %v233_v58 = vmul.f32 %v622_v52, %v787_v54  ;;  %631 = vrsqrt.f32 %v204_v50  ;;  %v196_v37 = vmul.f32 0.041666668, %v176_v44  ;;  %v285_v6 = vadd.f32 %v876_v46, %v262_v57 }
 0x13f   :  { %v189_v59 = vmul.f32 0.041666668, %v155_v28  ;;  %633 = vrsqrt.f32 %v211_v51  ;;  %v293_v60 = vpack.c.bf16 %v278_v53, %v277_v29  ;;  %v263_v61 = vmul.f32 %v869_v32, %v240_v56 }
 0x140   :  { %v624_v62 = vpop.eup %623  ;;  %v212_v63 = vadd.f32 1e-05, %v196_v37  ;;  %v256_v7 = vmul.f32 %v869_v32, %v233_v58 }
 0x141   :  { %v205_v2 = vadd.f32 1e-05, %v189_v59  ;;  %v626_v3 = vpop.eup %625  ;;  %v234_v4 = vmul.f32 %v624_v62, %v789_v55  ;;  %v158_v5 = vpop.xlane.xlu1 %157  ;;  %589 = vmatprep.mubr.msk.bf16.mxu0 %vm37_vm0, %v293_v60  ;;  %v286_v54 = vadd.f32 %v876_v46, %v263_v61 }
 0x142   :  { %v179_v45 = vpop.xlane.xlu0 %178  ;;  %v241_v8 = vmul.f32 %v626_v3, %v798_v0  ;;  %635 = vrsqrt.f32 %v212_v63  ;;  %v190_v9 = vmul.f32 0.041666668, %v158_v5  ;;  %v279_v26 = vadd.f32 %v876_v46, %v256_v7 }
 0x143   :  { %v197_v12 = vmul.f32 0.041666668, %v179_v45  ;;  %637 = vrsqrt.f32 %v205_v2  ;;  %v297_v13 = vpack.c.bf16 %v286_v54, %v285_v6  ;;  %v257_v14 = vmul.f32 %v869_v32, %v234_v4 }
 0x144   :  { %v628_v55 = vpop.eup %627  ;;  %v206_v15 = vadd.f32 1e-05, %v190_v9  ;;  %v264_v27 = vmul.f32 %v869_v32, %v241_v8 }
 0x145   :  { %v213_v18 = vadd.f32 1e-05, %v197_v12  ;;  %v630_v19 = vpop.eup %629  ;;  %v242_v22 = vmul.f32 %v628_v55, %v801_v1  ;;  %v182_v16 = vpop.xlane.xlu1 %181  ;;  %597 = vmatprep.mubr.msk.bf16.mxu1 %vm37_vm0, %v297_v13  ;;  %v280_v0 = vadd.f32 %v876_v46, %v257_v14 }
 0x146   :  { %v235_v30 = vmul.f32 %v630_v19, %v810_v10  ;;  %639 = vrsqrt.f32 %v206_v15  ;;  %v198_v31 = vmul.f32 0.041666668, %v182_v16  ;;  %v287_v40 = vadd.f32 %v876_v46, %v264_v27 }
 0x147   :  { %641 = vrsqrt.f32 %v213_v18  ;;  %v294_v33 = vpack.c.bf16 %v280_v0, %v279_v26  ;;  %v265_v34 = vmul.f32 %v869_v32, %v242_v22 }
 0x148   :  { %v632_v20 = vpop.eup %631  ;;  %v214_v38 = vadd.f32 1e-05, %v198_v31  ;;  %v258_v42 = vmul.f32 %v869_v32, %v235_v30 }
 0x149   :  { %v634_v1 = vpop.eup %633  ;;  %v236_v39 = vmul.f32 %v632_v20, %v813_v11  ;;  %590 = vmatmul.mubr.msk.bf16.vlgmr.msra.gmra.mrb[0].mxu0 %vm37_vm0, %v294_v33  ;;  %v288_v41 = vadd.f32 %v876_v46, %v265_v34 }
 0x14a   :  { %v243_v10 = vmul.f32 %v634_v1, %v822_v23  ;;  %643 = vrsqrt.f32 %v214_v38  ;;  %v281_v11 = vadd.f32 %v876_v46, %v258_v42 }
 0x14b   :  { %v298_v36 = vpack.c.bf16 %v288_v41, %v287_v40  ;;  %v259_v43 = vmul.f32 %v869_v32, %v236_v39 }
 0x14c   :  { %v636_v24 = vpop.eup %635  ;;  %v266_v51 = vmul.f32 %v869_v32, %v243_v10 }
 0x14d   :  { %v638_v48 = vpop.eup %637  ;;  %v244_v49 = vmul.f32 %v636_v24, %v825_v17  ;;  %598 = vmatmul.mubr.msk.bf16.vlgmr.msra.gmra.mrb[0].mxu1 %vm37_vm0, %v298_v36  ;;  %v282_v50 = vadd.f32 %v876_v46, %v259_v43 }
 0x14e   :  { %v237_v52 = vmul.f32 %v638_v48, %v834_v35  ;;  %v289_v17 = vadd.f32 %v876_v46, %v266_v51 }
 0x14f   :  { %v295_v44 = vpack.c.bf16 %v282_v50, %v281_v11  ;;  %v267_v23 = vmul.f32 %v869_v32, %v244_v49 }
 0x150   :  { %v640_v28 = vpop.eup %639  ;;  %v260_v57 = vmul.f32 %v869_v32, %v237_v52 }
 0x151   :  { %v642_v29 = vpop.eup %641  ;;  %v238_v53 = vmul.f32 %v640_v28, %v837_v21  ;;  %593 = vmatprep.mubr.msk.bf16.mxu0 %vm37_vm0, %v295_v44  ;;  %v290_v56 = vadd.f32 %v876_v46, %v267_v23 }
 0x152   :  { %v245_v58 = vmul.f32 %v642_v29, %v846_v47  ;;  %v283_v21 = vadd.f32 %v876_v46, %v260_v57 }
 0x153   :  { %v299_v37 = vpack.c.bf16 %v290_v56, %v289_v17  ;;  %v261_v35 = vmul.f32 %v869_v32, %v238_v53 }
 0x154   :  { %v644_v59 = vpop.eup %643  ;;  %v268_v62 = vmul.f32 %v869_v32, %v245_v58 }
 0x155   :  { %v246_v60 = vmul.f32 %v644_v59, %v849_v25  ;;  %601 = vmatprep.mubr.msk.bf16.mxu1 %vm37_vm0, %v299_v37  ;;  %v284_v61 = vadd.f32 %v876_v46, %v261_v35  ;;  %v532_v25 = vld [vmem:[%s1002_s2] ss:$0 sm:$0xff] }
 0x156   :  { %v291_v47 = vadd.f32 %v876_v46, %v268_v62 }
 0x157   :  { %v296_v63 = vpack.c.bf16 %v284_v61, %v283_v21  ;;  %v269_v2 = vmul.f32 %v869_v32, %v246_v60 }
 0x159   :  { %594 = vmatmul.mubr.msk.bf16.gmra.mrb[4].mxu0 %vm37_vm0, %v296_v63  ;;  %v292_v3 = vadd.f32 %v876_v46, %v269_v2 }
 0x15b   :  { %v300_v4 = vpack.c.bf16 %v292_v3, %v291_v47 }
 0x15d   :  { %602 = vmatmul.mubr.msk.bf16.gmra.mrb[4].mxu1 %vm37_vm0, %v300_v4 }
 0x21c   :  { %v591_v5 = vpop.f32.mrb[0].mxu0 }
 0x21d   :  { %v391_v45 = vadd.f32 %v591_v5, %v532_v25  ;;  %v382_v6 = vpop.f32.mrb[1].mxu0 }
 0x21e   :  { %v383_v54 = vadd.f32 %v532_v25, %v382_v6  ;;  %v592_v7 = vpop.f32.mrb[2].mxu0 }
 0x21f   :  { %v561_v32 = vpack.c.bf16 %v391_v45, %v391_v45  ;;  %v394_v8 = vadd.f32 %v592_v7, %v532_v25  ;;  %v385_v9 = vpop.f32.mrb[3].mxu0 }
 0x220   :  { %v559_v12 = vpack.c.bf16 %v383_v54, %v383_v54  ;;  %v386_v13 = vadd.f32 %v532_v25, %v385_v9  ;;  %v599_v14 = vpop.f32.mrb[0].mxu1 }
 0x221   :  { %512 = vst.msk [vmem:[%s1003_s5 + $0x8] sm:$0xf] %vm509_vm2, %v561_v32  ;;  %v562_v46 = vpack.c.bf16 %v394_v8, %v394_v8  ;;  %v423_v55 = vadd.f32 %v599_v14, %v532_v25  ;;  %v414_v15 = vpop.f32.mrb[1].mxu1 }
 0x222   :  { %510 = vst.msk [vmem:[%s1003_s5] sm:$0xf] %vm509_vm2, %v559_v12  ;;  %v560_v18 = vpack.c.bf16 %v386_v13, %v386_v13  ;;  %v415_v19 = vadd.f32 %v532_v25, %v414_v15  ;;  %v600_v22 = vpop.f32.mrb[2].mxu1 }
 0x223   :  { %513 = vst.msk [vmem:[%s1003_s5 + $0xc] sm:$0xf] %vm509_vm2, %v562_v46  ;;  %v569_v16 = vpack.c.bf16 %v423_v55, %v423_v55  ;;  %v426_v26 = vadd.f32 %v600_v22, %v532_v25  ;;  %v417_v0 = vpop.f32.mrb[3].mxu1 }
 0x224   :  { %511 = vst.msk [vmem:[%s1003_s5 + $0x4] sm:$0xf] %vm509_vm2, %v560_v18  ;;  %v567_v27 = vpack.c.bf16 %v415_v19, %v415_v19  ;;  %v418_v30 = vadd.f32 %v532_v25, %v417_v0 }
 0x225   :  { %520 = vst.msk [vmem:[%s1003_s5 + $0x28] sm:$0xf] %vm509_vm2, %v569_v16  ;;  %v570_v31 = vpack.c.bf16 %v426_v26, %v426_v26 }
 0x226   :  { %518 = vst.msk [vmem:[%s1003_s5 + $0x20] sm:$0xf] %vm509_vm2, %v567_v27  ;;  %v568_v33 = vpack.c.bf16 %v418_v30, %v418_v30 }
 0x227   :  { %521 = vst.msk [vmem:[%s1003_s5 + $0x2c] sm:$0xf] %vm509_vm2, %v570_v31 }
 0x228   :  { %519 = vst.msk [vmem:[%s1003_s5 + $0x24] sm:$0xf] %vm509_vm2, %v568_v33 }
 0x22c   :  { %v595_v34 = vpop.f32.mrb[4].mxu0 }
 0x22d   :  { %v407_v20 = vadd.f32 %v595_v34, %v532_v25  ;;  %v398_v38 = vpop.f32.mrb[5].mxu0 }
 0x22e   :  { %v399_v1 = vadd.f32 %v532_v25, %v398_v38  ;;  %v596_v39 = vpop.f32.mrb[6].mxu0 }
 0x22f   :  { %v565_v40 = vpack.c.bf16 %v407_v20, %v407_v20  ;;  %v410_v41 = vadd.f32 %v596_v39, %v532_v25  ;;  %v401_v42 = vpop.f32.mrb[7].mxu0 }
 0x230   :  { %v563_v10 = vpack.c.bf16 %v399_v1, %v399_v1  ;;  %v402_v36 = vadd.f32 %v532_v25, %v401_v42  ;;  %v603_v43 = vpop.f32.mrb[4].mxu1 }
 0x231   :  { %516 = vst.msk [vmem:[%s1003_s5 + $0x18] sm:$0xf] %vm509_vm2, %v565_v40  ;;  %v566_v24 = vpack.c.bf16 %v410_v41, %v410_v41  ;;  %v439_v48 = vadd.f32 %v603_v43, %v532_v25  ;;  %v430_v49 = vpop.f32.mrb[5].mxu1 }
 0x232   :  { %514 = vst.msk [vmem:[%s1003_s5 + $0x10] sm:$0xf] %vm509_vm2, %v563_v10  ;;  %v564_v11 = vpack.c.bf16 %v402_v36, %v402_v36  ;;  %v431_v50 = vadd.f32 %v532_v25, %v430_v49  ;;  %v604_v51 = vpop.f32.mrb[6].mxu1 }
 0x233   :  { %517 = vst.msk [vmem:[%s1003_s5 + $0x1c] sm:$0xf] %vm509_vm2, %v566_v24  ;;  %v573_v52 = vpack.c.bf16 %v439_v48, %v439_v48  ;;  %v442_v44 = vadd.f32 %v604_v51, %v532_v25  ;;  %v433_v23 = vpop.f32.mrb[7].mxu1 }
 0x234   :  { %515 = vst.msk [vmem:[%s1003_s5 + $0x14] sm:$0xf] %vm509_vm2, %v564_v11  ;;  %v571_v28 = vpack.c.bf16 %v431_v50, %v431_v50  ;;  %v434_v29 = vadd.f32 %v532_v25, %v433_v23 }
 0x235   :  { %524 = vst.msk [vmem:[%s1003_s5 + $0x38] sm:$0xf] %vm509_vm2, %v573_v52  ;;  %v574_v53 = vpack.c.bf16 %v442_v44, %v442_v44 }
 0x236   :  { %522 = vst.msk [vmem:[%s1003_s5 + $0x30] sm:$0xf] %vm509_vm2, %v571_v28  ;;  %v572_v17 = vpack.c.bf16 %v434_v29, %v434_v29 }
 0x237   :  { %525 = vst.msk [vmem:[%s1003_s5 + $0x3c] sm:$0xf] %vm509_vm2, %v574_v53 }
 0x238   :  { %523 = vst.msk [vmem:[%s1003_s5 + $0x34] sm:$0xf] %vm509_vm2, %v572_v17 }

// kernel: _lambda_.19
= control target key start
LH: loop header
LB: loop body
LE: loop exit
PB: predicated region body
PF: predicated region fallthrough
CT: control target
= control target key end

     0   :  { %vm132_vm0 = vcmask 785408   ;;  %vm254_vm1 = vcmask 195584   ;;  %s513_s1 = inlined_call_operand.vmem [shape: bf16[96,24], index: 1, kind: input, shape index: {}]   ;;  %s514_s3 = inlined_call_operand.vmem [shape: f32[1,96], index: 3, kind: input, shape index: {}]   ;;  %s515_s4 = inlined_call_operand.vmem [shape: f32[1,96], index: 4, kind: input, shape index: {}]   ;;  %s516_s0 = inlined_call_operand.vmem [shape: bf16[128,96], index: 0, kind: input, shape index: {}]   ;;  %s517_s2 = inlined_call_operand.vmem [shape: f32[1,24], index: 2, kind: input, shape index: {}]   ;;  %s518_s5 = inlined_call_operand.vmem [shape: f32[128,24], index: 5, kind: output, shape index: {}]  }
   0x1   :  { %v352_v0 = vld [vmem:[%s513_s1] sm:$0xff]   ;;  %v353_v1 = vld [vmem:[%s513_s1 + $0x8] sm:$0xff]   ;;  %v354_v2 = vld [vmem:[%s513_s1 + $0x10] sm:$0xff]  }
   0x2   :  { %312 = vmatprep.subr.bf16.mxu0 %v352_v0  ;;  %340 = vmatprep.subr.bf16.mxu1 %v352_v0  ;;  %v358_v3 = vld [vmem:[%s516_s0] sm:$0xff]   ;;  %v355_v5 = vld [vmem:[%s513_s1 + $0x18] sm:$0xff]   ;;  %v357_v7 = vld [vmem:[%s513_s1 + $0x28] sm:$0xff]  }
   0x3   :  { %313 = vmatpush3.bf16.msra.mxu0 %v352_v0  ;;  %346 = vmatpush3.bf16.msra.mxu1 %v352_v0  ;;  %v359_v4 = vld [vmem:[%s516_s0 + $0x20] sm:$0xff]   ;;  %v360_v8 = vld [vmem:[%s516_s0 + $0x8] sm:$0xff]   ;;  %v362_v10 = vld [vmem:[%s516_s0 + $0x10] sm:$0xff]  }
   0x4   :  { %314 = vmatprep.subr.bf16.mxu0 %v353_v1  ;;  %341 = vmatprep.subr.bf16.mxu1 %v353_v1  ;;  %v356_v6 = vld [vmem:[%s513_s1 + $0x20] sm:$0xff]   ;;  %v361_v9 = vld [vmem:[%s516_s0 + $0x28] sm:$0xff]   ;;  %v363_v11 = vld [vmem:[%s516_s0 + $0x30] sm:$0xff]  }
   0x5   :  { %324 = vmatprep.mubr.msk.bf16.mxu0 %vm132_vm0, %v358_v3  ;;  %332 = vmatprep.mubr.msk.bf16.mxu1 %vm132_vm0, %v359_v4  ;;  %v364_v12 = vld [vmem:[%s516_s0 + $0x18] sm:$0xff]   ;;  %v275_v14 = vld [vmem:[%s517_s2] ss:$0 sm:$0xff] }
   0x6   :  { %v365_v13 = vld [vmem:[%s516_s0 + $0x38] sm:$0xff]  }
   0x7   :  { %315 = vmatpush3.bf16.msra.mxu0 %v353_v1  ;;  %347 = vmatpush3.bf16.msra.mxu1 %v353_v1 }
   0x8   :  { %316 = vmatprep.subr.bf16.mxu0 %v354_v2  ;;  %342 = vmatprep.subr.bf16.mxu1 %v354_v2 }
   0xb   :  { %317 = vmatpush3.bf16.msra.mxu0 %v354_v2  ;;  %348 = vmatpush3.bf16.msra.mxu1 %v354_v2 }
   0xc   :  { %318 = vmatprep.subr.bf16.mxu0 %v355_v5  ;;  %343 = vmatprep.subr.bf16.mxu1 %v355_v5 }
   0xf   :  { %319 = vmatpush3.bf16.msra.mxu0 %v355_v5  ;;  %349 = vmatpush3.bf16.msra.mxu1 %v355_v5 }
  0x10   :  { %320 = vmatprep.subr.bf16.mxu0 %v356_v6  ;;  %344 = vmatprep.subr.bf16.mxu1 %v356_v6 }
  0x13   :  { %321 = vmatpush3.bf16.msra.mxu0 %v356_v6  ;;  %350 = vmatpush3.bf16.msra.mxu1 %v356_v6 }
  0x14   :  { %322 = vmatprep.subr.bf16.mxu0 %v357_v7  ;;  %345 = vmatprep.subr.bf16.mxu1 %v357_v7 }
  0x17   :  { %323 = vmatpush3.bf16.msra.mxu0 %v357_v7  ;;  %351 = vmatpush3.bf16.msra.mxu1 %v357_v7 }
  0x1a   :  { %325 = vmatmul.mubr.msk.bf16.vlgmr.msra.gmra.mrb[0].mxu0 %vm132_vm0, %v360_v8  ;;  %333 = vmatmul.mubr.msk.bf16.vlgmr.msra.gmra.mrb[0].mxu1 %vm132_vm0, %v361_v9 }
  0x1b   :  { %328 = vmatprep.mubr.msk.bf16.mxu0 %vm132_vm0, %v362_v10  ;;  %336 = vmatprep.mubr.msk.bf16.mxu1 %vm132_vm0, %v363_v11 }
  0x22   :  { %329 = vmatmul.mubr.msk.bf16.gmra.mrb[4].mxu0 %vm132_vm0, %v364_v12  ;;  %337 = vmatmul.mubr.msk.bf16.gmra.mrb[4].mxu1 %vm132_vm0, %v365_v13 }
  0xed   :  { %v326_v15 = vpop.f32.mrb[0].mxu0  ;;  %v334_v16 = vpop.f32.mrb[0].mxu1 }
  0xee   :  { %v200_v17 = vadd.f32 %v326_v15, %v275_v14  ;;  %v232_v18 = vadd.f32 %v334_v16, %v275_v14  ;;  %v191_v19 = vpop.f32.mrb[1].mxu0  ;;  %v223_v20 = vpop.f32.mrb[1].mxu1 }
  0xef   :  { %v192_v21 = vadd.f32 %v275_v14, %v191_v19  ;;  %v224_v22 = vadd.f32 %v275_v14, %v223_v20  ;;  %v327_v23 = vpop.f32.mrb[2].mxu0  ;;  %v335_v24 = vpop.f32.mrb[2].mxu1 }
  0xf0   :  { %257 = vst.msk [vmem:[%s518_s5 + $0x10] sm:$0xff] %vm254_vm1, %v200_v17  ;;  %265 = vst.msk [vmem:[%s518_s5 + $0x50] sm:$0xff] %vm254_vm1, %v232_v18  ;;  %v203_v25 = vadd.f32 %v327_v23, %v275_v14  ;;  %v235_v26 = vadd.f32 %v335_v24, %v275_v14  ;;  %v194_v27 = vpop.f32.mrb[3].mxu0  ;;  %v226_v28 = vpop.f32.mrb[3].mxu1 }
  0xf1   :  { %255 = vst.msk [vmem:[%s518_s5] sm:$0xff] %vm254_vm1, %v192_v21  ;;  %263 = vst.msk [vmem:[%s518_s5 + $0x40] sm:$0xff] %vm254_vm1, %v224_v22  ;;  %v195_v29 = vadd.f32 %v275_v14, %v194_v27  ;;  %v227_v30 = vadd.f32 %v275_v14, %v226_v28 }
  0xf2   :  { %258 = vst.msk [vmem:[%s518_s5 + $0x18] sm:$0xff] %vm254_vm1, %v203_v25  ;;  %266 = vst.msk [vmem:[%s518_s5 + $0x58] sm:$0xff] %vm254_vm1, %v235_v26 }
  0xf3   :  { %256 = vst.msk [vmem:[%s518_s5 + $0x8] sm:$0xff] %vm254_vm1, %v195_v29  ;;  %264 = vst.msk [vmem:[%s518_s5 + $0x48] sm:$0xff] %vm254_vm1, %v227_v30 }
  0xf5   :  { %v330_v31 = vpop.f32.mrb[4].mxu0  ;;  %v338_v32 = vpop.f32.mrb[4].mxu1 }
  0xf6   :  { %v216_v33 = vadd.f32 %v330_v31, %v275_v14  ;;  %v248_v34 = vadd.f32 %v338_v32, %v275_v14  ;;  %v207_v35 = vpop.f32.mrb[5].mxu0  ;;  %v239_v36 = vpop.f32.mrb[5].mxu1 }
  0xf7   :  { %v208_v37 = vadd.f32 %v275_v14, %v207_v35  ;;  %v240_v38 = vadd.f32 %v275_v14, %v239_v36  ;;  %v331_v39 = vpop.f32.mrb[6].mxu0  ;;  %v339_v40 = vpop.f32.mrb[6].mxu1 }
  0xf8   :  { %261 = vst.msk [vmem:[%s518_s5 + $0x30] sm:$0xff] %vm254_vm1, %v216_v33  ;;  %269 = vst.msk [vmem:[%s518_s5 + $0x70] sm:$0xff] %vm254_vm1, %v248_v34  ;;  %v219_v41 = vadd.f32 %v331_v39, %v275_v14  ;;  %v251_v42 = vadd.f32 %v339_v40, %v275_v14  ;;  %v210_v43 = vpop.f32.mrb[7].mxu0  ;;  %v242_v44 = vpop.f32.mrb[7].mxu1 }
  0xf9   :  { %259 = vst.msk [vmem:[%s518_s5 + $0x20] sm:$0xff] %vm254_vm1, %v208_v37  ;;  %267 = vst.msk [vmem:[%s518_s5 + $0x60] sm:$0xff] %vm254_vm1, %v240_v38  ;;  %v211_v45 = vadd.f32 %v275_v14, %v210_v43  ;;  %v243_v46 = vadd.f32 %v275_v14, %v242_v44 }
  0xfa   :  { %262 = vst.msk [vmem:[%s518_s5 + $0x38] sm:$0xff] %vm254_vm1, %v219_v41  ;;  %270 = vst.msk [vmem:[%s518_s5 + $0x78] sm:$0xff] %vm254_vm1, %v251_v42 }
  0xfb   :  { %260 = vst.msk [vmem:[%s518_s5 + $0x28] sm:$0xff] %vm254_vm1, %v211_v45  ;;  %268 = vst.msk [vmem:[%s518_s5 + $0x68] sm:$0xff] %vm254_vm1, %v243_v46 }

// kernel: _lambda_.17
= control target key start
LH: loop header
LB: loop body
LE: loop exit
PB: predicated region body
PF: predicated region fallthrough
CT: control target
= control target key end

     0   :  { %s6635_s30 = smov 0   ;;  %s9476_s0 = inlined_call_operand.vmem [shape: bf16[2,64,24], index: 0, kind: input, shape index: {}]   ;;  %s9477_s1 = inlined_call_operand.vmem [shape: bf16[2,1,24], index: 1, kind: input, shape index: {}]   ;;  %s9478_s2 = inlined_call_operand.vmem [shape: bf16[2,576,24], index: 2, kind: input, shape index: {}]   ;;  %s9479_s3 = inlined_call_operand.vmem [shape: bf16[2,576,24], index: 3, kind: input, shape index: {}]   ;;  %s9480_s4 = inlined_call_operand.vmem [shape: f32[9,1,3], index: 4, kind: input, shape index: {}]   ;;  %s9481_s5 = inlined_call_operand.vmem [shape: bf16[24,3], index: 5, kind: input, shape index: {}]   ;;  %s9482_s6 = inlined_call_operand.vmem [shape: bf16[3,24], index: 6, kind: input, shape index: {}]   ;;  %s9483_s7 = inlined_call_operand.vmem [shape: bf16[24,24], index: 7, kind: input, shape index: {}]   ;;  %s9484_s8 = inlined_call_operand.vmem [shape: f32[1,24], index: 8, kind: input, shape index: {}]   ;;  %s9485_s9 = inlined_call_operand.vmem [shape: f32[2,64,24], index: 9, kind: output, shape index: {}]  }
   0x1 LB: > { %s5011_s10 = sadd.s32 4294967295, %s6582_s30   ;;  %p5015_p0 = scmp.ge.s32.totalorder %s6582_s30, 1  ;;  %s6582_s30 = sphi %s6635_s30, %s19_s30  }
   0x2   : > { %p315_p1 = scmp.lt.s32.totalorder %s6582_s30, 3 }
   0x4   : > { %p316_p2 = pnand %p5015_p0, %p315_p1 }
   0x6   : > { %319 = sbr.rel (%p316_p2) target bundleno = 1696 (0x6a0), region = 56 }
   0xd   : > { %v6646_v0 = vld [vmem:[%s9481_s5] sm:$0xff]   ;;  %v6651_v1 = vld [vmem:[%s9481_s5 + $0x8] ss:$0 sps:$4 sm:$0xff]   ;;  %vm9540_vm0 = vcmask 1043456   ;;  %p364_p3 = scmp.lt.s32.totalorder %s5011_s10, 1  ;;  %vm9551_vm1 = vcmask 195584  }
   0xe   : > { %5740 = vmatprep.subr.bf16.mxu0 %v6646_v0  ;;  %v6661_v2 = vsel %vm9540_vm0, %v6651_v1, 0  ;;  %vm608_vm2 = vcmask 1040384   ;;  %v391_v27 = vld [vmem:[%s9482_s6] sm:$0x3]  ;;  %vm609_vm3 = vcmask 1041408   ;;  %v6584_v28 = vmov 65535  }
   0xf   : > { %5741 = vmatpush3.bf16.msra.mxu0 %v6646_v0  ;;  %s9862_s10 = smov (!%p364_p3, %s5011_s10), 1  ;;  %v610_v29 = vsel %vm608_vm2, 4294967295, %v6584_v28 }
  0x10   : > { %6076 = vmatprep.subr.msk.bf16.mxu0 %vm9540_vm0, %v6651_v1  ;;  %s5194_s15 = sshll.u32 %s9862_s10, 5  ;;  %v611_v30 = vsel %vm609_vm3, %v610_v29, 0  ;;  %s6080_s21 = smul.u32 288, %s9862_s10 }
  0x11   : > { %s368_s18 = scalar_lea.vmem %s9476_s0, %s5194_s15  ;;  %v6707_v31 = vand.u32 %v611_v30, %v391_v27  ;;  %s371_s27 = scalar_lea.vmem %s9477_s1, %s9862_s10 }
  0x12   : > { %v5197_v3 = vld [vmem:[%s368_s18] sm:$0xff]   ;;  %v5500_v4 = vld [vmem:[%s368_s18 + $0x8] sm:$0xff]   ;;  %v5501_v5 = vld [vmem:[%s368_s18 + $0x10] sm:$0xff]   ;;  %s6760_s24 = scalar_lea.vmem %s9478_s2, %s6080_s21  ;;  %s9344_s15 = scalar_lea.vmem %s9479_s3, %s6080_s21 }
  0x13   : > { %5743 = vmatpush3.bf16.msra.mxu0 %v6661_v2  ;;  %v6668_v6 = vunpack.c.l.bf16 %v5197_v3  ;;  %v6670_v7 = vunpack.c.h.bf16 %v5197_v3  ;;  %v6672_v8 = vunpack.c.l.bf16 %v5500_v4  ;;  %v6674_v9 = vunpack.c.h.bf16 %v5500_v4  ;;  %v5502_v10 = vld [vmem:[%s368_s18 + $0x18] sm:$0xff]   ;;  %6074 = vmatprep.subr.bf16.mxu1 %v6707_v31  ;;  %s5195_s21 = sshll.u32 %s9862_s10, 6 }
  0x14   : > { %v6676_v11 = vunpack.c.l.bf16 %v5501_v5  ;;  %v6678_v12 = vunpack.c.h.bf16 %v5501_v5  ;;  %v6692_v19 = vunpack.c.l.bf16 %v5502_v10  ;;  %v6694_v20 = vunpack.c.h.bf16 %v5502_v10  ;;  %5752 = vmatprep.subr.bf16.mxu0 %v6707_v31  ;;  %6075 = vmatpush3.bf16.msra.mxu1 %v6707_v31  ;;  %s386_s20 = scalar_lea.vmem %s9485_s9, %s5195_s21 }
  0x15   : > { %v408_v13 = vmul.f32 %v6668_v6, %v6668_v6  ;;  %v409_v14 = vmul.f32 %v6670_v7, %v6670_v7  ;;  %v410_v15 = vmul.f32 %v6672_v8, %v6672_v8  ;;  %v411_v16 = vmul.f32 %v6674_v9, %v6674_v9  ;;  %5762 = vmatprep.subr.bf16.mxu1 %v6646_v0 }
  0x16   : > { %9572 = vst [vmem:[#allocation2_spill] sm:$0xff] %v6678_v12  ;;  %v412_v17 = vmul.f32 %v6676_v11, %v6676_v11  ;;  %v413_v18 = vmul.f32 %v6678_v12, %v6678_v12  ;;  %v414_v24 = vmul.f32 %v6692_v19, %v6692_v19  ;;  %v415_v25 = vmul.f32 %v6694_v20, %v6694_v20 }
  0x17   : > { %v416_v21 = vpack.c.bf16 %v409_v14, %v408_v13  ;;  %v417_v22 = vpack.c.bf16 %v411_v16, %v410_v15 }
  0x18   : > { %v418_v23 = vpack.c.bf16 %v413_v18, %v412_v17  ;;  %v419_v26 = vpack.c.bf16 %v415_v25, %v414_v24 }
  0x19   : > { %5744 = vmatprep.mubr.msk.bf16.mxu0 %vm9551_vm1, %v416_v21 }
  0x1a   : > { %5745 = vmatmul.mubr.msk.bf16.vlgmr.msra.gmra.mrb[0].mxu0 %vm9551_vm1, %v417_v22 }
  0x1b   : > { %5748 = vmatprep.mubr.msk.bf16.mxu0 %vm9551_vm1, %v418_v23  ;;  %5753 = vmatpush3.bf16.msra.mxu0 %v6707_v31 }
  0x1c   : > { %5838 = vmatprep.subr.bf16.mxu0 %v6707_v31 }
  0x22   : > { %5749 = vmatmul.mubr.msk.bf16.gmra.mrb[4].mxu0 %vm9551_vm1, %v419_v26 }
  0xed   : > { %v5746_v32 = vpop.f32.mrb[0].mxu0 }
  0xee   : > { %6094 = vrsqrt.f32 %v5746_v32  ;;  %v480_v33 = vpop.f32.mrb[1].mxu0  ;;  %vm527_vm4 = vcmp.eq.f32.partialorder %v5746_v32, inf  ;;  %vm529_vm5 = vcmp.eq.f32.partialorder %v5746_v32, 0.0  ;;  %v530_v43 = vand.u32 2147483648, %v5746_v32 }
  0xef   : > { %6096 = vrsqrt.f32 %v480_v33  ;;  %v5747_v34 = vpop.f32.mrb[2].mxu0  ;;  %vm513_vm6 = vcmp.eq.f32.partialorder %v480_v33, inf  ;;  %vm515_vm7 = vcmp.eq.f32.partialorder %v480_v33, 0.0  ;;  %v516_v46 = vand.u32 2147483648, %v480_v33 }
  0xf0   : > { %6098 = vrsqrt.f32 %v5747_v34  ;;  %v483_v35 = vpop.f32.mrb[3].mxu0  ;;  %vm534_vm8 = vcmp.eq.f32.partialorder %v5747_v34, inf  ;;  %vm536_vm9 = vcmp.eq.f32.partialorder %v5747_v34, 0.0  ;;  %v537_v50 = vand.u32 2147483648, %v5747_v34 }
  0xf1   : > { %6100 = vrsqrt.f32 %v483_v35  ;;  %vm520_vm10 = vcmp.eq.f32.partialorder %v483_v35, inf  ;;  %v523_v57 = vand.u32 2147483648, %v483_v35  ;;  %vm522_vm11 = vcmp.eq.f32.partialorder %v483_v35, 0.0 }
  0xf5   : > { %v6715_v36 = vpop.f32.mrb[4].mxu0 }
  0xf6   : > { %6102 = vrsqrt.f32 %v6715_v36  ;;  %v6718_v37 = vpop.f32.mrb[5].mxu0  ;;  %vm555_vm12 = vcmp.eq.f32.partialorder %v6715_v36, inf  ;;  %vm557_vm13 = vcmp.eq.f32.partialorder %v6715_v36, 0.0  ;;  %v558_v4 = vand.u32 2147483648, %v6715_v36 }
  0xf7   : > { %6104 = vrsqrt.f32 %v6718_v37  ;;  %v6721_v38 = vpop.f32.mrb[6].mxu0  ;;  %vm541_vm14 = vcmp.eq.f32.partialorder %v6718_v37, inf  ;;  %vm543_vm15 = vcmp.eq.f32.partialorder %v6718_v37, 0.0  ;;  %v544_v15 = vand.u32 2147483648, %v6718_v37 }
  0xf8   : > { %v6095_v39 = vpop.eup %6094  ;;  %6106 = vrsqrt.f32 %v6721_v38  ;;  %v6724_v40 = vpop.f32.mrb[7].mxu0  ;;  %vm562_vm2 = vcmp.eq.f32.partialorder %v6721_v38, inf  ;;  %vm564_vm3 = vcmp.eq.f32.partialorder %v6721_v38, 0.0  ;;  %v565_v21 = vand.u32 2147483648, %v6721_v38 }
  0xf9   : > { %v6097_v41 = vpop.eup %6096  ;;  %v526_v42 = vmul.f32 %v6095_v39, %v5746_v32  ;;  %6108 = vrsqrt.f32 %v6724_v40  ;;  %v551_v27 = vand.u32 2147483648, %v6724_v40 }
  0xfa   : > { %v6099_v44 = vpop.eup %6098  ;;  %v512_v45 = vmul.f32 %v6097_v41, %v480_v33 }
  0xfb   : > { %v6101_v47 = vpop.eup %6100  ;;  %v528_v48 = vsel %vm527_vm4, %v5746_v32, %v526_v42  ;;  %v533_v49 = vmul.f32 %v6099_v44, %v5747_v34  ;;  %vm548_vm4 = vcmp.eq.f32.partialorder %v6724_v40, inf }
  0xfc   : > { %v531_v51 = vsel %vm529_vm5, %v530_v43, %v528_v48  ;;  %v514_v52 = vsel %vm513_vm6, %v480_v33, %v512_v45  ;;  %v519_v53 = vmul.f32 %v6101_v47, %v483_v35  ;;  %vm550_vm5 = vcmp.eq.f32.partialorder %v6724_v40, 0.0  ;;  %v5503_v48 = vld [vmem:[%s6760_s24 + $0x8] sm:$0xff]  }
  0xfd   : > { %v569_v54 = vmax.f32 %v531_v51, 1e-12  ;;  %v517_v55 = vsel %vm515_vm7, %v516_v46, %v514_v52  ;;  %v535_v56 = vsel %vm534_vm8, %v5747_v34, %v533_v49  ;;  %vm595_vm6 = vcmask 23552  }
  0xfe   : > { %v567_v58 = vmax.f32 %v517_v55, 1e-12  ;;  %v538_v59 = vsel %vm536_vm9, %v537_v50, %v535_v56  ;;  %v521_v60 = vsel %vm520_vm10, %v483_v35, %v519_v53  ;;  %v5504_v50 = vld [vmem:[%s6760_s24 + $0x10] sm:$0xff]   ;;  %v6779_v55 = vunpack.c.h.bf16 %v5503_v48 }
  0xff   : > { %6110 = vrcp.f32 %v569_v54  ;;  %v570_v61 = vmax.f32 %v538_v59, 1e-12  ;;  %v524_v62 = vsel %vm522_vm11, %v523_v57, %v521_v60  ;;  %v6777_v54 = vunpack.c.l.bf16 %v5503_v48  ;;  %v5512_v48 = vld [vmem:[%s6760_s24 + $0x50] sm:$0xff]  }
 0x100   : > { %v6103_v63 = vpop.eup %6102  ;;  %6112 = vrcp.f32 %v567_v58  ;;  %v568_v3 = vmax.f32 %v524_v62, 1e-12  ;;  %v6781_v58 = vunpack.c.l.bf16 %v5504_v50  ;;  %v6783_v59 = vunpack.c.h.bf16 %v5504_v50 }
 0x101   : > { %v6105_v5 = vpop.eup %6104  ;;  %6114 = vrcp.f32 %v570_v61  ;;  %v554_v10 = vmul.f32 %v6103_v63, %v6715_v36  ;;  %v856_v60 = vmul.f32 %v6777_v54, %v6777_v54  ;;  %v857_v61 = vmul.f32 %v6779_v55, %v6779_v55 }
 0x102   : > { %v6107_v13 = vpop.eup %6106  ;;  %6116 = vrcp.f32 %v568_v3  ;;  %v540_v14 = vmul.f32 %v6105_v5, %v6718_v37  ;;  %9573 = vst [vmem:[#allocation3_spill] sm:$0xff] %v6781_v58  ;;  %9574 = vst [vmem:[#allocation4_spill] sm:$0xff] %v6783_v59  ;;  %v858_v62 = vmul.f32 %v6781_v58, %v6781_v58  ;;  %v859_v63 = vmul.f32 %v6783_v59, %v6783_v59  ;;  %v5505_v3 = vld [vmem:[%s6760_s24 + $0x18] sm:$0xff]  }
 0x103   : > { %v6109_v16 = vpop.eup %6108  ;;  %v556_v17 = vsel %vm555_vm12, %v6715_v36, %v554_v10  ;;  %v561_v18 = vmul.f32 %v6107_v13, %v6721_v38  ;;  %v927_v5 = vpack.c.bf16 %v857_v61, %v856_v60  ;;  %v6801_v10 = vunpack.c.l.bf16 %v5505_v3 }
 0x104   : > { %v559_v22 = vsel %vm557_vm13, %v558_v4, %v556_v17  ;;  %v542_v23 = vsel %vm541_vm14, %v6718_v37, %v540_v14  ;;  %v547_v24 = vmul.f32 %v6109_v16, %v6724_v40  ;;  %v5506_v4 = vld [vmem:[%s6760_s24 + $0x20] sm:$0xff]   ;;  %v6803_v13 = vunpack.c.h.bf16 %v5505_v3 }
 0x105   : > { %v573_v25 = vmax.f32 %v559_v22, 1e-12  ;;  %v563_v26 = vsel %vm562_vm2, %v6721_v38, %v561_v18  ;;  %v545_v28 = vsel %vm543_vm15, %v544_v15, %v542_v23  ;;  %v5213_v38 = vld [vmem:[%s6760_s24] sm:$0xff]   ;;  %9575 = vst [vmem:[#allocation5_spill] sm:$0xff] %v6801_v10  ;;  %v928_v14 = vpack.c.bf16 %v859_v63, %v858_v62  ;;  %v5507_v23 = vld [vmem:[%s6760_s24 + $0x28] sm:$0xff]   ;;  %v5513_v63 = vld [vmem:[%s6760_s24 + $0x58] sm:$0xff]  }
 0x106   : > { %v566_v29 = vsel %vm564_vm3, %v565_v21, %v563_v26  ;;  %v549_v30 = vsel %vm548_vm4, %v6724_v40, %v547_v24  ;;  %v571_v32 = vmax.f32 %v545_v28, 1e-12  ;;  %v6763_v43 = vunpack.c.l.bf16 %v5213_v38  ;;  %9576 = vst [vmem:[#allocation6_spill] sm:$0xff] %v6803_v13  ;;  %v5508_v24 = vld [vmem:[%s6760_s24 + $0x30] sm:$0xff]   ;;  %v5514_v3 = vld [vmem:[%s6760_s24 + $0x60] sm:$0xff]  }
 0x107   : > { %6118 = vrcp.f32 %v573_v25  ;;  %v574_v33 = vmax.f32 %v566_v29, 1e-12  ;;  %v552_v34 = vsel %vm550_vm5, %v551_v27, %v549_v30  ;;  %v6765_v44 = vunpack.c.h.bf16 %v5213_v38 }
 0x108   : > { %v572_v35 = vmax.f32 %v552_v34, 1e-12  ;;  %6120 = vrcp.f32 %v571_v32  ;;  %v854_v46 = vmul.f32 %v6763_v43, %v6763_v43  ;;  %v6806_v15 = vunpack.c.l.bf16 %v5506_v4  ;;  %v5509_v34 = vld [vmem:[%s6760_s24 + $0x38] sm:$0xff]  }
 0x109   : > { %v6111_v36 = vpop.eup %6110  ;;  %6122 = vrcp.f32 %v574_v33  ;;  %v855_v47 = vmul.f32 %v6765_v44, %v6765_v44  ;;  %v6808_v16 = vunpack.c.h.bf16 %v5506_v4  ;;  %v860_v17 = vmul.f32 %v6801_v10, %v6801_v10 }
 0x10a   : > { %v6113_v37 = vpop.eup %6112  ;;  %6124 = vrcp.f32 %v572_v35  ;;  %9577 = vst [vmem:[#allocation7_spill] sm:$0xff] %v6806_v15  ;;  %v861_v18 = vmul.f32 %v6803_v13, %v6803_v13  ;;  %v862_v21 = vmul.f32 %v6806_v15, %v6806_v15  ;;  %v6826_v26 = vunpack.c.l.bf16 %v5507_v23 }
 0x10b   : > { %v6115_v39 = vpop.eup %6114  ;;  %v926_v57 = vpack.c.bf16 %v855_v47, %v854_v46  ;;  %9578 = vst [vmem:[#allocation8_spill] sm:$0xff] %v6808_v16  ;;  %v863_v22 = vmul.f32 %v6808_v16, %v6808_v16  ;;  %v6828_v27 = vunpack.c.h.bf16 %v5507_v23  ;;  %v6830_v29 = vunpack.c.l.bf16 %v5508_v24  ;;  %v5511_v47 = vld [vmem:[%s6760_s24 + $0x48] sm:$0xff]  }
 0x10c   : > { %v6117_v40 = vpop.eup %6116  ;;  %v592_v41 = vpack.c.bf16 %v6115_v39, %v6111_v36  ;;  %v929_v25 = vpack.c.bf16 %v861_v18, %v860_v17  ;;  %9579 = vst [vmem:[#allocation9_spill] sm:$0xff] %v6826_v26  ;;  %v6832_v30 = vunpack.c.h.bf16 %v5508_v24  ;;  %v6847_v36 = vunpack.c.l.bf16 %v5509_v34 }
 0x10d   : > { %v591_v42 = vpack.c.bf16 %v6117_v40, %v6113_v37  ;;  %9580 = vst [vmem:[#allocation10_spill] sm:$0xff] %v6828_v27  ;;  %v930_v28 = vpack.c.bf16 %v863_v22, %v862_v21  ;;  %9581 = vst [vmem:[#allocation11_spill] sm:$0xff] %v6830_v29  ;;  %v866_v32 = vmul.f32 %v6830_v29, %v6830_v29  ;;  %v6849_v37 = vunpack.c.h.bf16 %v5509_v34 }
 0x10e   : > { %9582 = vst [vmem:[#allocation12_spill] sm:$0xff] %v6832_v30  ;;  %v867_v33 = vmul.f32 %v6832_v30, %v6832_v30  ;;  %9583 = vst [vmem:[#allocation13_spill] sm:$0xff] %v6847_v36  ;;  %v6867_v50 = vunpack.c.l.bf16 %v5511_v47  ;;  %v6891_v18 = vunpack.c.l.bf16 %v5514_v3  ;;  %v6893_v21 = vunpack.c.h.bf16 %v5514_v3 }
 0x10f   : > { %5754 = vmatprep.mubr.msk.bf16.mxu0 %vm595_vm6, %v591_v42  ;;  %9584 = vst [vmem:[#allocation14_spill] sm:$0xff] %v6849_v37  ;;  %v869_v42 = vmul.f32 %v6849_v37, %v6849_v37 }
 0x110   : > { %5755 = vmatmul.mubr.msk.bf16.vlgmr.msra.gmra.mrb[8].mxu0 %vm595_vm6, %v592_v41  ;;  %v932_v38 = vpack.c.bf16 %v867_v33, %v866_v32  ;;  %v868_v41 = vmul.f32 %v6847_v36, %v6847_v36  ;;  %9587 = vst [vmem:[#allocation17_spill] sm:$0xff] %v6867_v50  ;;  %9593 = vst [vmem:[#allocation23_spill] sm:$0xff] %v6891_v18  ;;  %v878_v24 = vmul.f32 %v6891_v18, %v6891_v18 }
 0x111   : > { %v6119_v45 = vpop.eup %6118  ;;  %5839 = vmatpush3.bf16.msra.mxu0 %v6707_v31  ;;  %9594 = vst [vmem:[#allocation24_spill] sm:$0xff] %v6893_v21 }
 0x112   : > { %v6121_v49 = vpop.eup %6120  ;;  %5988 = vmatprep.subr.bf16.mxu0 %v6707_v31 }
 0x113   : > { %v6123_v51 = vpop.eup %6122 }
 0x114   : > { %v6125_v52 = vpop.eup %6124  ;;  %v594_v53 = vpack.c.bf16 %v6123_v51, %v6119_v45  ;;  %v6869_v51 = vunpack.c.h.bf16 %v5511_v47  ;;  %v5518_v47 = vld [vmem:[%s6760_s24 + $0x80] sm:$0xff]  }
 0x115   : > { %v593_v56 = vpack.c.bf16 %v6125_v52, %v6121_v49  ;;  %v933_v49 = vpack.c.bf16 %v869_v42, %v868_v41 }
 0x116   : > { %9588 = vst [vmem:[#allocation18_spill] sm:$0xff] %v6869_v51  ;;  %v873_v60 = vmul.f32 %v6869_v51, %v6869_v51 }
 0x117   : > { %5758 = vmatprep.mubr.msk.bf16.mxu1 %vm595_vm6, %v593_v56  ;;  %v6873_v56 = vunpack.c.h.bf16 %v5512_v48 }
 0x118   : > { %5759 = vmatmul.mubr.msk.bf16.vlgmr.msra.gmra.mrb[0].mxu1 %vm595_vm6, %v594_v53  ;;  %v6871_v53 = vunpack.c.l.bf16 %v5512_v48 }
 0x119   : > { %5763 = vmatpush3.bf16.msra.mxu1 %v6646_v0  ;;  %5766 = vmatprep.mubr.msk.bf16.mxu1 %vm9551_vm1, %v926_v57  ;;  %9590 = vst [vmem:[#allocation20_spill] sm:$0xff] %v6873_v56  ;;  %v872_v57 = vmul.f32 %v6867_v50, %v6867_v50  ;;  %v875_v62 = vmul.f32 %v6873_v56, %v6873_v56 }
 0x11a   : > { %6077 = vmatprep.subr.msk.bf16.mxu1 %vm9540_vm0, %v6651_v1  ;;  %9589 = vst [vmem:[#allocation19_spill] sm:$0xff] %v6871_v53  ;;  %v874_v61 = vmul.f32 %v6871_v53, %v6871_v53 }
 0x11b   : > { %v935_v4 = vpack.c.bf16 %v873_v60, %v872_v57  ;;  %v6931_v60 = vunpack.c.l.bf16 %v5518_v47 }
 0x11c   : > { %v936_v17 = vpack.c.bf16 %v875_v62, %v874_v61  ;;  %v6933_v61 = vunpack.c.h.bf16 %v5518_v47 }
 0x11d   : > { %5765 = vmatpush3.bf16.msra.mxu1 %v6661_v2  ;;  %9601 = vst [vmem:[#allocation31_spill] sm:$0xff] %v6931_v60  ;;  %v886_v3 = vmul.f32 %v6931_v60, %v6931_v60 }
 0x11e   : > { %5912 = vmatprep.subr.bf16.mxu1 %v6646_v0  ;;  %9602 = vst [vmem:[#allocation32_spill] sm:$0xff] %v6933_v61 }
 0x120   : > { %5767 = vmatmul.mubr.msk.bf16.vlgmr.msra.gmra.mrb[4].mxu1 %vm9551_vm1, %v927_v5  ;;  %v6887_v5 = vunpack.c.l.bf16 %v5513_v63 }
 0x121   : > { %5770 = vmatprep.mubr.msk.bf16.mxu1 %vm9551_vm1, %v928_v14  ;;  %5913 = vmatpush3.bf16.msra.mxu1 %v6646_v0  ;;  %v864_v0 = vmul.f32 %v6826_v26, %v6826_v26  ;;  %v6889_v14 = vunpack.c.h.bf16 %v5513_v63 }
 0x122   : > { %6078 = vmatprep.subr.msk.bf16.mxu1 %vm9540_vm0, %v6651_v1  ;;  %v865_v1 = vmul.f32 %v6828_v27, %v6828_v27  ;;  %9591 = vst [vmem:[#allocation21_spill] sm:$0xff] %v6887_v5  ;;  %v876_v22 = vmul.f32 %v6887_v5, %v6887_v5 }
 0x123   : > { %9592 = vst [vmem:[#allocation22_spill] sm:$0xff] %v6889_v14  ;;  %v877_v23 = vmul.f32 %v6889_v14, %v6889_v14 }
 0x124   : > { %v931_v35 = vpack.c.bf16 %v865_v1, %v864_v0  ;;  %v5516_v0 = vld [vmem:[%s6760_s24 + $0x70] sm:$0xff]  }
 0x125   : > { %5915 = vmatpush3.bf16.msra.mxu1 %v6661_v2  ;;  %v5510_v2 = vld [vmem:[%s6760_s24 + $0x40] sm:$0xff]   ;;  %v937_v1 = vpack.c.bf16 %v877_v23, %v876_v22  ;;  %v5520_v22 = vld [vmem:[%s6760_s24 + $0x90] sm:$0xff]  }
 0x126   : > { %v6851_v39 = vunpack.c.l.bf16 %v5510_v2  ;;  %v6853_v40 = vunpack.c.h.bf16 %v5510_v2  ;;  %v6911_v2 = vunpack.c.l.bf16 %v5516_v0 }
 0x128   : > { %5771 = vmatmul.mubr.msk.bf16.gmra.mrb[8].mxu1 %vm9551_vm1, %v929_v25  ;;  %9585 = vst [vmem:[#allocation15_spill] sm:$0xff] %v6851_v39  ;;  %9586 = vst [vmem:[#allocation16_spill] sm:$0xff] %v6853_v40  ;;  %v870_v45 = vmul.f32 %v6851_v39, %v6851_v39  ;;  %v871_v46 = vmul.f32 %v6853_v40, %v6853_v40  ;;  %v879_v25 = vmul.f32 %v6893_v21, %v6893_v21 }
 0x129   : > { %5774 = vmatprep.mubr.msk.bf16.mxu1 %vm9551_vm1, %v930_v28  ;;  %v5515_v28 = vld [vmem:[%s6760_s24 + $0x68] sm:$0xff]   ;;  %9597 = vst [vmem:[#allocation27_spill] sm:$0xff] %v6911_v2  ;;  %v882_v42 = vmul.f32 %v6911_v2, %v6911_v2 }
 0x12a   : > { %v934_v52 = vpack.c.bf16 %v871_v46, %v870_v45  ;;  %v6907_v32 = vunpack.c.l.bf16 %v5515_v28  ;;  %v6909_v33 = vunpack.c.h.bf16 %v5515_v28  ;;  %v938_v34 = vpack.c.bf16 %v879_v25, %v878_v24  ;;  %v5517_v46 = vld [vmem:[%s6760_s24 + $0x78] sm:$0xff]  }
 0x12c   : > { %9595 = vst [vmem:[#allocation25_spill] sm:$0xff] %v6907_v32  ;;  %9596 = vst [vmem:[#allocation26_spill] sm:$0xff] %v6909_v33  ;;  %v881_v41 = vmul.f32 %v6909_v33, %v6909_v33 }
 0x130   : > { %5775 = vmatmul.mubr.msk.bf16.gmra.mrb[12].mxu1 %vm9551_vm1, %v931_v35  ;;  %v6913_v35 = vunpack.c.h.bf16 %v5516_v0  ;;  %v6951_v0 = vunpack.c.l.bf16 %v5520_v22 }
 0x131   : > { %5778 = vmatprep.mubr.msk.bf16.mxu1 %vm9551_vm1, %v932_v38  ;;  %v880_v38 = vmul.f32 %v6907_v32, %v6907_v32 }
 0x132   : > { %9598 = vst [vmem:[#allocation28_spill] sm:$0xff] %v6913_v35  ;;  %v883_v45 = vmul.f32 %v6913_v35, %v6913_v35  ;;  %9605 = vst [vmem:[#allocation35_spill] sm:$0xff] %v6951_v0 }
 0x133   : > { %v939_v48 = vpack.c.bf16 %v881_v41, %v880_v38  ;;  %v890_v41 = vmul.f32 %v6951_v0, %v6951_v0 }
 0x134   : > { %v940_v57 = vpack.c.bf16 %v883_v45, %v882_v42  ;;  %v5521_v45 = vld [vmem:[%s6760_s24 + $0x98] sm:$0xff]  }
 0x138   : > { %5779 = vmatmul.mubr.msk.bf16.gmra.mrb[16].mxu1 %vm9551_vm1, %v933_v49  ;;  %v6927_v49 = vunpack.c.l.bf16 %v5517_v46 }
 0x139   : > { %5782 = vmatprep.mubr.msk.bf16.mxu1 %vm9551_vm1, %v934_v52  ;;  %v6929_v52 = vunpack.c.h.bf16 %v5517_v46  ;;  %v5522_v46 = vld [vmem:[%s6760_s24 + $0xa0] sm:$0xff]  }
 0x13a   : > { %9599 = vst [vmem:[#allocation29_spill] sm:$0xff] %v6927_v49  ;;  %v884_v62 = vmul.f32 %v6927_v49, %v6927_v49 }
 0x13b   : > { %9600 = vst [vmem:[#allocation30_spill] sm:$0xff] %v6929_v52  ;;  %v885_v63 = vmul.f32 %v6929_v52, %v6929_v52 }
 0x13d   : > { %v941_v23 = vpack.c.bf16 %v885_v63, %v884_v62  ;;  %v6971_v63 = vunpack.c.l.bf16 %v5522_v46 }
 0x13f   : > { %9609 = vst [vmem:[#allocation39_spill] sm:$0xff] %v6971_v63 }
 0x140   : > { %5783 = vmatmul.mubr.msk.bf16.gmra.mrb[20].mxu1 %vm9551_vm1, %v935_v4  ;;  %v887_v4 = vmul.f32 %v6933_v61, %v6933_v61 }
 0x141   : > { %5786 = vmatprep.mubr.msk.bf16.mxu1 %vm9551_vm1, %v936_v17  ;;  %v5519_v17 = vld [vmem:[%s6760_s24 + $0x88] sm:$0xff]  }
 0x142   : > { %v6947_v24 = vunpack.c.l.bf16 %v5519_v17  ;;  %v6949_v25 = vunpack.c.h.bf16 %v5519_v17  ;;  %v942_v28 = vpack.c.bf16 %v887_v4, %v886_v3  ;;  %v6973_v3 = vunpack.c.h.bf16 %v5522_v46 }
 0x144   : > { %9603 = vst [vmem:[#allocation33_spill] sm:$0xff] %v6947_v24  ;;  %9604 = vst [vmem:[#allocation34_spill] sm:$0xff] %v6949_v25  ;;  %v889_v38 = vmul.f32 %v6949_v25, %v6949_v25 }
 0x145   : > { %9610 = vst [vmem:[#allocation40_spill] sm:$0xff] %v6973_v3 }
 0x148   : > { %5787 = vmatmul.mubr.msk.bf16.gmra.mrb[24].mxu1 %vm9551_vm1, %v937_v1  ;;  %v6953_v1 = vunpack.c.h.bf16 %v5520_v22  ;;  %v894_v22 = vmul.f32 %v6971_v63, %v6971_v63 }
 0x149   : > { %5790 = vmatprep.mubr.msk.bf16.mxu1 %vm9551_vm1, %v938_v34  ;;  %v888_v34 = vmul.f32 %v6947_v24, %v6947_v24 }
 0x14a   : > { %9606 = vst [vmem:[#allocation36_spill] sm:$0xff] %v6953_v1  ;;  %v891_v42 = vmul.f32 %v6953_v1, %v6953_v1 }
 0x14b   : > { %v943_v47 = vpack.c.bf16 %v889_v38, %v888_v34  ;;  %v5524_v34 = vld [vmem:[%s6760_s24 + $0xb0] sm:$0xff]  }
 0x14c   : > { %v944_v62 = vpack.c.bf16 %v891_v42, %v890_v41  ;;  %v6991_v46 = vunpack.c.l.bf16 %v5524_v34 }
 0x14e   : > { %9613 = vst [vmem:[#allocation43_spill] sm:$0xff] %v6991_v46 }
 0x150   : > { %5791 = vmatmul.mubr.msk.bf16.gmra.mrb[28].mxu1 %vm9551_vm1, %v939_v48  ;;  %v6967_v48 = vunpack.c.l.bf16 %v5521_v45 }
 0x151   : > { %5794 = vmatprep.mubr.msk.bf16.mxu1 %vm9551_vm1, %v940_v57  ;;  %v6969_v57 = vunpack.c.h.bf16 %v5521_v45 }
 0x152   : > { %9607 = vst [vmem:[#allocation37_spill] sm:$0xff] %v6967_v48  ;;  %v892_v4 = vmul.f32 %v6967_v48, %v6967_v48 }
 0x153   : > { %9608 = vst [vmem:[#allocation38_spill] sm:$0xff] %v6969_v57  ;;  %v893_v17 = vmul.f32 %v6969_v57, %v6969_v57 }
 0x155   : > { %v945_v38 = vpack.c.bf16 %v893_v17, %v892_v4  ;;  %v898_v4 = vmul.f32 %v6991_v46, %v6991_v46 }
 0x158   : > { %5795 = vmatmul.mubr.msk.bf16.gmra.mrb[32].mxu1 %vm9551_vm1, %v941_v23  ;;  %v895_v23 = vmul.f32 %v6973_v3, %v6973_v3 }
 0x159   : > { %5798 = vmatprep.mubr.msk.bf16.mxu1 %vm9551_vm1, %v942_v28  ;;  %v5523_v28 = vld [vmem:[%s6760_s24 + $0xa8] sm:$0xff]  }
 0x15a   : > { %v6987_v41 = vunpack.c.l.bf16 %v5523_v28  ;;  %v6989_v42 = vunpack.c.h.bf16 %v5523_v28  ;;  %v946_v45 = vpack.c.bf16 %v895_v23, %v894_v22  ;;  %v5525_v22 = vld [vmem:[%s6760_s24 + $0xb8] sm:$0xff]   ;;  %v5526_v23 = vld [vmem:[%s6760_s24 + $0xc0] sm:$0xff]  }
 0x15c   : > { %9611 = vst [vmem:[#allocation41_spill] sm:$0xff] %v6987_v41  ;;  %9612 = vst [vmem:[#allocation42_spill] sm:$0xff] %v6989_v42  ;;  %v897_v3 = vmul.f32 %v6989_v42, %v6989_v42  ;;  %v7013_v42 = vunpack.c.h.bf16 %v5526_v23 }
 0x15e   : > { %9618 = vst [vmem:[#allocation48_spill] sm:$0xff] %v7013_v42 }
 0x160   : > { %5799 = vmatmul.mubr.msk.bf16.gmra.mrb[36].mxu1 %vm9551_vm1, %v943_v47  ;;  %v6993_v47 = vunpack.c.h.bf16 %v5524_v34  ;;  %v7007_v34 = vunpack.c.l.bf16 %v5525_v22 }
 0x161   : > { %5802 = vmatprep.mubr.msk.bf16.mxu1 %vm9551_vm1, %v944_v62  ;;  %v896_v62 = vmul.f32 %v6987_v41, %v6987_v41  ;;  %v7011_v41 = vunpack.c.l.bf16 %v5526_v23 }
 0x162   : > { %9614 = vst [vmem:[#allocation44_spill] sm:$0xff] %v6993_v47  ;;  %v899_v17 = vmul.f32 %v6993_v47, %v6993_v47  ;;  %9615 = vst [vmem:[#allocation45_spill] sm:$0xff] %v7007_v34 }
 0x163   : > { %v947_v28 = vpack.c.bf16 %v897_v3, %v896_v62  ;;  %9617 = vst [vmem:[#allocation47_spill] sm:$0xff] %v7011_v41  ;;  %v902_v3 = vmul.f32 %v7011_v41, %v7011_v41  ;;  %v903_v62 = vmul.f32 %v7013_v42, %v7013_v42 }
 0x164   : > { %v948_v63 = vpack.c.bf16 %v899_v17, %v898_v4  ;;  %v5527_v4 = vld [vmem:[%s6760_s24 + $0xc8] sm:$0xff]   ;;  %v5528_v17 = vld [vmem:[%s6760_s24 + $0xd0] sm:$0xff]  }
 0x165   : > { %v7027_v23 = vunpack.c.l.bf16 %v5527_v4  ;;  %v950_v46 = vpack.c.bf16 %v903_v62, %v902_v3  ;;  %v5529_v3 = vld [vmem:[%s6760_s24 + $0xd8] sm:$0xff]   ;;  %v5530_v62 = vld [vmem:[%s6760_s24 + $0xe0] sm:$0xff]  }
 0x167   : > { %9619 = vst [vmem:[#allocation49_spill] sm:$0xff] %v7027_v23 }
 0x168   : > { %5803 = vmatmul.mubr.msk.bf16.gmra.mrb[40].mxu1 %vm9551_vm1, %v945_v38  ;;  %v7009_v38 = vunpack.c.h.bf16 %v5525_v22 }
 0x169   : > { %5806 = vmatprep.mubr.msk.bf16.mxu1 %vm9551_vm1, %v946_v45  ;;  %v900_v45 = vmul.f32 %v7007_v34, %v7007_v34  ;;  %v7031_v34 = vunpack.c.l.bf16 %v5528_v17 }
 0x16a   : > { %9616 = vst [vmem:[#allocation46_spill] sm:$0xff] %v7009_v38  ;;  %v901_v47 = vmul.f32 %v7009_v38, %v7009_v38  ;;  %v7033_v38 = vunpack.c.h.bf16 %v5528_v17  ;;  %v7047_v17 = vunpack.c.l.bf16 %v5529_v3 }
 0x16b   : > { %9621 = vst [vmem:[#allocation51_spill] sm:$0xff] %v7031_v34 }
 0x16c   : > { %v949_v22 = vpack.c.bf16 %v901_v47, %v900_v45  ;;  %9622 = vst [vmem:[#allocation52_spill] sm:$0xff] %v7033_v38  ;;  %v906_v47 = vmul.f32 %v7031_v34, %v7031_v34  ;;  %v907_v45 = vmul.f32 %v7033_v38, %v7033_v38  ;;  %9623 = vst [vmem:[#allocation53_spill] sm:$0xff] %v7047_v17 }
 0x16e   : > { %v952_v41 = vpack.c.bf16 %v907_v45, %v906_v47  ;;  %v5531_v47 = vld [vmem:[%s6760_s24 + $0xe8] sm:$0xff]   ;;  %v5532_v45 = vld [vmem:[%s6760_s24 + $0xf0] sm:$0xff]  }
 0x170   : > { %5807 = vmatmul.mubr.msk.bf16.gmra.mrb[44].mxu1 %vm9551_vm1, %v947_v28  ;;  %v7029_v28 = vunpack.c.h.bf16 %v5527_v4 }
 0x171   : > { %5810 = vmatprep.mubr.msk.bf16.mxu1 %vm9551_vm1, %v948_v63  ;;  %v904_v63 = vmul.f32 %v7027_v23, %v7027_v23  ;;  %v7051_v23 = vunpack.c.l.bf16 %v5530_v62 }
 0x172   : > { %9620 = vst [vmem:[#allocation50_spill] sm:$0xff] %v7029_v28  ;;  %v905_v42 = vmul.f32 %v7029_v28, %v7029_v28  ;;  %v7053_v28 = vunpack.c.h.bf16 %v5530_v62  ;;  %v7067_v62 = vunpack.c.l.bf16 %v5531_v47 }
 0x173   : > { %9625 = vst [vmem:[#allocation55_spill] sm:$0xff] %v7051_v23 }
 0x174   : > { %v951_v4 = vpack.c.bf16 %v905_v42, %v904_v63  ;;  %9626 = vst [vmem:[#allocation56_spill] sm:$0xff] %v7053_v28  ;;  %v910_v42 = vmul.f32 %v7051_v23, %v7051_v23  ;;  %v911_v63 = vmul.f32 %v7053_v28, %v7053_v28  ;;  %9627 = vst [vmem:[#allocation57_spill] sm:$0xff] %v7067_v62 }
 0x176   : > { %v954_v34 = vpack.c.bf16 %v911_v63, %v910_v42  ;;  %v5533_v42 = vld [vmem:[%s6760_s24 + $0xf8] sm:$0xff]   ;;  %v5534_v63 = vld [vmem:[%s6760_s24 + $0x100] sm:$0xff]  }
 0x178   : > { %5811 = vmatmul.mubr.msk.bf16.gmra.mrb[48].mxu1 %vm9551_vm1, %v949_v22  ;;  %v7049_v22 = vunpack.c.h.bf16 %v5529_v3 }
 0x179   : > { %5814 = vmatprep.mubr.msk.bf16.mxu1 %vm9551_vm1, %v950_v46  ;;  %v908_v46 = vmul.f32 %v7047_v17, %v7047_v17  ;;  %v7071_v17 = vunpack.c.l.bf16 %v5532_v45 }
 0x17a   : > { %9624 = vst [vmem:[#allocation54_spill] sm:$0xff] %v7049_v22  ;;  %v909_v38 = vmul.f32 %v7049_v22, %v7049_v22  ;;  %v7073_v22 = vunpack.c.h.bf16 %v5532_v45  ;;  %v7087_v45 = vunpack.c.l.bf16 %v5533_v42 }
 0x17b   : > { %9629 = vst [vmem:[#allocation59_spill] sm:$0xff] %v7071_v17 }
 0x17c   : > { %v953_v3 = vpack.c.bf16 %v909_v38, %v908_v46  ;;  %9630 = vst [vmem:[#allocation60_spill] sm:$0xff] %v7073_v22  ;;  %v914_v38 = vmul.f32 %v7071_v17, %v7071_v17  ;;  %v915_v46 = vmul.f32 %v7073_v22, %v7073_v22  ;;  %9631 = vst [vmem:[#allocation61_spill] sm:$0xff] %v7087_v45 }
 0x17e   : > { %v956_v23 = vpack.c.bf16 %v915_v46, %v914_v38  ;;  %v5535_v38 = vld [vmem:[%s6760_s24 + $0x108] sm:$0xff]   ;;  %v5536_v46 = vld [vmem:[%s6760_s24 + $0x110] sm:$0xff]  }
 0x180   : > { %5815 = vmatmul.mubr.msk.bf16.gmra.mrb[52].mxu1 %vm9551_vm1, %v951_v4  ;;  %v7069_v4 = vunpack.c.h.bf16 %v5531_v47 }
 0x181   : > { %5818 = vmatprep.mubr.msk.bf16.mxu1 %vm9551_vm1, %v952_v41  ;;  %v912_v41 = vmul.f32 %v7067_v62, %v7067_v62  ;;  %v7091_v62 = vunpack.c.l.bf16 %v5534_v63 }
 0x182   : > { %9628 = vst [vmem:[#allocation58_spill] sm:$0xff] %v7069_v4  ;;  %v913_v28 = vmul.f32 %v7069_v4, %v7069_v4  ;;  %v7093_v4 = vunpack.c.h.bf16 %v5534_v63  ;;  %v7107_v63 = vunpack.c.l.bf16 %v5535_v38 }
 0x183   : > { %9633 = vst [vmem:[#allocation63_spill] sm:$0xff] %v7091_v62 }
 0x184   : > { %v955_v47 = vpack.c.bf16 %v913_v28, %v912_v41  ;;  %9634 = vst [vmem:[#allocation64_spill] sm:$0xff] %v7093_v4  ;;  %v918_v28 = vmul.f32 %v7091_v62, %v7091_v62  ;;  %v919_v41 = vmul.f32 %v7093_v4, %v7093_v4  ;;  %9635 = vst [vmem:[#allocation65_spill] sm:$0xff] %v7107_v63 }
 0x186   : > { %v958_v17 = vpack.c.bf16 %v919_v41, %v918_v28  ;;  %v5537_v28 = vld [vmem:[%s6760_s24 + $0x118] sm:$0xff]  }
 0x188   : > { %5819 = vmatmul.mubr.msk.bf16.gmra.mrb[56].mxu1 %vm9551_vm1, %v953_v3  ;;  %v7089_v3 = vunpack.c.h.bf16 %v5533_v42 }
 0x189   : > { %5822 = vmatprep.mubr.msk.bf16.mxu1 %vm9551_vm1, %v954_v34  ;;  %v916_v34 = vmul.f32 %v7087_v45, %v7087_v45  ;;  %v7111_v45 = vunpack.c.l.bf16 %v5536_v46 }
 0x18a   : > { %9632 = vst [vmem:[#allocation62_spill] sm:$0xff] %v7089_v3  ;;  %v917_v22 = vmul.f32 %v7089_v3, %v7089_v3  ;;  %v7113_v3 = vunpack.c.h.bf16 %v5536_v46  ;;  %v7128_v46 = vunpack.c.h.bf16 %v5537_v28 }
 0x18b   : > { %9637 = vst [vmem:[#allocation67_spill] sm:$0xff] %v7111_v45 }
 0x18c   : > { %v957_v42 = vpack.c.bf16 %v917_v22, %v916_v34  ;;  %9638 = vst [vmem:[#allocation68_spill] sm:$0xff] %v7113_v3  ;;  %v922_v22 = vmul.f32 %v7111_v45, %v7111_v45  ;;  %v923_v34 = vmul.f32 %v7113_v3, %v7113_v3  ;;  %9640 = vst [vmem:[#allocation70_spill] sm:$0xff] %v7128_v46 }
 0x190   : > { %5823 = vmatmul.mubr.msk.bf16.gmra.mrb[60].mxu1 %vm9551_vm1, %v955_v47  ;;  %v7109_v47 = vunpack.c.h.bf16 %v5535_v38  ;;  %v7126_v38 = vunpack.c.l.bf16 %v5537_v28 }
 0x191   : > { %5826 = vmatprep.mubr.msk.bf16.mxu1 %vm9551_vm1, %v956_v23  ;;  %v920_v23 = vmul.f32 %v7107_v63, %v7107_v63 }
 0x192   : > { %9636 = vst [vmem:[#allocation66_spill] sm:$0xff] %v7109_v47  ;;  %v921_v4 = vmul.f32 %v7109_v47, %v7109_v47  ;;  %9639 = vst [vmem:[#allocation69_spill] sm:$0xff] %v7126_v38  ;;  %v924_v47 = vmul.f32 %v7126_v38, %v7126_v38 }
 0x194   : > { %v959_v41 = vpack.c.bf16 %v921_v4, %v920_v23 }
 0x198   : > { %5827 = vmatmul.mubr.msk.bf16.gmra.mrb[64].mxu1 %vm9551_vm1, %v957_v42  ;;  %v960_v42 = vpack.c.bf16 %v923_v34, %v922_v22 }
 0x199   : > { %5830 = vmatprep.mubr.msk.bf16.mxu1 %vm9551_vm1, %v958_v17  ;;  %v925_v17 = vmul.f32 %v7128_v46, %v7128_v46 }
 0x19b   : > { %v961_v45 = vpack.c.bf16 %v925_v17, %v924_v47 }
 0x1a0   : > { %5831 = vmatmul.mubr.msk.bf16.gmra.mrb[68].mxu1 %vm9551_vm1, %v959_v41 }
 0x1a1   : > { %5834 = vmatprep.mubr.msk.bf16.mxu1 %vm9551_vm1, %v960_v42 }
 0x1a8   : > { %5835 = vmatmul.mubr.msk.bf16.gmra.mrb[72].mxu1 %vm9551_vm1, %v961_v45 }
 0x1e3   : > { %v7137_v3 = vpop.f32.mrb[8].mxu0 }
 0x1e4   : > { %v7139_v4 = vpop.f32.mrb[9].mxu0 }
 0x1e5   : > { %v7141_v23 = vpop.f32.mrb[10].mxu0 }
 0x1e6   : > { %v7143_v22 = vpop.f32.mrb[11].mxu0 }
 0x1eb   : > { %v7145_v34 = vpop.f32.mrb[0].mxu1 }
 0x1ec   : > { %v7147_v28 = vpop.f32.mrb[1].mxu1 }
 0x1ed   : > { %v7149_v41 = vpop.f32.mrb[2].mxu1 }
 0x1ee   : > { %v7151_v46 = vpop.f32.mrb[3].mxu1 }
 0x1f3   : > { %v5768_v42 = vpop.f32.mrb[4].mxu1 }
 0x1f4   : > { %6126 = vrsqrt.f32 %v5768_v42  ;;  %v1104_v47 = vpop.f32.mrb[5].mxu1  ;;  %vm1407_vm7 = vcmp.eq.f32.partialorder %v5768_v42, inf  ;;  %vm1409_vm8 = vcmp.eq.f32.partialorder %v5768_v42, 0.0  ;;  %v1410_v57 = vand.u32 2147483648, %v5768_v42 }
 0x1f5   : > { %6128 = vrsqrt.f32 %v1104_v47  ;;  %v5769_v45 = vpop.f32.mrb[6].mxu1  ;;  %vm1393_vm9 = vcmp.eq.f32.partialorder %v1104_v47, inf  ;;  %vm1395_vm10 = vcmp.eq.f32.partialorder %v1104_v47, 0.0  ;;  %v1396_v25 = vand.u32 2147483648, %v1104_v47 }
 0x1f6   : > { %6130 = vrsqrt.f32 %v5769_v45  ;;  %v1107_v17 = vpop.f32.mrb[7].mxu1  ;;  %vm1414_vm11 = vcmp.eq.f32.partialorder %v5769_v45, inf  ;;  %vm1416_vm12 = vcmp.eq.f32.partialorder %v5769_v45, 0.0  ;;  %v1417_v35 = vand.u32 2147483648, %v5769_v45 }
 0x1f7   : > { %6132 = vrsqrt.f32 %v1107_v17  ;;  %vm1400_vm13 = vcmp.eq.f32.partialorder %v1107_v17, inf  ;;  %vm1402_vm14 = vcmp.eq.f32.partialorder %v1107_v17, 0.0  ;;  %v1403_v18 = vand.u32 2147483648, %v1107_v17 }
 0x1fb   : > { %v7153_v38 = vpop.f32.mrb[8].mxu1 }
 0x1fc   : > { %6134 = vrsqrt.f32 %v7153_v38  ;;  %v7156_v62 = vpop.f32.mrb[9].mxu1  ;;  %vm1435_vm15 = vcmp.eq.f32.partialorder %v7153_v38, inf  ;;  %vm1437_vm2 = vcmp.eq.f32.partialorder %v7153_v38, 0.0 }
 0x1fd   : > { %6136 = vrsqrt.f32 %v7156_v62  ;;  %v7159_v63 = vpop.f32.mrb[10].mxu1  ;;  %vm1421_vm3 = vcmp.eq.f32.partialorder %v7156_v62, inf  ;;  %vm1423_vm4 = vcmp.eq.f32.partialorder %v7156_v62, 0.0 }
 0x1fe   : > { %v6127_v1 = vpop.eup %6126  ;;  %6138 = vrsqrt.f32 %v7159_v63  ;;  %v7162_v0 = vpop.f32.mrb[11].mxu1  ;;  %vm1442_vm5 = vcmp.eq.f32.partialorder %v7159_v63, inf }
 0x1ff   : > { %v6129_v48 = vpop.eup %6128  ;;  %v1406_v61 = vmul.f32 %v6127_v1, %v5768_v42  ;;  %6140 = vrsqrt.f32 %v7162_v0 }
 0x200   : > { %v6131_v60 = vpop.eup %6130  ;;  %v1392_v24 = vmul.f32 %v6129_v48, %v1104_v47 }
 0x201   : > { %v6133_v52 = vpop.eup %6132  ;;  %v1408_v2 = vsel %vm1407_vm7, %v5768_v42, %v1406_v61  ;;  %v1413_v49 = vmul.f32 %v6131_v60, %v5769_v45  ;;  %vm1444_vm7 = vcmp.eq.f32.partialorder %v7159_v63, 0.0 }
 0x202   : > { %v1411_v21 = vsel %vm1409_vm8, %v1410_v57, %v1408_v2  ;;  %v1394_v33 = vsel %vm1393_vm9, %v1104_v47, %v1392_v24  ;;  %v1399_v1 = vmul.f32 %v6133_v52, %v1107_v17  ;;  %v1438_v2 = vand.u32 2147483648, %v7153_v38 }
 0x203   : > { %v1897_v32 = vmax.f32 %v1411_v21, 1e-12  ;;  %v1397_v56 = vsel %vm1395_vm10, %v1396_v25, %v1394_v33  ;;  %v1415_v14 = vsel %vm1414_vm11, %v5769_v45, %v1413_v49  ;;  %v7170_v48 = vpop.f32.mrb[12].mxu1  ;;  %v1445_v25 = vand.u32 2147483648, %v7159_v63 }
 0x204   : > { %v1895_v53 = vmax.f32 %v1397_v56, 1e-12  ;;  %v1418_v61 = vsel %vm1416_vm12, %v1417_v35, %v1415_v14  ;;  %v1401_v60 = vsel %vm1400_vm13, %v1107_v17, %v1399_v1  ;;  %6142 = vrsqrt.f32 %v7170_v48  ;;  %v7174_v42 = vpop.f32.mrb[13].mxu1 }
 0x205   : > { %v7180_v21 = vpop.f32.mrb[14].mxu1  ;;  %v1404_v56 = vsel %vm1402_vm14, %v1403_v18, %v1401_v60  ;;  %v1424_v14 = vand.u32 2147483648, %v7156_v62  ;;  %6144 = vrcp.f32 %v1897_v32  ;;  %v1898_v52 = vmax.f32 %v1418_v61, 1e-12 }
 0x206   : > { %v6135_v33 = vpop.eup %6134  ;;  %v7186_v35 = vpop.f32.mrb[15].mxu1  ;;  %6146 = vrcp.f32 %v1895_v53  ;;  %vm1428_vm8 = vcmp.eq.f32.partialorder %v7162_v0, inf  ;;  %v1431_v18 = vand.u32 2147483648, %v7162_v0  ;;  %v1896_v17 = vmax.f32 %v1404_v56, 1e-12 }
 0x207   : > { %v6137_v49 = vpop.eup %6136  ;;  %v1434_v24 = vmul.f32 %v6135_v33, %v7153_v38  ;;  %6148 = vrsqrt.f32 %v7174_v42  ;;  %vm1430_vm9 = vcmp.eq.f32.partialorder %v7162_v0, 0.0  ;;  %vm1463_vm10 = vcmp.eq.f32.partialorder %v7170_v48, inf }
 0x208   : > { %v6139_v57 = vpop.eup %6138  ;;  %v1420_v47 = vmul.f32 %v6137_v49, %v7156_v62  ;;  %6150 = vrsqrt.f32 %v7180_v21  ;;  %vm1465_vm11 = vcmp.eq.f32.partialorder %v7170_v48, 0.0  ;;  %vm1449_vm12 = vcmp.eq.f32.partialorder %v7174_v42, inf }
 0x209   : > { %v6141_v45 = vpop.eup %6140  ;;  %v1436_v1 = vsel %vm1435_vm15, %v7153_v38, %v1434_v24  ;;  %v1441_v32 = vmul.f32 %v6139_v57, %v7159_v63  ;;  %6152 = vrcp.f32 %v1898_v52  ;;  %vm1451_vm13 = vcmp.eq.f32.partialorder %v7174_v42, 0.0 }
 0x20a   : > { %v1439_v61 = vsel %vm1437_vm2, %v1438_v2, %v1436_v1  ;;  %v1422_v53 = vsel %vm1421_vm3, %v7156_v62, %v1420_v47  ;;  %v1427_v60 = vmul.f32 %v6141_v45, %v7162_v0  ;;  %6154 = vrsqrt.f32 %v7186_v35 }
 0x20b   : > { %v1901_v33 = vmax.f32 %v1439_v61, 1e-12  ;;  %v1425_v56 = vsel %vm1423_vm4, %v1424_v14, %v1422_v53  ;;  %v1443_v49 = vsel %vm1442_vm5, %v7159_v63, %v1441_v32  ;;  %v7210_v24 = vpop.f32.mrb[16].mxu1  ;;  %6156 = vrcp.f32 %v1896_v17 }
 0x20c   : > { %v1899_v38 = vmax.f32 %v1425_v56, 1e-12  ;;  %v1446_v2 = vsel %vm1444_vm7, %v1445_v25, %v1443_v49  ;;  %v1429_v57 = vsel %vm1428_vm8, %v7162_v0, %v1427_v60  ;;  %v7218_v52 = vpop.f32.mrb[17].mxu1  ;;  %v1466_v25 = vand.u32 2147483648, %v7170_v48 }
 0x20d   : > { %v1902_v62 = vmax.f32 %v1446_v2, 1e-12  ;;  %v7221_v14 = vpop.f32.mrb[18].mxu1  ;;  %6158 = vrcp.f32 %v1901_v33  ;;  %v1432_v45 = vsel %vm1430_vm9, %v1431_v18, %v1429_v57  ;;  %v1452_v61 = vand.u32 2147483648, %v7174_v42 }
 0x20e   : > { %v6143_v47 = vpop.eup %6142  ;;  %v7223_v1 = vpop.f32.mrb[19].mxu1  ;;  %6160 = vrcp.f32 %v1899_v38  ;;  %v1900_v17 = vmax.f32 %v1432_v45, 1e-12  ;;  %vm1470_vm14 = vcmp.eq.f32.partialorder %v7180_v21, inf  ;;  %vm1472_vm15 = vcmp.eq.f32.partialorder %v7180_v21, 0.0 }
 0x20f   : > { %v1462_v63 = vmul.f32 %v6143_v47, %v7170_v48  ;;  %6162 = vrcp.f32 %v1902_v62  ;;  %v7230_v0 = vpop.eup %6144  ;;  %v1473_v33 = vand.u32 2147483648, %v7180_v21  ;;  %vm1456_vm2 = vcmp.eq.f32.partialorder %v7186_v35, inf }
 0x210   : > { %6164 = vrsqrt.f32 %v7210_v24  ;;  %v7235_v18 = vpop.eup %6146  ;;  %vm1458_vm3 = vcmp.eq.f32.partialorder %v7186_v35, 0.0  ;;  %v1459_v38 = vand.u32 2147483648, %v7186_v35  ;;  %vm1491_vm4 = vcmp.eq.f32.partialorder %v7210_v24, inf }
 0x211   : > { %v1464_v32 = vsel %vm1463_vm10, %v7170_v48, %v1462_v63  ;;  %6166 = vrsqrt.f32 %v7218_v52  ;;  %v6149_v53 = vpop.eup %6148  ;;  %vm1493_vm5 = vcmp.eq.f32.partialorder %v7210_v24, 0.0  ;;  %vm1477_vm7 = vcmp.eq.f32.partialorder %v7218_v52, inf }
 0x212   : > { %v1467_v60 = vsel %vm1465_vm11, %v1466_v25, %v1464_v32  ;;  %6168 = vrsqrt.f32 %v7221_v14  ;;  %v6151_v56 = vpop.eup %6150  ;;  %v1448_v49 = vmul.f32 %v6149_v53, %v7174_v42  ;;  %vm1479_vm8 = vcmp.eq.f32.partialorder %v7218_v52, 0.0 }
 0x213   : > { %v7244_v48 = vpop.f32.mrb[20].mxu1  ;;  %6170 = vrsqrt.f32 %v7223_v1  ;;  %v7252_v57 = vpop.eup %6152  ;;  %v1469_v62 = vmul.f32 %v6151_v56, %v7180_v21  ;;  %v1905_v32 = vmax.f32 %v1467_v60, 1e-12  ;;  %vm1498_vm9 = vcmp.eq.f32.partialorder %v7221_v14, inf }
 0x214   : > { %v7250_v2 = vpop.f32.mrb[21].mxu1  ;;  %6172 = vrcp.f32 %v1900_v17  ;;  %v6155_v25 = vpop.eup %6154  ;;  %v1450_v53 = vsel %vm1449_vm12, %v7174_v42, %v1448_v49  ;;  %vm1500_vm10 = vcmp.eq.f32.partialorder %v7221_v14, 0.0  ;;  %vm1484_vm11 = vcmp.eq.f32.partialorder %v7223_v1, inf }
 0x215   : > { %v7258_v63 = vpop.f32.mrb[22].mxu1  ;;  %6174 = vrsqrt.f32 %v7244_v48  ;;  %v6157_v47 = vpop.eup %6156  ;;  %v1453_v45 = vsel %vm1451_vm13, %v1452_v61, %v1450_v53  ;;  %v1471_v60 = vsel %vm1470_vm14, %v7180_v21, %v1469_v62  ;;  %v1455_v49 = vmul.f32 %v6155_v25, %v7186_v35 }
 0x216   : > { %v7267_v56 = vpop.f32.mrb[23].mxu1  ;;  %6176 = vrsqrt.f32 %v7250_v2  ;;  %v1903_v5 = vmax.f32 %v1453_v45, 1e-12  ;;  %v1474_v40 = vsel %vm1472_vm15, %v1473_v33, %v1471_v60  ;;  %vm1486_vm12 = vcmp.eq.f32.partialorder %v7223_v1, 0.0 }
 0x217   : > { %v7278_v17 = vpop.eup %6158  ;;  %6178 = vrsqrt.f32 %v7258_v63  ;;  %v1906_v61 = vmax.f32 %v1474_v40, 1e-12  ;;  %v1457_v62 = vsel %vm1456_vm2, %v7186_v35, %v1455_v49  ;;  %v1487_v45 = vand.u32 2147483648, %v7223_v1 }
 0x218   : > { %v7285_v42 = vpop.eup %6160  ;;  %6180 = vrcp.f32 %v1905_v32  ;;  %vm1519_vm13 = vcmp.eq.f32.partialorder %v7244_v48, inf  ;;  %v1522_v21 = vand.u32 2147483648, %v7244_v48  ;;  %v2111_v33 = vpack.c.bf16 %v6157_v47, %v7235_v18 }
 0x219   : > { %v7292_v25 = vpop.eup %6162  ;;  %6182 = vrcp.f32 %v1903_v5  ;;  %v1460_v40 = vsel %vm1458_vm3, %v1459_v38, %v1457_v62  ;;  %vm1521_vm14 = vcmp.eq.f32.partialorder %v7244_v48, 0.0  ;;  %vm1505_vm15 = vcmp.eq.f32.partialorder %v7250_v2, inf }
 0x21a   : > { %v6165_v53 = vpop.eup %6164  ;;  %v1508_v60 = vand.u32 2147483648, %v7250_v2  ;;  %vm1507_vm2 = vcmp.eq.f32.partialorder %v7250_v2, 0.0  ;;  %vm1526_vm0 = vcmp.eq.f32.partialorder %v7258_v63, inf  ;;  %5840 = vmatprep.mubr.msk.bf16.mxu0 %vm595_vm6, %v2111_v33  ;;  %6184 = vrsqrt.f32 %v7267_v56 }
 0x21b   : > { %v7302_v49 = vpop.f32.mrb[24].mxu1  ;;  %v6167_v32 = vpop.eup %6166  ;;  %v1490_v51 = vmul.f32 %v6165_v53, %v7210_v24  ;;  %v2112_v5 = vpack.c.bf16 %v7252_v57, %v7230_v0  ;;  %6186 = vrcp.f32 %v1906_v61  ;;  %vm1528_vm3 = vcmp.eq.f32.partialorder %v7258_v63, 0.0 }
 0x21c   : > { %v7311_v35 = vpop.f32.mrb[25].mxu1  ;;  %v6169_v18 = vpop.eup %6168  ;;  %v1476_v38 = vmul.f32 %v6167_v32, %v7218_v52  ;;  %v1529_v47 = vand.u32 2147483648, %v7258_v63  ;;  %v1904_v39 = vmax.f32 %v1460_v40, 1e-12  ;;  %6188 = vrsqrt.f32 %v7302_v49 }
 0x21d   : > { %v7316_v62 = vpop.f32.mrb[26].mxu1  ;;  %v6171_v53 = vpop.eup %6170  ;;  %v1492_v33 = vsel %vm1491_vm4, %v7210_v24, %v1490_v51  ;;  %v1497_v0 = vmul.f32 %v6169_v18, %v7221_v14  ;;  %5841 = vmatmul.mubr.msk.bf16.vlgmr.msra.gmra.mrb[12].mxu0 %vm595_vm6, %v2112_v5  ;;  %v9641_v32 = vand.u32 2147483648, %v7210_v24  ;;  %6190 = vrsqrt.f32 %v7311_v35 }
 0x21e   : > { %v7324_v57 = vpop.f32.mrb[27].mxu1  ;;  %v7326_v61 = vpop.eup %6172  ;;  %v1478_v40 = vsel %vm1477_vm7, %v7218_v52, %v1476_v38  ;;  %v1483_v51 = vmul.f32 %v6171_v53, %v7223_v1  ;;  %5989 = vmatpush3.bf16.msra.mxu0 %v6707_v31  ;;  %v9642_v30 = vand.u32 2147483648, %v7218_v52  ;;  %vm1512_vm4 = vcmp.eq.f32.partialorder %v7267_v56, inf }
 0x21f   : > { %v1495_v50 = vsel %vm1493_vm5, %v9641_v32, %v1492_v33  ;;  %v6175_v5 = vpop.eup %6174  ;;  %v1499_v24 = vsel %vm1498_vm9, %v7221_v14, %v1497_v0  ;;  %v9643_v53 = vand.u32 2147483648, %v7221_v14  ;;  %6192 = vrcp.f32 %v1904_v39 }
 0x220   : > { %v1909_v18 = vmax.f32 %v1495_v50, 1e-12  ;;  %v1481_v37 = vsel %vm1479_vm8, %v9642_v30, %v1478_v40  ;;  %v6177_v38 = vpop.eup %6176  ;;  %v1485_v50 = vsel %vm1484_vm11, %v7223_v1, %v1483_v51  ;;  %v1518_v52 = vmul.f32 %v6175_v5, %v7244_v48 }
 0x221   : > { %v1907_v33 = vmax.f32 %v1481_v37, 1e-12  ;;  %v1502_v31 = vsel %vm1500_vm10, %v9643_v53, %v1499_v24  ;;  %v6179_v30 = vpop.eup %6178  ;;  %v1488_v0 = vsel %vm1486_vm12, %v1487_v45, %v1485_v50  ;;  %v1504_v40 = vmul.f32 %v6177_v38, %v7250_v2 }
 0x222   : > { %v1910_v32 = vmax.f32 %v1502_v31, 1e-12  ;;  %6194 = vrcp.f32 %v1909_v18  ;;  %v1908_v37 = vmax.f32 %v1488_v0, 1e-12  ;;  %v1520_v14 = vsel %vm1519_vm13, %v7244_v48, %v1518_v52  ;;  %v7363_v51 = vpop.eup %6180 }
 0x223   : > { %v1525_v24 = vmul.f32 %v6179_v30, %v7258_v63  ;;  %v7361_v53 = vpop.f32.mrb[28].mxu1  ;;  %6196 = vrcp.f32 %v1907_v33  ;;  %v1523_v39 = vsel %vm1521_vm14, %v1522_v21, %v1520_v14  ;;  %v1506_v1 = vsel %vm1505_vm15, %v7250_v2, %v1504_v40  ;;  %v7373_v5 = vpop.eup %6182 }
 0x224   : > { %vm1514_vm5 = vcmp.eq.f32.partialorder %v7267_v56, 0.0  ;;  %v7371_v45 = vpop.f32.mrb[29].mxu1  ;;  %6198 = vrcp.f32 %v1910_v32  ;;  %v1913_v18 = vmax.f32 %v1523_v39, 1e-12  ;;  %v1509_v38 = vsel %vm1507_vm2, %v1508_v60, %v1506_v1  ;;  %v6185_v33 = vpop.eup %6184 }
 0x225   : > { %v1527_v48 = vsel %vm1526_vm0, %v7258_v63, %v1525_v24  ;;  %v7380_v21 = vpop.f32.mrb[30].mxu1  ;;  %v1911_v31 = vmax.f32 %v1509_v38, 1e-12  ;;  %v1515_v52 = vand.u32 2147483648, %v7267_v56  ;;  %6200 = vrsqrt.f32 %v7316_v62  ;;  %v7388_v32 = vpop.eup %6186 }
 0x226   : > { %v1530_v50 = vsel %vm1528_vm3, %v1529_v47, %v1527_v48  ;;  %v7386_v30 = vpop.f32.mrb[31].mxu1  ;;  %6202 = vrcp.f32 %v1908_v37  ;;  %v1511_v60 = vmul.f32 %v6185_v33, %v7267_v56  ;;  %vm1547_vm0 = vcmp.eq.f32.partialorder %v7302_v49, inf  ;;  %v6189_v0 = vpop.eup %6188 }
 0x227   : > { %v1914_v2 = vmax.f32 %v1530_v50, 1e-12  ;;  %6204 = vrcp.f32 %v1913_v18  ;;  %vm1549_vm7 = vcmp.eq.f32.partialorder %v7302_v49, 0.0  ;;  %v1550_v63 = vand.u32 2147483648, %v7302_v49  ;;  %v6191_v40 = vpop.eup %6190 }
 0x228   : > { %v2113_v47 = vpack.c.bf16 %v7326_v61, %v7285_v42  ;;  %6206 = vrcp.f32 %v1911_v31  ;;  %v1513_v37 = vsel %vm1512_vm4, %v7267_v56, %v1511_v60  ;;  %v1546_v14 = vmul.f32 %v6189_v0, %v7302_v49 }
 0x229   : > { %vm1533_vm8 = vcmp.eq.f32.partialorder %v7311_v35, inf  ;;  %v1516_v24 = vsel %vm1514_vm5, %v1515_v52, %v1513_v37  ;;  %v1532_v39 = vmul.f32 %v6191_v40, %v7311_v35  ;;  %v1536_v1 = vand.u32 2147483648, %v7311_v35  ;;  %v6193_v56 = vpop.eup %6192 }
 0x22a   : > { %5844 = vmatprep.mubr.msk.bf16.mxu0 %vm595_vm6, %v2113_v47  ;;  %6208 = vrsqrt.f32 %v7324_v57  ;;  %v1912_v42 = vmax.f32 %v1516_v24, 1e-12  ;;  %v1548_v61 = vsel %vm1547_vm0, %v7302_v49, %v1546_v14  ;;  %v2114_v18 = vpack.c.bf16 %v7292_v25, %v7278_v17 }
 0x22b   : > { %6210 = vrcp.f32 %v1914_v2  ;;  %v7412_v38 = vpop.f32.mrb[32].mxu1  ;;  %v1551_v48 = vsel %vm1549_vm7, %v1550_v63, %v1548_v61  ;;  %v1534_v33 = vsel %vm1533_vm8, %v7311_v35, %v1532_v39  ;;  %vm1535_vm9 = vcmp.eq.f32.partialorder %v7311_v35, 0.0 }
 0x22c   : > { %6212 = vrsqrt.f32 %v7361_v53  ;;  %v7419_v31 = vpop.f32.mrb[33].mxu1  ;;  %v7421_v50 = vpop.eup %6194  ;;  %v1917_v52 = vmax.f32 %v1551_v48, 1e-12  ;;  %v1537_v2 = vsel %vm1535_vm9, %v1536_v1, %v1534_v33  ;;  %5845 = vmatmul.mubr.msk.bf16.gmra.mrb[16].mxu0 %vm595_vm6, %v2114_v18  ;;  %vm1554_vm10 = vcmp.eq.f32.partialorder %v7316_v62, inf }
 0x22d   : > { %6214 = vrcp.f32 %v1912_v42  ;;  %v7424_v17 = vpop.f32.mrb[34].mxu1  ;;  %v6197_v25 = vpop.eup %6196  ;;  %v1915_v49 = vmax.f32 %v1537_v2, 1e-12  ;;  %vm1556_vm11 = vcmp.eq.f32.partialorder %v7316_v62, 0.0  ;;  %v1557_v63 = vand.u32 2147483648, %v7316_v62 }
 0x22e   : > { %6216 = vrsqrt.f32 %v7371_v45  ;;  %v7427_v60 = vpop.f32.mrb[35].mxu1  ;;  %v7429_v35 = vpop.eup %6198  ;;  %v2115_v47 = vpack.c.bf16 %v6193_v56, %v7373_v5  ;;  %vm1540_vm12 = vcmp.eq.f32.partialorder %v7324_v57, inf  ;;  %vm1542_vm13 = vcmp.eq.f32.partialorder %v7324_v57, 0.0 }
 0x22f   : > { %6218 = vrcp.f32 %v1917_v52  ;;  %v6201_v0 = vpop.eup %6200  ;;  %v1543_v24 = vand.u32 2147483648, %v7324_v57  ;;  %vm1575_vm14 = vcmp.eq.f32.partialorder %v7361_v53, inf  ;;  %v2116_v5 = vpack.c.bf16 %v7388_v32, %v7363_v51 }
 0x230   : > { %6220 = vrcp.f32 %v1915_v49  ;;  %v6203_v40 = vpop.eup %6202  ;;  %v1553_v37 = vmul.f32 %v6201_v0, %v7316_v62  ;;  %5848 = vmatprep.mubr.msk.bf16.mxu0 %vm595_vm6, %v2115_v47  ;;  %vm1577_vm15 = vcmp.eq.f32.partialorder %v7361_v53, 0.0  ;;  %v1578_v42 = vand.u32 2147483648, %v7361_v53 }
 0x231   : > { %6222 = vrsqrt.f32 %v7380_v21  ;;  %v7439_v14 = vpop.eup %6204  ;;  %vm1561_vm2 = vcmp.eq.f32.partialorder %v7371_v45, inf  ;;  %vm1563_vm3 = vcmp.eq.f32.partialorder %v7371_v45, 0.0  ;;  %v1564_v33 = vand.u32 2147483648, %v7371_v45 }
 0x232   : > { %6224 = vrsqrt.f32 %v7386_v30  ;;  %v7447_v39 = vpop.eup %6206  ;;  %v1555_v1 = vsel %vm1554_vm10, %v7316_v62, %v1553_v37  ;;  %vm1582_vm4 = vcmp.eq.f32.partialorder %v7380_v21, inf  ;;  %vm1584_vm5 = vcmp.eq.f32.partialorder %v7380_v21, 0.0 }
 0x233   : > { %6226 = vrsqrt.f32 %v7412_v38  ;;  %v7455_v61 = vpop.f32.mrb[36].mxu1  ;;  %v1558_v56 = vsel %vm1556_vm11, %v1557_v63, %v1555_v1  ;;  %v1585_v2 = vand.u32 2147483648, %v7380_v21  ;;  %vm1568_vm0 = vcmp.eq.f32.partialorder %v7386_v30, inf }
 0x234   : > { %v6209_v18 = vpop.eup %6208  ;;  %6228 = vrsqrt.f32 %v7419_v31  ;;  %v7462_v51 = vpop.f32.mrb[37].mxu1  ;;  %5849 = vmatmul.mubr.msk.bf16.gmra.mrb[20].mxu0 %vm595_vm6, %v2116_v5  ;;  %v1571_v49 = vand.u32 2147483648, %v7386_v30  ;;  %v2117_v0 = vpack.c.bf16 %v6203_v40, %v6197_v25  ;;  %v1918_v37 = vmax.f32 %v1558_v56, 1e-12 }
 0x235   : > { %v7464_v32 = vpop.eup %6210  ;;  %v1539_v48 = vmul.f32 %v6209_v18, %v7324_v57  ;;  %6230 = vrsqrt.f32 %v7424_v17  ;;  %v7471_v62 = vpop.f32.mrb[38].mxu1  ;;  %vm1570_vm7 = vcmp.eq.f32.partialorder %v7386_v30, 0.0  ;;  %vm1603_vm8 = vcmp.eq.f32.partialorder %v7412_v38, inf }
 0x236   : > { %v6213_v52 = vpop.eup %6212  ;;  %v7477_v63 = vpop.f32.mrb[39].mxu1  ;;  %v1606_v18 = vand.u32 2147483648, %v7412_v38  ;;  %vm1605_vm9 = vcmp.eq.f32.partialorder %v7412_v38, 0.0  ;;  %vm1589_vm10 = vcmp.eq.f32.partialorder %v7419_v31, inf  ;;  %v1592_v40 = vand.u32 2147483648, %v7419_v31  ;;  %5852 = vmatprep.mubr.msk.bf16.mxu0 %vm595_vm6, %v2117_v0 }
 0x237   : > { %v7479_v47 = vpop.eup %6214  ;;  %v1541_v5 = vsel %vm1540_vm12, %v7324_v57, %v1539_v48  ;;  %v1574_v1 = vmul.f32 %v6213_v52, %v7361_v53  ;;  %6232 = vrsqrt.f32 %v7427_v60  ;;  %vm1591_vm11 = vcmp.eq.f32.partialorder %v7419_v31, 0.0 }
 0x238   : > { %v6217_v29 = vpop.eup %6216  ;;  %v1544_v25 = vsel %vm1542_vm13, %v1543_v24, %v1541_v5  ;;  %v2118_v24 = vpack.c.bf16 %v7429_v35, %v7421_v50  ;;  %vm1610_vm12 = vcmp.eq.f32.partialorder %v7424_v17, inf  ;;  %vm1612_vm13 = vcmp.eq.f32.partialorder %v7424_v17, 0.0 }
 0x239   : > { %v7495_v56 = vpop.eup %6218  ;;  %v1916_v48 = vmax.f32 %v1544_v25, 1e-12  ;;  %v1576_v52 = vsel %vm1575_vm14, %v7361_v53, %v1574_v1  ;;  %v1560_v57 = vmul.f32 %v6217_v29, %v7371_v45  ;;  %6234 = vrsqrt.f32 %v7455_v61 }
 0x23a   : > { %v7504_v5 = vpop.eup %6220  ;;  %v1579_v0 = vsel %vm1577_vm15, %v1578_v42, %v1576_v52  ;;  %6236 = vrcp.f32 %v1918_v37  ;;  %v1613_v50 = vand.u32 2147483648, %v7424_v17  ;;  %vm1596_vm14 = vcmp.eq.f32.partialorder %v7427_v60, inf }
 0x23b   : > { %v6223_v25 = vpop.eup %6222  ;;  %v1921_v1 = vmax.f32 %v1579_v0, 1e-12  ;;  %v1562_v29 = vsel %vm1561_vm2, %v7371_v45, %v1560_v57  ;;  %v7515_v35 = vpop.f32.mrb[40].mxu1  ;;  %6238 = vrsqrt.f32 %v7462_v51  ;;  %vm1598_vm15 = vcmp.eq.f32.partialorder %v7427_v60, 0.0 }
 0x23c   : > { %v6225_v36 = vpop.eup %6224  ;;  %v1565_v53 = vsel %vm1563_vm3, %v1564_v33, %v1562_v29  ;;  %v1581_v42 = vmul.f32 %v6223_v25, %v7380_v21  ;;  %v7522_v37 = vpop.f32.mrb[41].mxu1  ;;  %6240 = vrcp.f32 %v1916_v48  ;;  %5853 = vmatmul.mubr.msk.bf16.gmra.mrb[24].mxu0 %vm595_vm6, %v2118_v24  ;;  %v1599_v29 = vand.u32 2147483648, %v7427_v60 }
 0x23d   : > { %v6227_v52 = vpop.eup %6226  ;;  %v1919_v0 = vmax.f32 %v1565_v53, 1e-12  ;;  %v1567_v57 = vmul.f32 %v6225_v36, %v7386_v30  ;;  %v7527_v16 = vpop.f32.mrb[42].mxu1  ;;  %6242 = vrsqrt.f32 %v7471_v62  ;;  %vm1631_vm2 = vcmp.eq.f32.partialorder %v7455_v61, inf }
 0x23e   : > { %v6229_v45 = vpop.eup %6228  ;;  %v1583_v33 = vsel %vm1582_vm4, %v7380_v21, %v1581_v42  ;;  %v1602_v25 = vmul.f32 %v6227_v52, %v7412_v38  ;;  %v7535_v48 = vpop.f32.mrb[43].mxu1  ;;  %6244 = vrcp.f32 %v1921_v1  ;;  %vm1633_vm3 = vcmp.eq.f32.partialorder %v7455_v61, 0.0 }
 0x23f   : > { %v6231_v36 = vpop.eup %6230  ;;  %v1586_v24 = vsel %vm1584_vm5, %v1585_v2, %v1583_v33  ;;  %v1569_v53 = vsel %vm1568_vm0, %v7386_v30, %v1567_v57  ;;  %v1588_v27 = vmul.f32 %v6229_v45, %v7419_v31  ;;  %6246 = vrcp.f32 %v1919_v0 }
 0x240   : > { %v1922_v42 = vmax.f32 %v1586_v24, 1e-12  ;;  %v1572_v52 = vsel %vm1570_vm7, %v1571_v49, %v1569_v53  ;;  %v1604_v15 = vsel %vm1603_vm8, %v7412_v38, %v1602_v25  ;;  %v1609_v26 = vmul.f32 %v6231_v36, %v7424_v17 }
 0x241   : > { %v1920_v1 = vmax.f32 %v1572_v52, 1e-12  ;;  %v1607_v21 = vsel %vm1605_vm9, %v1606_v18, %v1604_v15  ;;  %v1590_v2 = vsel %vm1589_vm10, %v7419_v31, %v1588_v27  ;;  %v6233_v57 = vpop.eup %6232  ;;  %v1634_v31 = vand.u32 2147483648, %v7455_v61 }
 0x242   : > { %6248 = vrcp.f32 %v1922_v42  ;;  %v1925_v45 = vmax.f32 %v1607_v21, 1e-12  ;;  %v1593_v30 = vsel %vm1591_vm11, %v1592_v40, %v1590_v2  ;;  %v1611_v49 = vsel %vm1610_vm12, %v7424_v17, %v1609_v26 }
 0x243   : > { %6250 = vrcp.f32 %v1920_v1  ;;  %v1923_v0 = vmax.f32 %v1593_v30, 1e-12  ;;  %v1614_v38 = vsel %vm1612_vm13, %v1613_v50, %v1611_v49  ;;  %v1595_v15 = vmul.f32 %v6233_v57, %v7427_v60  ;;  %v7562_v18 = vpop.f32.mrb[44].mxu1  ;;  %v6235_v27 = vpop.eup %6234 }
 0x244   : > { %6252 = vrcp.f32 %v1925_v45  ;;  %v7567_v40 = vpop.f32.mrb[45].mxu1  ;;  %v7569_v26 = vpop.eup %6236  ;;  %v1926_v33 = vmax.f32 %v1614_v38, 1e-12  ;;  %v1630_v50 = vmul.f32 %v6235_v27, %v7455_v61  ;;  %v2119_v25 = vpack.c.bf16 %v7479_v47, %v7447_v39 }
 0x245   : > { %v1597_v17 = vsel %vm1596_vm14, %v7427_v60, %v1595_v15  ;;  %v7577_v36 = vpop.f32.mrb[46].mxu1  ;;  %v6239_v24 = vpop.eup %6238  ;;  %6254 = vrcp.f32 %v1923_v0  ;;  %vm1617_vm4 = vcmp.eq.f32.partialorder %v7462_v51, inf  ;;  %vm1619_vm5 = vcmp.eq.f32.partialorder %v7462_v51, 0.0 }
 0x246   : > { %v1600_v53 = vsel %vm1598_vm15, %v1599_v29, %v1597_v17  ;;  %v7583_v42 = vpop.f32.mrb[47].mxu1  ;;  %v6241_v52 = vpop.eup %6240  ;;  %v1632_v21 = vsel %vm1631_vm2, %v7455_v61, %v1630_v50  ;;  %v1616_v39 = vmul.f32 %v6239_v24, %v7462_v51  ;;  %5856 = vmatprep.mubr.msk.bf16.mxu0 %vm595_vm6, %v2119_v25  ;;  %6256 = vrsqrt.f32 %v7477_v63 }
 0x247   : > { %v1924_v1 = vmax.f32 %v1600_v53, 1e-12  ;;  %v6243_v60 = vpop.eup %6242  ;;  %v1635_v47 = vsel %vm1633_vm3, %v1634_v31, %v1632_v21  ;;  %v1620_v29 = vand.u32 2147483648, %v7462_v51  ;;  %v2120_v2 = vpack.c.bf16 %v7464_v32, %v7439_v14 }
 0x248   : > { %6258 = vrsqrt.f32 %v7515_v35  ;;  %v7597_v57 = vpop.eup %6244  ;;  %v1929_v45 = vmax.f32 %v1635_v47, 1e-12  ;;  %v1618_v30 = vsel %vm1617_vm4, %v7462_v51, %v1616_v39  ;;  %v1637_v49 = vmul.f32 %v6243_v60, %v7471_v62 }
 0x249   : > { %6260 = vrcp.f32 %v1926_v33  ;;  %v1621_v61 = vsel %vm1619_vm5, %v1620_v29, %v1618_v30  ;;  %vm1638_vm0 = vcmp.eq.f32.partialorder %v7471_v62, inf  ;;  %v1641_v14 = vand.u32 2147483648, %v7471_v62  ;;  %5857 = vmatmul.mubr.msk.bf16.gmra.mrb[28].mxu0 %vm595_vm6, %v2120_v2  ;;  %v6247_v32 = vpop.eup %6246 }
 0x24a   : > { %6262 = vrcp.f32 %v1924_v1  ;;  %v1927_v0 = vmax.f32 %v1621_v61, 1e-12  ;;  %v1639_v38 = vsel %vm1638_vm0, %v7471_v62, %v1637_v49  ;;  %vm1640_vm7 = vcmp.eq.f32.partialorder %v7471_v62, 0.0 }
 0x24b   : > { %6264 = vrcp.f32 %v1929_v45  ;;  %v7610_v15 = vpop.f32.mrb[48].mxu1  ;;  %v1642_v31 = vsel %vm1640_vm7, %v1641_v14, %v1639_v38  ;;  %v2121_v62 = vpack.c.bf16 %v6241_v52, %v7504_v5  ;;  %vm1624_vm8 = vcmp.eq.f32.partialorder %v7477_v63, inf }
 0x24c   : > { %v7612_v27 = vpop.eup %6248  ;;  %6266 = vrsqrt.f32 %v7522_v37  ;;  %v7615_v51 = vpop.f32.mrb[49].mxu1  ;;  %v1930_v17 = vmax.f32 %v1642_v31, 1e-12  ;;  %vm1626_vm9 = vcmp.eq.f32.partialorder %v7477_v63, 0.0  ;;  %v2122_v53 = vpack.c.bf16 %v7569_v26, %v7495_v56 }
 0x24d   : > { %v6251_v33 = vpop.eup %6250  ;;  %6268 = vrcp.f32 %v1927_v0  ;;  %v7617_v50 = vpop.f32.mrb[50].mxu1  ;;  %v1627_v21 = vand.u32 2147483648, %v7477_v63  ;;  %vm1659_vm10 = vcmp.eq.f32.partialorder %v7515_v35, inf  ;;  %vm1661_vm11 = vcmp.eq.f32.partialorder %v7515_v35, 0.0  ;;  %5860 = vmatprep.mubr.msk.bf16.mxu0 %vm595_vm6, %v2121_v62 }
 0x24e   : > { %v7619_v25 = vpop.eup %6252  ;;  %6270 = vrsqrt.f32 %v7527_v16  ;;  %v7623_v24 = vpop.f32.mrb[51].mxu1  ;;  %v1662_v52 = vand.u32 2147483648, %v7515_v35  ;;  %vm1645_vm12 = vcmp.eq.f32.partialorder %v7522_v37, inf  ;;  %vm1647_vm13 = vcmp.eq.f32.partialorder %v7522_v37, 0.0 }
 0x24f   : > { %6272 = vrcp.f32 %v1930_v17  ;;  %v7629_v1 = vpop.eup %6254  ;;  %v1648_v39 = vand.u32 2147483648, %v7522_v37  ;;  %vm1666_vm14 = vcmp.eq.f32.partialorder %v7527_v16, inf  ;;  %vm1668_vm15 = vcmp.eq.f32.partialorder %v7527_v16, 0.0 }
 0x250   : > { %6274 = vrsqrt.f32 %v7535_v48  ;;  %v6257_v5 = vpop.eup %6256  ;;  %v2123_v29 = vpack.c.bf16 %v6251_v33, %v6247_v32  ;;  %v1669_v49 = vand.u32 2147483648, %v7527_v16  ;;  %vm1652_vm2 = vcmp.eq.f32.partialorder %v7535_v48, inf }
 0x251   : > { %6276 = vrsqrt.f32 %v7562_v18  ;;  %v1623_v26 = vmul.f32 %v6257_v5, %v7477_v63  ;;  %5861 = vmatmul.mubr.msk.bf16.gmra.mrb[32].mxu0 %vm595_vm6, %v2122_v53  ;;  %vm1654_vm3 = vcmp.eq.f32.partialorder %v7535_v48, 0.0  ;;  %v1655_v0 = vand.u32 2147483648, %v7535_v48 }
 0x252   : > { %v6259_v56 = vpop.eup %6258  ;;  %6278 = vrsqrt.f32 %v7567_v40  ;;  %vm1687_vm4 = vcmp.eq.f32.partialorder %v7562_v18, inf  ;;  %5864 = vmatprep.mubr.msk.bf16.mxu0 %vm595_vm6, %v2123_v29  ;;  %v2124_v38 = vpack.c.bf16 %v7612_v27, %v7597_v57  ;;  %vm1689_vm5 = vcmp.eq.f32.partialorder %v7562_v18, 0.0 }
 0x253   : > { %v7645_v60 = vpop.eup %6260  ;;  %v1658_v47 = vmul.f32 %v6259_v56, %v7515_v35  ;;  %6280 = vrsqrt.f32 %v7577_v36  ;;  %v7650_v2 = vpop.f32.mrb[52].mxu1  ;;  %v1625_v30 = vsel %vm1624_vm8, %v7477_v63, %v1623_v26  ;;  %v1690_v62 = vand.u32 2147483648, %v7562_v18 }
 0x254   : > { %v7652_v45 = vpop.eup %6262  ;;  %6282 = vrsqrt.f32 %v7583_v42  ;;  %v7660_v61 = vpop.f32.mrb[53].mxu1  ;;  %v1628_v17 = vsel %vm1626_vm9, %v1627_v21, %v1625_v30  ;;  %vm1673_vm0 = vcmp.eq.f32.partialorder %v7567_v40, inf  ;;  %vm1675_vm7 = vcmp.eq.f32.partialorder %v7567_v40, 0.0 }
 0x255   : > { %v7662_v14 = vpop.eup %6264  ;;  %v1660_v32 = vsel %vm1659_vm10, %v7515_v35, %v1658_v47  ;;  %v7673_v31 = vpop.f32.mrb[54].mxu1  ;;  %6284 = vrsqrt.f32 %v7610_v15  ;;  %v1676_v27 = vand.u32 2147483648, %v7567_v40  ;;  %vm1694_vm8 = vcmp.eq.f32.partialorder %v7577_v36, inf }
 0x256   : > { %v6267_v33 = vpop.eup %6266  ;;  %v7680_v53 = vpop.f32.mrb[55].mxu1  ;;  %v1663_v56 = vsel %vm1661_vm11, %v1662_v52, %v1660_v32  ;;  %vm1696_vm9 = vcmp.eq.f32.partialorder %v7577_v36, 0.0  ;;  %v1697_v21 = vand.u32 2147483648, %v7577_v36  ;;  %v1928_v47 = vmax.f32 %v1628_v17, 1e-12 }
 0x257   : > { %v7682_v5 = vpop.eup %6268  ;;  %v1644_v57 = vmul.f32 %v6267_v33, %v7522_v37  ;;  %vm1680_vm10 = vcmp.eq.f32.partialorder %v7583_v42, inf  ;;  %v1683_v29 = vand.u32 2147483648, %v7583_v42  ;;  %v1933_v32 = vmax.f32 %v1663_v56, 1e-12 }
 0x258   : > { %v6271_v63 = vpop.eup %6270  ;;  %vm1682_vm11 = vcmp.eq.f32.partialorder %v7583_v42, 0.0  ;;  %vm1715_vm1 = vcmp.eq.f32.partialorder %v7610_v15, inf  ;;  %v1718_v17 = vand.u32 2147483648, %v7610_v15  ;;  %6286 = vrsqrt.f32 %v7615_v51 }
 0x259   : > { %v7693_v26 = vpop.eup %6272  ;;  %v1646_v35 = vsel %vm1645_vm12, %v7522_v37, %v1644_v57  ;;  %v1665_v52 = vmul.f32 %v6271_v63, %v7527_v16  ;;  %5865 = vmatmul.mubr.msk.bf16.gmra.mrb[36].mxu0 %vm595_vm6, %v2124_v38  ;;  %vm1717_vm12 = vcmp.eq.f32.partialorder %v7610_v15, 0.0  ;;  %6288 = vrsqrt.f32 %v7617_v50 }
 0x25a   : > { %v6275_v30 = vpop.eup %6274  ;;  %v1649_v33 = vsel %vm1647_vm13, %v1648_v39, %v1646_v35  ;;  %6290 = vrsqrt.f32 %v7623_v24  ;;  %vm1701_vm13 = vcmp.eq.f32.partialorder %v7615_v51, inf }
 0x25b   : > { %v6277_v57 = vpop.eup %6276  ;;  %v1931_v63 = vmax.f32 %v1649_v33, 1e-12  ;;  %v1667_v59 = vsel %vm1666_vm14, %v7527_v16, %v1665_v52  ;;  %v1651_v56 = vmul.f32 %v6275_v30, %v7535_v48  ;;  %v7714_v37 = vpop.f32.mrb[56].mxu1  ;;  %v2125_v33 = vpack.c.bf16 %v7652_v45, %v7629_v1 }
 0x25c   : > { %v6279_v39 = vpop.eup %6278  ;;  %v1670_v38 = vsel %vm1668_vm15, %v1669_v49, %v1667_v59  ;;  %v1686_v35 = vmul.f32 %v6277_v57, %v7562_v18  ;;  %v7722_v52 = vpop.f32.mrb[57].mxu1  ;;  %6292 = vrcp.f32 %v1928_v47  ;;  %vm1703_vm14 = vcmp.eq.f32.partialorder %v7615_v51, 0.0 }
 0x25d   : > { %v6281_v30 = vpop.eup %6280  ;;  %v1934_v13 = vmax.f32 %v1670_v38, 1e-12  ;;  %v1653_v58 = vsel %vm1652_vm2, %v7535_v48, %v1651_v56  ;;  %v1672_v10 = vmul.f32 %v6279_v39, %v7567_v40  ;;  %v7728_v16 = vpop.f32.mrb[58].mxu1  ;;  %6294 = vrcp.f32 %v1933_v32  ;;  %5868 = vmatprep.mubr.msk.bf16.mxu0 %vm595_vm6, %v2125_v33 }
 0x25e   : > { %v6283_v59 = vpop.eup %6282  ;;  %v1656_v1 = vsel %vm1654_vm3, %v1655_v0, %v1653_v58  ;;  %v1688_v45 = vsel %vm1687_vm4, %v7562_v18, %v1686_v35  ;;  %v1693_v49 = vmul.f32 %v6281_v30, %v7577_v36  ;;  %v7738_v47 = vpop.f32.mrb[59].mxu1  ;;  %6296 = vrcp.f32 %v1931_v63 }
 0x25f   : > { %v1932_v57 = vmax.f32 %v1656_v1, 1e-12  ;;  %v1691_v32 = vsel %vm1689_vm5, %v1690_v62, %v1688_v45  ;;  %v1674_v58 = vsel %vm1673_vm0, %v7567_v40, %v1672_v10  ;;  %v6285_v48 = vpop.eup %6284  ;;  %v1679_v63 = vmul.f32 %v6283_v59, %v7583_v42 }
 0x260   : > { %v1937_v0 = vmax.f32 %v1691_v32, 1e-12  ;;  %v1677_v56 = vsel %vm1675_vm7, %v1676_v27, %v1674_v58  ;;  %v1695_v39 = vsel %vm1694_vm8, %v7577_v36, %v1693_v49  ;;  %6298 = vrcp.f32 %v1934_v13 }
 0x261   : > { %v1935_v18 = vmax.f32 %v1677_v56, 1e-12  ;;  %v1698_v62 = vsel %vm1696_vm9, %v1697_v21, %v1695_v39  ;;  %v1714_v10 = vmul.f32 %v6285_v48, %v7610_v15  ;;  %6300 = vrcp.f32 %v1932_v57 }
 0x262   : > { %v1938_v38 = vmax.f32 %v1698_v62, 1e-12  ;;  %v1681_v40 = vsel %vm1680_vm10, %v7583_v42, %v1679_v63  ;;  %v1704_v27 = vand.u32 2147483648, %v7615_v51  ;;  %6302 = vrcp.f32 %v1937_v0  ;;  %v6287_v21 = vpop.eup %6286 }
 0x263   : > { %v1684_v35 = vsel %vm1682_vm11, %v1683_v29, %v1681_v40  ;;  %v1716_v13 = vsel %vm1715_vm1, %v7610_v15, %v1714_v10  ;;  %vm1722_vm15 = vcmp.eq.f32.partialorder %v7617_v50, inf  ;;  %v7765_v36 = vpop.f32.mrb[60].mxu1  ;;  %6304 = vrcp.f32 %v1935_v18  ;;  %v6289_v42 = vpop.eup %6288 }
 0x264   : > { %v1936_v33 = vmax.f32 %v1684_v35, 1e-12  ;;  %v1719_v30 = vsel %vm1717_vm12, %v1718_v17, %v1716_v13  ;;  %v2126_v59 = vpack.c.bf16 %v7645_v60, %v7619_v25  ;;  %v7771_v1 = vpop.f32.mrb[61].mxu1  ;;  %v1700_v45 = vmul.f32 %v6287_v21, %v7615_v51  ;;  %v6291_v57 = vpop.eup %6290 }
 0x265   : > { %v1941_v29 = vmax.f32 %v1719_v30, 1e-12  ;;  %vm1724_vm1 = vcmp.eq.f32.partialorder %v7617_v50, 0.0  ;;  %6306 = vrsqrt.f32 %v7650_v2  ;;  %v7776_v49 = vpop.f32.mrb[62].mxu1  ;;  %v1721_v15 = vmul.f32 %v6289_v42, %v7617_v50 }
 0x266   : > { %6308 = vrcp.f32 %v1938_v38  ;;  %v1725_v17 = vand.u32 2147483648, %v7617_v50  ;;  %vm1708_vm2 = vcmp.eq.f32.partialorder %v7623_v24, inf  ;;  %5869 = vmatmul.mubr.msk.bf16.gmra.mrb[40].mxu0 %vm595_vm6, %v2126_v59  ;;  %v7782_v25 = vpop.f32.mrb[63].mxu1  ;;  %v6293_v60 = vpop.eup %6292  ;;  %v1702_v32 = vsel %vm1701_vm13, %v7615_v51, %v1700_v45 }
 0x267   : > { %6310 = vrcp.f32 %v1936_v33  ;;  %v1707_v58 = vmul.f32 %v6291_v57, %v7623_v24  ;;  %vm1710_vm3 = vcmp.eq.f32.partialorder %v7623_v24, 0.0  ;;  %v7789_v48 = vpop.eup %6294  ;;  %v1705_v0 = vsel %vm1703_vm14, %v1704_v27, %v1702_v32 }
 0x268   : > { %v1723_v56 = vsel %vm1722_vm15, %v7617_v50, %v1721_v15  ;;  %v1711_v39 = vand.u32 2147483648, %v7623_v24  ;;  %6312 = vrsqrt.f32 %v7660_v61  ;;  %v6297_v63 = vpop.eup %6296  ;;  %v1939_v18 = vmax.f32 %v1705_v0, 1e-12 }
 0x269   : > { %6314 = vrcp.f32 %v1941_v29  ;;  %v1726_v62 = vsel %vm1724_vm1, %v1725_v17, %v1723_v56  ;;  %v1709_v10 = vsel %vm1708_vm2, %v7623_v24, %v1707_v58  ;;  %v2127_v21 = vpack.c.bf16 %v6293_v60, %v7682_v5 }
 0x26a   : > { %v1942_v51 = vmax.f32 %v1726_v62, 1e-12  ;;  %v1712_v38 = vsel %vm1710_vm3, %v1711_v39, %v1709_v10  ;;  %6316 = vrsqrt.f32 %v7673_v31  ;;  %v7804_v40 = vpop.eup %6298  ;;  %v2128_v24 = vpack.c.bf16 %v7693_v26, %v7662_v14 }
 0x26b   : > { %6318 = vrcp.f32 %v1939_v18  ;;  %v1940_v27 = vmax.f32 %v1712_v38, 1e-12  ;;  %v7806_v35 = vpop.f32.mrb[64].mxu1  ;;  %v6301_v13 = vpop.eup %6300  ;;  %vm1743_vm4 = vcmp.eq.f32.partialorder %v7650_v2, inf  ;;  %vm1745_vm5 = vcmp.eq.f32.partialorder %v7650_v2, 0.0  ;;  %5872 = vmatprep.mubr.msk.bf16.mxu0 %vm595_vm6, %v2127_v21 }
 0x26c   : > { %6320 = vrcp.f32 %v1942_v51  ;;  %v7809_v50 = vpop.f32.mrb[65].mxu1  ;;  %v7811_v33 = vpop.eup %6302  ;;  %v1746_v29 = vand.u32 2147483648, %v7650_v2  ;;  %vm1729_vm0 = vcmp.eq.f32.partialorder %v7660_v61, inf  ;;  %vm1731_vm7 = vcmp.eq.f32.partialorder %v7660_v61, 0.0 }
 0x26d   : > { %6322 = vrcp.f32 %v1940_v27  ;;  %v7815_v30 = vpop.f32.mrb[66].mxu1  ;;  %v7817_v59 = vpop.eup %6304  ;;  %v1732_v45 = vand.u32 2147483648, %v7660_v61  ;;  %vm1750_vm8 = vcmp.eq.f32.partialorder %v7673_v31, inf  ;;  %vm1752_vm9 = vcmp.eq.f32.partialorder %v7673_v31, 0.0 }
 0x26e   : > { %6324 = vrsqrt.f32 %v7680_v53  ;;  %v7823_v5 = vpop.f32.mrb[67].mxu1  ;;  %5873 = vmatmul.mubr.msk.bf16.gmra.mrb[44].mxu0 %vm595_vm6, %v2128_v24  ;;  %v1753_v15 = vand.u32 2147483648, %v7673_v31  ;;  %v2129_v17 = vpack.c.bf16 %v6301_v13, %v6297_v63  ;;  %vm1736_vm10 = vcmp.eq.f32.partialorder %v7680_v53, inf }
 0x26f   : > { %v6307_v42 = vpop.eup %6306  ;;  %6326 = vrsqrt.f32 %v7714_v37  ;;  %v1739_v58 = vand.u32 2147483648, %v7680_v53  ;;  %v2130_v0 = vpack.c.bf16 %v7804_v40, %v7789_v48  ;;  %vm1738_vm11 = vcmp.eq.f32.partialorder %v7680_v53, 0.0 }
 0x270   : > { %v7830_v14 = vpop.eup %6308  ;;  %v1742_v26 = vmul.f32 %v6307_v42, %v7650_v2  ;;  %6328 = vrsqrt.f32 %v7722_v52  ;;  %vm1771_vm12 = vcmp.eq.f32.partialorder %v7714_v37, inf  ;;  %5876 = vmatprep.mubr.msk.bf16.mxu0 %vm595_vm6, %v2129_v17  ;;  %vm1773_vm13 = vcmp.eq.f32.partialorder %v7714_v37, 0.0 }
 0x271   : > { %v6311_v57 = vpop.eup %6310  ;;  %6330 = vrsqrt.f32 %v7728_v16  ;;  %v1774_v48 = vand.u32 2147483648, %v7714_v37  ;;  %vm1757_vm14 = vcmp.eq.f32.partialorder %v7722_v52, inf  ;;  %vm1759_vm15 = vcmp.eq.f32.partialorder %v7722_v52, 0.0 }
 0x272   : > { %v6313_v60 = vpop.eup %6312  ;;  %v1744_v32 = vsel %vm1743_vm4, %v7650_v2, %v1742_v26  ;;  %6332 = vrsqrt.f32 %v7738_v47  ;;  %v1760_v2 = vand.u32 2147483648, %v7722_v52  ;;  %vm1778_vm1 = vcmp.eq.f32.partialorder %v7728_v16, inf }
 0x273   : > { %v7847_v56 = vpop.eup %6314  ;;  %v1747_v39 = vsel %vm1745_vm5, %v1746_v29, %v1744_v32  ;;  %v1728_v63 = vmul.f32 %v6313_v60, %v7660_v61  ;;  %6334 = vrsqrt.f32 %v7765_v36  ;;  %v7856_v18 = vpop.f32.mrb[68].mxu1  ;;  %vm1780_vm2 = vcmp.eq.f32.partialorder %v7728_v16, 0.0 }
 0x274   : > { %v6317_v62 = vpop.eup %6316  ;;  %6336 = vrsqrt.f32 %v7771_v1  ;;  %v7863_v10 = vpop.f32.mrb[69].mxu1  ;;  %v1945_v38 = vmax.f32 %v1747_v39, 1e-12  ;;  %v1781_v42 = vand.u32 2147483648, %v7728_v16  ;;  %vm1764_vm3 = vcmp.eq.f32.partialorder %v7738_v47, inf }
 0x275   : > { %v7865_v51 = vpop.eup %6318  ;;  %v1730_v40 = vsel %vm1729_vm0, %v7660_v61, %v1728_v63  ;;  %v1749_v27 = vmul.f32 %v6317_v62, %v7673_v31  ;;  %v7873_v13 = vpop.f32.mrb[70].mxu1  ;;  %vm1766_vm4 = vcmp.eq.f32.partialorder %v7738_v47, 0.0  ;;  %v1767_v61 = vand.u32 2147483648, %v7738_v47 }
 0x276   : > { %v7875_v21 = vpop.eup %6320  ;;  %v1733_v24 = vsel %vm1731_vm7, %v1732_v45, %v1730_v40  ;;  %v7882_v29 = vpop.f32.mrb[71].mxu1  ;;  %5877 = vmatmul.mubr.msk.bf16.gmra.mrb[48].mxu0 %vm595_vm6, %v2130_v0  ;;  %6338 = vrsqrt.f32 %v7776_v49  ;;  %vm1799_vm5 = vcmp.eq.f32.partialorder %v7765_v36, inf  ;;  %v2131_v39 = vpack.c.bf16 %v6311_v57, %v7817_v59 }
 0x277   : > { %v7884_v26 = vpop.eup %6322  ;;  %v1943_v17 = vmax.f32 %v1733_v24, 1e-12  ;;  %v1751_v60 = vsel %vm1750_vm8, %v7673_v31, %v1749_v27  ;;  %6340 = vrsqrt.f32 %v7782_v25  ;;  %vm1801_vm0 = vcmp.eq.f32.partialorder %v7765_v36, 0.0 }
 0x278   : > { %v6325_v45 = vpop.eup %6324  ;;  %v1754_v32 = vsel %vm1752_vm9, %v1753_v15, %v1751_v60  ;;  %6342 = vrcp.f32 %v1945_v38  ;;  %v1802_v0 = vand.u32 2147483648, %v7765_v36  ;;  %vm1785_vm7 = vcmp.eq.f32.partialorder %v7771_v1, inf  ;;  %5880 = vmatprep.mubr.msk.bf16.mxu0 %vm595_vm6, %v2131_v39 }
 0x279   : > { %v6327_v63 = vpop.eup %6326  ;;  %v1735_v62 = vmul.f32 %v6325_v45, %v7680_v53  ;;  %v1788_v31 = vand.u32 2147483648, %v7771_v1  ;;  %v1809_v15 = vand.u32 2147483648, %v7776_v49  ;;  %v2132_v59 = vpack.c.bf16 %v7830_v14, %v7811_v33 }
 0x27a   : > { %v6329_v40 = vpop.eup %6328  ;;  %v1770_v27 = vmul.f32 %v6327_v63, %v7714_v37  ;;  %6344 = vrcp.f32 %v1943_v17  ;;  %v1946_v38 = vmax.f32 %v1754_v32, 1e-12  ;;  %vm1787_vm8 = vcmp.eq.f32.partialorder %v7771_v1, 0.0 }
 0x27b   : > { %v6331_v57 = vpop.eup %6330  ;;  %v1737_v24 = vsel %vm1736_vm10, %v7680_v53, %v1735_v62  ;;  %v1756_v60 = vmul.f32 %v6329_v40, %v7722_v52  ;;  %vm1806_vm9 = vcmp.eq.f32.partialorder %v7776_v49, inf  ;;  %v7914_v45 = vpop.f32.mrb[72].mxu1  ;;  %vm1808_vm10 = vcmp.eq.f32.partialorder %v7776_v49, 0.0 }
 0x27c   : > { %v6333_v63 = vpop.eup %6332  ;;  %v1740_v33 = vsel %vm1738_vm11, %v1739_v58, %v1737_v24  ;;  %v1772_v14 = vsel %vm1771_vm12, %v7714_v37, %v1770_v27  ;;  %v1777_v17 = vmul.f32 %v6331_v57, %v7728_v16  ;;  %6346 = vrsqrt.f32 %v7806_v35  ;;  %v7926_v32 = vpop.f32.mrb[73].mxu1 }
 0x27d   : > { %v6335_v39 = vpop.eup %6334  ;;  %v1944_v62 = vmax.f32 %v1740_v33, 1e-12  ;;  %v1775_v40 = vsel %vm1773_vm13, %v1774_v48, %v1772_v14  ;;  %v1758_v53 = vsel %vm1757_vm14, %v7722_v52, %v1756_v60  ;;  %v1763_v58 = vmul.f32 %v6333_v63, %v7738_v47  ;;  %v7934_v27 = vpop.f32.mrb[74].mxu1 }
 0x27e   : > { %v6337_v57 = vpop.eup %6336  ;;  %v1949_v24 = vmax.f32 %v1775_v40, 1e-12  ;;  %v1761_v12 = vsel %vm1759_vm15, %v1760_v2, %v1758_v53  ;;  %v1779_v37 = vsel %vm1778_vm1, %v7728_v16, %v1777_v17  ;;  %v1798_v48 = vmul.f32 %v6335_v39, %v7765_v36  ;;  %v7944_v33 = vpop.f32.mrb[75].mxu1  ;;  %5881 = vmatmul.mubr.msk.bf16.gmra.mrb[52].mxu0 %vm595_vm6, %v2132_v59 }
 0x27f   : > { %6348 = vrcp.f32 %v1946_v38  ;;  %v1947_v60 = vmax.f32 %v1761_v12, 1e-12  ;;  %v1782_v63 = vsel %vm1780_vm2, %v1781_v42, %v1779_v37  ;;  %v1765_v14 = vsel %vm1764_vm3, %v7738_v47, %v1763_v58 }
 0x280   : > { %6350 = vrcp.f32 %v1944_v62  ;;  %v1950_v52 = vmax.f32 %v1782_v63, 1e-12  ;;  %v1768_v2 = vsel %vm1766_vm4, %v1767_v61, %v1765_v14  ;;  %v1800_v17 = vsel %vm1799_vm5, %v7765_v36, %v1798_v48  ;;  %v6339_v38 = vpop.eup %6338 }
 0x281   : > { %6352 = vrcp.f32 %v1949_v24  ;;  %v1948_v12 = vmax.f32 %v1768_v2, 1e-12  ;;  %v1803_v16 = vsel %vm1801_vm0, %v1802_v0, %v1800_v17  ;;  %v1784_v42 = vmul.f32 %v6337_v57, %v7771_v1  ;;  %v6341_v39 = vpop.eup %6340 }
 0x282   : > { %6354 = vrcp.f32 %v1947_v60  ;;  %v1953_v59 = vmax.f32 %v1803_v16, 1e-12  ;;  %v1805_v62 = vmul.f32 %v6339_v38, %v7776_v49  ;;  %vm1792_vm11 = vcmp.eq.f32.partialorder %v7782_v25, inf  ;;  %v7962_v47 = vpop.eup %6342 }
 0x283   : > { %6356 = vrcp.f32 %v1950_v52  ;;  %v1786_v61 = vsel %vm1785_vm7, %v7771_v1, %v1784_v42  ;;  %v1791_v40 = vmul.f32 %v6341_v39, %v7782_v25  ;;  %vm1794_vm12 = vcmp.eq.f32.partialorder %v7782_v25, 0.0 }
 0x284   : > { %6358 = vrcp.f32 %v1948_v12  ;;  %v1789_v36 = vsel %vm1787_vm8, %v1788_v31, %v1786_v61  ;;  %v1807_v0 = vsel %vm1806_vm9, %v7776_v49, %v1805_v62  ;;  %v1795_v53 = vand.u32 2147483648, %v7782_v25  ;;  %v6345_v58 = vpop.eup %6344 }
 0x285   : > { %v1951_v57 = vmax.f32 %v1789_v36, 1e-12  ;;  %v1810_v24 = vsel %vm1808_vm10, %v1809_v15, %v1807_v0  ;;  %v1793_v37 = vsel %vm1792_vm11, %v7782_v25, %v1791_v40  ;;  %6360 = vrsqrt.f32 %v7809_v50 }
 0x286   : > { %v6347_v48 = vpop.eup %6346  ;;  %6362 = vrcp.f32 %v1953_v59  ;;  %v1954_v60 = vmax.f32 %v1810_v24, 1e-12  ;;  %v1796_v1 = vsel %vm1794_vm12, %v1795_v53, %v1793_v37  ;;  %vm1827_vm13 = vcmp.eq.f32.partialorder %v7806_v35, inf }
 0x287   : > { %6364 = vrcp.f32 %v1951_v57  ;;  %v1952_v31 = vmax.f32 %v1796_v1, 1e-12  ;;  %v1826_v63 = vmul.f32 %v6347_v48, %v7806_v35  ;;  %v1830_v14 = vand.u32 2147483648, %v7806_v35 }
 0x288   : > { %6366 = vrcp.f32 %v1954_v60  ;;  %v2133_v49 = vpack.c.bf16 %v7884_v26, %v7865_v51  ;;  %vm1829_vm14 = vcmp.eq.f32.partialorder %v7806_v35, 0.0  ;;  %v2134_v17 = vpack.c.bf16 %v7875_v21, %v7847_v56 }
 0x289   : > { %v6349_v15 = vpop.eup %6348  ;;  %6368 = vrcp.f32 %v1952_v31  ;;  %v1828_v25 = vsel %vm1827_vm13, %v7806_v35, %v1826_v63  ;;  %vm1813_vm15 = vcmp.eq.f32.partialorder %v7809_v50, inf  ;;  %vm1815_vm1 = vcmp.eq.f32.partialorder %v7809_v50, 0.0 }
 0x28a   : > { %v6351_v52 = vpop.eup %6350  ;;  %v1831_v2 = vsel %vm1829_vm14, %v1830_v14, %v1828_v25  ;;  %6370 = vrsqrt.f32 %v7815_v30  ;;  %5884 = vmatprep.mubr.msk.bf16.mxu0 %vm595_vm6, %v2133_v49  ;;  %v1816_v56 = vand.u32 2147483648, %v7809_v50  ;;  %vm1834_vm2 = vcmp.eq.f32.partialorder %v7815_v30, inf }
 0x28b   : > { %v7990_v38 = vpop.eup %6352  ;;  %v1957_v12 = vmax.f32 %v1831_v2, 1e-12  ;;  %6372 = vrsqrt.f32 %v7823_v5  ;;  %5885 = vmatmul.mubr.msk.bf16.gmra.mrb[56].mxu0 %vm595_vm6, %v2134_v17  ;;  %v2135_v21 = vpack.c.bf16 %v6351_v52, %v6345_v58  ;;  %vm1836_vm3 = vcmp.eq.f32.partialorder %v7815_v30, 0.0 }
 0x28c   : > { %v6355_v51 = vpop.eup %6354  ;;  %6374 = vrsqrt.f32 %v7856_v18  ;;  %v1837_v42 = vand.u32 2147483648, %v7815_v30  ;;  %vm1820_vm4 = vcmp.eq.f32.partialorder %v7823_v5, inf  ;;  %v2136_v39 = vpack.c.bf16 %v6349_v15, %v7962_v47 }
 0x28d   : > { %v7995_v35 = vpop.eup %6356  ;;  %6376 = vrcp.f32 %v1957_v12  ;;  %vm1822_vm5 = vcmp.eq.f32.partialorder %v7823_v5, 0.0  ;;  %v1823_v61 = vand.u32 2147483648, %v7823_v5  ;;  %5888 = vmatprep.mubr.msk.bf16.mxu0 %vm595_vm6, %v2135_v21  ;;  %vm1855_vm0 = vcmp.eq.f32.partialorder %v7856_v18, inf }
 0x28e   : > { %v6359_v26 = vpop.eup %6358  ;;  %6378 = vrsqrt.f32 %v7863_v10  ;;  %vm1857_vm7 = vcmp.eq.f32.partialorder %v7856_v18, 0.0  ;;  %v1858_v47 = vand.u32 2147483648, %v7856_v18  ;;  %vm1841_vm8 = vcmp.eq.f32.partialorder %v7863_v10, inf }
 0x28f   : > { %v6361_v16 = vpop.eup %6360  ;;  %6380 = vrsqrt.f32 %v7873_v13  ;;  %v1844_v53 = vand.u32 2147483648, %v7863_v10  ;;  %vm1843_vm9 = vcmp.eq.f32.partialorder %v7863_v10, 0.0  ;;  %vm1862_vm10 = vcmp.eq.f32.partialorder %v7873_v13, inf }
 0x290   : > { %v8007_v59 = vpop.eup %6362  ;;  %v1812_v62 = vmul.f32 %v6361_v16, %v7809_v50  ;;  %6382 = vrsqrt.f32 %v7882_v29  ;;  %v1865_v24 = vand.u32 2147483648, %v7873_v13  ;;  %vm1864_vm11 = vcmp.eq.f32.partialorder %v7873_v13, 0.0 }
 0x291   : > { %v8014_v40 = vpop.eup %6364  ;;  %6384 = vrsqrt.f32 %v7914_v45  ;;  %vm1848_vm12 = vcmp.eq.f32.partialorder %v7882_v29, inf  ;;  %v1851_v48 = vand.u32 2147483648, %v7882_v29  ;;  %v2137_v60 = vpack.c.bf16 %v6359_v26, %v6355_v51 }
 0x292   : > { %v8020_v36 = vpop.eup %6366  ;;  %v1814_v0 = vsel %vm1813_vm15, %v7809_v50, %v1812_v62  ;;  %6386 = vrsqrt.f32 %v7926_v32  ;;  %vm1850_vm13 = vcmp.eq.f32.partialorder %v7882_v29, 0.0  ;;  %v1886_v31 = vand.u32 2147483648, %v7914_v45 }
 0x293   : > { %v8028_v58 = vpop.eup %6368  ;;  %v1817_v57 = vsel %vm1815_vm1, %v1816_v56, %v1814_v0  ;;  %6388 = vrsqrt.f32 %v7934_v27  ;;  %5889 = vmatmul.mubr.msk.bf16.gmra.mrb[60].mxu0 %vm595_vm6, %v2136_v39  ;;  %v2138_v63 = vpack.c.bf16 %v7995_v35, %v7990_v38  ;;  %v2140_v52 = vpack.c.bf16 %v8020_v36, %v8007_v59 }
 0x294   : > { %v6371_v37 = vpop.eup %6370  ;;  %6390 = vrsqrt.f32 %v7944_v33  ;;  %v1955_v49 = vmax.f32 %v1817_v57, 1e-12  ;;  %5892 = vmatprep.mubr.msk.bf16.mxu0 %vm595_vm6, %v2137_v60  ;;  %v2139_v25 = vpack.c.bf16 %v8028_v58, %v8014_v40  ;;  %vm1869_vm1 = vcmp.eq.f32.partialorder %v7926_v32, inf }
 0x295   : > { %v6373_v50 = vpop.eup %6372  ;;  %v1833_v1 = vmul.f32 %v6371_v37, %v7815_v30  ;;  %v1872_v12 = vand.u32 2147483648, %v7926_v32  ;;  %vm1871_vm15 = vcmp.eq.f32.partialorder %v7926_v32, 0.0  ;;  %vm1890_vm14 = vcmp.eq.f32.partialorder %v7934_v27, inf }
 0x296   : > { %v6375_v14 = vpop.eup %6374  ;;  %v1819_v15 = vmul.f32 %v6373_v50, %v7823_v5  ;;  %v1893_v56 = vand.u32 2147483648, %v7934_v27  ;;  %6392 = vrcp.f32 %v1955_v49 }
 0x297   : > { %v8054_v2 = vpop.eup %6376  ;;  %v1835_v17 = vsel %vm1834_vm2, %v7815_v30, %v1833_v1  ;;  %v1854_v38 = vmul.f32 %v6375_v14, %v7856_v18  ;;  %vm1892_vm2 = vcmp.eq.f32.partialorder %v7934_v27, 0.0 }
 0x298   : > { %v6379_v51 = vpop.eup %6378  ;;  %v1838_v35 = vsel %vm1836_vm3, %v1837_v42, %v1835_v17  ;;  %v1821_v26 = vsel %vm1820_vm4, %v7823_v5, %v1819_v15  ;;  %vm1876_vm3 = vcmp.eq.f32.partialorder %v7944_v33, inf  ;;  %vm9644_vm4 = vcmp.eq.f32.partialorder %v7914_v45, inf }
 0x299   : > { %v6381_v21 = vpop.eup %6380  ;;  %v1958_v16 = vmax.f32 %v1838_v35, 1e-12  ;;  %v1824_v39 = vsel %vm1822_vm5, %v1823_v61, %v1821_v26  ;;  %v1856_v30 = vsel %vm1855_vm0, %v7856_v18, %v1854_v38  ;;  %v1840_v42 = vmul.f32 %v6379_v51, %v7863_v10 }
 0x29a   : > { %v6383_v62 = vpop.eup %6382  ;;  %v1956_v40 = vmax.f32 %v1824_v39, 1e-12  ;;  %v1859_v0 = vsel %vm1857_vm7, %v1858_v47, %v1856_v30  ;;  %v1861_v58 = vmul.f32 %v6381_v21, %v7873_v13  ;;  %vm9645_vm5 = vcmp.eq.f32.partialorder %v7914_v45, 0.0 }
 0x29b   : > { %v6385_v5 = vpop.eup %6384  ;;  %6394 = vrcp.f32 %v1958_v16  ;;  %v1961_v61 = vmax.f32 %v1859_v0, 1e-12  ;;  %v1842_v57 = vsel %vm1841_vm8, %v7863_v10, %v1840_v42  ;;  %v1847_v37 = vmul.f32 %v6383_v62, %v7882_v29  ;;  %5893 = vmatmul.mubr.msk.bf16.gmra.mrb[64].mxu0 %vm595_vm6, %v2138_v63 }
 0x29c   : > { %v6387_v60 = vpop.eup %6386  ;;  %6396 = vrcp.f32 %v1956_v40  ;;  %v1845_v50 = vsel %vm1843_vm9, %v1844_v53, %v1842_v57  ;;  %v1863_v18 = vsel %vm1862_vm10, %v7873_v13, %v1861_v58  ;;  %v1882_v47 = vmul.f32 %v6385_v5, %v7914_v45  ;;  %5896 = vmatprep.mubr.msk.bf16.mxu0 %vm595_vm6, %v2139_v25 }
 0x29d   : > { %v6389_v1 = vpop.eup %6388  ;;  %6398 = vrcp.f32 %v1961_v61  ;;  %v1959_v14 = vmax.f32 %v1845_v50, 1e-12  ;;  %v1866_v49 = vsel %vm1864_vm11, %v1865_v24, %v1863_v18  ;;  %v1849_v15 = vsel %vm1848_vm12, %v7882_v29, %v1847_v37  ;;  %v696_v18 = vld [vmem:[%s371_s27] sm:$0x1] }
 0x29e   : > { %v6391_v10 = vpop.eup %6390  ;;  %v1962_v53 = vmax.f32 %v1866_v49, 1e-12  ;;  %v1852_v17 = vsel %vm1850_vm13, %v1851_v48, %v1849_v15  ;;  %v1884_v63 = vsel %vm9644_vm4, %v7914_v45, %v1882_v47  ;;  %v1868_v38 = vmul.f32 %v6387_v60, %v7926_v32 }
 0x29f   : > { %6400 = vrcp.f32 %v1959_v14  ;;  %v1960_v13 = vmax.f32 %v1852_v17, 1e-12  ;;  %v1887_v24 = vsel %vm9645_vm5, %v1886_v31, %v1884_v63  ;;  %v1889_v51 = vmul.f32 %v6389_v1, %v7934_v27 }
 0x2a0   : > { %6402 = vrcp.f32 %v1962_v53  ;;  %v1965_v25 = vmax.f32 %v1887_v24, 1e-12  ;;  %v1870_v29 = vsel %vm1869_vm1, %v7926_v32, %v1868_v38  ;;  %v1875_v48 = vmul.f32 %v6391_v10, %v7944_v33 }
 0x2a1   : > { %6404 = vrcp.f32 %v1960_v13  ;;  %v1873_v35 = vsel %vm1871_vm15, %v1872_v12, %v1870_v29  ;;  %v1891_v26 = vsel %vm1890_vm14, %v7934_v27, %v1889_v51  ;;  %v1879_v45 = vand.u32 2147483648, %v7944_v33  ;;  %v6393_v12 = vpop.eup %6392 }
 0x2a2   : > { %v1963_v31 = vmax.f32 %v1873_v35, 1e-12  ;;  %v1894_v21 = vsel %vm1892_vm2, %v1893_v56, %v1891_v26  ;;  %v1877_v16 = vsel %vm1876_vm3, %v7944_v33, %v1875_v48  ;;  %vm1878_vm0 = vcmp.eq.f32.partialorder %v7944_v33, 0.0 }
 0x2a3   : > { %6406 = vrcp.f32 %v1965_v25  ;;  %v1966_v39 = vmax.f32 %v1894_v21, 1e-12  ;;  %v1880_v32 = vsel %vm1878_vm0, %v1879_v45, %v1877_v16  ;;  %5897 = vmatmul.mubr.msk.bf16.gmra.mrb[68].mxu0 %vm595_vm6, %v2140_v52  ;;  %v698_v60 = vlaneseq  ;;  %v9647_v21 = vld [vmem:[#allocation2_spill] sm:$0xff] }
 0x2a4   : > { %6408 = vrcp.f32 %v1963_v31  ;;  %v1964_v30 = vmax.f32 %v1880_v32, 1e-12  ;;  %v697_v47 = vunpack.c.l.bf16 %v696_v18  ;;  %v682_v14 = vmul.f32 %v7137_v3, %v6672_v8 }
 0x2a5   : > { %v6395_v42 = vpop.eup %6394  ;;  %6410 = vrcp.f32 %v1966_v39  ;;  %v699_v50 = vshrl.u32 %v698_v60, 7  ;;  %v683_v49 = vmul.f32 %v7141_v23, %v6674_v9  ;;  %v680_v15 = vmul.f32 %v6668_v6, %v7139_v4  ;;  %v9653_v60 = vld [vmem:[#allocation9_spill] sm:$0xff] }
 0x2a6   : > { %v6397_v27 = vpop.eup %6396  ;;  %6412 = vrcp.f32 %v1964_v30  ;;  %v2142_v56 = vpack.c.bf16 %v6395_v42, %v8054_v2  ;;  %v681_v10 = vmul.f32 %v6670_v7, %v7143_v22  ;;  %v690_v17 = vmul.f32 0.35355338, %v682_v14 }
 0x2a7   : > { %v6399_v62 = vpop.eup %6398  ;;  %v2141_v40 = vpack.c.bf16 %v6397_v27, %v6393_v12  ;;  %v700_v1 = vsub.s32 0, %v699_v50  ;;  %v691_v63 = vmul.f32 0.35355338, %v683_v49  ;;  %v688_v38 = vmul.f32 0.35355338, %v680_v15  ;;  %v9649_v27 = vld [vmem:[#allocation5_spill] sm:$0xff] }
 0x2a8   : > { %v689_v13 = vmul.f32 0.35355338, %v681_v10  ;;  %v687_v31 = vmul.f32 %v7149_v41, %v6694_v20  ;;  %vm9646_vm7 = vcmask 195584   ;;  %v685_v16 = vmul.f32 %v9647_v21, %v7151_v46  ;;  %v9656_v49 = vld [vmem:[#allocation10_spill] sm:$0xff] }
 0x2a9   : > { %v6401_v33 = vpop.eup %6400  ;;  %5900 = vmatprep.mubr.msk.bf16.mxu0 %vm595_vm6, %v2141_v40  ;;  %v701_v53 = vrot.slane %v697_v47, %v700_v1  ;;  %vm9648_vm8 = vmmov %vm9646_vm7  ;;  %v9654_v47 = vld [vmem:[#allocation7_spill] sm:$0xff] }
 0x2aa   : > { %v6403_v0 = vpop.eup %6402  ;;  %v695_v32 = vmul.f32 0.35355338, %v687_v31  ;;  %v693_v30 = vmul.f32 0.35355338, %v685_v16  ;;  %vm9655_vm9 = vmmov %vm9646_vm7 }
 0x2ab   : > { %v6405_v58 = vpop.eup %6404  ;;  %v2144_v5 = vpack.c.bf16 %v6403_v0, %v6399_v62  ;;  %5901 = vmatmul.mubr.msk.bf16.gmra.mrb[72].mxu0 %vm595_vm6, %v2142_v56  ;;  %v8148_v29 = vadd.f32 %v701_v53, %v690_v17  ;;  %v8150_v9 = vadd.f32 %v701_v53, %v691_v63  ;;  %v8153_v7 = vadd.f32 %v701_v53, %v688_v38  ;;  %v9650_v56 = vld [vmem:[#allocation3_spill] sm:$0xff]  ;;  %vm9657_vm10 = vmmov %vm9646_vm7 }
 0x2ac   : > { %v2143_v59 = vpack.c.bf16 %v6405_v58, %v6401_v33  ;;  %v8155_v23 = vadd.f32 %v701_v53, %v689_v13  ;;  %v8176_v40 = vadd.f32 %v701_v53, %v695_v32  ;;  %v8181_v0 = vadd.f32 %v701_v53, %v693_v30  ;;  %v9652_v58 = vld [vmem:[#allocation4_spill] sm:$0xff]  ;;  %vm9661_vm11 = vmmov %vm9646_vm7  ;;  %v9667_v30 = vld [vmem:[#allocation17_spill] sm:$0xff] }
 0x2ad   : > { %v6407_v36 = vpop.eup %6406  ;;  %vm9663_vm12 = vmmov %vm9646_vm7 }
 0x2ae   : > { %v6409_v52 = vpop.eup %6408  ;;  %5904 = vmatprep.mubr.msk.bf16.mxu0 %vm595_vm6, %v2143_v59  ;;  %vm9665_vm13 = vmmov %vm9646_vm7 }
 0x2af   : > { %v6411_v61 = vpop.eup %6410  ;;  %vm9666_vm14 = vmmov %vm9646_vm7 }
 0x2b0   : > { %v6413_v57 = vpop.eup %6412  ;;  %v2146_v37 = vpack.c.bf16 %v6411_v61, %v6407_v36  ;;  %vm9673_vm15 = vmmov %vm9646_vm7 }
 0x2b1   : > { %v2145_v2 = vpack.c.bf16 %v6413_v57, %v6409_v52  ;;  %vm9675_vm1 = vmmov %vm9646_vm7 }
 0x2b2   : > { %vm9679_vm2 = vmmov %vm9675_vm1 }
 0x2b3   : > { %5905 = vmatmul.mubr.msk.bf16.gmra.mrb[76].mxu0 %vm595_vm6, %v2144_v5  ;;  %vm9681_vm3 = vmmov %vm9675_vm1 }
 0x2b4   : > { %5908 = vmatprep.mubr.msk.bf16.mxu0 %vm595_vm6, %v2145_v2  ;;  %vm9683_vm4 = vmmov %vm9675_vm1 }
 0x2b5   : > { %vm9684_vm5 = vmmov %vm9675_vm1 }
 0x2b6   : > { %vm9690_vm0 = vmmov %vm9675_vm1 }
 0x2bb   : > { %5909 = vmatmul.mubr.msk.bf16.gmra.mrb[80].mxu0 %vm595_vm6, %v2146_v37 }
 0x2f0   : > { %v5842_v24 = vpop.f32.mrb[12].mxu0 }
 0x2f1   : > { %v2578_v51 = vmul.f32 %v5842_v24, %v6777_v54  ;;  %v2289_v25 = vpop.f32.mrb[13].mxu0 }
 0x2f2   : > { %v2576_v8 = vmul.f32 %v6763_v43, %v2289_v25  ;;  %v5843_v3 = vpop.f32.mrb[14].mxu0 }
 0x2f3   : > { %v2579_v6 = vmul.f32 %v5843_v3, %v6779_v55  ;;  %v2292_v4 = vpop.f32.mrb[15].mxu0  ;;  %v2650_v48 = vmul.f32 %v2578_v51, %v8148_v29  ;;  %v686_v55 = vmul.f32 %v7145_v34, %v6692_v19  ;;  %v9659_v3 = vld [vmem:[#allocation13_spill] sm:$0xff] }
 0x2f4   : > { %v2577_v22 = vmul.f32 %v6765_v44, %v2292_v4  ;;  %v2648_v43 = vmul.f32 %v2576_v8, %v8153_v7  ;;  %v684_v44 = vmul.f32 %v6676_v11, %v7147_v28  ;;  %v9651_v11 = vld [vmem:[#allocation6_spill] sm:$0xff] }
 0x2f5   : > { %v2651_v54 = vmul.f32 %v2579_v6, %v8150_v9  ;;  %v694_v39 = vmul.f32 0.35355338, %v686_v55 }
 0x2f6   : > { %v2649_v35 = vmul.f32 %v2577_v22, %v8155_v23  ;;  %v692_v12 = vmul.f32 0.35355338, %v684_v44  ;;  %v9660_v22 = vld [vmem:[#allocation11_spill] sm:$0xff] }
 0x2f7   : > { %v2721_v26 = vpack.c.bf16 %v2651_v54, %v2650_v48  ;;  %v8174_v62 = vadd.f32 %v701_v53, %v694_v39 }
 0x2f8   : > { %v2720_v45 = vpack.c.bf16 %v2649_v35, %v2648_v43  ;;  %v8179_v33 = vadd.f32 %v701_v53, %v692_v12  ;;  %v9658_v53 = vld [vmem:[#allocation8_spill] sm:$0xff]  ;;  %v9662_v43 = vld [vmem:[#allocation14_spill] sm:$0xff] }
 0x2fa   : > { %5916 = vmatprep.mubr.msk.bf16.mxu1 %vm9646_vm7, %v2720_v45  ;;  %v9664_v45 = vld [vmem:[#allocation12_spill] sm:$0xff]  ;;  %vm9692_vm7 = vmmov %vm9690_vm0 }
 0x2fb   : > { %5917 = vmatmul.mubr.msk.bf16.vlgmr.msra.gmra.mrb[76].mxu1 %vm9648_vm8, %v2721_v26  ;;  %vm9697_vm8 = vmmov %vm9690_vm0 }
 0x2ff   : > { %v5846_v42 = vpop.f32.mrb[16].mxu0 }
 0x300   : > { %v2582_v19 = vmul.f32 %v5846_v42, %v9649_v27  ;;  %v2305_v34 = vpop.f32.mrb[17].mxu0 }
 0x301   : > { %v2580_v20 = vmul.f32 %v9650_v56, %v2305_v34  ;;  %v5847_v41 = vpop.f32.mrb[18].mxu0 }
 0x302   : > { %v2583_v28 = vmul.f32 %v5847_v41, %v9651_v11  ;;  %v2308_v46 = vpop.f32.mrb[19].mxu0  ;;  %v2654_v59 = vmul.f32 %v2582_v19, %v8174_v62  ;;  %v9668_v19 = vld [vmem:[#allocation15_spill] sm:$0xff] }
 0x303   : > { %v2581_v5 = vmul.f32 %v9652_v58, %v2308_v46  ;;  %v2652_v52 = vmul.f32 %v2580_v20, %v8179_v33  ;;  %v9669_v20 = vld [vmem:[#allocation18_spill] sm:$0xff] }
 0x304   : > { %v2655_v36 = vmul.f32 %v2583_v28, %v8176_v40  ;;  %v9670_v28 = vld [vmem:[#allocation16_spill] sm:$0xff] }
 0x305   : > { %v2653_v61 = vmul.f32 %v2581_v5, %v8181_v0 }
 0x306   : > { %v2723_v57 = vpack.c.bf16 %v2655_v36, %v2654_v59 }
 0x307   : > { %v2722_v37 = vpack.c.bf16 %v2653_v61, %v2652_v52  ;;  %v5850_v2 = vpop.f32.mrb[20].mxu0 }
 0x308   : > { %v2586_v50 = vmul.f32 %v5850_v2, %v9653_v60  ;;  %v2321_v18 = vpop.f32.mrb[21].mxu0 }
 0x309   : > { %v2584_v1 = vmul.f32 %v9654_v47, %v2321_v18  ;;  %v5851_v14 = vpop.f32.mrb[22].mxu0  ;;  %5920 = vmatprep.mubr.msk.bf16.mxu1 %vm9655_vm9, %v2722_v37  ;;  %v9671_v37 = vld [vmem:[#allocation21_spill] sm:$0xff]  ;;  %vm9699_vm9 = vmmov %vm9690_vm0 }
 0x30a   : > { %v2587_v15 = vmul.f32 %v5851_v14, %v9656_v49  ;;  %v2324_v10 = vpop.f32.mrb[23].mxu0  ;;  %5921 = vmatmul.mubr.msk.bf16.gmra.mrb[80].mxu1 %vm9657_vm10, %v2723_v57  ;;  %v2658_v63 = vmul.f32 %v2586_v50, %v8148_v29  ;;  %v9672_v50 = vld [vmem:[#allocation19_spill] sm:$0xff]  ;;  %vm9703_vm10 = vmmov %vm9690_vm0 }
 0x30b   : > { %v2585_v17 = vmul.f32 %v9658_v53, %v2324_v10  ;;  %v2656_v13 = vmul.f32 %v2584_v1, %v8153_v7  ;;  %v9674_v1 = vld [vmem:[#allocation22_spill] sm:$0xff] }
 0x30c   : > { %v2659_v38 = vmul.f32 %v2587_v15, %v8150_v9  ;;  %v9676_v15 = vld [vmem:[#allocation20_spill] sm:$0xff] }
 0x30d   : > { %v2657_v24 = vmul.f32 %v2585_v17, %v8155_v23 }
 0x30e   : > { %v2725_v51 = vpack.c.bf16 %v2659_v38, %v2658_v63 }
 0x30f   : > { %v2724_v25 = vpack.c.bf16 %v2657_v24, %v2656_v13  ;;  %v5854_v8 = vpop.f32.mrb[24].mxu0 }
 0x310   : > { %v2590_v6 = vmul.f32 %v5854_v8, %v9659_v3  ;;  %v2337_v4 = vpop.f32.mrb[25].mxu0 }
 0x311   : > { %v2588_v48 = vmul.f32 %v9660_v22, %v2337_v4  ;;  %v5855_v54 = vpop.f32.mrb[26].mxu0  ;;  %5924 = vmatprep.mubr.msk.bf16.mxu1 %vm9661_vm11, %v2724_v25  ;;  %v9677_v25 = vld [vmem:[#allocation25_spill] sm:$0xff]  ;;  %vm9705_vm11 = vmmov %vm9690_vm0 }
 0x312   : > { %v2591_v35 = vmul.f32 %v5855_v54, %v9662_v43  ;;  %v2340_v26 = vpop.f32.mrb[27].mxu0  ;;  %5925 = vmatmul.mubr.msk.bf16.gmra.mrb[84].mxu1 %vm9663_vm12, %v2725_v51  ;;  %v2662_v31 = vmul.f32 %v2590_v6, %v8174_v62  ;;  %v9678_v6 = vld [vmem:[#allocation23_spill] sm:$0xff]  ;;  %vm9707_vm12 = vmmov %vm9690_vm0 }
 0x313   : > { %v2589_v55 = vmul.f32 %v9664_v45, %v2340_v26  ;;  %v2660_v21 = vmul.f32 %v2588_v48, %v8179_v33  ;;  %v9680_v48 = vld [vmem:[#allocation26_spill] sm:$0xff] }
 0x314   : > { %v2663_v44 = vmul.f32 %v2591_v35, %v8176_v40  ;;  %v9682_v35 = vld [vmem:[#allocation24_spill] sm:$0xff] }
 0x315   : > { %v2661_v16 = vmul.f32 %v2589_v55, %v8181_v0 }
 0x316   : > { %v2727_v39 = vpack.c.bf16 %v2663_v44, %v2662_v31 }
 0x317   : > { %v2726_v32 = vpack.c.bf16 %v2661_v16, %v2660_v21 }
 0x319   : > { %5928 = vmatprep.mubr.msk.bf16.mxu1 %vm9665_vm13, %v2726_v32  ;;  %v9685_v32 = vld [vmem:[#allocation29_spill] sm:$0xff]  ;;  %vm9708_vm13 = vmmov %vm9690_vm0 }
 0x31a   : > { %5929 = vmatmul.mubr.msk.bf16.gmra.mrb[88].mxu1 %vm9666_vm14, %v2727_v39  ;;  %vm9715_vm14 = vmmov %vm9690_vm0 }
 0x31c   : > { %v5858_v12 = vpop.f32.mrb[28].mxu0 }
 0x31d   : > { %v2594_v42 = vmul.f32 %v5858_v12, %v9667_v30  ;;  %v2353_v27 = vpop.f32.mrb[29].mxu0 }
 0x31e   : > { %v2592_v34 = vmul.f32 %v9668_v19, %v2353_v27  ;;  %v5859_v56 = vpop.f32.mrb[30].mxu0 }
 0x31f   : > { %v2595_v41 = vmul.f32 %v5859_v56, %v9669_v20  ;;  %v2356_v11 = vpop.f32.mrb[31].mxu0  ;;  %v2666_v58 = vmul.f32 %v2594_v42, %v8148_v29  ;;  %v9686_v42 = vld [vmem:[#allocation27_spill] sm:$0xff] }
 0x320   : > { %v2593_v46 = vmul.f32 %v9670_v28, %v2356_v11  ;;  %v2664_v59 = vmul.f32 %v2592_v34, %v8153_v7  ;;  %v9687_v34 = vld [vmem:[#allocation30_spill] sm:$0xff] }
 0x321   : > { %v2667_v5 = vmul.f32 %v2595_v41, %v8150_v9  ;;  %v9688_v41 = vld [vmem:[#allocation28_spill] sm:$0xff] }
 0x322   : > { %v2665_v36 = vmul.f32 %v2593_v46, %v8155_v23 }
 0x323   : > { %v2729_v52 = vpack.c.bf16 %v2667_v5, %v2666_v58 }
 0x324   : > { %v2728_v61 = vpack.c.bf16 %v2665_v36, %v2664_v59  ;;  %v5862_v57 = vpop.f32.mrb[32].mxu0 }
 0x325   : > { %v2598_v2 = vmul.f32 %v5862_v57, %v9671_v37  ;;  %v2369_v60 = vpop.f32.mrb[33].mxu0 }
 0x326   : > { %v2596_v18 = vmul.f32 %v9672_v50, %v2369_v60  ;;  %v5863_v47 = vpop.f32.mrb[34].mxu0  ;;  %5932 = vmatprep.mubr.msk.bf16.mxu1 %vm9673_vm15, %v2728_v61  ;;  %v9689_v61 = vld [vmem:[#allocation33_spill] sm:$0xff]  ;;  %vm9717_vm15 = vmmov %vm9690_vm0 }
 0x327   : > { %v2599_v14 = vmul.f32 %v5863_v47, %v9674_v1  ;;  %v2372_v49 = vpop.f32.mrb[35].mxu0  ;;  %5933 = vmatmul.mubr.msk.bf16.gmra.mrb[92].mxu1 %vm9675_vm1, %v2729_v52  ;;  %v2670_v53 = vmul.f32 %v2598_v2, %v8174_v62  ;;  %v9691_v2 = vld [vmem:[#allocation31_spill] sm:$0xff]  ;;  %vm9721_vm1 = vmmov %vm9690_vm0 }
 0x328   : > { %v2597_v10 = vmul.f32 %v9676_v15, %v2372_v49  ;;  %v2668_v63 = vmul.f32 %v2596_v18, %v8179_v33  ;;  %v9693_v18 = vld [vmem:[#allocation34_spill] sm:$0xff] }
 0x329   : > { %v2671_v17 = vmul.f32 %v2599_v14, %v8176_v40  ;;  %v9694_v14 = vld [vmem:[#allocation32_spill] sm:$0xff] }
 0x32a   : > { %v2669_v38 = vmul.f32 %v2597_v10, %v8181_v0 }
 0x32b   : > { %v2731_v13 = vpack.c.bf16 %v2671_v17, %v2670_v53 }
 0x32c   : > { %v2730_v24 = vpack.c.bf16 %v2669_v38, %v2668_v63  ;;  %v5866_v51 = vpop.f32.mrb[36].mxu0 }
 0x32d   : > { %v2602_v8 = vmul.f32 %v5866_v51, %v9677_v25  ;;  %v2385_v3 = vpop.f32.mrb[37].mxu0 }
 0x32e   : > { %v2600_v4 = vmul.f32 %v9678_v6, %v2385_v3  ;;  %v5867_v22 = vpop.f32.mrb[38].mxu0  ;;  %5936 = vmatprep.mubr.msk.bf16.mxu1 %vm9679_vm2, %v2730_v24  ;;  %v9695_v24 = vld [vmem:[#allocation37_spill] sm:$0xff]  ;;  %vm9723_vm2 = vmmov %vm9690_vm0 }
 0x32f   : > { %v2603_v54 = vmul.f32 %v5867_v22, %v9680_v48  ;;  %v2388_v43 = vpop.f32.mrb[39].mxu0  ;;  %5937 = vmatmul.mubr.msk.bf16.gmra.mrb[96].mxu1 %vm9681_vm3, %v2731_v13  ;;  %v2674_v45 = vmul.f32 %v2602_v8, %v8148_v29  ;;  %v9696_v8 = vld [vmem:[#allocation35_spill] sm:$0xff]  ;;  %vm9727_vm3 = vmmov %vm9690_vm0 }
 0x330   : > { %v2601_v26 = vmul.f32 %v9682_v35, %v2388_v43  ;;  %v2672_v31 = vmul.f32 %v2600_v4, %v8153_v7  ;;  %v9698_v4 = vld [vmem:[#allocation38_spill] sm:$0xff] }
 0x331   : > { %v2675_v55 = vmul.f32 %v2603_v54, %v8150_v9  ;;  %v9700_v54 = vld [vmem:[#allocation36_spill] sm:$0xff] }
 0x332   : > { %v2673_v44 = vmul.f32 %v2601_v26, %v8155_v23 }
 0x333   : > { %v2733_v21 = vpack.c.bf16 %v2675_v55, %v2674_v45 }
 0x334   : > { %v2732_v16 = vpack.c.bf16 %v2673_v44, %v2672_v31 }
 0x336   : > { %5940 = vmatprep.mubr.msk.bf16.mxu1 %vm9683_vm4, %v2732_v16  ;;  %v9701_v16 = vld [vmem:[#allocation41_spill] sm:$0xff]  ;;  %vm9729_vm4 = vmmov %vm9690_vm0 }
 0x337   : > { %5941 = vmatmul.mubr.msk.bf16.gmra.mrb[100].mxu1 %vm9684_vm5, %v2733_v21  ;;  %vm9733_vm5 = vmmov %vm9690_vm0 }
 0x339   : > { %v5870_v39 = vpop.f32.mrb[40].mxu0 }
 0x33a   : > { %v2606_v12 = vmul.f32 %v5870_v39, %v9685_v32  ;;  %v2401_v30 = vpop.f32.mrb[41].mxu0 }
 0x33b   : > { %v2604_v27 = vmul.f32 %v9686_v42, %v2401_v30  ;;  %v5871_v19 = vpop.f32.mrb[42].mxu0 }
 0x33c   : > { %v2607_v56 = vmul.f32 %v5871_v19, %v9687_v34  ;;  %v2404_v20 = vpop.f32.mrb[43].mxu0  ;;  %v2678_v28 = vmul.f32 %v2606_v12, %v8174_v62  ;;  %v9702_v12 = vld [vmem:[#allocation39_spill] sm:$0xff] }
 0x33d   : > { %v2605_v11 = vmul.f32 %v9688_v41, %v2404_v20  ;;  %v2676_v58 = vmul.f32 %v2604_v27, %v8179_v33  ;;  %v9704_v27 = vld [vmem:[#allocation42_spill] sm:$0xff] }
 0x33e   : > { %v2679_v46 = vmul.f32 %v2607_v56, %v8176_v40  ;;  %v9706_v56 = vld [vmem:[#allocation40_spill] sm:$0xff] }
 0x33f   : > { %v2677_v5 = vmul.f32 %v2605_v11, %v8181_v0 }
 0x340   : > { %v2735_v59 = vpack.c.bf16 %v2679_v46, %v2678_v28 }
 0x341   : > { %v2734_v36 = vpack.c.bf16 %v2677_v5, %v2676_v58  ;;  %v5874_v52 = vpop.f32.mrb[44].mxu0 }
 0x342   : > { %v2610_v57 = vmul.f32 %v5874_v52, %v9689_v61  ;;  %v2417_v37 = vpop.f32.mrb[45].mxu0 }
 0x343   : > { %5944 = vmatprep.mubr.msk.bf16.mxu1 %vm9690_vm0, %v2734_v36  ;;  %v2608_v60 = vmul.f32 %v9691_v2, %v2417_v37  ;;  %v5875_v50 = vpop.f32.mrb[46].mxu0  ;;  %v9709_v36 = vld [vmem:[#allocation45_spill] sm:$0xff] }
 0x344   : > { %5945 = vmatmul.mubr.msk.bf16.gmra.mrb[104].mxu1 %vm9692_vm7, %v2735_v59  ;;  %v2611_v47 = vmul.f32 %v5875_v50, %v9693_v18  ;;  %v2420_v1 = vpop.f32.mrb[47].mxu0  ;;  %v2682_v15 = vmul.f32 %v2610_v57, %v8148_v29  ;;  %v9710_v57 = vld [vmem:[#allocation43_spill] sm:$0xff]  ;;  %vm9738_vm7 = vmmov %vm9690_vm0 }
 0x345   : > { %v2609_v49 = vmul.f32 %v9694_v14, %v2420_v1  ;;  %v2680_v53 = vmul.f32 %v2608_v60, %v8153_v7  ;;  %v9711_v60 = vld [vmem:[#allocation46_spill] sm:$0xff] }
 0x346   : > { %v2683_v10 = vmul.f32 %v2611_v47, %v8150_v9  ;;  %v9712_v47 = vld [vmem:[#allocation44_spill] sm:$0xff] }
 0x347   : > { %v2681_v17 = vmul.f32 %v2609_v49, %v8155_v23 }
 0x348   : > { %v2737_v63 = vpack.c.bf16 %v2683_v10, %v2682_v15 }
 0x349   : > { %v2736_v38 = vpack.c.bf16 %v2681_v17, %v2680_v53  ;;  %v5878_v13 = vpop.f32.mrb[48].mxu0 }
 0x34a   : > { %v2614_v51 = vmul.f32 %v5878_v13, %v9695_v24  ;;  %v2433_v25 = vpop.f32.mrb[49].mxu0 }
 0x34b   : > { %v2612_v3 = vmul.f32 %v9696_v8, %v2433_v25  ;;  %v5879_v6 = vpop.f32.mrb[50].mxu0  ;;  %5948 = vmatprep.mubr.msk.bf16.mxu1 %vm9697_vm8, %v2736_v38  ;;  %v9713_v38 = vld [vmem:[#allocation49_spill] sm:$0xff]  ;;  %vm9740_vm8 = vmmov %vm9690_vm0 }
 0x34c   : > { %v2615_v22 = vmul.f32 %v5879_v6, %v9698_v4  ;;  %v2436_v48 = vpop.f32.mrb[51].mxu0  ;;  %5949 = vmatmul.mubr.msk.bf16.gmra.mrb[108].mxu1 %vm9699_vm9, %v2737_v63  ;;  %v2686_v35 = vmul.f32 %v2614_v51, %v8174_v62  ;;  %v9714_v51 = vld [vmem:[#allocation47_spill] sm:$0xff]  ;;  %vm9744_vm9 = vmmov %vm9690_vm0 }
 0x34d   : > { %v2613_v43 = vmul.f32 %v9700_v54, %v2436_v48  ;;  %v2684_v45 = vmul.f32 %v2612_v3, %v8179_v33  ;;  %v9716_v3 = vld [vmem:[#allocation50_spill] sm:$0xff] }
 0x34e   : > { %v2687_v26 = vmul.f32 %v2615_v22, %v8176_v40  ;;  %v9718_v22 = vld [vmem:[#allocation48_spill] sm:$0xff] }
 0x34f   : > { %v2685_v55 = vmul.f32 %v2613_v43, %v8181_v0 }
 0x350   : > { %v2739_v31 = vpack.c.bf16 %v2687_v26, %v2686_v35 }
 0x351   : > { %v2738_v44 = vpack.c.bf16 %v2685_v55, %v2684_v45  ;;  %v5882_v21 = vpop.f32.mrb[52].mxu0 }
 0x352   : > { %v2618_v39 = vmul.f32 %v5882_v21, %v9701_v16  ;;  %v2449_v32 = vpop.f32.mrb[53].mxu0 }
 0x353   : > { %v2616_v30 = vmul.f32 %v9702_v12, %v2449_v32  ;;  %v5883_v42 = vpop.f32.mrb[54].mxu0  ;;  %5952 = vmatprep.mubr.msk.bf16.mxu1 %vm9703_vm10, %v2738_v44  ;;  %v9719_v44 = vld [vmem:[#allocation53_spill] sm:$0xff]  ;;  %vm9746_vm10 = vmmov %vm9690_vm0 }
 0x354   : > { %v2619_v19 = vmul.f32 %v5883_v42, %v9704_v27  ;;  %v2452_v34 = vpop.f32.mrb[55].mxu0  ;;  %5953 = vmatmul.mubr.msk.bf16.gmra.mrb[112].mxu1 %vm9705_vm11, %v2739_v31  ;;  %v2690_v41 = vmul.f32 %v2618_v39, %v8148_v29  ;;  %v9720_v39 = vld [vmem:[#allocation51_spill] sm:$0xff]  ;;  %vm9748_vm11 = vmmov %vm9690_vm0 }
 0x355   : > { %v2617_v20 = vmul.f32 %v9706_v56, %v2452_v34  ;;  %v2688_v28 = vmul.f32 %v2616_v30, %v8153_v7  ;;  %v9722_v30 = vld [vmem:[#allocation54_spill] sm:$0xff] }
 0x356   : > { %v2691_v11 = vmul.f32 %v2619_v19, %v8150_v9  ;;  %v9724_v19 = vld [vmem:[#allocation52_spill] sm:$0xff] }
 0x357   : > { %v2689_v46 = vmul.f32 %v2617_v20, %v8155_v23 }
 0x358   : > { %v2741_v58 = vpack.c.bf16 %v2691_v11, %v2690_v41 }
 0x359   : > { %v2740_v5 = vpack.c.bf16 %v2689_v46, %v2688_v28 }
 0x35b   : > { %5956 = vmatprep.mubr.msk.bf16.mxu1 %vm9707_vm12, %v2740_v5  ;;  %v9725_v5 = vld [vmem:[#allocation57_spill] sm:$0xff]  ;;  %vm9749_vm12 = vmmov %vm9690_vm0 }
 0x35c   : > { %5957 = vmatmul.mubr.msk.bf16.gmra.mrb[116].mxu1 %vm9708_vm13, %v2741_v58  ;;  %vm9780_vm13 = vcmask 1043456  }
 0x35e   : > { %v5886_v59 = vpop.f32.mrb[56].mxu0 }
 0x35f   : > { %v2622_v52 = vmul.f32 %v5886_v59, %v9709_v36  ;;  %v2465_v61 = vpop.f32.mrb[57].mxu0 }
 0x360   : > { %v2620_v37 = vmul.f32 %v9710_v57, %v2465_v61  ;;  %v5887_v2 = vpop.f32.mrb[58].mxu0 }
 0x361   : > { %v2623_v50 = vmul.f32 %v5887_v2, %v9711_v60  ;;  %v2468_v18 = vpop.f32.mrb[59].mxu0  ;;  %v2694_v14 = vmul.f32 %v2622_v52, %v8174_v62  ;;  %v9726_v52 = vld [vmem:[#allocation55_spill] sm:$0xff] }
 0x362   : > { %v2621_v1 = vmul.f32 %v9712_v47, %v2468_v18  ;;  %v2692_v15 = vmul.f32 %v2620_v37, %v8179_v33  ;;  %v9728_v37 = vld [vmem:[#allocation58_spill] sm:$0xff] }
 0x363   : > { %v2695_v49 = vmul.f32 %v2623_v50, %v8176_v40  ;;  %v9730_v50 = vld [vmem:[#allocation56_spill] sm:$0xff] }
 0x364   : > { %v2693_v10 = vmul.f32 %v2621_v1, %v8181_v0 }
 0x365   : > { %v2743_v53 = vpack.c.bf16 %v2695_v49, %v2694_v14 }
 0x366   : > { %v2742_v17 = vpack.c.bf16 %v2693_v10, %v2692_v15  ;;  %v5890_v63 = vpop.f32.mrb[60].mxu0 }
 0x367   : > { %v2626_v13 = vmul.f32 %v5890_v63, %v9713_v38  ;;  %v2481_v24 = vpop.f32.mrb[61].mxu0 }
 0x368   : > { %v2624_v25 = vmul.f32 %v9714_v51, %v2481_v24  ;;  %v5891_v8 = vpop.f32.mrb[62].mxu0  ;;  %5960 = vmatprep.mubr.msk.bf16.mxu1 %vm9715_vm14, %v2742_v17  ;;  %v9731_v17 = vld [vmem:[#allocation61_spill] sm:$0xff]  ;;  %vm9781_vm14 = vmmov %vm9780_vm13 }
 0x369   : > { %v2627_v6 = vmul.f32 %v5891_v8, %v9716_v3  ;;  %v2484_v4 = vpop.f32.mrb[63].mxu0  ;;  %5961 = vmatmul.mubr.msk.bf16.gmra.mrb[120].mxu1 %vm9717_vm15, %v2743_v53  ;;  %v2698_v54 = vmul.f32 %v2626_v13, %v8148_v29  ;;  %v9732_v13 = vld [vmem:[#allocation59_spill] sm:$0xff]  ;;  %vm9783_vm15 = vmmov %vm9690_vm0 }
 0x36a   : > { %v2625_v48 = vmul.f32 %v9718_v22, %v2484_v4  ;;  %v2696_v35 = vmul.f32 %v2624_v25, %v8153_v7  ;;  %v9734_v25 = vld [vmem:[#allocation62_spill] sm:$0xff] }
 0x36b   : > { %v2699_v43 = vmul.f32 %v2627_v6, %v8150_v9  ;;  %v9735_v6 = vld [vmem:[#allocation60_spill] sm:$0xff] }
 0x36c   : > { %v2697_v26 = vmul.f32 %v2625_v48, %v8155_v23 }
 0x36d   : > { %v2745_v45 = vpack.c.bf16 %v2699_v43, %v2698_v54 }
 0x36e   : > { %v2744_v55 = vpack.c.bf16 %v2697_v26, %v2696_v35  ;;  %v5894_v31 = vpop.f32.mrb[64].mxu0 }
 0x36f   : > { %v2630_v21 = vmul.f32 %v5894_v31, %v9719_v44  ;;  %v2497_v16 = vpop.f32.mrb[65].mxu0 }
 0x370   : > { %v2628_v32 = vmul.f32 %v9720_v39, %v2497_v16  ;;  %v5895_v12 = vpop.f32.mrb[66].mxu0  ;;  %5964 = vmatprep.mubr.msk.bf16.mxu1 %vm9721_vm1, %v2744_v55  ;;  %v9736_v55 = vld [vmem:[#allocation65_spill] sm:$0xff]  ;;  %vm9784_vm1 = vmmov %vm9690_vm0 }
 0x371   : > { %v2631_v42 = vmul.f32 %v5895_v12, %v9722_v30  ;;  %v2500_v27 = vpop.f32.mrb[67].mxu0  ;;  %5965 = vmatmul.mubr.msk.bf16.gmra.mrb[124].mxu1 %vm9723_vm2, %v2745_v45  ;;  %v2702_v56 = vmul.f32 %v2630_v21, %v8174_v62  ;;  %v9737_v21 = vld [vmem:[#allocation63_spill] sm:$0xff]  ;;  %vm9785_vm2 = vmmov %vm9690_vm0 }
 0x372   : > { %v2629_v34 = vmul.f32 %v9724_v19, %v2500_v27  ;;  %v2700_v41 = vmul.f32 %v2628_v32, %v8179_v33  ;;  %v9739_v32 = vld [vmem:[#allocation66_spill] sm:$0xff] }
 0x373   : > { %v2703_v20 = vmul.f32 %v2631_v42, %v8176_v40  ;;  %v9741_v42 = vld [vmem:[#allocation64_spill] sm:$0xff] }
 0x374   : > { %v2701_v11 = vmul.f32 %v2629_v34, %v8181_v0 }
 0x375   : > { %v2747_v28 = vpack.c.bf16 %v2703_v20, %v2702_v56 }
 0x376   : > { %v2746_v46 = vpack.c.bf16 %v2701_v11, %v2700_v41  ;;  %v5898_v58 = vpop.f32.mrb[68].mxu0 }
 0x377   : > { %v2634_v59 = vmul.f32 %v5898_v58, %v9725_v5  ;;  %v2513_v36 = vpop.f32.mrb[69].mxu0 }
 0x378   : > { %v2632_v61 = vmul.f32 %v9726_v52, %v2513_v36  ;;  %v5899_v57 = vpop.f32.mrb[70].mxu0  ;;  %5968 = vmatprep.mubr.msk.bf16.mxu1 %vm9727_vm3, %v2746_v46  ;;  %v9742_v46 = vld [vmem:[#allocation69_spill] sm:$0xff]  ;;  %vm9786_vm3 = vmmov %vm9690_vm0 }
 0x379   : > { %v2635_v2 = vmul.f32 %v5899_v57, %v9728_v37  ;;  %v2516_v60 = vpop.f32.mrb[71].mxu0  ;;  %5969 = vmatmul.mubr.msk.bf16.gmra.mrb[128].mxu1 %vm9729_vm4, %v2747_v28  ;;  %v2706_v47 = vmul.f32 %v2634_v59, %v8148_v29  ;;  %v9743_v59 = vld [vmem:[#allocation67_spill] sm:$0xff]  ;;  %vm9787_vm4 = vmmov %vm9690_vm0 }
 0x37a   : > { %v2633_v18 = vmul.f32 %v9730_v50, %v2516_v60  ;;  %v2704_v14 = vmul.f32 %v2632_v61, %v8153_v7  ;;  %v9745_v61 = vld [vmem:[#allocation70_spill] sm:$0xff] }
 0x37b   : > { %v2707_v1 = vmul.f32 %v2635_v2, %v8150_v9 }
 0x37c   : > { %v2705_v49 = vmul.f32 %v2633_v18, %v8155_v23 }
 0x37d   : > { %v2749_v15 = vpack.c.bf16 %v2707_v1, %v2706_v47  ;;  %v5140_v47 = vld [vmem:[%s9480_s4] ss:$0 sm:$0xff] }
 0x37e   : > { %v2748_v10 = vpack.c.bf16 %v2705_v49, %v2704_v14  ;;  %v5902_v53 = vpop.f32.mrb[72].mxu0 }
 0x37f   : > { %v2638_v63 = vmul.f32 %v5902_v53, %v9731_v17  ;;  %v2529_v38 = vpop.f32.mrb[73].mxu0 }
 0x380   : > { %v2636_v24 = vmul.f32 %v9732_v13, %v2529_v38  ;;  %v5903_v51 = vpop.f32.mrb[74].mxu0  ;;  %5972 = vmatprep.mubr.msk.bf16.mxu1 %vm9733_vm5, %v2748_v10  ;;  %vm9788_vm5 = vmmov %vm9690_vm0 }
 0x381   : > { %v2639_v8 = vmul.f32 %v5903_v51, %v9734_v25  ;;  %v2532_v3 = vpop.f32.mrb[75].mxu0  ;;  %5973 = vmatmul.mubr.msk.bf16.gmra.mrb[132].mxu1 %vm9690_vm0, %v2749_v15  ;;  %v2710_v22 = vmul.f32 %v2638_v63, %v8174_v62 }
 0x382   : > { %v2637_v4 = vmul.f32 %v9735_v6, %v2532_v3  ;;  %v2708_v54 = vmul.f32 %v2636_v24, %v8179_v33 }
 0x383   : > { %v2711_v48 = vmul.f32 %v2639_v8, %v8176_v40 }
 0x384   : > { %v2709_v43 = vmul.f32 %v2637_v4, %v8181_v0 }
 0x385   : > { %v2751_v35 = vpack.c.bf16 %v2711_v48, %v2710_v22 }
 0x386   : > { %v2750_v26 = vpack.c.bf16 %v2709_v43, %v2708_v54  ;;  %v5906_v45 = vpop.f32.mrb[76].mxu0 }
 0x387   : > { %v2642_v31 = vmul.f32 %v5906_v45, %v9736_v55  ;;  %v2545_v44 = vpop.f32.mrb[77].mxu0  ;;  %v5141_v45 = vld [vmem:[%s9480_s4 + $0x1] ss:$0 sm:$0xff] }
 0x388   : > { %v2640_v16 = vmul.f32 %v9737_v21, %v2545_v44  ;;  %v5907_v39 = vpop.f32.mrb[78].mxu0  ;;  %5976 = vmatprep.mubr.msk.bf16.mxu1 %vm9738_vm7, %v2750_v26  ;;  %vm9789_vm7 = vmmov %vm9690_vm0 }
 0x389   : > { %v2643_v12 = vmul.f32 %v5907_v39, %v9739_v32  ;;  %v2548_v30 = vpop.f32.mrb[79].mxu0  ;;  %5977 = vmatmul.mubr.msk.bf16.gmra.mrb[136].mxu1 %vm9740_vm8, %v2751_v35  ;;  %v2714_v19 = vmul.f32 %v2642_v31, %v8148_v29  ;;  %vm9790_vm8 = vmmov %vm9690_vm0 }
 0x38a   : > { %v2641_v27 = vmul.f32 %v9741_v42, %v2548_v30  ;;  %v2712_v56 = vmul.f32 %v2640_v16, %v8153_v7 }
 0x38b   : > { %v2715_v34 = vmul.f32 %v2643_v12, %v8150_v9  ;;  %v9747_v9 = vld [vmem:[#allocation68_spill] sm:$0xff] }
 0x38c   : > { %v2713_v20 = vmul.f32 %v2641_v27, %v8155_v23 }
 0x38d   : > { %v2753_v41 = vpack.c.bf16 %v2715_v34, %v2714_v19 }
 0x38e   : > { %v2752_v11 = vpack.c.bf16 %v2713_v20, %v2712_v56  ;;  %v5910_v28 = vpop.f32.mrb[80].mxu0 }
 0x38f   : > { %v2646_v58 = vmul.f32 %v5910_v28, %v9742_v46  ;;  %v2561_v5 = vpop.f32.mrb[81].mxu0 }
 0x390   : > { %v2644_v36 = vmul.f32 %v9743_v59, %v2561_v5  ;;  %v5911_v52 = vpop.f32.mrb[82].mxu0  ;;  %5980 = vmatprep.mubr.msk.bf16.mxu1 %vm9744_vm9, %v2752_v11  ;;  %vm9791_vm9 = vmmov %vm9690_vm0 }
 0x391   : > { %v2647_v57 = vmul.f32 %v5911_v52, %v9745_v61  ;;  %v2564_v29 = vpop.f32.mrb[83].mxu0  ;;  %5981 = vmatmul.mubr.msk.bf16.gmra.mrb[140].mxu1 %vm9746_vm10, %v2753_v41  ;;  %v2718_v23 = vmul.f32 %v2646_v58, %v8174_v62  ;;  %vm9792_vm10 = vmmov %vm9690_vm0 }
 0x392   : > { %v2645_v7 = vmul.f32 %v9747_v9, %v2564_v29  ;;  %v2716_v2 = vmul.f32 %v2644_v36, %v8179_v33 }
 0x393   : > { %v2719_v37 = vmul.f32 %v2647_v57, %v8176_v40 }
 0x394   : > { %v2717_v60 = vmul.f32 %v2645_v7, %v8181_v0 }
 0x395   : > { %v2755_v50 = vpack.c.bf16 %v2719_v37, %v2718_v23 }
 0x396   : > { %v2754_v18 = vpack.c.bf16 %v2717_v60, %v2716_v2 }
 0x398   : > { %5984 = vmatprep.mubr.msk.bf16.mxu1 %vm9748_vm11, %v2754_v18  ;;  %vm9793_vm11 = vmmov %vm9690_vm0 }
 0x399   : > { %5985 = vmatmul.mubr.msk.bf16.gmra.mrb[144].mxu1 %vm9749_vm12, %v2755_v50  ;;  %vm9794_vm12 = vmmov %vm9690_vm0 }
 0x3ce   : > { %v5918_v1 = vpop.f32.mrb[76].mxu1 }
 0x3cf   : > { %v2898_v14 = vpop.f32.mrb[77].mxu1  ;;  %v8355_v15 = vadd.f32 %v5918_v1, %v5140_v47 }
 0x3d0   : > { %v8353_v49 = vadd.f32 %v5140_v47, %v2898_v14  ;;  %v5919_v62 = vpop.f32.mrb[78].mxu1 }
 0x3d1   : > { %v2901_v40 = vpop.f32.mrb[79].mxu1  ;;  %v8361_v10 = vadd.f32 %v5919_v62, %v5140_v47  ;;  %v3323_v63 = vsel %vm595_vm6, %v8355_v15, -inf }
 0x3d2   : > { %v8357_v33 = vadd.f32 %v5140_v47, %v2901_v40  ;;  %v3320_v0 = vsel %vm595_vm6, %v8353_v49, -inf }
 0x3d3   : > { %v3325_v13 = vsel %vm595_vm6, %v8361_v10, -inf }
 0x3d4   : > { %v3321_v53 = vsel %vm595_vm6, %v8357_v33, -inf }
 0x3d5   : > { %v3322_v17 = vmax.f32 %v3320_v0, %v3321_v53 }
 0x3d7   : > { %v3324_v38 = vmax.f32 %v3322_v17, %v3323_v63 }
 0x3d9   : > { %v3326_v24 = vmax.f32 %v3324_v38, %v3325_v13 }
 0x3dd   : > { %v5922_v51 = vpop.f32.mrb[80].mxu1 }
 0x3de   : > { %v2914_v25 = vpop.f32.mrb[81].mxu1  ;;  %v8371_v4 = vadd.f32 %v5922_v51, %v5140_v47 }
 0x3df   : > { %v8369_v8 = vadd.f32 %v5140_v47, %v2914_v25  ;;  %v5923_v3 = vpop.f32.mrb[82].mxu1 }
 0x3e0   : > { %v2917_v6 = vpop.f32.mrb[83].mxu1  ;;  %v8377_v43 = vadd.f32 %v5923_v3, %v5140_v47  ;;  %v3331_v55 = vsel %vm595_vm6, %v8371_v4, -inf }
 0x3e1   : > { %v3327_v22 = vsel %vm595_vm6, %v8369_v8, -inf  ;;  %v8375_v48 = vadd.f32 %v5140_v47, %v2917_v6 }
 0x3e2   : > { %v3328_v54 = vmax.f32 %v3326_v24, %v3327_v22  ;;  %v3333_v16 = vsel %vm595_vm6, %v8377_v43, -inf }
 0x3e3   : > { %v3329_v35 = vsel %vm595_vm6, %v8375_v48, -inf }
 0x3e4   : > { %v3330_v26 = vmax.f32 %v3328_v54, %v3329_v35 }
 0x3e5   : > { %v5926_v31 = vpop.f32.mrb[84].mxu1 }
 0x3e6   : > { %v3332_v44 = vmax.f32 %v3330_v26, %v3331_v55  ;;  %v2930_v21 = vpop.f32.mrb[85].mxu1  ;;  %v8390_v42 = vadd.f32 %v5926_v31, %v5141_v45 }
 0x3e7   : > { %v8388_v39 = vadd.f32 %v5141_v45, %v2930_v21  ;;  %v5927_v32 = vpop.f32.mrb[86].mxu1 }
 0x3e8   : > { %v3334_v12 = vmax.f32 %v3332_v44, %v3333_v16  ;;  %v2933_v30 = vpop.f32.mrb[87].mxu1  ;;  %v8396_v56 = vadd.f32 %v5927_v32, %v5141_v45  ;;  %v3344_v28 = vsel %vm595_vm6, %v8390_v42, -inf }
 0x3e9   : > { %v8392_v27 = vadd.f32 %v5141_v45, %v2933_v30  ;;  %v3341_v34 = vsel %vm595_vm6, %v8388_v39, -inf }
 0x3ea   : > { %v3335_v19 = vrot.slane %v3334_v12, 4  ;;  %v3346_v36 = vsel %vm595_vm6, %v8396_v56, -inf }
 0x3eb   : > { %v3342_v20 = vsel %vm595_vm6, %v8392_v27, -inf }
 0x3ec   : > { %v3336_v41 = vmax.f32 %v3334_v12, %v3335_v19  ;;  %v3343_v11 = vmax.f32 %v3341_v34, %v3342_v20 }
 0x3ed   : > { %v5930_v46 = vpop.f32.mrb[88].mxu1 }
 0x3ee   : > { %v3337_v58 = vrot.slane %v3336_v41, 2  ;;  %v3345_v5 = vmax.f32 %v3343_v11, %v3344_v28  ;;  %v2946_v59 = vpop.f32.mrb[89].mxu1  ;;  %v8406_v7 = vadd.f32 %v5930_v46, %v5141_v45 }
 0x3ef   : > { %v8404_v52 = vadd.f32 %v5141_v45, %v2946_v59  ;;  %v5931_v61 = vpop.f32.mrb[90].mxu1 }
 0x3f0   : > { %v3338_v57 = vmax.f32 %v3336_v41, %v3337_v58  ;;  %v3347_v29 = vmax.f32 %v3345_v5, %v3346_v36  ;;  %v2949_v9 = vpop.f32.mrb[91].mxu1  ;;  %v3352_v1 = vsel %vm595_vm6, %v8406_v7, -inf  ;;  %v8416_v14 = vadd.f32 %v5931_v61, %v5141_v45 }
 0x3f1   : > { %v3348_v23 = vsel %vm595_vm6, %v8404_v52, -inf  ;;  %v8410_v37 = vadd.f32 %v5141_v45, %v2949_v9 }
 0x3f2   : > { %v3339_v2 = vrot.slane %v3338_v57, 1  ;;  %v3349_v60 = vmax.f32 %v3347_v29, %v3348_v23 }
 0x3f3   : > { %v3350_v50 = vsel %vm595_vm6, %v8410_v37, -inf }
 0x3f4   : > { %v3340_v18 = vmax.f32 %v3338_v57, %v3339_v2  ;;  %v3351_v47 = vmax.f32 %v3349_v60, %v3350_v50 }
 0x3f6   : > { %v3509_v62 = vsub.f32 %v8353_v49, %v3340_v18  ;;  %v3510_v40 = vsub.f32 %v8357_v33, %v3340_v18  ;;  %v3511_v0 = vsub.f32 %v8355_v15, %v3340_v18  ;;  %v3512_v53 = vsub.f32 %v8361_v10, %v3340_v18  ;;  %v5142_v15 = vld [vmem:[%s9480_s4 + $0x2] ss:$0 sm:$0xff] }
 0x3f7   : > { %v3513_v17 = vsub.f32 %v8369_v8, %v3340_v18  ;;  %v3514_v63 = vsub.f32 %v8375_v48, %v3340_v18  ;;  %v3515_v38 = vsub.f32 %v8371_v4, %v3340_v18  ;;  %v3516_v13 = vsub.f32 %v8377_v43, %v3340_v18 }
 0x3f8   : > { %v3581_v24 = vmul.f32 1.442695, %v3509_v62  ;;  %v3583_v51 = vmul.f32 1.442695, %v3510_v40  ;;  %v3585_v25 = vmul.f32 1.442695, %v3511_v0  ;;  %v3353_v3 = vmax.f32 %v3351_v47, %v3352_v1 }
 0x3f9   : > { %v3587_v6 = vmul.f32 1.442695, %v3512_v53  ;;  %v3354_v49 = vsel %vm595_vm6, %v8416_v14, -inf  ;;  %v3589_v33 = vmul.f32 1.442695, %v3513_v17 }
 0x3fa   : > { %6414 = vpow2.f32 %v3581_v24  ;;  %v3355_v10 = vmax.f32 %v3353_v3, %v3354_v49  ;;  %v5934_v8 = vpop.f32.mrb[92].mxu1  ;;  %v3591_v4 = vmul.f32 1.442695, %v3514_v63  ;;  %v3593_v48 = vmul.f32 1.442695, %v3515_v38 }
 0x3fb   : > { %6416 = vpow2.f32 %v3583_v51  ;;  %v2962_v22 = vpop.f32.mrb[93].mxu1  ;;  %v8433_v55 = vadd.f32 %v5934_v8, %v5142_v15  ;;  %v3595_v44 = vmul.f32 1.442695, %v3516_v13 }
 0x3fc   : > { %6418 = vpow2.f32 %v3585_v25  ;;  %v3356_v54 = vrot.slane %v3355_v10, 4  ;;  %v8431_v43 = vadd.f32 %v5142_v15, %v2962_v22  ;;  %v5935_v35 = vpop.f32.mrb[94].mxu1 }
 0x3fd   : > { %6420 = vpow2.f32 %v3587_v6  ;;  %v2965_v26 = vpop.f32.mrb[95].mxu1  ;;  %v8437_v21 = vadd.f32 %v5935_v35, %v5142_v15  ;;  %v3365_v34 = vsel %vm595_vm6, %v8433_v55, -inf }
 0x3fe   : > { %6422 = vpow2.f32 %v3589_v33  ;;  %v3357_v45 = vmax.f32 %v3355_v10, %v3356_v54  ;;  %v8435_v31 = vadd.f32 %v5142_v15, %v2965_v26  ;;  %v3362_v32 = vsel %vm595_vm6, %v8431_v43, -inf }
 0x3ff   : > { %6424 = vpow2.f32 %v3591_v4  ;;  %v3367_v5 = vsel %vm595_vm6, %v8437_v21, -inf }
 0x400   : > { %6426 = vpow2.f32 %v3593_v48  ;;  %v3358_v16 = vrot.slane %v3357_v45, 2  ;;  %v3363_v12 = vsel %vm595_vm6, %v8435_v31, -inf }
 0x401   : > { %v3364_v30 = vmax.f32 %v3362_v32, %v3363_v12  ;;  %6428 = vpow2.f32 %v3595_v44 }
 0x402   : > { %v3359_v19 = vmax.f32 %v3357_v45, %v3358_v16  ;;  %v5938_v20 = vpop.f32.mrb[96].mxu1 }
 0x403   : > { %v3366_v41 = vmax.f32 %v3364_v30, %v3365_v34  ;;  %v8445_v11 = vadd.f32 %v5938_v20, %v5142_v15  ;;  %v2978_v28 = vpop.f32.mrb[97].mxu1 }
 0x404   : > { %v8447_v46 = vpop.eup %6414  ;;  %v3360_v58 = vrot.slane %v3359_v19, 1  ;;  %v8451_v59 = vadd.f32 %v5142_v15, %v2978_v28  ;;  %v5939_v36 = vpop.f32.mrb[98].mxu1 }
 0x405   : > { %v8453_v61 = vpop.eup %6416  ;;  %v3725_v57 = vsel %vm595_vm6, %v8447_v46, 0.0  ;;  %v3368_v29 = vmax.f32 %v3366_v41, %v3367_v5  ;;  %v8457_v9 = vadd.f32 %v5939_v36, %v5142_v15  ;;  %v2981_v23 = vpop.f32.mrb[99].mxu1  ;;  %v3373_v62 = vsel %vm595_vm6, %v8445_v11, -inf }
 0x406   : > { %v8459_v2 = vpop.eup %6418  ;;  %v3726_v60 = vsel %vm595_vm6, %v8453_v61, 0.0  ;;  %v3361_v50 = vmax.f32 %v3359_v19, %v3360_v58  ;;  %v3369_v18 = vsel %vm595_vm6, %v8451_v59, -inf  ;;  %v8469_v0 = vadd.f32 %v5142_v15, %v2981_v23 }
 0x407   : > { %v8465_v47 = vpop.eup %6420  ;;  %v3727_v1 = vadd.f32 %v3726_v60, %v3725_v57  ;;  %v3370_v40 = vmax.f32 %v3368_v29, %v3369_v18  ;;  %v3728_v17 = vsel %vm595_vm6, %v8459_v2, 0.0  ;;  %v3375_v6 = vsel %vm595_vm6, %v8457_v9, -inf }
 0x408   : > { %v8471_v53 = vpop.eup %6422  ;;  %v3517_v63 = vsub.f32 %v8388_v39, %v3361_v50  ;;  %v3518_v38 = vsub.f32 %v8392_v27, %v3361_v50  ;;  %v3519_v13 = vsub.f32 %v8390_v42, %v3361_v50  ;;  %v3520_v25 = vsub.f32 %v8396_v56, %v3361_v50  ;;  %v8494_v56 = vld [vmem:[%s9480_s4 + $0x3] ss:$0 sm:$0xff] }
 0x409   : > { %v8478_v24 = vpop.eup %6424  ;;  %v3729_v51 = vadd.f32 %v3728_v17, %v3727_v1  ;;  %v3521_v3 = vsub.f32 %v8404_v52, %v3361_v50  ;;  %v3730_v15 = vsel %vm595_vm6, %v8465_v47, 0.0  ;;  %v3522_v39 = vsub.f32 %v8410_v37, %v3361_v50 }
 0x40a   : > { %v8484_v49 = vpop.eup %6426  ;;  %v3523_v27 = vsub.f32 %v8406_v7, %v3361_v50  ;;  %v3524_v42 = vsub.f32 %v8416_v14, %v3361_v50  ;;  %v5942_v33 = vpop.f32.mrb[100].mxu1  ;;  %v3732_v10 = vsel %vm595_vm6, %v8471_v53, 0.0  ;;  %v3597_v8 = vmul.f32 1.442695, %v3517_v63 }
 0x40b   : > { %v3731_v52 = vadd.f32 %v3730_v15, %v3729_v51  ;;  %v3599_v4 = vmul.f32 1.442695, %v3518_v38  ;;  %v2994_v22 = vpop.f32.mrb[101].mxu1  ;;  %v3734_v37 = vsel %vm595_vm6, %v8478_v24, 0.0  ;;  %v3601_v48 = vmul.f32 1.442695, %v3519_v13  ;;  %v8504_v44 = vpop.eup %6428 }
 0x40c   : > { %v3603_v7 = vmul.f32 1.442695, %v3520_v25  ;;  %v3371_v14 = vsel %vm595_vm6, %v8469_v0, -inf  ;;  %v3736_v35 = vsel %vm595_vm6, %v8484_v49, 0.0  ;;  %6430 = vpow2.f32 %v3597_v8  ;;  %v5943_v45 = vpop.f32.mrb[102].mxu1 }
 0x40d   : > { %v3733_v54 = vadd.f32 %v3732_v10, %v3731_v52  ;;  %v3605_v26 = vmul.f32 1.442695, %v3521_v3  ;;  %6432 = vpow2.f32 %v3599_v4  ;;  %v3607_v16 = vmul.f32 1.442695, %v3522_v39  ;;  %v2997_v30 = vpop.f32.mrb[103].mxu1 }
 0x40e   : > { %v3609_v32 = vmul.f32 1.442695, %v3523_v27  ;;  %v3372_v12 = vmax.f32 %v3370_v40, %v3371_v14  ;;  %6434 = vpow2.f32 %v3601_v48  ;;  %v3611_v34 = vmul.f32 1.442695, %v3524_v42 }
 0x40f   : > { %v3735_v19 = vadd.f32 %v3734_v37, %v3733_v54  ;;  %v8507_v20 = vadd.f32 %v8494_v56, %v2994_v22  ;;  %6436 = vpow2.f32 %v3603_v7  ;;  %v8510_v28 = vadd.f32 %v5942_v33, %v8494_v56 }
 0x410   : > { %v3374_v41 = vmax.f32 %v3372_v12, %v3373_v62  ;;  %v8513_v58 = vadd.f32 %v8494_v56, %v2997_v30  ;;  %v3738_v36 = vsel %vm595_vm6, %v8504_v44, 0.0  ;;  %6438 = vpow2.f32 %v3605_v26 }
 0x411   : > { %v3737_v5 = vadd.f32 %v3736_v35, %v3735_v19  ;;  %v8518_v57 = vadd.f32 %v5943_v45, %v8494_v56  ;;  %6440 = vpow2.f32 %v3607_v16  ;;  %v3383_v23 = vsel %vm595_vm6, %v8507_v20, -inf }
 0x412   : > { %v3376_v29 = vmax.f32 %v3374_v41, %v3375_v6  ;;  %v3384_v60 = vsel %vm595_vm6, %v8513_v58, -inf  ;;  %6442 = vpow2.f32 %v3609_v32  ;;  %v3386_v62 = vsel %vm595_vm6, %v8510_v28, -inf }
 0x413   : > { %v3739_v50 = vadd.f32 %v3738_v36, %v3737_v5  ;;  %v3385_v18 = vmax.f32 %v3383_v23, %v3384_v60  ;;  %6444 = vpow2.f32 %v3611_v34  ;;  %v3388_v38 = vsel %vm595_vm6, %v8518_v57, -inf }
 0x414   : > { %v3377_v1 = vrot.slane %v3376_v29, 4 }
 0x415   : > { %v3740_v40 = vrot.slane %v3739_v50, 4  ;;  %v3387_v17 = vmax.f32 %v3385_v18, %v3386_v62 }
 0x416   : > { %v3378_v63 = vmax.f32 %v3376_v29, %v3377_v1  ;;  %v8528_v51 = vpop.eup %6430 }
 0x417   : > { %v5946_v13 = vpop.f32.mrb[104].mxu1  ;;  %v3741_v25 = vadd.f32 %v3740_v40, %v3739_v50  ;;  %v3389_v6 = vmax.f32 %v3387_v17, %v3388_v38  ;;  %v8530_v15 = vpop.eup %6432  ;;  %v3746_v39 = vsel %vm595_vm6, %v8528_v51, 0.0 }
 0x418   : > { %v3010_v3 = vpop.f32.mrb[105].mxu1  ;;  %v3379_v27 = vrot.slane %v3378_v63, 2  ;;  %v8535_v42 = vadd.f32 %v5946_v13, %v8494_v56  ;;  %v8540_v10 = vpop.eup %6434  ;;  %v3747_v4 = vsel %vm595_vm6, %v8530_v15, 0.0 }
 0x419   : > { %v8538_v33 = vadd.f32 %v8494_v56, %v3010_v3  ;;  %v5947_v52 = vpop.f32.mrb[106].mxu1  ;;  %v3742_v8 = vrot.slane %v3741_v25, 2  ;;  %v8547_v48 = vpop.eup %6436  ;;  %v3748_v7 = vadd.f32 %v3747_v4, %v3746_v39  ;;  %v3749_v45 = vsel %vm595_vm6, %v8540_v10, 0.0 }
 0x41a   : > { %v8545_v22 = vadd.f32 %v5947_v52, %v8494_v56  ;;  %v3013_v37 = vpop.f32.mrb[107].mxu1  ;;  %v3380_v14 = vmax.f32 %v3378_v63, %v3379_v27  ;;  %v8551_v35 = vpop.eup %6438  ;;  %v3394_v19 = vsel %vm595_vm6, %v8535_v42, -inf  ;;  %v3751_v36 = vsel %vm595_vm6, %v8547_v48, 0.0 }
 0x41b   : > { %v3390_v54 = vsel %vm595_vm6, %v8538_v33, -inf  ;;  %v3743_v26 = vadd.f32 %v3742_v8, %v3741_v25  ;;  %v8555_v32 = vpop.eup %6440  ;;  %v3750_v12 = vadd.f32 %v3749_v45, %v3748_v7  ;;  %v8560_v34 = vadd.f32 %v8494_v56, %v3013_v37 }
 0x41c   : > { %v3391_v16 = vmax.f32 %v3389_v6, %v3390_v54  ;;  %v3381_v30 = vrot.slane %v3380_v14, 1  ;;  %v8562_v41 = vpop.eup %6442  ;;  %v3753_v29 = vsel %vm595_vm6, %v8551_v35, 0.0  ;;  %v3396_v23 = vsel %vm595_vm6, %v8545_v22, -inf }
 0x41d   : > { %v3744_v5 = vrot.slane %v3743_v26, 1  ;;  %v8570_v60 = vpop.eup %6444  ;;  %v3752_v50 = vadd.f32 %v3751_v36, %v3750_v12  ;;  %v3755_v18 = vsel %vm595_vm6, %v8555_v32, 0.0  ;;  %v3392_v1 = vsel %vm595_vm6, %v8560_v34, -inf }
 0x41e   : > { %v3382_v56 = vmax.f32 %v3380_v14, %v3381_v30  ;;  %v3757_v40 = vsel %vm595_vm6, %v8562_v41, 0.0  ;;  %v3759_v17 = vsel %vm595_vm6, %v8570_v60, 0.0  ;;  %v3393_v63 = vmax.f32 %v3391_v16, %v3392_v1 }
 0x41f   : > { %v3745_v62 = vadd.f32 %v3744_v5, %v3743_v26  ;;  %v5950_v38 = vpop.f32.mrb[108].mxu1  ;;  %v3754_v13 = vadd.f32 %v3753_v29, %v3752_v50 }
 0x420   : > { %v3525_v25 = vsub.f32 %v8431_v43, %v3382_v56  ;;  %v3526_v3 = vsub.f32 %v8435_v31, %v3382_v56  ;;  %v3527_v6 = vsub.f32 %v8433_v55, %v3382_v56  ;;  %v3026_v39 = vpop.f32.mrb[109].mxu1  ;;  %v3528_v27 = vsub.f32 %v8437_v21, %v3382_v56  ;;  %v5144_v43 = vld [vmem:[%s9480_s4 + $0x4] ss:$0 sm:$0xff] }
 0x421   : > { %6446 = vrcp.f32 %v3745_v62  ;;  %v3529_v52 = vsub.f32 %v8451_v59, %v3382_v56  ;;  %v3530_v8 = vsub.f32 %v8469_v0, %v3382_v56  ;;  %v5951_v4 = vpop.f32.mrb[110].mxu1  ;;  %v3756_v37 = vadd.f32 %v3755_v18, %v3754_v13 }
 0x422   : > { %v3531_v7 = vsub.f32 %v8445_v11, %v3382_v56  ;;  %v3532_v14 = vsub.f32 %v8457_v9, %v3382_v56  ;;  %v3613_v54 = vmul.f32 1.442695, %v3525_v25  ;;  %v3029_v55 = vpop.f32.mrb[111].mxu1  ;;  %v3615_v31 = vmul.f32 1.442695, %v3526_v3 }
 0x423   : > { %v3617_v26 = vmul.f32 1.442695, %v3527_v6  ;;  %v3619_v45 = vmul.f32 1.442695, %v3528_v27  ;;  %v3395_v21 = vmax.f32 %v3393_v63, %v3394_v19  ;;  %v3758_v16 = vadd.f32 %v3757_v40, %v3756_v37 }
 0x424   : > { %6448 = vpow2.f32 %v3613_v54  ;;  %v3621_v59 = vmul.f32 1.442695, %v3529_v52  ;;  %v3623_v0 = vmul.f32 1.442695, %v3530_v8  ;;  %v3625_v12 = vmul.f32 1.442695, %v3531_v7 }
 0x425   : > { %6450 = vpow2.f32 %v3615_v31  ;;  %v3627_v30 = vmul.f32 1.442695, %v3532_v14  ;;  %v3397_v11 = vmax.f32 %v3395_v21, %v3396_v23  ;;  %v3760_v5 = vadd.f32 %v3759_v17, %v3758_v16 }
 0x426   : > { %6452 = vpow2.f32 %v3617_v26  ;;  %v8591_v9 = vadd.f32 %v5950_v38, %v5144_v43  ;;  %v8593_v36 = vadd.f32 %v5144_v43, %v3026_v39  ;;  %v8595_v50 = vadd.f32 %v5951_v4, %v5144_v43  ;;  %v8630_v26 = vld [vmem:[%s9480_s4 + $0x5] ss:$0 sm:$0xff] }
 0x427   : > { %6454 = vpow2.f32 %v3619_v45  ;;  %v3398_v29 = vrot.slane %v3397_v11, 4  ;;  %v8597_v18 = vadd.f32 %v5144_v43, %v3029_v55  ;;  %v5954_v19 = vpop.f32.mrb[112].mxu1  ;;  %v3761_v56 = vrot.slane %v3760_v5, 4 }
 0x428   : > { %6456 = vpow2.f32 %v3621_v59  ;;  %v3407_v1 = vsel %vm595_vm6, %v8591_v9, -inf  ;;  %v3404_v23 = vsel %vm595_vm6, %v8593_v36, -inf  ;;  %v3042_v62 = vpop.f32.mrb[113].mxu1  ;;  %v3409_v17 = vsel %vm595_vm6, %v8595_v50, -inf }
 0x429   : > { %6458 = vpow2.f32 %v3623_v0  ;;  %v3399_v40 = vmax.f32 %v3397_v11, %v3398_v29  ;;  %v3405_v63 = vsel %vm595_vm6, %v8597_v18, -inf  ;;  %v5955_v38 = vpop.f32.mrb[114].mxu1  ;;  %v3762_v13 = vadd.f32 %v3761_v56, %v3760_v5 }
 0x42a   : > { %6460 = vpow2.f32 %v3625_v12  ;;  %v3406_v25 = vmax.f32 %v3404_v23, %v3405_v63  ;;  %v8607_v3 = vadd.f32 %v5954_v19, %v5144_v43  ;;  %v3045_v6 = vpop.f32.mrb[115].mxu1  ;;  %v8611_v52 = vadd.f32 %v5144_v43, %v3042_v62 }
 0x42b   : > { %v8609_v39 = vpop.eup %6446  ;;  %6462 = vpow2.f32 %v3627_v30  ;;  %v3400_v27 = vrot.slane %v3399_v40, 2  ;;  %v8613_v8 = vadd.f32 %v5955_v38, %v5144_v43  ;;  %v3763_v4 = vrot.slane %v3762_v13, 2 }
 0x42c   : > { %v3408_v37 = vmax.f32 %v3406_v25, %v3407_v1  ;;  %v8617_v7 = vsel %vm595_vm6, %v8607_v3, -inf  ;;  %v8619_v14 = vadd.f32 %v5144_v43, %v3045_v6  ;;  %v3411_v55 = vsel %vm595_vm6, %v8611_v52, -inf }
 0x42d   : > { %v3401_v54 = vmax.f32 %v3399_v40, %v3400_v27  ;;  %v8625_v31 = vsel %vm595_vm6, %v8613_v8, -inf  ;;  %v8634_v45 = vmul.f32 %v8609_v39, %v8447_v46  ;;  %v3764_v43 = vadd.f32 %v3763_v4, %v3762_v13 }
 0x42e   : > { %v8636_v21 = vpop.eup %6448  ;;  %v3410_v16 = vmax.f32 %v3408_v37, %v3409_v17  ;;  %v3413_v59 = vsel %vm595_vm6, %v8619_v14, -inf  ;;  %v8642_v0 = vmul.f32 %v8609_v39, %v8453_v61  ;;  %v8650_v46 = vmul.f32 %v8609_v39, %v8459_v2 }
 0x42f   : > { %v8644_v12 = vpop.eup %6450  ;;  %v3767_v30 = vsel %vm595_vm6, %v8636_v21, 0.0  ;;  %v3402_v11 = vrot.slane %v3401_v54, 1  ;;  %v5958_v5 = vpop.f32.mrb[116].mxu1  ;;  %v8654_v29 = vmul.f32 %v8609_v39, %v8465_v47  ;;  %v3765_v56 = vrot.slane %v3764_v43, 1 }
 0x430   : > { %v8656_v19 = vpop.eup %6452  ;;  %v3768_v61 = vsel %vm595_vm6, %v8644_v12, 0.0  ;;  %v3412_v1 = vmax.f32 %v3410_v16, %v3411_v55  ;;  %v8661_v23 = vadd.f32 %v5958_v5, %v8630_v26  ;;  %v3058_v62 = vpop.f32.mrb[117].mxu1 }
 0x431   : > { %9750 = vst [vmem:[#allocation2_spill] sm:$0xff] %v8656_v19  ;;  %v8663_v40 = vpop.eup %6454  ;;  %v3769_v17 = vadd.f32 %v3768_v61, %v3767_v30  ;;  %v3770_v2 = vsel %vm595_vm6, %v8656_v19, 0.0  ;;  %v3403_v63 = vmax.f32 %v3401_v54, %v3402_v11  ;;  %v8668_v47 = vadd.f32 %v8630_v26, %v3058_v62  ;;  %v5959_v38 = vpop.f32.mrb[118].mxu1 }
 0x432   : > { %9751 = vst [vmem:[#allocation5_spill] sm:$0xff] %v8663_v40  ;;  %v8670_v13 = vpop.eup %6456  ;;  %v3766_v25 = vadd.f32 %v3765_v56, %v3764_v43  ;;  %v3772_v6 = vsel %vm595_vm6, %v8663_v40, 0.0  ;;  %v3414_v27 = vmax.f32 %v3412_v1, %v3413_v59  ;;  %v3428_v4 = vsel %vm595_vm6, %v8661_v23, -inf  ;;  %v3061_v37 = vpop.f32.mrb[119].mxu1 }
 0x433   : > { %9752 = vst [vmem:[#allocation3_spill] sm:$0xff] %v8670_v13  ;;  %v8676_v55 = vpop.eup %6458  ;;  %v3771_v16 = vadd.f32 %v3770_v2, %v3769_v17  ;;  %v3774_v54 = vsel %vm595_vm6, %v8670_v13, 0.0  ;;  %v3533_v30 = vsub.f32 %v8507_v20, %v3403_v63  ;;  %v3534_v11 = vsub.f32 %v8513_v58, %v3403_v63 }
 0x434   : > { %9753 = vst [vmem:[#allocation6_spill] sm:$0xff] %v8676_v55  ;;  %v8682_v5 = vpop.eup %6460  ;;  %6464 = vrcp.f32 %v3766_v25  ;;  %v3776_v43 = vsel %vm595_vm6, %v8676_v55, 0.0  ;;  %v3535_v59 = vsub.f32 %v8510_v28, %v3403_v63  ;;  %v3536_v56 = vsub.f32 %v8518_v57, %v3403_v63 }
 0x435   : > { %9754 = vst [vmem:[#allocation4_spill] sm:$0xff] %v8682_v5  ;;  %v8688_v61 = vpop.eup %6462  ;;  %v3773_v1 = vadd.f32 %v3772_v6, %v3771_v16  ;;  %v3778_v62 = vsel %vm595_vm6, %v8682_v5, 0.0  ;;  %v3537_v20 = vsub.f32 %v8538_v33, %v3403_v63  ;;  %v3538_v58 = vsub.f32 %v8560_v34, %v3403_v63 }
 0x436   : > { %v3780_v17 = vsel %vm595_vm6, %v8688_v61, 0.0  ;;  %v3539_v2 = vsub.f32 %v8535_v42, %v3403_v63  ;;  %v3540_v25 = vsub.f32 %v8545_v22, %v3403_v63  ;;  %v3629_v28 = vmul.f32 1.442695, %v3533_v30 }
 0x437   : > { %v3775_v55 = vadd.f32 %v3774_v54, %v3773_v1  ;;  %v3631_v57 = vmul.f32 1.442695, %v3534_v11  ;;  %v3633_v13 = vmul.f32 1.442695, %v3535_v59  ;;  %v3635_v40 = vmul.f32 1.442695, %v3536_v56 }
 0x438   : > { %6466 = vpow2.f32 %v3629_v28  ;;  %v3637_v6 = vmul.f32 1.442695, %v3537_v20  ;;  %v3639_v16 = vmul.f32 1.442695, %v3538_v58  ;;  %v3641_v5 = vmul.f32 1.442695, %v3539_v2 }
 0x439   : > { %v3777_v19 = vadd.f32 %v3776_v43, %v3775_v55  ;;  %6468 = vpow2.f32 %v3631_v57  ;;  %v3643_v33 = vmul.f32 1.442695, %v3540_v25  ;;  %v3416_v34 = vmax.f32 %v3414_v27, %v8617_v7 }
 0x43a   : > { %6470 = vpow2.f32 %v3633_v13  ;;  %v3425_v42 = vsel %vm595_vm6, %v8668_v47, -inf  ;;  %v8702_v22 = vadd.f32 %v5959_v38, %v8630_v26  ;;  %v8705_v63 = vadd.f32 %v8630_v26, %v3061_v37 }
 0x43b   : > { %v3779_v54 = vadd.f32 %v3778_v62, %v3777_v19  ;;  %6472 = vpow2.f32 %v3635_v40  ;;  %v3418_v30 = vmax.f32 %v3416_v34, %v8625_v31  ;;  %v3995_v55 = vpack.c.bf16 %v8642_v0, %v8634_v45 }
 0x43c   : > { %6474 = vpow2.f32 %v3637_v6  ;;  %v3430_v7 = vsel %vm595_vm6, %v8702_v22, -inf  ;;  %v3426_v13 = vsel %vm595_vm6, %v8705_v63, -inf  ;;  %v5962_v27 = vpop.f32.mrb[120].mxu1  ;;  %v3996_v38 = vpack.c.bf16 %v8654_v29, %v8650_v46 }
 0x43d   : > { %v3781_v37 = vadd.f32 %v3780_v17, %v3779_v54  ;;  %6476 = vpow2.f32 %v3639_v16  ;;  %v3419_v19 = vrot.slane %v3418_v30, 4  ;;  %v3427_v40 = vmax.f32 %v3425_v42, %v3426_v13  ;;  %v3074_v11 = vpop.f32.mrb[121].mxu1  ;;  %5990 = vmatprep.mubr.msk.bf16.mxu0 %vm595_vm6, %v3995_v55  ;;  %v8759_v54 = vld [vmem:[%s9480_s4 + $0x6] ss:$0 sm:$0xff] }
 0x43e   : > { %v8717_v31 = vpop.eup %6464  ;;  %6478 = vpow2.f32 %v3641_v5  ;;  %v8720_v45 = vadd.f32 %v5962_v27, %v8630_v26  ;;  %v8723_v0 = vadd.f32 %v8630_v26, %v3074_v11  ;;  %v5963_v43 = vpop.f32.mrb[122].mxu1  ;;  %5991 = vmatmul.mubr.msk.bf16.vlgmr.msra.gmra.mrb[84].mxu0 %vm595_vm6, %v3996_v38  ;;  %v3927_v46 = vmul.f32 %v8609_v39, %v8471_v53 }
 0x43f   : > { %v3782_v29 = vrot.slane %v3781_v37, 4  ;;  %6480 = vpow2.f32 %v3643_v33  ;;  %v3420_v59 = vmax.f32 %v3418_v30, %v3419_v19  ;;  %v3429_v56 = vmax.f32 %v3427_v40, %v3428_v4  ;;  %v3077_v1 = vpop.f32.mrb[123].mxu1 }
 0x440   : > { %v3436_v5 = vsel %vm595_vm6, %v8720_v45, -inf  ;;  %v3432_v62 = vsel %vm595_vm6, %v8723_v0, -inf  ;;  %v8733_v20 = vadd.f32 %v5963_v43, %v8630_v26  ;;  %v8736_v58 = vadd.f32 %v8630_v26, %v3077_v1 }
 0x441   : > { %v3783_v17 = vadd.f32 %v3782_v29, %v3781_v37  ;;  %v3421_v2 = vrot.slane %v3420_v59, 2  ;;  %v3431_v53 = vmax.f32 %v3429_v56, %v3430_v7  ;;  %v3928_v25 = vmul.f32 %v8609_v39, %v8478_v24 }
 0x442   : > { %v8740_v4 = vpop.eup %6466  ;;  %v8744_v28 = vsel %vm595_vm6, %v8733_v20, -inf  ;;  %v3434_v57 = vsel %vm595_vm6, %v8736_v58, -inf  ;;  %v3929_v6 = vmul.f32 %v8609_v39, %v8484_v49  ;;  %v3930_v26 = vmul.f32 %v8609_v39, %v8504_v44 }
 0x443   : > { %v8752_v16 = vpop.eup %6468  ;;  %v3784_v33 = vrot.slane %v3783_v17, 2  ;;  %v3788_v24 = vsel %vm595_vm6, %v8740_v4, 0.0  ;;  %v3422_v34 = vmax.f32 %v3420_v59, %v3421_v2  ;;  %v3433_v42 = vmax.f32 %v3431_v53, %v3432_v62 }
 0x444   : > { %v8761_v30 = vpop.eup %6470  ;;  %v3789_v49 = vsel %vm595_vm6, %v8752_v16, 0.0  ;;  %v3997_v55 = vpack.c.bf16 %v3928_v25, %v3927_v46  ;;  %v5966_v44 = vpop.f32.mrb[124].mxu1  ;;  %v3998_v39 = vpack.c.bf16 %v3930_v26, %v3929_v6  ;;  %v8767_v7 = vmul.f32 %v8717_v31, %v8528_v51 }
 0x445   : > { %v8769_v13 = vpop.eup %6472  ;;  %v3785_v27 = vadd.f32 %v3784_v33, %v3783_v17  ;;  %v3790_v38 = vadd.f32 %v3789_v49, %v3788_v24  ;;  %v3791_v37 = vsel %vm595_vm6, %v8761_v30, 0.0  ;;  %v3423_v19 = vrot.slane %v3422_v34, 1  ;;  %v3090_v40 = vpop.f32.mrb[125].mxu1 }
 0x446   : > { %v8773_v11 = vpop.eup %6474  ;;  %v3793_v43 = vsel %vm595_vm6, %v8769_v13, 0.0  ;;  %v3435_v46 = vmax.f32 %v3433_v42, %v3434_v57  ;;  %5994 = vmatprep.mubr.msk.bf16.mxu0 %vm595_vm6, %v3997_v55  ;;  %v8779_v51 = vadd.f32 %v5966_v44, %v8759_v54  ;;  %v8782_v29 = vadd.f32 %v8759_v54, %v3090_v40  ;;  %v5967_v59 = vpop.f32.mrb[126].mxu1 }
 0x447   : > { %v8784_v56 = vpop.eup %6476  ;;  %v3786_v1 = vrot.slane %v3785_v27, 1  ;;  %v3792_v62 = vadd.f32 %v3791_v37, %v3790_v38  ;;  %v3795_v17 = vsel %vm595_vm6, %v8773_v11, 0.0  ;;  %v3424_v2 = vmax.f32 %v3422_v34, %v3423_v19  ;;  %v3093_v53 = vpop.f32.mrb[127].mxu1  ;;  %5995 = vmatmul.mubr.msk.bf16.gmra.mrb[88].mxu0 %vm595_vm6, %v3998_v39 }
 0x448   : > { %v8789_v25 = vpop.eup %6478  ;;  %v3797_v57 = vsel %vm595_vm6, %v8784_v56, 0.0  ;;  %v3437_v6 = vmax.f32 %v3435_v46, %v3436_v5  ;;  %v3449_v26 = vsel %vm595_vm6, %v8779_v51, -inf  ;;  %v3446_v33 = vsel %vm595_vm6, %v8782_v29, -inf }
 0x449   : > { %9755 = vst [vmem:[#allocation9_spill] sm:$0xff] %v8789_v25  ;;  %v8797_v24 = vpop.eup %6480  ;;  %v3787_v42 = vadd.f32 %v3786_v1, %v3785_v27  ;;  %v3794_v49 = vadd.f32 %v3793_v43, %v3792_v62  ;;  %v3799_v34 = vsel %vm595_vm6, %v8789_v25, 0.0  ;;  %v3541_v55 = vsub.f32 %v8593_v36, %v3424_v2 }
 0x44a   : > { %9756 = vst [vmem:[#allocation7_spill] sm:$0xff] %v8797_v24  ;;  %v3801_v44 = vsel %vm595_vm6, %v8797_v24, 0.0  ;;  %v3542_v5 = vsub.f32 %v8597_v18, %v3424_v2  ;;  %v3543_v39 = vsub.f32 %v8591_v9, %v3424_v2  ;;  %v3544_v38 = vsub.f32 %v8595_v50, %v3424_v2 }
 0x44b   : > { %6482 = vrcp.f32 %v3787_v42  ;;  %v3796_v37 = vadd.f32 %v3795_v17, %v3794_v49  ;;  %v3545_v19 = vsub.f32 %v8611_v52, %v3424_v2  ;;  %v3546_v27 = vsub.f32 %v8619_v14, %v3424_v2 }
 0x44c   : > { %v3547_v40 = vsub.f32 %v8607_v3, %v3424_v2  ;;  %v3548_v43 = vsub.f32 %v8613_v8, %v3424_v2  ;;  %v3645_v36 = vmul.f32 1.442695, %v3541_v55  ;;  %v3647_v46 = vmul.f32 1.442695, %v3542_v5  ;;  %v5970_v1 = vpop.f32.mrb[128].mxu1 }
 0x44d   : > { %v3798_v62 = vadd.f32 %v3797_v57, %v3796_v37  ;;  %v3649_v24 = vmul.f32 1.442695, %v3543_v39  ;;  %v3651_v18 = vmul.f32 1.442695, %v3544_v38  ;;  %v3653_v25 = vmul.f32 1.442695, %v3545_v19 }
 0x44e   : > { %6484 = vpow2.f32 %v3645_v36  ;;  %v3655_v9 = vmul.f32 1.442695, %v3546_v27  ;;  %v3657_v50 = vmul.f32 1.442695, %v3547_v40  ;;  %v3659_v42 = vmul.f32 1.442695, %v3548_v43 }
 0x44f   : > { %v3800_v17 = vadd.f32 %v3799_v34, %v3798_v62  ;;  %6486 = vpow2.f32 %v3647_v46  ;;  %v3439_v52 = vmax.f32 %v3437_v6, %v8744_v28  ;;  %v8813_v14 = vadd.f32 %v5967_v59, %v8759_v54  ;;  %v3106_v3 = vpop.f32.mrb[129].mxu1 }
 0x450   : > { %6488 = vpow2.f32 %v3649_v24  ;;  %v8816_v8 = vadd.f32 %v8759_v54, %v3093_v53  ;;  %v8819_v2 = vadd.f32 %v5970_v1, %v8759_v54  ;;  %v8822_v57 = vadd.f32 %v8759_v54, %v3106_v3  ;;  %v5971_v49 = vpop.f32.mrb[130].mxu1 }
 0x451   : > { %v3802_v55 = vadd.f32 %v3801_v44, %v3800_v17  ;;  %6490 = vpow2.f32 %v3651_v18  ;;  %v3440_v34 = vrot.slane %v3439_v52, 4  ;;  %v3451_v28 = vsel %vm595_vm6, %v8813_v14, -inf  ;;  %v3109_v59 = vpop.f32.mrb[131].mxu1 }
 0x452   : > { %6492 = vpow2.f32 %v3653_v25  ;;  %v3447_v6 = vsel %vm595_vm6, %v8816_v8, -inf  ;;  %v8830_v53 = vsel %vm595_vm6, %v8819_v2, -inf  ;;  %v3453_v24 = vsel %vm595_vm6, %v8822_v57, -inf }
 0x453   : > { %v3803_v5 = vrot.slane %v3802_v55, 4  ;;  %6494 = vpow2.f32 %v3655_v9  ;;  %v3441_v44 = vmax.f32 %v3439_v52, %v3440_v34  ;;  %v3448_v39 = vmax.f32 %v3446_v33, %v3447_v6  ;;  %v8847_v33 = vld [vmem:[%s9480_s4 + $0x7] ss:$0 sm:$0xff] }
 0x454   : > { %6496 = vpow2.f32 %v3657_v50  ;;  %v8835_v38 = vadd.f32 %v5971_v49, %v8759_v54  ;;  %v3932_v25 = vmul.f32 %v8717_v31, %v8530_v15  ;;  %v8840_v37 = vadd.f32 %v8759_v54, %v3109_v59  ;;  %v5974_v19 = vpop.f32.mrb[132].mxu1 }
 0x455   : > { %v8842_v27 = vpop.eup %6482  ;;  %v3804_v40 = vadd.f32 %v3803_v5, %v3802_v55  ;;  %6498 = vpow2.f32 %v3659_v42  ;;  %v3442_v43 = vrot.slane %v3441_v44, 2  ;;  %v3450_v36 = vmax.f32 %v3448_v39, %v3449_v26  ;;  %v3122_v46 = vpop.f32.mrb[133].mxu1 }
 0x456   : > { %v8851_v1 = vsel %vm595_vm6, %v8835_v38, -inf  ;;  %v3999_v15 = vpack.c.bf16 %v3932_v25, %v8767_v7  ;;  %v8856_v54 = vsel %vm595_vm6, %v8840_v37, -inf  ;;  %v3933_v62 = vmul.f32 %v8717_v31, %v8540_v10  ;;  %v5975_v26 = vpop.f32.mrb[134].mxu1 }
 0x457   : > { %v3805_v18 = vrot.slane %v3804_v40, 2  ;;  %v3443_v9 = vmax.f32 %v3441_v44, %v3442_v43  ;;  %v3452_v50 = vmax.f32 %v3450_v36, %v3451_v28  ;;  %v3934_v42 = vmul.f32 %v8717_v31, %v8547_v48  ;;  %v8862_v17 = vpop.f32.mrb[135].mxu1 }
 0x458   : > { %v8864_v52 = vpop.eup %6484  ;;  %5998 = vmatprep.mubr.msk.bf16.mxu0 %vm595_vm6, %v3999_v15  ;;  %v3935_v7 = vmul.f32 %v8717_v31, %v8551_v35  ;;  %v3936_v3 = vmul.f32 %v8717_v31, %v8555_v32  ;;  %v8872_v10 = vadd.f32 %v5974_v19, %v8847_v33  ;;  %v8875_v49 = vadd.f32 %v8847_v33, %v3122_v46 }
 0x459   : > { %9757 = vst [vmem:[#allocation10_spill] sm:$0xff] %v8864_v52  ;;  %v8877_v55 = vpop.eup %6486  ;;  %v3806_v48 = vadd.f32 %v3805_v18, %v3804_v40  ;;  %v3809_v34 = vsel %vm595_vm6, %v8864_v52, 0.0  ;;  %v3444_v28 = vrot.slane %v3443_v9, 1  ;;  %v3454_v59 = vmax.f32 %v3452_v50, %v3453_v24 }
 0x45a   : > { %9758 = vst [vmem:[#allocation8_spill] sm:$0xff] %v8877_v55  ;;  %v8881_v6 = vpop.eup %6488  ;;  %v3810_v35 = vsel %vm595_vm6, %v8877_v55, 0.0  ;;  %v4000_v32 = vpack.c.bf16 %v3934_v42, %v3933_v62  ;;  %v4001_v5 = vpack.c.bf16 %v3936_v3, %v3935_v7  ;;  %v8887_v44 = vsel %vm595_vm6, %v8872_v10, -inf }
 0x45b   : > { %9759 = vst [vmem:[#allocation13_spill] sm:$0xff] %v8881_v6  ;;  %v8889_v39 = vpop.eup %6490  ;;  %v3807_v25 = vrot.slane %v3806_v48, 1  ;;  %v3811_v19 = vadd.f32 %v3810_v35, %v3809_v34  ;;  %v3812_v40 = vsel %vm595_vm6, %v8881_v6, 0.0  ;;  %v3445_v43 = vmax.f32 %v3443_v9, %v3444_v28 }
 0x45c   : > { %9760 = vst [vmem:[#allocation11_spill] sm:$0xff] %v8889_v39  ;;  %v8893_v24 = vpop.eup %6492  ;;  %v3814_v36 = vsel %vm595_vm6, %v8889_v39, 0.0  ;;  %v3456_v46 = vmax.f32 %v3454_v59, %v8856_v54  ;;  %5999 = vmatmul.mubr.msk.bf16.gmra.mrb[92].mxu0 %vm595_vm6, %v4000_v32  ;;  %v8901_v15 = vsel %vm595_vm6, %v8875_v49, -inf  ;;  %v8904_v62 = vadd.f32 %v5975_v26, %v8847_v33  ;;  %v5978_v18 = vpop.f32.mrb[136].mxu1 }
 0x45d   : > { %9761 = vst [vmem:[#allocation14_spill] sm:$0xff] %v8893_v24  ;;  %v8906_v50 = vpop.eup %6494  ;;  %v3808_v9 = vadd.f32 %v3807_v25, %v3806_v48  ;;  %v3813_v42 = vadd.f32 %v3812_v40, %v3811_v19  ;;  %v3816_v7 = vsel %vm595_vm6, %v8893_v24, 0.0  ;;  %v3549_v3 = vsub.f32 %v8668_v47, %v3445_v43  ;;  %6002 = vmatprep.mubr.msk.bf16.mxu0 %vm595_vm6, %v4001_v5  ;;  %v3138_v54 = vpop.f32.mrb[137].mxu1 }
 0x45e   : > { %9762 = vst [vmem:[#allocation12_spill] sm:$0xff] %v8906_v50  ;;  %v8912_v34 = vpop.eup %6496  ;;  %v3818_v28 = vsel %vm595_vm6, %v8906_v50, 0.0  ;;  %v3550_v26 = vsub.f32 %v8705_v63, %v3445_v43  ;;  %v3551_v59 = vsub.f32 %v8661_v23, %v3445_v43  ;;  %v3552_v48 = vsub.f32 %v8702_v22, %v3445_v43  ;;  %v5979_v35 = vpop.f32.mrb[138].mxu1 }
 0x45f   : > { %9763 = vst [vmem:[#allocation17_spill] sm:$0xff] %v8912_v34  ;;  %v8919_v32 = vpop.eup %6498  ;;  %6500 = vrcp.f32 %v3808_v9  ;;  %v3815_v25 = vadd.f32 %v3814_v36, %v3813_v42  ;;  %v3820_v47 = vsel %vm595_vm6, %v8912_v34, 0.0  ;;  %v3553_v5 = vsub.f32 %v8723_v0, %v3445_v43  ;;  %v3141_v19 = vpop.f32.mrb[139].mxu1 }
 0x460   : > { %v3822_v40 = vsel %vm595_vm6, %v8919_v32, 0.0  ;;  %v3554_v63 = vsub.f32 %v8736_v58, %v3445_v43  ;;  %v3555_v23 = vsub.f32 %v8720_v45, %v3445_v43  ;;  %v3556_v22 = vsub.f32 %v8733_v20, %v3445_v43 }
 0x461   : > { %v3817_v50 = vadd.f32 %v3816_v7, %v3815_v25  ;;  %v3661_v24 = vmul.f32 1.442695, %v3549_v3  ;;  %v3663_v39 = vmul.f32 1.442695, %v3550_v26  ;;  %v3665_v9 = vmul.f32 1.442695, %v3551_v59 }
 0x462   : > { %v3667_v36 = vmul.f32 1.442695, %v3552_v48  ;;  %v3669_v42 = vmul.f32 1.442695, %v3553_v5  ;;  %v3671_v6 = vmul.f32 1.442695, %v3554_v63  ;;  %v3458_v34 = vmax.f32 %v3456_v46, %v8830_v53 }
 0x463   : > { %v3819_v0 = vadd.f32 %v3818_v28, %v3817_v50  ;;  %6502 = vpow2.f32 %v3661_v24  ;;  %v3673_v55 = vmul.f32 1.442695, %v3555_v23  ;;  %v3675_v52 = vmul.f32 1.442695, %v3556_v22  ;;  %v9764_v63 = vld [vmem:[#allocation2_spill] sm:$0xff]  ;;  %v9765_v22 = vld [vmem:[#allocation5_spill] sm:$0xff] }
 0x464   : > { %6504 = vpow2.f32 %v3663_v39  ;;  %v3460_v58 = vmax.f32 %v3458_v34, %v8851_v1  ;;  %v3472_v45 = vsel %vm595_vm6, %v8904_v62, -inf  ;;  %v8935_v20 = vadd.f32 %v8847_v33, %v8862_v17  ;;  %v8937_v43 = vpop.f32.mrb[140].mxu1 }
 0x465   : > { %v3821_v7 = vadd.f32 %v3820_v47, %v3819_v0  ;;  %6506 = vpow2.f32 %v3665_v9  ;;  %v3937_v53 = vmul.f32 %v8717_v31, %v8562_v41  ;;  %v3938_v24 = vmul.f32 %v8717_v31, %v8570_v60  ;;  %v8943_v39 = vpop.f32.mrb[141].mxu1  ;;  %v6092_v60 = vld [vmem:[%s9483_s7] sm:$0xff]  }
 0x466   : > { %6508 = vpow2.f32 %v3667_v36  ;;  %v3461_v1 = vrot.slane %v3460_v58, 4  ;;  %v3468_v46 = vsel %vm595_vm6, %v8935_v20, -inf  ;;  %v8948_v17 = vadd.f32 %v5978_v18, %v8847_v33  ;;  %v8950_v50 = vpop.f32.mrb[142].mxu1  ;;  %6062 = vmatprep.subr.bf16.mxu1 %v6092_v60 }
 0x467   : > { %v3823_v3 = vadd.f32 %v3822_v40, %v3821_v7  ;;  %6510 = vpow2.f32 %v3669_v42  ;;  %v3469_v34 = vmax.f32 %v8901_v15, %v3468_v46  ;;  %v4002_v41 = vpack.c.bf16 %v3938_v24, %v3937_v53  ;;  %v8953_v28 = vpop.f32.mrb[143].mxu1  ;;  %6063 = vmatpush3.bf16.msra.mxu1 %v6092_v60 }
 0x468   : > { %6512 = vpow2.f32 %v3671_v6  ;;  %v3462_v31 = vmax.f32 %v3460_v58, %v3461_v1  ;;  %v3478_v26 = vsel %vm595_vm6, %v8948_v17, -inf  ;;  %v8961_v18 = vadd.f32 %v8847_v33, %v3138_v54 }
 0x469   : > { %v8963_v59 = vpop.eup %6500  ;;  %v3824_v48 = vrot.slane %v3823_v3, 4  ;;  %6514 = vpow2.f32 %v3673_v55  ;;  %v3471_v15 = vmax.f32 %v3469_v34, %v8887_v44  ;;  %6003 = vmatmul.mubr.msk.bf16.gmra.mrb[96].mxu0 %vm595_vm6, %v4002_v41  ;;  %v8968_v25 = vadd.f32 %v5979_v35, %v8847_v33 }
 0x46a   : > { %6516 = vpow2.f32 %v3675_v52  ;;  %v3463_v6 = vrot.slane %v3462_v31, 2  ;;  %v3474_v47 = vsel %vm595_vm6, %v8961_v18, -inf  ;;  %v3939_v54 = vmul.f32 %v8842_v27, %v8636_v21 }
 0x46b   : > { %v3825_v5 = vadd.f32 %v3824_v48, %v3823_v3  ;;  %v3473_v40 = vmax.f32 %v3471_v15, %v3472_v45  ;;  %v8976_v55 = vsel %vm595_vm6, %v8968_v25, -inf  ;;  %v3940_v44 = vmul.f32 %v8842_v27, %v8644_v12  ;;  %v9766_v45 = vld [vmem:[#allocation3_spill] sm:$0xff]  ;;  %v9767_v48 = vld [vmem:[#allocation6_spill] sm:$0xff] }
 0x46c   : > { %v3464_v35 = vmax.f32 %v3462_v31, %v3463_v6  ;;  %v8981_v52 = vadd.f32 %v8847_v33, %v3141_v19  ;;  %v3941_v23 = vmul.f32 %v8842_v27, %v9764_v63  ;;  %v3942_v21 = vmul.f32 %v8842_v27, %v9765_v22  ;;  %v8987_v9 = vpop.f32.mrb[144].mxu1  ;;  %v8996_v33 = vld [vmem:[%s9480_s4 + $0x8] ss:$0 sm:$0xff] }
 0x46d   : > { %v8989_v36 = vpop.eup %6502  ;;  %v3826_v42 = vrot.slane %v3825_v5, 2  ;;  %v3475_v0 = vmax.f32 %v3473_v40, %v3474_v47  ;;  %v4003_v58 = vpack.c.bf16 %v3940_v44, %v3939_v54  ;;  %v3943_v12 = vmul.f32 %v8842_v27, %v9766_v45  ;;  %v8998_v19 = vpop.f32.mrb[145].mxu1 }
 0x46e   : > { %v9000_v7 = vpop.eup %6504  ;;  %v3830_v53 = vsel %vm595_vm6, %v8989_v36, 0.0  ;;  %v3465_v24 = vrot.slane %v3464_v35, 1  ;;  %v3476_v1 = vsel %vm595_vm6, %v8981_v52, -inf  ;;  %v4004_v46 = vpack.c.bf16 %v3942_v21, %v3941_v23  ;;  %v9006_v3 = vpop.f32.mrb[146].mxu1 }
 0x46f   : > { %v9008_v34 = vpop.eup %6506  ;;  %v3827_v41 = vadd.f32 %v3826_v42, %v3825_v5  ;;  %v3831_v60 = vsel %vm595_vm6, %v9000_v7, 0.0  ;;  %6006 = vmatprep.mubr.msk.bf16.mxu0 %vm595_vm6, %v4003_v58  ;;  %v3477_v31 = vmax.f32 %v3475_v0, %v3476_v1  ;;  %v3944_v15 = vmul.f32 %v8842_v27, %v9767_v48  ;;  %v9015_v6 = vpop.f32.mrb[147].mxu1 }
 0x470   : > { %v9017_v47 = vpop.eup %6508  ;;  %v3832_v54 = vadd.f32 %v3831_v60, %v3830_v53  ;;  %v3833_v40 = vsel %vm595_vm6, %v9008_v34, 0.0  ;;  %v3466_v44 = vmax.f32 %v3464_v35, %v3465_v24  ;;  %v9023_v5 = vadd.f32 %v8937_v43, %v8996_v33 }
 0x471   : > { %v9025_v63 = vpop.eup %6510  ;;  %v3828_v23 = vrot.slane %v3827_v41, 1  ;;  %v3835_v22 = vsel %vm595_vm6, %v9017_v47, 0.0  ;;  %v3479_v21 = vmax.f32 %v3477_v31, %v3478_v26  ;;  %6007 = vmatmul.mubr.msk.bf16.gmra.mrb[100].mxu0 %vm595_vm6, %v4004_v46  ;;  %v4005_v42 = vpack.c.bf16 %v3944_v15, %v3943_v12 }
 0x472   : > { %v9030_v0 = vpop.eup %6512  ;;  %v3834_v58 = vadd.f32 %v3833_v40, %v3832_v54  ;;  %v3837_v35 = vsel %vm595_vm6, %v9025_v63, 0.0  ;;  %v3557_v45 = vsub.f32 %v8782_v29, %v3466_v44  ;;  %v3558_v43 = vsub.f32 %v8816_v8, %v3466_v44 }
 0x473   : > { %v9036_v53 = vpop.eup %6514  ;;  %v3829_v24 = vadd.f32 %v3828_v23, %v3827_v41  ;;  %v3839_v1 = vsel %vm595_vm6, %v9030_v0, 0.0  ;;  %v3559_v26 = vsub.f32 %v8779_v51, %v3466_v44  ;;  %v3560_v12 = vsub.f32 %v8813_v14, %v3466_v44  ;;  %6010 = vmatprep.mubr.msk.bf16.mxu0 %vm595_vm6, %v4005_v42 }
 0x474   : > { %9768 = vst [vmem:[#allocation15_spill] sm:$0xff] %v9036_v53  ;;  %v9043_v46 = vpop.eup %6516  ;;  %v3836_v60 = vadd.f32 %v3835_v22, %v3834_v58  ;;  %v3841_v29 = vsel %vm595_vm6, %v9036_v53, 0.0  ;;  %v3561_v8 = vsub.f32 %v8822_v57, %v3466_v44  ;;  %v3562_v31 = vsub.f32 %v8840_v37, %v3466_v44 }
 0x475   : > { %6518 = vrcp.f32 %v3829_v24  ;;  %v3843_v41 = vsel %vm595_vm6, %v9043_v46, 0.0  ;;  %v3563_v51 = vsub.f32 %v8819_v2, %v3466_v44  ;;  %v3564_v14 = vsub.f32 %v8835_v38, %v3466_v44 }
 0x476   : > { %v3838_v48 = vadd.f32 %v3837_v35, %v3836_v60  ;;  %v3677_v15 = vmul.f32 1.442695, %v3557_v45  ;;  %v3679_v54 = vmul.f32 1.442695, %v3558_v43  ;;  %v3681_v40 = vmul.f32 1.442695, %v3559_v26 }
 0x477   : > { %v3683_v23 = vmul.f32 1.442695, %v3560_v12  ;;  %v3685_v22 = vmul.f32 1.442695, %v3561_v8  ;;  %v3687_v42 = vmul.f32 1.442695, %v3562_v31  ;;  %v3481_v58 = vmax.f32 %v3479_v21, %v8976_v55 }
 0x478   : > { %v3840_v57 = vadd.f32 %v3839_v1, %v3838_v48  ;;  %6520 = vpow2.f32 %v3677_v15  ;;  %v3689_v37 = vmul.f32 1.442695, %v3563_v51  ;;  %v3691_v24 = vmul.f32 1.442695, %v3564_v14  ;;  %v9769_v43 = vld [vmem:[#allocation4_spill] sm:$0xff] }
 0x479   : > { %6522 = vpow2.f32 %v3679_v54  ;;  %v3482_v53 = vrot.slane %v3481_v58, 4  ;;  %v3491_v2 = vsel %vm595_vm6, %v9023_v5, -inf  ;;  %v9058_v38 = vadd.f32 %v8996_v33, %v8943_v39 }
 0x47a   : > { %v3842_v44 = vadd.f32 %v3841_v29, %v3840_v57  ;;  %6524 = vpow2.f32 %v3681_v40  ;;  %v9062_v35 = vadd.f32 %v8950_v50, %v8996_v33  ;;  %v9066_v55 = vadd.f32 %v8996_v33, %v8953_v28 }
 0x47b   : > { %6526 = vpow2.f32 %v3683_v23  ;;  %v3483_v21 = vmax.f32 %v3481_v58, %v3482_v53  ;;  %v3488_v45 = vsel %vm595_vm6, %v9058_v38, -inf  ;;  %v3945_v1 = vmul.f32 %v8842_v27, %v9769_v43 }
 0x47c   : > { %v3844_v39 = vadd.f32 %v3843_v41, %v3842_v44  ;;  %6528 = vpow2.f32 %v3685_v22  ;;  %v3493_v26 = vsel %vm595_vm6, %v9062_v35, -inf  ;;  %v3489_v50 = vsel %vm595_vm6, %v9066_v55, -inf }
 0x47d   : > { %6530 = vpow2.f32 %v3687_v42  ;;  %v3484_v12 = vrot.slane %v3483_v21, 2  ;;  %v3490_v28 = vmax.f32 %v3488_v45, %v3489_v50  ;;  %v3946_v53 = vmul.f32 %v8842_v27, %v8688_v61 }
 0x47e   : > { %v3845_v60 = vrot.slane %v3844_v39, 4  ;;  %6532 = vpow2.f32 %v3689_v37  ;;  %v9080_v29 = vadd.f32 %v8987_v9, %v8996_v33  ;;  %v9084_v8 = vadd.f32 %v8996_v33, %v8998_v19 }
 0x47f   : > { %v9086_v31 = vpop.eup %6518  ;;  %6534 = vpow2.f32 %v3691_v24  ;;  %v3485_v41 = vmax.f32 %v3483_v21, %v3484_v12  ;;  %v3492_v51 = vmax.f32 %v3490_v28, %v3491_v2  ;;  %v4006_v14 = vpack.c.bf16 %v3946_v53, %v3945_v1 }
 0x480   : > { %v3846_v48 = vadd.f32 %v3845_v60, %v3844_v39  ;;  %v9090_v61 = vsel %vm595_vm6, %v9080_v29, -inf  ;;  %v3495_v27 = vsel %vm595_vm6, %v9084_v8, -inf  ;;  %v9096_v9 = vadd.f32 %v9006_v3, %v8996_v33 }
 0x481   : > { %v3486_v19 = vrot.slane %v3485_v41, 1  ;;  %6011 = vmatmul.mubr.msk.bf16.gmra.mrb[104].mxu0 %vm595_vm6, %v4006_v14  ;;  %v3494_v15 = vmax.f32 %v3492_v51, %v3493_v26  ;;  %v3947_v54 = vmul.f32 %v8963_v59, %v8740_v4  ;;  %v3948_v40 = vmul.f32 %v8963_v59, %v8752_v16 }
 0x482   : > { %v9103_v23 = vpop.eup %6520  ;;  %v3847_v22 = vrot.slane %v3846_v48, 2  ;;  %v9107_v42 = vsel %vm595_vm6, %v9096_v9, -inf  ;;  %v9111_v3 = vadd.f32 %v8996_v33, %v9015_v6  ;;  %v3949_v58 = vmul.f32 %v8963_v59, %v8761_v30 }
 0x483   : > { %v9115_v57 = vpop.eup %6522  ;;  %v3851_v4 = vsel %vm595_vm6, %v9103_v23, 0.0  ;;  %v3487_v16 = vmax.f32 %v3485_v41, %v3486_v19  ;;  %v3496_v37 = vmax.f32 %v3494_v15, %v3495_v27  ;;  %v4007_v24 = vpack.c.bf16 %v3948_v40, %v3947_v54 }
 0x484   : > { %v9119_v2 = vpop.eup %6524  ;;  %v3848_v44 = vadd.f32 %v3847_v22, %v3846_v48  ;;  %v3852_v21 = vsel %vm595_vm6, %v9115_v57, 0.0  ;;  %v3497_v33 = vsel %vm595_vm6, %v9111_v3, -inf  ;;  %v3950_v30 = vmul.f32 %v8963_v59, %v8769_v13 }
 0x485   : > { %v9127_v6 = vpop.eup %6526  ;;  %v3853_v45 = vadd.f32 %v3852_v21, %v3851_v4  ;;  %v3854_v43 = vsel %vm595_vm6, %v9119_v2, 0.0  ;;  %v3565_v1 = vsub.f32 %v8875_v49, %v3487_v16  ;;  %v3566_v39 = vsub.f32 %v8935_v20, %v3487_v16  ;;  %6014 = vmatprep.mubr.msk.bf16.mxu0 %vm595_vm6, %v4007_v24 }
 0x486   : > { %v9134_v26 = vpop.eup %6528  ;;  %v3849_v50 = vrot.slane %v3848_v44, 1  ;;  %v3856_v12 = vsel %vm595_vm6, %v9127_v6, 0.0  ;;  %v3567_v13 = vsub.f32 %v8872_v10, %v3487_v16  ;;  %v3568_v28 = vsub.f32 %v8904_v62, %v3487_v16 }
 0x487   : > { %v9140_v53 = vpop.eup %6530  ;;  %v3855_v60 = vadd.f32 %v3854_v43, %v3853_v45  ;;  %v3858_v49 = vsel %vm595_vm6, %v9134_v26, 0.0  ;;  %v3569_v20 = vsub.f32 %v8961_v18, %v3487_v16  ;;  %v3570_v41 = vsub.f32 %v8981_v52, %v3487_v16 }
 0x488   : > { %v9146_v51 = vpop.eup %6532  ;;  %v3850_v14 = vadd.f32 %v3849_v50, %v3848_v44  ;;  %v3860_v48 = vsel %vm595_vm6, %v9140_v53, 0.0  ;;  %v3571_v10 = vsub.f32 %v8948_v17, %v3487_v16  ;;  %v3572_v62 = vsub.f32 %v8968_v25, %v3487_v16  ;;  %v9770_v50 = vld [vmem:[#allocation9_spill] sm:$0xff] }
 0x489   : > { %v9152_v27 = vpop.eup %6534  ;;  %v3857_v19 = vadd.f32 %v3856_v12, %v3855_v60  ;;  %v3862_v15 = vsel %vm595_vm6, %v9146_v51, 0.0  ;;  %v3693_v54 = vmul.f32 1.442695, %v3565_v1  ;;  %v3695_v18 = vmul.f32 1.442695, %v3566_v39 }
 0x48a   : > { %6536 = vrcp.f32 %v3850_v14  ;;  %v3864_v52 = vsel %vm595_vm6, %v9152_v27, 0.0  ;;  %v3697_v40 = vmul.f32 1.442695, %v3567_v13  ;;  %v3699_v22 = vmul.f32 1.442695, %v3568_v28  ;;  %v9773_v28 = vld [vmem:[#allocation8_spill] sm:$0xff] }
 0x48b   : > { %v3859_v4 = vadd.f32 %v3858_v49, %v3857_v19  ;;  %6538 = vpow2.f32 %v3693_v54  ;;  %v3701_v24 = vmul.f32 1.442695, %v3569_v20  ;;  %v3703_v17 = vmul.f32 1.442695, %v3570_v41  ;;  %v9774_v20 = vld [vmem:[#allocation13_spill] sm:$0xff] }
 0x48c   : > { %6540 = vpow2.f32 %v3695_v18  ;;  %v3705_v25 = vmul.f32 1.442695, %v3571_v10  ;;  %v3707_v16 = vmul.f32 1.442695, %v3572_v62  ;;  %v3498_v44 = vmax.f32 %v3496_v37, %v3497_v33  ;;  %v9771_v37 = vld [vmem:[#allocation7_spill] sm:$0xff]  ;;  %v9778_v18 = vld [vmem:[#allocation17_spill] sm:$0xff] }
 0x48d   : > { %v3861_v21 = vadd.f32 %v3860_v48, %v3859_v4  ;;  %6542 = vpow2.f32 %v3697_v40  ;;  %v4008_v45 = vpack.c.bf16 %v3950_v30, %v3949_v58  ;;  %v3951_v43 = vmul.f32 %v8963_v59, %v8773_v11  ;;  %v9772_v58 = vld [vmem:[#allocation10_spill] sm:$0xff]  ;;  %v9775_v48 = vld [vmem:[#allocation11_spill] sm:$0xff] }
 0x48e   : > { %6544 = vpow2.f32 %v3699_v22  ;;  %v3500_v1 = vmax.f32 %v3498_v44, %v9090_v61  ;;  %v3952_v39 = vmul.f32 %v8963_v59, %v8784_v56  ;;  %v3953_v12 = vmul.f32 %v8963_v59, %v9770_v50 }
 0x48f   : > { %v3863_v13 = vadd.f32 %v3862_v15, %v3861_v21  ;;  %6546 = vpow2.f32 %v3701_v24  ;;  %6015 = vmatmul.mubr.msk.bf16.gmra.mrb[108].mxu0 %vm595_vm6, %v4008_v45  ;;  %v3954_v33 = vmul.f32 %v8963_v59, %v9771_v37  ;;  %v3955_v30 = vmul.f32 %v9086_v31, %v9772_v58  ;;  %v9777_v15 = vld [vmem:[#allocation12_spill] sm:$0xff] }
 0x490   : > { %6548 = vpow2.f32 %v3703_v17  ;;  %v3502_v11 = vmax.f32 %v3500_v1, %v9107_v42  ;;  %v4009_v61 = vpack.c.bf16 %v3952_v39, %v3951_v43  ;;  %v3956_v56 = vmul.f32 %v9086_v31, %v9773_v28  ;;  %v9776_v42 = vld [vmem:[#allocation14_spill] sm:$0xff] }
 0x491   : > { %v3865_v60 = vadd.f32 %v3864_v52, %v3863_v13  ;;  %6550 = vpow2.f32 %v3705_v25  ;;  %v4010_v49 = vpack.c.bf16 %v3954_v33, %v3953_v12  ;;  %v9175_v41 = vmul.f32 %v9086_v31, %v9774_v20 }
 0x492   : > { %v3503_v14 = vrot.slane %v3502_v11, 4  ;;  %6018 = vmatprep.mubr.msk.bf16.mxu0 %vm595_vm6, %v4009_v61  ;;  %v4011_v59 = vpack.c.bf16 %v3956_v56, %v3955_v30  ;;  %v3958_v10 = vmul.f32 %v9086_v31, %v9775_v48  ;;  %v9182_v19 = vmul.f32 %v9086_v31, %v9776_v42 }
 0x493   : > { %v3866_v62 = vrot.slane %v3865_v60, 4  ;;  %v9186_v54 = vmul.f32 %v9086_v31, %v9777_v15  ;;  %v9190_v52 = vmul.f32 %v9086_v31, %v9778_v18  ;;  %6552 = vpow2.f32 %v3707_v16 }
 0x494   : > { %v6537_v40 = vpop.eup %6536  ;;  %v3504_v22 = vmax.f32 %v3502_v11, %v3503_v14  ;;  %v4012_v4 = vpack.c.bf16 %v3958_v10, %v9175_v41  ;;  %v9195_v24 = vmul.f32 %v9086_v31, %v8919_v32 }
 0x495   : > { %v9197_v17 = vpop.eup %6538  ;;  %v3867_v25 = vadd.f32 %v3866_v62, %v3865_v60  ;;  %v4013_v44 = vpack.c.bf16 %v9186_v54, %v9182_v19  ;;  %v9202_v21 = vmul.f32 %v6537_v40, %v8989_v36  ;;  %v9205_v45 = vmul.f32 %v6537_v40, %v9000_v7 }
 0x496   : > { %v9207_v16 = vpop.eup %6540  ;;  %v3872_v43 = vsel %vm595_vm6, %v9197_v17, 0.0  ;;  %v3505_v1 = vrot.slane %v3504_v22, 2  ;;  %v4014_v32 = vpack.c.bf16 %v9195_v24, %v9190_v52  ;;  %v9214_v31 = vmul.f32 %v6537_v40, %v9008_v34 }
 0x497   : > { %v9216_v39 = vpop.eup %6542  ;;  %v3868_v50 = vrot.slane %v3867_v25, 2  ;;  %v3873_v36 = vsel %vm595_vm6, %v9207_v16, 0.0  ;;  %6019 = vmatmul.mubr.msk.bf16.gmra.mrb[112].mxu0 %vm595_vm6, %v4010_v49  ;;  %v4015_v7 = vpack.c.bf16 %v9205_v45, %v9202_v21  ;;  %v9224_v12 = vmul.f32 %v6537_v40, %v9017_v47  ;;  %v9779_v49 = vld [vmem:[#allocation15_spill] sm:$0xff] }
 0x498   : > { %v9226_v13 = vpop.eup %6544  ;;  %v3874_v37 = vadd.f32 %v3873_v36, %v3872_v43  ;;  %v3506_v33 = vmax.f32 %v3504_v22, %v3505_v1  ;;  %6022 = vmatprep.mubr.msk.bf16.mxu0 %vm595_vm6, %v4011_v59  ;;  %v9230_v34 = vmul.f32 %v6537_v40, %v9025_v63  ;;  %v3875_v11 = vsel %vm595_vm6, %v9216_v39, 0.0 }
 0x499   : > { %v9232_v58 = vpop.eup %6546  ;;  %v3869_v30 = vadd.f32 %v3868_v50, %v3867_v25  ;;  %v4016_v61 = vpack.c.bf16 %v9224_v12, %v9214_v31  ;;  %v9239_v47 = vmul.f32 %v6537_v40, %v9030_v0  ;;  %v9244_v20 = vmul.f32 %v6537_v40, %v9779_v49 }
 0x49a   : > { %v9241_v28 = vpop.eup %6548  ;;  %v3876_v56 = vadd.f32 %v3875_v11, %v3874_v37  ;;  %v3507_v60 = vrot.slane %v3506_v33, 1  ;;  %v3877_v14 = vsel %vm595_vm6, %v9226_v13, 0.0  ;;  %v9253_v48 = vmul.f32 %v6537_v40, %v9043_v46 }
 0x49b   : > { %v9246_v63 = vpop.eup %6550  ;;  %v3870_v41 = vrot.slane %v3869_v30, 1  ;;  %v4017_v59 = vpack.c.bf16 %v9239_v47, %v9230_v34  ;;  %v3879_v10 = vsel %vm595_vm6, %v9232_v58, 0.0  ;;  %v3881_v19 = vsel %vm595_vm6, %v9241_v28, 0.0 }
 0x49c   : > { %v3878_v0 = vadd.f32 %v3877_v14, %v3876_v56  ;;  %v3508_v62 = vmax.f32 %v3506_v33, %v3507_v60  ;;  %v3883_v15 = vsel %vm595_vm6, %v9246_v63, 0.0  ;;  %v4018_v54 = vpack.c.bf16 %v9253_v48, %v9244_v20 }
 0x49d   : > { %v3871_v42 = vadd.f32 %v3870_v41, %v3869_v30  ;;  %v9263_v18 = vpop.eup %6552 }
 0x49e   : > { %v3880_v22 = vadd.f32 %v3879_v10, %v3878_v0  ;;  %v3573_v46 = vsub.f32 %v9058_v38, %v3508_v62  ;;  %v3574_v40 = vsub.f32 %v9066_v55, %v3508_v62  ;;  %v3575_v25 = vsub.f32 %v9023_v5, %v3508_v62 }
 0x49f   : > { %6554 = vrcp.f32 %v3871_v42  ;;  %v3576_v21 = vsub.f32 %v9062_v35, %v3508_v62  ;;  %v3577_v45 = vsub.f32 %v9084_v8, %v3508_v62  ;;  %v3578_v43 = vsub.f32 %v9111_v3, %v3508_v62  ;;  %6023 = vmatmul.mubr.msk.bf16.gmra.mrb[116].mxu0 %vm595_vm6, %v4012_v4 }
 0x4a0   : > { %v3882_v1 = vadd.f32 %v3881_v19, %v3880_v22  ;;  %v3579_v50 = vsub.f32 %v9080_v29, %v3508_v62  ;;  %v3580_v36 = vsub.f32 %v9096_v9, %v3508_v62  ;;  %v3709_v37 = vmul.f32 1.442695, %v3573_v46  ;;  %6026 = vmatprep.mubr.msk.bf16.mxu0 %vm595_vm6, %v4013_v44 }
 0x4a1   : > { %v3711_v38 = vmul.f32 1.442695, %v3574_v40  ;;  %v3713_v55 = vmul.f32 1.442695, %v3575_v25  ;;  %v3715_v5 = vmul.f32 1.442695, %v3576_v21 }
 0x4a2   : > { %v3884_v33 = vadd.f32 %v3883_v15, %v3882_v1  ;;  %6556 = vpow2.f32 %v3709_v37  ;;  %v3885_v35 = vsel %vm595_vm6, %v9263_v18, 0.0  ;;  %v3717_v8 = vmul.f32 1.442695, %v3577_v45 }
 0x4a3   : > { %6558 = vpow2.f32 %v3711_v38  ;;  %v3719_v4 = vmul.f32 1.442695, %v3578_v43  ;;  %v3721_v29 = vmul.f32 1.442695, %v3579_v50  ;;  %v3723_v11 = vmul.f32 1.442695, %v3580_v36 }
 0x4a4   : > { %v3886_v3 = vadd.f32 %v3885_v35, %v3884_v33  ;;  %6560 = vpow2.f32 %v3713_v55 }
 0x4a5   : > { %6562 = vpow2.f32 %v3715_v5 }
 0x4a6   : > { %v3887_v30 = vrot.slane %v3886_v3, 4  ;;  %6564 = vpow2.f32 %v3717_v8 }
 0x4a7   : > { %6027 = vmatmul.mubr.msk.bf16.gmra.mrb[120].mxu0 %vm595_vm6, %v4014_v32  ;;  %6566 = vpow2.f32 %v3719_v4 }
 0x4a8   : > { %v3888_v9 = vadd.f32 %v3887_v30, %v3886_v3  ;;  %6030 = vmatprep.mubr.msk.bf16.mxu0 %vm595_vm6, %v4015_v7  ;;  %6568 = vpow2.f32 %v3721_v29 }
 0x4a9   : > { %v6555_v44 = vpop.eup %6554  ;;  %6570 = vpow2.f32 %v3723_v11 }
 0x4aa   : > { %v3889_v56 = vrot.slane %v3888_v9, 2  ;;  %v3971_v60 = vmul.f32 %v6555_v44, %v9103_v23  ;;  %v3972_v49 = vmul.f32 %v6555_v44, %v9115_v57  ;;  %v3973_v41 = vmul.f32 %v6555_v44, %v9119_v2 }
 0x4ab   : > { %v3974_v14 = vmul.f32 %v6555_v44, %v9127_v6  ;;  %v3975_v52 = vmul.f32 %v6555_v44, %v9134_v26  ;;  %v3976_v24 = vmul.f32 %v6555_v44, %v9140_v53  ;;  %v3977_v32 = vmul.f32 %v6555_v44, %v9146_v51 }
 0x4ac   : > { %v9289_v0 = vpop.eup %6556  ;;  %v3890_v7 = vadd.f32 %v3889_v56, %v3888_v9  ;;  %v4019_v10 = vpack.c.bf16 %v3972_v49, %v3971_v60  ;;  %v3978_v62 = vmul.f32 %v6555_v44, %v9152_v27 }
 0x4ad   : > { %v6559_v42 = vpop.eup %6558  ;;  %v3893_v23 = vsel %vm595_vm6, %v9289_v0, 0.0  ;;  %v4020_v57 = vpack.c.bf16 %v3974_v14, %v3973_v41  ;;  %v4021_v2 = vpack.c.bf16 %v3976_v24, %v3975_v52 }
 0x4ae   : > { %v6561_v6 = vpop.eup %6560  ;;  %v3891_v19 = vrot.slane %v3890_v7, 1  ;;  %v3894_v26 = vsel %vm595_vm6, %v6559_v42, 0.0  ;;  %v4022_v53 = vpack.c.bf16 %v3978_v62, %v3977_v32  ;;  %v6093_v32 = vld [vmem:[%s9483_s7 + $0x8] ss:$0 sps:$4 sm:$0xff]  }
 0x4af   : > { %v6563_v15 = vpop.eup %6562  ;;  %v3895_v51 = vadd.f32 %v3894_v26, %v3893_v23  ;;  %6031 = vmatmul.mubr.msk.bf16.gmra.mrb[124].mxu0 %vm595_vm6, %v4016_v61  ;;  %v3896_v22 = vsel %vm595_vm6, %v6561_v6, 0.0  ;;  %6079 = vmatprep.subr.msk.bf16.mxu1 %vm9780_vm13, %v6093_v32  ;;  %vm9795_vm13 = vmmov %vm9690_vm0 }
 0x4b0   : > { %v3892_v27 = vadd.f32 %v3891_v19, %v3890_v7  ;;  %6034 = vmatprep.mubr.msk.bf16.mxu0 %vm595_vm6, %v4017_v59  ;;  %v6565_v46 = vpop.eup %6564  ;;  %v3898_v21 = vsel %vm595_vm6, %v6563_v15, 0.0  ;;  %v5538_v7 = vld [vmem:[%s9344_s15 + $0x8] sm:$0xff]  }
 0x4b1   : > { %v3897_v40 = vadd.f32 %v3896_v22, %v3895_v51  ;;  %v6567_v25 = vpop.eup %6566  ;;  %v3900_v31 = vsel %vm595_vm6, %v6565_v46, 0.0  ;;  %v5362_v62 = vunpack.c.l.bf16 %v5538_v7  ;;  %v5363_v23 = vunpack.c.h.bf16 %v5538_v7 }
 0x4b2   : > { %6572 = vrcp.f32 %v3892_v27  ;;  %v6569_v45 = vpop.eup %6568  ;;  %v3902_v61 = vsel %vm595_vm6, %v6567_v25, 0.0  ;;  %v5540_v27 = vld [vmem:[%s9344_s15 + $0x18] sm:$0xff]  }
 0x4b3   : > { %v3899_v43 = vadd.f32 %v3898_v21, %v3897_v40  ;;  %v6571_v1 = vpop.eup %6570  ;;  %v3904_v34 = vsel %vm595_vm6, %v6569_v45, 0.0  ;;  %v5370_v40 = vunpack.c.l.bf16 %v5540_v27  ;;  %v5371_v21 = vunpack.c.h.bf16 %v5540_v27 }
 0x4b4   : > { %v3906_v59 = vsel %vm595_vm6, %v6571_v1, 0.0 }
 0x4b5   : > { %v3901_v12 = vadd.f32 %v3900_v31, %v3899_v43 }
 0x4b7   : > { %v3903_v50 = vadd.f32 %v3902_v61, %v3901_v12  ;;  %6035 = vmatmul.mubr.msk.bf16.gmra.mrb[128].mxu0 %vm595_vm6, %v4018_v54 }
 0x4b8   : > { %6038 = vmatprep.mubr.msk.bf16.mxu0 %vm595_vm6, %v4019_v10  ;;  %v5357_v10 = vld [vmem:[%s9344_s15] sm:$0xff]  }
 0x4b9   : > { %v3905_v47 = vadd.f32 %v3904_v34, %v3903_v50 }
 0x4bb   : > { %v3907_v36 = vadd.f32 %v3906_v59, %v3905_v47  ;;  %v5542_v59 = vld [vmem:[%s9344_s15 + $0x28] sm:$0xff]  }
 0x4bc   : > { %v6573_v37 = vpop.eup %6572 }
 0x4bd   : > { %v3908_v38 = vrot.slane %v3907_v36, 4  ;;  %v3979_v55 = vmul.f32 %v6573_v37, %v9197_v17  ;;  %v3980_v5 = vmul.f32 %v6573_v37, %v9207_v16  ;;  %v3981_v33 = vmul.f32 %v6573_v37, %v9216_v39 }
 0x4be   : > { %v3982_v20 = vmul.f32 %v6573_v37, %v9226_v13  ;;  %v3983_v48 = vmul.f32 %v6573_v37, %v9232_v58  ;;  %v3984_v54 = vmul.f32 %v6573_v37, %v9241_v28  ;;  %v3985_v35 = vmul.f32 %v6573_v37, %v9246_v63 }
 0x4bf   : > { %v3909_v8 = vadd.f32 %v3908_v38, %v3907_v36  ;;  %6039 = vmatmul.mubr.msk.bf16.gmra.mrb[132].mxu0 %vm595_vm6, %v4020_v57  ;;  %v4023_v3 = vpack.c.bf16 %v3980_v5, %v3979_v55  ;;  %v3986_v4 = vmul.f32 %v6573_v37, %v9263_v18  ;;  %v5541_v36 = vld [vmem:[%s9344_s15 + $0x20] sm:$0xff]   ;;  %v5378_v37 = vunpack.c.l.bf16 %v5542_v59 }
 0x4c0   : > { %6042 = vmatprep.mubr.msk.bf16.mxu0 %vm595_vm6, %v4021_v2  ;;  %v4024_v17 = vpack.c.bf16 %v3982_v20, %v3981_v33  ;;  %v4025_v16 = vpack.c.bf16 %v3984_v54, %v3983_v48  ;;  %v5359_v2 = vunpack.c.h.bf16 %v5357_v10  ;;  %v5374_v38 = vunpack.c.l.bf16 %v5541_v36 }
 0x4c1   : > { %v3910_v29 = vrot.slane %v3909_v8, 2  ;;  %v4026_v39 = vpack.c.bf16 %v3986_v4, %v3985_v35  ;;  %v5379_v55 = vunpack.c.h.bf16 %v5542_v59  ;;  %v5375_v33 = vunpack.c.h.bf16 %v5541_v36 }
 0x4c3   : > { %v3911_v30 = vadd.f32 %v3910_v29, %v3909_v8 }
 0x4c5   : > { %v3912_v13 = vrot.slane %v3911_v30, 1 }
 0x4c7   : > { %v3913_v9 = vadd.f32 %v3912_v13, %v3911_v30  ;;  %6043 = vmatmul.mubr.msk.bf16.gmra.mrb[136].mxu0 %vm595_vm6, %v4022_v53 }
 0x4c8   : > { %6046 = vmatprep.mubr.msk.bf16.mxu0 %vm595_vm6, %v4023_v3 }
 0x4c9   : > { %6574 = vrcp.f32 %v3913_v9 }
 0x4cf   : > { %6047 = vmatmul.mubr.msk.bf16.gmra.mrb[140].mxu0 %vm595_vm6, %v4024_v17 }
 0x4d0   : > { %6050 = vmatprep.mubr.msk.bf16.mxu0 %vm595_vm6, %v4025_v16 }
 0x4d3   : > { %v6575_v58 = vpop.eup %6574 }
 0x4d4   : > { %v3987_v28 = vmul.f32 %v6575_v58, %v9289_v0  ;;  %v3988_v63 = vmul.f32 %v6575_v58, %v6559_v42  ;;  %v3989_v18 = vmul.f32 %v6575_v58, %v6561_v6  ;;  %v3990_v44 = vmul.f32 %v6575_v58, %v6563_v15 }
 0x4d5   : > { %v3991_v11 = vmul.f32 %v6575_v58, %v6565_v46  ;;  %v3992_v56 = vmul.f32 %v6575_v58, %v6567_v25  ;;  %v3993_v60 = vmul.f32 %v6575_v58, %v6569_v45  ;;  %v3994_v49 = vmul.f32 %v6575_v58, %v6571_v1  ;;  %v5539_v46 = vld [vmem:[%s9344_s15 + $0x10] sm:$0xff]  }
 0x4d6   : > { %v4027_v41 = vpack.c.bf16 %v3988_v63, %v3987_v28  ;;  %v4028_v14 = vpack.c.bf16 %v3990_v44, %v3989_v18  ;;  %v4848_v0 = vsel %vm9781_vm14, %v6093_v32, 0  ;;  %v5358_v42 = vunpack.c.l.bf16 %v5357_v10  ;;  %v5546_v10 = vld [vmem:[%s9344_s15 + $0x48] sm:$0xff]   ;;  %vm9796_vm14 = vmmov %vm9690_vm0 }
 0x4d7   : > { %6051 = vmatmul.mubr.msk.bf16.gmra.mrb[144].mxu0 %vm595_vm6, %v4026_v39  ;;  %v4029_v52 = vpack.c.bf16 %v3992_v56, %v3991_v11  ;;  %v4030_v24 = vpack.c.bf16 %v3994_v49, %v3993_v60  ;;  %6065 = vmatpush3.bf16.msra.mxu1 %v4848_v0  ;;  %v5366_v25 = vunpack.c.l.bf16 %v5539_v46  ;;  %v5367_v43 = vunpack.c.h.bf16 %v5539_v46  ;;  %v5544_v11 = vld [vmem:[%s9344_s15 + $0x38] sm:$0xff]   ;;  %v5543_v56 = vld [vmem:[%s9344_s15 + $0x30] sm:$0xff]  }
 0x4d8   : > { %6054 = vmatprep.mubr.msk.bf16.mxu0 %vm595_vm6, %v4027_v41  ;;  %v5386_v60 = vunpack.c.l.bf16 %v5544_v11  ;;  %v5382_v49 = vunpack.c.l.bf16 %v5543_v56  ;;  %v5387_v41 = vunpack.c.h.bf16 %v5544_v11 }
 0x4df   : > { %6055 = vmatmul.mubr.msk.bf16.gmra.mrb[148].mxu0 %vm595_vm6, %v4028_v14 }
 0x4e0   : > { %6058 = vmatprep.mubr.msk.bf16.mxu0 %vm595_vm6, %v4029_v52  ;;  %v5383_v52 = vunpack.c.h.bf16 %v5543_v56 }
 0x4e7   : > { %6059 = vmatmul.mubr.msk.bf16.gmra.mrb[152].mxu0 %vm595_vm6, %v4030_v24  ;;  %vm9782_vm6 = vmmov %vm9690_vm0 }
 0x511   : > { %v5992_v57 = vpop.f32.mrb[84].mxu0 }
 0x512   : > { %v4606_v6 = vmul.f32 %v5992_v57, %v5362_v62  ;;  %v4173_v19 = vpop.f32.mrb[85].mxu0 }
 0x513   : > { %v4604_v26 = vmul.f32 %v5358_v42, %v4173_v19  ;;  %v5993_v53 = vpop.f32.mrb[86].mxu0 }
 0x514   : > { %v4607_v15 = vmul.f32 %v5993_v53, %v5363_v23  ;;  %v4176_v51 = vpop.f32.mrb[87].mxu0  ;;  %v4710_v8 = vsel %vm9782_vm6, %v4606_v6, 0.0  ;;  %vm9797_vm6 = vmmov %vm9690_vm0 }
 0x515   : > { %v4605_v22 = vmul.f32 %v5359_v2, %v4176_v51  ;;  %v4676_v16 = vsel %vm9784_vm1, %v4604_v26, 0.0  ;;  %v5545_v2 = vld [vmem:[%s9344_s15 + $0x40] sm:$0xff]   ;;  %vm9799_vm1 = vmmov %vm9690_vm0 }
 0x516   : > { %v4727_v13 = vsel %vm9786_vm3, %v4607_v15, 0.0  ;;  %vm9801_vm3 = vmmov %vm9690_vm0 }
 0x517   : > { %v4693_v28 = vsel %vm9788_vm5, %v4605_v22, 0.0  ;;  %v5394_v22 = vunpack.c.l.bf16 %v5546_v10  ;;  %vm9803_vm5 = vmmov %vm9690_vm0 }
 0x51a   : > { %v5996_v45 = vpop.f32.mrb[88].mxu0 }
 0x51b   : > { %v4610_v31 = vmul.f32 %v5996_v45, %v5370_v40  ;;  %v4189_v12 = vpop.f32.mrb[89].mxu0 }
 0x51c   : > { %v4608_v61 = vmul.f32 %v5366_v25, %v4189_v12  ;;  %v5997_v1 = vpop.f32.mrb[90].mxu0  ;;  %v5391_v12 = vunpack.c.h.bf16 %v5545_v2 }
 0x51d   : > { %v4611_v50 = vmul.f32 %v5997_v1, %v5371_v21  ;;  %v4192_v34 = vpop.f32.mrb[91].mxu0  ;;  %v4778_v62 = vsel %vm9789_vm7, %v4610_v31, 0.0  ;;  %v5390_v21 = vunpack.c.l.bf16 %v5545_v2  ;;  %vm9804_vm7 = vmmov %vm9690_vm0 }
 0x51e   : > { %v4609_v47 = vmul.f32 %v5367_v43, %v4192_v34  ;;  %v4744_v6 = vsel %vm9791_vm9, %v4608_v61, 0.0  ;;  %v5395_v43 = vunpack.c.h.bf16 %v5546_v10  ;;  %vm9806_vm9 = vmmov %vm9690_vm0 }
 0x51f   : > { %v4795_v15 = vsel %vm9793_vm11, %v4611_v50, 0.0  ;;  %vm9808_vm11 = vmmov %vm9690_vm0 }
 0x520   : > { %v4761_v46 = vsel %vm9795_vm13, %v4609_v47, 0.0  ;;  %vm9810_vm13 = vmmov %vm9690_vm0 }
 0x52f   : > { %v6000_v5 = vpop.f32.mrb[92].mxu0 }
 0x530   : > { %v4614_v20 = vmul.f32 %v6000_v5, %v5378_v37  ;;  %v4205_v48 = vpop.f32.mrb[93].mxu0 }
 0x531   : > { %v4612_v54 = vmul.f32 %v5374_v38, %v4205_v48  ;;  %v6001_v35 = vpop.f32.mrb[94].mxu0 }
 0x532   : > { %v4711_v3 = vsel %vm9783_vm15, %v4614_v20, 0.0  ;;  %v4615_v4 = vmul.f32 %v6001_v35, %v5379_v55  ;;  %v4208_v17 = vpop.f32.mrb[95].mxu0  ;;  %vm9798_vm15 = vmmov %vm9690_vm0  ;;  %v5548_v35 = vld [vmem:[%s9344_s15 + $0x58] sm:$0xff]  }
 0x533   : > { %v4712_v29 = vadd.f32 %v4711_v3, %v4710_v8  ;;  %v4677_v39 = vsel %vm9785_vm2, %v4612_v54, 0.0  ;;  %v4613_v30 = vmul.f32 %v5375_v33, %v4208_v17  ;;  %vm9800_vm2 = vmmov %vm9690_vm0  ;;  %v5547_v8 = vld [vmem:[%s9344_s15 + $0x50] sm:$0xff]   ;;  %v5402_v3 = vunpack.c.l.bf16 %v5548_v35 }
 0x534   : > { %v4678_v9 = vadd.f32 %v4677_v39, %v4676_v16  ;;  %v4728_v58 = vsel %vm9787_vm4, %v4615_v4, 0.0  ;;  %v5398_v4 = vunpack.c.l.bf16 %v5547_v8  ;;  %v5403_v17 = vunpack.c.h.bf16 %v5548_v35  ;;  %vm9802_vm4 = vmmov %vm9690_vm0 }
 0x535   : > { %v4729_v63 = vadd.f32 %v4728_v58, %v4727_v13  ;;  %v4694_v18 = vsel %vm9690_vm0, %v4613_v30, 0.0  ;;  %v5399_v39 = vunpack.c.h.bf16 %v5547_v8 }
 0x536   : > { %v4695_v44 = vadd.f32 %v4694_v18, %v4693_v28 }
 0x53c   : > { %v6004_v14 = vpop.f32.mrb[96].mxu0 }
 0x53d   : > { %v4618_v24 = vmul.f32 %v6004_v14, %v5386_v60  ;;  %v4221_v32 = vpop.f32.mrb[97].mxu0 }
 0x53e   : > { %v4616_v0 = vmul.f32 %v5382_v49, %v4221_v32  ;;  %v6005_v7 = vpop.f32.mrb[98].mxu0 }
 0x53f   : > { %v4779_v42 = vsel %vm9790_vm8, %v4618_v24, 0.0  ;;  %v4619_v23 = vmul.f32 %v6005_v7, %v5387_v41  ;;  %v4224_v57 = vpop.f32.mrb[99].mxu0  ;;  %v5549_v24 = vld [vmem:[%s9344_s15 + $0x60] sm:$0xff]   ;;  %vm9805_vm8 = vmmov %vm9690_vm0 }
 0x540   : > { %v4780_v19 = vadd.f32 %v4779_v42, %v4778_v62  ;;  %v4745_v26 = vsel %vm9792_vm10, %v4616_v0, 0.0  ;;  %v4617_v53 = vmul.f32 %v5383_v52, %v4224_v57  ;;  %v5550_v52 = vld [vmem:[%s9344_s15 + $0x68] sm:$0xff]   ;;  %v5406_v0 = vunpack.c.l.bf16 %v5549_v24  ;;  %vm9807_vm10 = vmmov %vm9690_vm0 }
 0x541   : > { %v4746_v51 = vadd.f32 %v4745_v26, %v4744_v6  ;;  %v4796_v27 = vsel %vm9794_vm12, %v4619_v23, 0.0  ;;  %v5410_v32 = vunpack.c.l.bf16 %v5550_v52  ;;  %v5411_v7 = vunpack.c.h.bf16 %v5550_v52  ;;  %v5552_v6 = vld [vmem:[%s9344_s15 + $0x78] sm:$0xff]   ;;  %vm9809_vm12 = vmmov %vm9690_vm0 }
 0x542   : > { %v4797_v40 = vadd.f32 %v4796_v27, %v4795_v15  ;;  %v4762_v25 = vsel %vm9796_vm14, %v4617_v53, 0.0  ;;  %v5407_v62 = vunpack.c.h.bf16 %v5549_v24  ;;  %v5551_v15 = vld [vmem:[%s9344_s15 + $0x70] sm:$0xff]   ;;  %vm9811_vm14 = vmmov %vm9690_vm0 }
 0x543   : > { %v4763_v45 = vadd.f32 %v4762_v25, %v4761_v46  ;;  %v5418_v25 = vunpack.c.l.bf16 %v5552_v6 }
 0x544   : > { %v6008_v31 = vpop.f32.mrb[100].mxu0 }
 0x545   : > { %v4622_v61 = vmul.f32 %v6008_v31, %v5394_v22  ;;  %v4237_v1 = vpop.f32.mrb[101].mxu0 }
 0x546   : > { %v4620_v34 = vmul.f32 %v5390_v21, %v4237_v1  ;;  %v6009_v50 = vpop.f32.mrb[102].mxu0  ;;  %v5415_v1 = vunpack.c.h.bf16 %v5551_v15 }
 0x547   : > { %v4713_v59 = vsel %vm9797_vm6, %v4622_v61, 0.0  ;;  %v4623_v36 = vmul.f32 %v6009_v50, %v5395_v43  ;;  %v4240_v37 = vpop.f32.mrb[103].mxu0  ;;  %v5414_v43 = vunpack.c.l.bf16 %v5551_v15  ;;  %vm9812_vm6 = vmmov %vm9690_vm0 }
 0x548   : > { %v4714_v38 = vadd.f32 %v4713_v59, %v4712_v29  ;;  %v4679_v47 = vsel %vm9798_vm15, %v4620_v34, 0.0  ;;  %v4621_v55 = vmul.f32 %v5391_v12, %v4240_v37  ;;  %v5419_v12 = vunpack.c.h.bf16 %v5552_v6  ;;  %v5554_v37 = vld [vmem:[%s9344_s15 + $0x88] sm:$0xff]   ;;  %vm9813_vm15 = vmmov %vm9690_vm0 }
 0x549   : > { %v4680_v5 = vadd.f32 %v4679_v47, %v4678_v9  ;;  %v4730_v33 = vsel %vm9799_vm1, %v4623_v36, 0.0  ;;  %v5426_v8 = vunpack.c.l.bf16 %v5554_v37  ;;  %vm9814_vm1 = vmmov %vm9690_vm0 }
 0x54a   : > { %v4731_v20 = vadd.f32 %v4730_v33, %v4729_v63  ;;  %v4696_v48 = vsel %vm9800_vm2, %v4621_v55, 0.0  ;;  %vm9815_vm2 = vmmov %vm9690_vm0 }
 0x54b   : > { %v4697_v54 = vadd.f32 %v4696_v48, %v4695_v44 }
 0x554   : > { %v6012_v16 = vpop.f32.mrb[104].mxu0 }
 0x555   : > { %v4626_v30 = vmul.f32 %v6012_v16, %v5402_v3  ;;  %v4253_v29 = vpop.f32.mrb[105].mxu0 }
 0x556   : > { %v4624_v13 = vmul.f32 %v5398_v4, %v4253_v29  ;;  %v6013_v58 = vpop.f32.mrb[106].mxu0 }
 0x557   : > { %v4781_v9 = vsel %vm9801_vm3, %v4626_v30, 0.0  ;;  %v4627_v28 = vmul.f32 %v6013_v58, %v5403_v17  ;;  %v4256_v63 = vpop.f32.mrb[107].mxu0  ;;  %vm9816_vm3 = vmmov %vm9690_vm0 }
 0x558   : > { %v4782_v18 = vadd.f32 %v4781_v9, %v4780_v19  ;;  %v4747_v44 = vsel %vm9802_vm4, %v4624_v13, 0.0  ;;  %v4625_v11 = vmul.f32 %v5399_v39, %v4256_v63  ;;  %v5427_v39 = vunpack.c.h.bf16 %v5554_v37  ;;  %v5556_v63 = vld [vmem:[%s9344_s15 + $0x98] sm:$0xff]   ;;  %vm9817_vm4 = vmmov %vm9690_vm0 }
 0x559   : > { %v4748_v56 = vadd.f32 %v4747_v44, %v4746_v51  ;;  %v4798_v60 = vsel %vm9803_vm5, %v4627_v28, 0.0  ;;  %v5434_v24 = vunpack.c.l.bf16 %v5556_v63  ;;  %vm9818_vm5 = vmmov %vm9690_vm0 }
 0x55a   : > { %v4799_v49 = vadd.f32 %v4798_v60, %v4797_v40  ;;  %v4764_v41 = vsel %vm9690_vm0, %v4625_v11, 0.0 }
 0x55b   : > { %v4765_v14 = vadd.f32 %v4764_v41, %v4763_v45 }
 0x562   : > { %v6016_v10 = vpop.f32.mrb[108].mxu0 }
 0x563   : > { %v4630_v42 = vmul.f32 %v6016_v10, %v5410_v32  ;;  %v4269_v23 = vpop.f32.mrb[109].mxu0 }
 0x564   : > { %v4628_v57 = vmul.f32 %v5406_v0, %v4269_v23  ;;  %v6017_v2 = vpop.f32.mrb[110].mxu0 }
 0x565   : > { %v4715_v19 = vsel %vm9804_vm7, %v4630_v42, 0.0  ;;  %v4631_v26 = vmul.f32 %v6017_v2, %v5411_v7  ;;  %v4272_v53 = vpop.f32.mrb[111].mxu0  ;;  %vm9819_vm7 = vmmov %vm9690_vm0 }
 0x566   : > { %v4716_v51 = vadd.f32 %v4715_v19, %v4714_v38  ;;  %v4681_v27 = vsel %vm9805_vm8, %v4628_v57, 0.0  ;;  %v4629_v22 = vmul.f32 %v5407_v62, %v4272_v53  ;;  %v5435_v62 = vunpack.c.h.bf16 %v5556_v63  ;;  %vm9820_vm8 = vmmov %vm9690_vm0 }
 0x567   : > { %v4682_v46 = vadd.f32 %v4681_v27, %v4680_v5  ;;  %v4732_v40 = vsel %vm9806_vm9, %v4631_v26, 0.0  ;;  %v5553_v5 = vld [vmem:[%s9344_s15 + $0x80] sm:$0xff]   ;;  %v5558_v26 = vld [vmem:[%s9344_s15 + $0xa8] sm:$0xff]   ;;  %vm9821_vm9 = vmmov %vm9690_vm0 }
 0x568   : > { %v4733_v21 = vadd.f32 %v4732_v40, %v4731_v20  ;;  %v4698_v45 = vsel %vm9807_vm10, %v4629_v22, 0.0  ;;  %v5422_v17 = vunpack.c.l.bf16 %v5553_v5  ;;  %v5423_v29 = vunpack.c.h.bf16 %v5553_v5  ;;  %v5557_v27 = vld [vmem:[%s9344_s15 + $0xa0] sm:$0xff]   ;;  %vm9822_vm10 = vmmov %vm9690_vm0 }
 0x569   : > { %v4699_v31 = vadd.f32 %v4698_v45, %v4697_v54  ;;  %v5442_v45 = vunpack.c.l.bf16 %v5558_v26 }
 0x56a   : > { %v6020_v61 = vpop.f32.mrb[112].mxu0 }
 0x56b   : > { %v4634_v34 = vmul.f32 %v6020_v61, %v5418_v25  ;;  %v4285_v50 = vpop.f32.mrb[113].mxu0 }
 0x56c   : > { %v4632_v59 = vmul.f32 %v5414_v43, %v4285_v50  ;;  %v6021_v36 = vpop.f32.mrb[114].mxu0  ;;  %v5439_v50 = vunpack.c.h.bf16 %v5557_v27 }
 0x56d   : > { %v4783_v38 = vsel %vm9808_vm11, %v4634_v34, 0.0  ;;  %v4635_v47 = vmul.f32 %v6021_v36, %v5419_v12  ;;  %v4288_v55 = vpop.f32.mrb[115].mxu0  ;;  %v5438_v12 = vunpack.c.l.bf16 %v5557_v27  ;;  %vm9823_vm11 = vmmov %vm9690_vm0 }
 0x56e   : > { %v4784_v33 = vadd.f32 %v4783_v38, %v4782_v18  ;;  %v4749_v20 = vsel %vm9809_vm12, %v4632_v59, 0.0  ;;  %v4633_v48 = vmul.f32 %v5415_v1, %v4288_v55  ;;  %v5443_v1 = vunpack.c.h.bf16 %v5558_v26  ;;  %vm9824_vm12 = vmmov %vm9690_vm0 }
 0x56f   : > { %v4750_v35 = vadd.f32 %v4749_v20, %v4748_v56  ;;  %v4800_v54 = vsel %vm9810_vm13, %v4635_v47, 0.0  ;;  %v5555_v56 = vld [vmem:[%s9344_s15 + $0x90] sm:$0xff]   ;;  %v5560_v47 = vld [vmem:[%s9344_s15 + $0xb8] sm:$0xff]   ;;  %vm9825_vm13 = vmmov %vm9690_vm0 }
 0x570   : > { %v4801_v3 = vadd.f32 %v4800_v54, %v4799_v49  ;;  %v4766_v4 = vsel %vm9811_vm14, %v4633_v48, 0.0  ;;  %v5430_v7 = vunpack.c.l.bf16 %v5555_v56  ;;  %v5431_v23 = vunpack.c.h.bf16 %v5555_v56  ;;  %v5559_v20 = vld [vmem:[%s9344_s15 + $0xb0] sm:$0xff]   ;;  %vm9826_vm14 = vmmov %vm9690_vm0 }
 0x571   : > { %v4767_v16 = vadd.f32 %v4766_v4, %v4765_v14  ;;  %v5450_v4 = vunpack.c.l.bf16 %v5560_v47 }
 0x572   : > { %v6024_v30 = vpop.f32.mrb[116].mxu0 }
 0x573   : > { %v4638_v13 = vmul.f32 %v6024_v30, %v5426_v8  ;;  %v4301_v58 = vpop.f32.mrb[117].mxu0 }
 0x574   : > { %v4636_v9 = vmul.f32 %v5422_v17, %v4301_v58  ;;  %v6025_v28 = vpop.f32.mrb[118].mxu0  ;;  %v5447_v58 = vunpack.c.h.bf16 %v5559_v20 }
 0x575   : > { %v4717_v18 = vsel %vm9812_vm6, %v4638_v13, 0.0  ;;  %v4639_v44 = vmul.f32 %v6025_v28, %v5427_v39  ;;  %v4304_v11 = vpop.f32.mrb[119].mxu0  ;;  %v5446_v39 = vunpack.c.l.bf16 %v5559_v20  ;;  %vm9827_vm6 = vmmov %vm9690_vm0 }
 0x576   : > { %v4718_v60 = vadd.f32 %v4717_v18, %v4716_v51  ;;  %v4683_v49 = vsel %vm9813_vm15, %v4636_v9, 0.0  ;;  %v4637_v41 = vmul.f32 %v5423_v29, %v4304_v11  ;;  %v5451_v29 = vunpack.c.h.bf16 %v5560_v47  ;;  %vm9828_vm15 = vmmov %vm9690_vm0 }
 0x577   : > { %v4684_v52 = vadd.f32 %v4683_v49, %v4682_v46  ;;  %v4734_v14 = vsel %vm9814_vm1, %v4639_v44, 0.0  ;;  %v5562_v44 = vld [vmem:[%s9344_s15 + $0xc8] sm:$0xff]   ;;  %v5561_v49 = vld [vmem:[%s9344_s15 + $0xc0] sm:$0xff]   ;;  %vm9829_vm1 = vmmov %vm9690_vm0 }
 0x578   : > { %v4735_v32 = vadd.f32 %v4734_v14, %v4733_v21  ;;  %v4700_v0 = vsel %vm9815_vm2, %v4637_v41, 0.0  ;;  %vm9830_vm2 = vmmov %vm9690_vm0 }
 0x579   : > { %v4701_v10 = vadd.f32 %v4700_v0, %v4699_v31  ;;  %v5458_v0 = vunpack.c.l.bf16 %v5562_v44 }
 0x57a   : > { %v6028_v42 = vpop.f32.mrb[120].mxu0 }
 0x57b   : > { %v4642_v57 = vmul.f32 %v6028_v42, %v5434_v24  ;;  %v4317_v2 = vpop.f32.mrb[121].mxu0 }
 0x57c   : > { %v4640_v6 = vmul.f32 %v5430_v7, %v4317_v2  ;;  %v6029_v19 = vpop.f32.mrb[122].mxu0  ;;  %v5455_v2 = vunpack.c.h.bf16 %v5561_v49 }
 0x57d   : > { %v4785_v53 = vsel %vm9816_vm3, %v4642_v57, 0.0  ;;  %v4643_v15 = vmul.f32 %v6029_v19, %v5435_v62  ;;  %v4320_v51 = vpop.f32.mrb[123].mxu0  ;;  %v5454_v62 = vunpack.c.l.bf16 %v5561_v49  ;;  %vm9831_vm3 = vmmov %vm9690_vm0 }
 0x57e   : > { %v4786_v22 = vadd.f32 %v4785_v53, %v4784_v33  ;;  %v4751_v46 = vsel %vm9817_vm4, %v4640_v6, 0.0  ;;  %v4641_v40 = vmul.f32 %v5431_v23, %v4320_v51  ;;  %v5459_v23 = vunpack.c.h.bf16 %v5562_v44  ;;  %vm9832_vm4 = vmmov %vm9690_vm0 }
 0x57f   : > { %v4752_v25 = vadd.f32 %v4751_v46, %v4750_v35  ;;  %v4802_v21 = vsel %vm9818_vm5, %v4643_v15, 0.0  ;;  %v5564_v15 = vld [vmem:[%s9344_s15 + $0xd8] sm:$0xff]   ;;  %v5563_v46 = vld [vmem:[%s9344_s15 + $0xd0] sm:$0xff]   ;;  %vm9833_vm5 = vmmov %vm9690_vm0 }
 0x580   : > { %v4803_v43 = vadd.f32 %v4802_v21, %v4801_v3  ;;  %v4768_v31 = vsel %vm9690_vm0, %v4641_v40, 0.0 }
 0x581   : > { %v4769_v61 = vadd.f32 %v4768_v31, %v4767_v16  ;;  %v5466_v31 = vunpack.c.l.bf16 %v5564_v15 }
 0x582   : > { %v6032_v34 = vpop.f32.mrb[124].mxu0 }
 0x583   : > { %v4646_v59 = vmul.f32 %v6032_v34, %v5442_v45  ;;  %v4333_v36 = vpop.f32.mrb[125].mxu0 }
 0x584   : > { %v4644_v37 = vmul.f32 %v5438_v12, %v4333_v36  ;;  %v6033_v38 = vpop.f32.mrb[126].mxu0  ;;  %v5463_v36 = vunpack.c.h.bf16 %v5563_v46 }
 0x585   : > { %v4719_v55 = vsel %vm9819_vm7, %v4646_v59, 0.0  ;;  %v4647_v5 = vmul.f32 %v6033_v38, %v5443_v1  ;;  %v4336_v33 = vpop.f32.mrb[127].mxu0  ;;  %v5462_v1 = vunpack.c.l.bf16 %v5563_v46  ;;  %vm9834_vm7 = vmmov %vm9690_vm0 }
 0x586   : > { %v4720_v48 = vadd.f32 %v4719_v55, %v4718_v60  ;;  %v4685_v35 = vsel %vm9820_vm8, %v4644_v37, 0.0  ;;  %v4645_v54 = vmul.f32 %v5439_v50, %v4336_v33  ;;  %v5467_v50 = vunpack.c.h.bf16 %v5564_v15  ;;  %vm9835_vm8 = vmmov %vm9690_vm0 }
 0x587   : > { %v4686_v8 = vadd.f32 %v4685_v35, %v4684_v52  ;;  %v4736_v3 = vsel %vm9821_vm9, %v4647_v5, 0.0  ;;  %v5566_v5 = vld [vmem:[%s9344_s15 + $0xe8] sm:$0xff]   ;;  %v5565_v35 = vld [vmem:[%s9344_s15 + $0xe0] sm:$0xff]   ;;  %vm9836_vm9 = vmmov %vm9690_vm0 }
 0x588   : > { %v4737_v17 = vadd.f32 %v4736_v3, %v4735_v32  ;;  %v4702_v16 = vsel %vm9822_vm10, %v4645_v54, 0.0  ;;  %vm9837_vm10 = vmmov %vm9690_vm0 }
 0x589   : > { %v4703_v30 = vadd.f32 %v4702_v16, %v4701_v10  ;;  %v5474_v16 = vunpack.c.l.bf16 %v5566_v5 }
 0x58a   : > { %v6036_v13 = vpop.f32.mrb[128].mxu0 }
 0x58b   : > { %v4650_v9 = vmul.f32 %v6036_v13, %v5450_v4  ;;  %v4349_v28 = vpop.f32.mrb[129].mxu0 }
 0x58c   : > { %v4648_v63 = vmul.f32 %v5446_v39, %v4349_v28  ;;  %v6037_v18 = vpop.f32.mrb[130].mxu0  ;;  %v5471_v28 = vunpack.c.h.bf16 %v5565_v35 }
 0x58d   : > { %v4787_v11 = vsel %vm9823_vm11, %v4650_v9, 0.0  ;;  %v4651_v56 = vmul.f32 %v6037_v18, %v5451_v29  ;;  %v4352_v60 = vpop.f32.mrb[131].mxu0  ;;  %v5470_v29 = vunpack.c.l.bf16 %v5565_v35  ;;  %vm9838_vm11 = vmmov %vm9690_vm0 }
 0x58e   : > { %v4788_v41 = vadd.f32 %v4787_v11, %v4786_v22  ;;  %v4753_v52 = vsel %vm9824_vm12, %v4648_v63, 0.0  ;;  %v4649_v14 = vmul.f32 %v5447_v58, %v4352_v60  ;;  %v5475_v58 = vunpack.c.h.bf16 %v5566_v5  ;;  %vm9839_vm12 = vmmov %vm9690_vm0 }
 0x58f   : > { %v4754_v24 = vadd.f32 %v4753_v52, %v4752_v25  ;;  %v4804_v32 = vsel %vm9825_vm13, %v4651_v56, 0.0  ;;  %v5568_v56 = vld [vmem:[%s9344_s15 + $0xf8] sm:$0xff]   ;;  %v5567_v52 = vld [vmem:[%s9344_s15 + $0xf0] sm:$0xff]   ;;  %vm9840_vm13 = vmmov %vm9690_vm0 }
 0x590   : > { %v4805_v7 = vadd.f32 %v4804_v32, %v4803_v43  ;;  %v4770_v10 = vsel %vm9826_vm14, %v4649_v14, 0.0  ;;  %vm9841_vm14 = vmmov %vm9690_vm0 }
 0x591   : > { %v4771_v42 = vadd.f32 %v4770_v10, %v4769_v61  ;;  %v5482_v10 = vunpack.c.l.bf16 %v5568_v56 }
 0x592   : > { %v6040_v57 = vpop.f32.mrb[132].mxu0 }
 0x593   : > { %v4654_v6 = vmul.f32 %v6040_v57, %v5458_v0  ;;  %v4365_v19 = vpop.f32.mrb[133].mxu0 }
 0x594   : > { %v4652_v26 = vmul.f32 %v5454_v62, %v4365_v19  ;;  %v6041_v53 = vpop.f32.mrb[134].mxu0  ;;  %v5479_v19 = vunpack.c.h.bf16 %v5567_v52 }
 0x595   : > { %v4721_v51 = vsel %vm9827_vm6, %v4654_v6, 0.0  ;;  %v4655_v27 = vmul.f32 %v6041_v53, %v5459_v23  ;;  %v4368_v22 = vpop.f32.mrb[135].mxu0  ;;  %v5478_v23 = vunpack.c.l.bf16 %v5567_v52  ;;  %vm9842_vm6 = vmmov %vm9690_vm0 }
 0x596   : > { %v4722_v40 = vadd.f32 %v4721_v51, %v4720_v48  ;;  %v4687_v25 = vsel %vm9828_vm15, %v4652_v26, 0.0  ;;  %v4653_v21 = vmul.f32 %v5455_v2, %v4368_v22  ;;  %v5483_v2 = vunpack.c.h.bf16 %v5568_v56  ;;  %vm9843_vm15 = vmmov %vm9690_vm0 }
 0x597   : > { %v4688_v45 = vadd.f32 %v4687_v25, %v4686_v8  ;;  %v4738_v43 = vsel %vm9829_vm1, %v4655_v27, 0.0  ;;  %v5570_v27 = vld [vmem:[%s9344_s15 + $0x108] sm:$0xff]   ;;  %v5569_v25 = vld [vmem:[%s9344_s15 + $0x100] sm:$0xff]   ;;  %vm9844_vm1 = vmmov %vm9690_vm0 }
 0x598   : > { %v4739_v12 = vadd.f32 %v4738_v43, %v4737_v17  ;;  %v4704_v61 = vsel %vm9830_vm2, %v4653_v21, 0.0  ;;  %vm9845_vm2 = vmmov %vm9690_vm0 }
 0x599   : > { %v4705_v34 = vadd.f32 %v4704_v61, %v4703_v30  ;;  %v5490_v61 = vunpack.c.l.bf16 %v5570_v27 }
 0x59a   : > { %v6044_v59 = vpop.f32.mrb[136].mxu0 }
 0x59b   : > { %v4658_v37 = vmul.f32 %v6044_v59, %v5466_v31  ;;  %v4381_v38 = vpop.f32.mrb[137].mxu0 }
 0x59c   : > { %v4656_v47 = vmul.f32 %v5462_v1, %v4381_v38  ;;  %v6045_v55 = vpop.f32.mrb[138].mxu0  ;;  %v5487_v38 = vunpack.c.h.bf16 %v5569_v25 }
 0x59d   : > { %v4789_v33 = vsel %vm9831_vm3, %v4658_v37, 0.0  ;;  %v4659_v20 = vmul.f32 %v6045_v55, %v5467_v50  ;;  %v4384_v48 = vpop.f32.mrb[139].mxu0  ;;  %v5486_v50 = vunpack.c.l.bf16 %v5569_v25  ;;  %vm9846_vm3 = vmmov %vm9690_vm0 }
 0x59e   : > { %v4790_v54 = vadd.f32 %v4789_v33, %v4788_v41  ;;  %v4755_v8 = vsel %vm9832_vm4, %v4656_v47, 0.0  ;;  %v4657_v3 = vmul.f32 %v5463_v36, %v4384_v48  ;;  %v5491_v36 = vunpack.c.h.bf16 %v5570_v27  ;;  %vm9847_vm4 = vmmov %vm9690_vm0 }
 0x59f   : > { %v4756_v4 = vadd.f32 %v4755_v8, %v4754_v24  ;;  %v4806_v17 = vsel %vm9833_vm5, %v4659_v20, 0.0  ;;  %v5572_v20 = vld [vmem:[%s9344_s15 + $0x118] sm:$0xff]   ;;  %v5571_v8 = vld [vmem:[%s9344_s15 + $0x110] sm:$0xff]   ;;  %vm9848_vm5 = vmmov %vm9690_vm0 }
 0x5a0   : > { %v4807_v39 = vadd.f32 %v4806_v17, %v4805_v7  ;;  %v4772_v30 = vsel %vm9690_vm0, %v4657_v3, 0.0 }
 0x5a1   : > { %v4773_v13 = vadd.f32 %v4772_v30, %v4771_v42  ;;  %v5498_v30 = vunpack.c.l.bf16 %v5572_v20 }
 0x5a2   : > { %v6048_v9 = vpop.f32.mrb[140].mxu0 }
 0x5a3   : > { %v4662_v63 = vmul.f32 %v6048_v9, %v5474_v16  ;;  %v4397_v18 = vpop.f32.mrb[141].mxu0 }
 0x5a4   : > { %v4660_v44 = vmul.f32 %v5470_v29, %v4397_v18  ;;  %v6049_v11 = vpop.f32.mrb[142].mxu0 }
 0x5a5   : > { %v4723_v60 = vsel %vm9834_vm7, %v4662_v63, 0.0  ;;  %v4663_v49 = vmul.f32 %v6049_v11, %v5475_v58  ;;  %v4400_v41 = vpop.f32.mrb[143].mxu0  ;;  %v5494_v58 = vunpack.c.l.bf16 %v5571_v8  ;;  %vm9849_vm7 = vmmov %vm9690_vm0 }
 0x5a6   : > { %v4724_v14 = vadd.f32 %v4723_v60, %v4722_v40  ;;  %v4689_v24 = vsel %vm9835_vm8, %v4660_v44, 0.0  ;;  %v4661_v32 = vmul.f32 %v5471_v28, %v4400_v41  ;;  %v5499_v28 = vunpack.c.h.bf16 %v5572_v20  ;;  %vm9850_vm8 = vmmov %vm9690_vm0 }
 0x5a7   : > { %v4690_v0 = vadd.f32 %v4689_v24, %v4688_v45  ;;  %v4740_v7 = vsel %vm9836_vm9, %v4663_v49, 0.0  ;;  %v5495_v44 = vunpack.c.h.bf16 %v5571_v8  ;;  %vm9851_vm9 = vmmov %vm9690_vm0 }
 0x5a8   : > { %v4741_v62 = vadd.f32 %v4740_v7, %v4739_v12  ;;  %v4706_v42 = vsel %vm9837_vm10, %v4661_v32, 0.0  ;;  %vm9852_vm10 = vmmov %vm9690_vm0 }
 0x5a9   : > { %v4707_v57 = vadd.f32 %v4706_v42, %v4705_v34 }
 0x5aa   : > { %v6052_v6 = vpop.f32.mrb[144].mxu0 }
 0x5ab   : > { %v4666_v26 = vmul.f32 %v6052_v6, %v5482_v10  ;;  %v4413_v53 = vpop.f32.mrb[145].mxu0 }
 0x5ac   : > { %v4664_v15 = vmul.f32 %v5478_v23, %v4413_v53  ;;  %v6053_v51 = vpop.f32.mrb[146].mxu0 }
 0x5ad   : > { %v4791_v22 = vsel %vm9838_vm11, %v4666_v26, 0.0  ;;  %v4667_v46 = vmul.f32 %v6053_v51, %v5483_v2  ;;  %v4416_v40 = vpop.f32.mrb[147].mxu0  ;;  %vm9853_vm11 = vmmov %vm9690_vm0 }
 0x5ae   : > { %v4792_v21 = vadd.f32 %v4791_v22, %v4790_v54  ;;  %v4757_v45 = vsel %vm9839_vm12, %v4664_v15, 0.0  ;;  %v4665_v43 = vmul.f32 %v5479_v19, %v4416_v40  ;;  %v5185_v19 = vld [vmem:[%s9484_s8] ss:$0 sm:$0xff]  ;;  %vm9854_vm12 = vmmov %vm9690_vm0 }
 0x5af   : > { %v4758_v31 = vadd.f32 %v4757_v45, %v4756_v4  ;;  %v4808_v12 = vsel %vm9840_vm13, %v4667_v46, 0.0  ;;  %vm9855_vm13 = vmmov %vm9690_vm0 }
 0x5b0   : > { %v4809_v1 = vadd.f32 %v4808_v12, %v4807_v39  ;;  %v4774_v34 = vsel %vm9841_vm14, %v4665_v43, 0.0  ;;  %vm9856_vm14 = vmmov %vm9690_vm0 }
 0x5b1   : > { %v4775_v59 = vadd.f32 %v4774_v34, %v4773_v13 }
 0x5b2   : > { %v6056_v37 = vpop.f32.mrb[148].mxu0 }
 0x5b3   : > { %v4670_v47 = vmul.f32 %v6056_v37, %v5490_v61  ;;  %v4429_v55 = vpop.f32.mrb[149].mxu0 }
 0x5b4   : > { %v4668_v5 = vmul.f32 %v5486_v50, %v4429_v55  ;;  %v6057_v33 = vpop.f32.mrb[150].mxu0 }
 0x5b5   : > { %v4725_v48 = vsel %vm9842_vm6, %v4670_v47, 0.0  ;;  %v4671_v35 = vmul.f32 %v6057_v33, %v5491_v36  ;;  %v4432_v54 = vpop.f32.mrb[151].mxu0  ;;  %vm9857_vm6 = vmmov %vm9690_vm0 }
 0x5b6   : > { %v4726_v3 = vadd.f32 %v4725_v48, %v4724_v14  ;;  %v4691_v4 = vsel %vm9843_vm15, %v4668_v5, 0.0  ;;  %v4669_v17 = vmul.f32 %v5487_v38, %v4432_v54  ;;  %vm9858_vm15 = vmmov %vm9690_vm0 }
 0x5b7   : > { %v4692_v16 = vadd.f32 %v4691_v4, %v4690_v0  ;;  %v4742_v39 = vsel %vm9844_vm1, %v4671_v35, 0.0  ;;  %vm9859_vm1 = vmmov %vm9690_vm0 }
 0x5b8   : > { %v4743_v29 = vadd.f32 %v4742_v39, %v4741_v62  ;;  %v4708_v13 = vsel %vm9845_vm2, %v4669_v17, 0.0  ;;  %vm9860_vm2 = vmmov %vm9690_vm0 }
 0x5b9   : > { %v4709_v9 = vadd.f32 %v4708_v13, %v4707_v57 }
 0x5ba   : > { %v4813_v63 = vpack.c.bf16 %v4743_v29, %v4726_v3  ;;  %v6060_v18 = vpop.f32.mrb[152].mxu0 }
 0x5bb   : > { %v4812_v11 = vpack.c.bf16 %v4709_v9, %v4692_v16  ;;  %v4674_v56 = vmul.f32 %v6060_v18, %v5498_v30  ;;  %v4445_v60 = vpop.f32.mrb[153].mxu0 }
 0x5bc   : > { %v4672_v49 = vmul.f32 %v5494_v58, %v4445_v60  ;;  %v6061_v41 = vpop.f32.mrb[154].mxu0 }
 0x5bd   : > { %v4793_v52 = vsel %vm9846_vm3, %v4674_v56, 0.0  ;;  %v4675_v14 = vmul.f32 %v6061_v41, %v5499_v28  ;;  %v4448_v24 = vpop.f32.mrb[155].mxu0  ;;  %6066 = vmatprep.mubr.msk.bf16.mxu1 %vm9847_vm4, %v4812_v11 }
 0x5be   : > { %v4794_v32 = vadd.f32 %v4793_v52, %v4792_v21  ;;  %v4759_v0 = vsel %vm9848_vm5, %v4672_v49, 0.0  ;;  %v4673_v7 = vmul.f32 %v5495_v44, %v4448_v24  ;;  %6067 = vmatmul.mubr.msk.bf16.vlgmr.msra.gmra.mrb[148].mxu1 %vm9690_vm0, %v4813_v63 }
 0x5bf   : > { %v4760_v10 = vadd.f32 %v4759_v0, %v4758_v31  ;;  %v4810_v62 = vsel %vm9849_vm7, %v4675_v14, 0.0 }
 0x5c0   : > { %v4811_v42 = vadd.f32 %v4810_v62, %v4809_v1  ;;  %v4776_v23 = vsel %vm9850_vm8, %v4673_v7, 0.0 }
 0x5c1   : > { %v4777_v57 = vadd.f32 %v4776_v23, %v4775_v59 }
 0x5c2   : > { %v4815_v2 = vpack.c.bf16 %v4811_v42, %v4794_v32 }
 0x5c3   : > { %v4814_v6 = vpack.c.bf16 %v4777_v57, %v4760_v10 }
 0x5c5   : > { %6070 = vmatprep.mubr.msk.bf16.mxu1 %vm9851_vm9, %v4814_v6 }
 0x5c6   : > { %6071 = vmatmul.mubr.msk.bf16.gmra.mrb[152].mxu1 %vm9852_vm10, %v4815_v2 }
 0x691   : > { %v6068_v26 = vpop.f32.mrb[148].mxu1 }
 0x692   : > { %v4893_v53 = vadd.f32 %v6068_v26, %v5185_v19  ;;  %v4884_v15 = vpop.f32.mrb[149].mxu1 }
 0x693   : > { %v4885_v51 = vadd.f32 %v5185_v19, %v4884_v15  ;;  %v6069_v27 = vpop.f32.mrb[150].mxu1 }
 0x694   : > { %4917 = vst.msk [vmem:[%s386_s20 + $0x10] sm:$0xff] %vm9853_vm11, %v4893_v53  ;;  %v4896_v22 = vadd.f32 %v6069_v27, %v5185_v19  ;;  %v4887_v46 = vpop.f32.mrb[151].mxu1 }
 0x695   : > { %4915 = vst.msk [vmem:[%s386_s20] sm:$0xff] %vm9854_vm12, %v4885_v51  ;;  %v4888_v40 = vadd.f32 %v5185_v19, %v4887_v46 }
 0x696   : > { %4918 = vst.msk [vmem:[%s386_s20 + $0x18] sm:$0xff] %vm9855_vm13, %v4896_v22 }
 0x697   : > { %4916 = vst.msk [vmem:[%s386_s20 + $0x8] sm:$0xff] %vm9856_vm14, %v4888_v40 }
 0x699   : > { %v6072_v25 = vpop.f32.mrb[152].mxu1 }
 0x69a   : > { %v4909_v21 = vadd.f32 %v6072_v25, %v5185_v19  ;;  %v4900_v45 = vpop.f32.mrb[153].mxu1 }
 0x69b   : > { %v4901_v43 = vadd.f32 %v5185_v19, %v4900_v45  ;;  %v6073_v31 = vpop.f32.mrb[154].mxu1 }
 0x69c   : > { %4921 = vst.msk [vmem:[%s386_s20 + $0x30] sm:$0xff] %vm9857_vm6, %v4909_v21  ;;  %v4912_v12 = vadd.f32 %v6073_v31, %v5185_v19  ;;  %v4903_v61 = vpop.f32.mrb[155].mxu1 }
 0x69d   : > { %4919 = vst.msk [vmem:[%s386_s20 + $0x20] sm:$0xff] %vm9858_vm15, %v4901_v43  ;;  %v4904_v1 = vadd.f32 %v5185_v19, %v4903_v61 }
 0x69e   : > { %4922 = vst.msk [vmem:[%s386_s20 + $0x38] sm:$0xff] %vm9859_vm1, %v4912_v12 }
 0x69f   : > { %4920 = vst.msk [vmem:[%s386_s20 + $0x28] sm:$0xff] %vm9860_vm2, %v4904_v1 }
 0x6a0 PF: > { %s19_s30 = sadd.s32 1, %s6582_s30  }
 0x6a1   : > { %p16_p4 = scmp.ge.s32.totalorder %s19_s30, 4  }
 0x6a3   :  { %18 = sbr.rel (!%p16_p4) target bundleno = 1 (0x1), region = 95 }

// kernel: _lambda_.21
= control target key start
LH: loop header
LB: loop body
LE: loop exit
PB: predicated region body
PF: predicated region fallthrough
CT: control target
= control target key end

     0   :  { %vm18_vm0 = vcmask 392192   ;;  %s174_s0 = inlined_call_operand.vmem [shape: f32[32,48], index: 0, kind: input, shape index: {}]   ;;  %s175_s1 = inlined_call_operand.vmem [shape: f32[1,48], index: 1, kind: input, shape index: {}]   ;;  %s176_s2 = inlined_call_operand.vmem [shape: f32[1,48], index: 2, kind: input, shape index: {}]   ;;  %s177_s3 = inlined_call_operand.vmem [shape: f32[32,48], index: 3, kind: output, shape index: {}]  }
   0x1   :  { %v14_v0 = vld [vmem:[%s174_s0] sm:$0xff]  ;;  %v16_v1 = vld [vmem:[%s174_s0 + $0x10] sm:$0xff]  ;;  %v15_v2 = vld [vmem:[%s174_s0 + $0x8] sm:$0xff] }
   0x2   :  { %v19_v3 = vsel %vm18_vm0, %v14_v0, 0.0  ;;  %v25_v4 = vsel %vm18_vm0, %v16_v1, 0.0  ;;  %v17_v5 = vld [vmem:[%s174_s0 + $0x18] sm:$0xff]  ;;  %v22_v6 = vsel %vm18_vm0, %v15_v2, 0.0  ;;  %v102_v41 = vld [vmem:[%s175_s1] ss:$0 sm:$0xff] }
   0x3   :  { %20 = vadd.xlane.f32.xlu0 %v19_v3  ;;  %26 = vadd.xlane.f32.xlu1 %v25_v4  ;;  %v28_v7 = vsel %vm18_vm0, %v17_v5, 0.0  ;;  %v103_v43 = vld [vmem:[%s176_s2] ss:$0 sm:$0xff] }
   0x7   :  { %23 = vadd.xlane.f32.xlu0 %v22_v6  ;;  %29 = vadd.xlane.f32.xlu1 %v28_v7 }
  0x90   :  { %v21_v8 = vpop.xlane.xlu0 %20  ;;  %v27_v9 = vpop.xlane.xlu1 %26 }
  0x91   :  { %v32_v10 = vmul.f32 0.020833334, %v21_v8  ;;  %v34_v11 = vmul.f32 0.020833334, %v27_v9 }
  0x93   :  { %v36_v12 = vsub.f32 %v14_v0, %v32_v10  ;;  %v38_v13 = vsub.f32 %v16_v1, %v34_v11 }
  0x94   :  { %v24_v14 = vpop.xlane.xlu0 %23  ;;  %v30_v15 = vpop.xlane.xlu1 %29 }
  0x95   :  { %v33_v16 = vmul.f32 0.020833334, %v24_v14  ;;  %v35_v17 = vmul.f32 0.020833334, %v30_v15  ;;  %v40_v18 = vmul.f32 %v36_v12, %v36_v12  ;;  %v42_v19 = vmul.f32 %v38_v13, %v38_v13 }
  0x97   :  { %v37_v20 = vsub.f32 %v15_v2, %v33_v16  ;;  %v39_v21 = vsub.f32 %v17_v5, %v35_v17  ;;  %v44_v22 = vsel %vm18_vm0, %v40_v18, 0.0  ;;  %v50_v23 = vsel %vm18_vm0, %v42_v19, 0.0 }
  0x98   :  { %45 = vadd.xlane.f32.xlu0 %v44_v22 }
  0x99   :  { %v41_v24 = vmul.f32 %v37_v20, %v37_v20  ;;  %v43_v25 = vmul.f32 %v39_v21, %v39_v21 }
  0x9b   :  { %v47_v26 = vsel %vm18_vm0, %v41_v24, 0.0  ;;  %v53_v27 = vsel %vm18_vm0, %v43_v25, 0.0 }
  0x9c   :  { %51 = vadd.xlane.f32.xlu0 %v50_v23  ;;  %48 = vadd.xlane.f32.xlu1 %v47_v26 }
  0xa0   :  { %54 = vadd.xlane.f32.xlu1 %v53_v27 }
 0x125   :  { %v46_v28 = vpop.xlane.xlu0 %45 }
 0x126   :  { %v56_v29 = vmul.f32 0.020833334, %v46_v28 }
 0x128   :  { %v60_v30 = vadd.f32 1e-05, %v56_v29 }
 0x129   :  { %v49_v31 = vpop.xlane.xlu1 %48  ;;  %v52_v32 = vpop.xlane.xlu0 %51 }
 0x12a   :  { %104 = vrsqrt.f32 %v60_v30  ;;  %v57_v33 = vmul.f32 0.020833334, %v49_v31  ;;  %v58_v34 = vmul.f32 0.020833334, %v52_v32 }
 0x12c   :  { %v61_v35 = vadd.f32 1e-05, %v57_v33  ;;  %v62_v36 = vadd.f32 1e-05, %v58_v34 }
 0x12d   :  { %v55_v37 = vpop.xlane.xlu1 %54 }
 0x12e   :  { %106 = vrsqrt.f32 %v61_v35  ;;  %v59_v38 = vmul.f32 0.020833334, %v55_v37 }
 0x12f   :  { %108 = vrsqrt.f32 %v62_v36 }
 0x130   :  { %v63_v39 = vadd.f32 1e-05, %v59_v38 }
 0x132   :  { %110 = vrsqrt.f32 %v63_v39 }
 0x134   :  { %v105_v40 = vpop.eup %104 }
 0x135   :  { %v68_v42 = vmul.f32 %v105_v40, %v36_v12 }
 0x137   :  { %v79_v44 = vmul.f32 %v102_v41, %v68_v42 }
 0x138   :  { %v107_v45 = vpop.eup %106 }
 0x139   :  { %v109_v46 = vpop.eup %108  ;;  %v90_v47 = vadd.f32 %v103_v43, %v79_v44  ;;  %v69_v48 = vmul.f32 %v107_v45, %v37_v20 }
 0x13a   :  { %v70_v49 = vmul.f32 %v109_v46, %v38_v13 }
 0x13b   :  { %94 = vst.msk [vmem:[%s177_s3] sm:$0xff] %vm18_vm0, %v90_v47  ;;  %v80_v50 = vmul.f32 %v102_v41, %v69_v48 }
 0x13c   :  { %v111_v51 = vpop.eup %110  ;;  %v81_v52 = vmul.f32 %v102_v41, %v70_v49 }
 0x13d   :  { %v91_v53 = vadd.f32 %v103_v43, %v80_v50  ;;  %v71_v54 = vmul.f32 %v111_v51, %v39_v21 }
 0x13e   :  { %v92_v55 = vadd.f32 %v103_v43, %v81_v52 }
 0x13f   :  { %95 = vst.msk [vmem:[%s177_s3 + $0x8] sm:$0xff] %vm18_vm0, %v91_v53  ;;  %v82_v56 = vmul.f32 %v102_v41, %v71_v54 }
 0x140   :  { %96 = vst.msk [vmem:[%s177_s3 + $0x10] sm:$0xff] %vm18_vm0, %v92_v55 }
 0x141   :  { %v93_v57 = vadd.f32 %v103_v43, %v82_v56 }
 0x143   :  { %97 = vst.msk [vmem:[%s177_s3 + $0x18] sm:$0xff] %vm18_vm0, %v93_v57 }

// kernel: _lambda_.20
= control target key start
LH: loop header
LB: loop body
LE: loop exit
PB: predicated region body
PF: predicated region fallthrough
CT: control target
= control target key end

     0   :  { %vm25_vm0 = vcmask 785408   ;;  %vm213_vm1 = vcmask 392192   ;;  %s367_s0 = inlined_call_operand.vmem [shape: f32[32,96], index: 0, kind: input, shape index: {}]   ;;  %s368_s1 = inlined_call_operand.vmem [shape: bf16[96,48], index: 1, kind: input, shape index: {}]   ;;  %s369_s3 = inlined_call_operand.vmem [shape: f32[1,96], index: 3, kind: input, shape index: {}]   ;;  %s370_s4 = inlined_call_operand.vmem [shape: f32[1,96], index: 4, kind: input, shape index: {}]   ;;  %s371_s2 = inlined_call_operand.vmem [shape: f32[1,48], index: 2, kind: input, shape index: {}]   ;;  %s372_s5 = inlined_call_operand.vmem [shape: f32[32,48], index: 5, kind: output, shape index: {}]  }
   0x1   :  { %v21_v0 = vld [vmem:[%s367_s0] sm:$0xff]  ;;  %v23_v1 = vld [vmem:[%s367_s0 + $0x10] sm:$0xff]  ;;  %v22_v2 = vld [vmem:[%s367_s0 + $0x8] sm:$0xff] }
   0x2   :  { %v26_v3 = vsel %vm25_vm0, %v21_v0, 0.0  ;;  %v32_v4 = vsel %vm25_vm0, %v23_v1, 0.0  ;;  %v24_v5 = vld [vmem:[%s367_s0 + $0x18] sm:$0xff]  ;;  %v29_v6 = vsel %vm25_vm0, %v22_v2, 0.0  ;;  %v257_v28 = vld [vmem:[%s368_s1] sm:$0xff]   ;;  %v258_v29 = vld [vmem:[%s368_s1 + $0x8] sm:$0xff]  }
   0x3   :  { %27 = vadd.xlane.f32.xlu0 %v26_v3  ;;  %33 = vadd.xlane.f32.xlu1 %v32_v4  ;;  %v35_v7 = vsel %vm25_vm0, %v24_v5, 0.0  ;;  %v259_v30 = vld [vmem:[%s368_s1 + $0x10] sm:$0xff]   ;;  %v260_v31 = vld [vmem:[%s368_s1 + $0x18] sm:$0xff]   ;;  %v261_v32 = vld [vmem:[%s368_s1 + $0x20] sm:$0xff]  }
   0x4   :  { %241 = vmatprep.subr.bf16.mxu0 %v257_v28  ;;  %v262_v33 = vld [vmem:[%s368_s1 + $0x28] sm:$0xff]   ;;  %v222_v48 = vld [vmem:[%s369_s3] ss:$0 sm:$0xff] }
   0x5   :  { %242 = vmatpush3.bf16.msra.mxu0 %v257_v28  ;;  %v223_v54 = vld [vmem:[%s370_s4] ss:$0 sm:$0xff] }
   0x6   :  { %243 = vmatprep.subr.bf16.mxu0 %v258_v29 }
   0x7   :  { %30 = vadd.xlane.f32.xlu0 %v29_v6  ;;  %36 = vadd.xlane.f32.xlu1 %v35_v7 }
   0x9   :  { %244 = vmatpush3.bf16.msra.mxu0 %v258_v29 }
   0xa   :  { %245 = vmatprep.subr.bf16.mxu0 %v259_v30 }
   0xd   :  { %246 = vmatpush3.bf16.msra.mxu0 %v259_v30 }
   0xe   :  { %247 = vmatprep.subr.bf16.mxu0 %v260_v31 }
  0x11   :  { %248 = vmatpush3.bf16.msra.mxu0 %v260_v31 }
  0x12   :  { %249 = vmatprep.subr.bf16.mxu0 %v261_v32 }
  0x15   :  { %250 = vmatpush3.bf16.msra.mxu0 %v261_v32 }
  0x16   :  { %251 = vmatprep.subr.bf16.mxu0 %v262_v33 }
  0x19   :  { %252 = vmatpush3.bf16.msra.mxu0 %v262_v33 }
  0x90   :  { %v28_v8 = vpop.xlane.xlu0 %27  ;;  %v34_v9 = vpop.xlane.xlu1 %33 }
  0x91   :  { %v39_v10 = vmul.f32 0.010416667, %v28_v8  ;;  %v41_v11 = vmul.f32 0.010416667, %v34_v9 }
  0x93   :  { %v43_v12 = vsub.f32 %v21_v0, %v39_v10  ;;  %v317_v13 = vsub.f32 %v23_v1, %v41_v11 }
  0x94   :  { %v31_v14 = vpop.xlane.xlu0 %30  ;;  %v37_v15 = vpop.xlane.xlu1 %36 }
  0x95   :  { %v40_v16 = vmul.f32 0.010416667, %v31_v14  ;;  %v42_v17 = vmul.f32 0.010416667, %v37_v15  ;;  %v47_v18 = vmul.f32 %v43_v12, %v43_v12  ;;  %v49_v19 = vmul.f32 %v317_v13, %v317_v13 }
  0x97   :  { %v44_v20 = vsub.f32 %v22_v2, %v40_v16  ;;  %v46_v21 = vsub.f32 %v24_v5, %v42_v17  ;;  %v51_v22 = vsel %vm25_vm0, %v47_v18, 0.0  ;;  %v57_v23 = vsel %vm25_vm0, %v49_v19, 0.0  ;;  %v224_v2 = vld [vmem:[%s371_s2] ss:$0 sm:$0xff] }
  0x98   :  { %52 = vadd.xlane.f32.xlu0 %v51_v22 }
  0x99   :  { %v48_v24 = vmul.f32 %v44_v20, %v44_v20  ;;  %v50_v25 = vmul.f32 %v46_v21, %v46_v21 }
  0x9b   :  { %v54_v26 = vsel %vm25_vm0, %v48_v24, 0.0  ;;  %v60_v27 = vsel %vm25_vm0, %v50_v25, 0.0 }
  0x9c   :  { %58 = vadd.xlane.f32.xlu0 %v57_v23  ;;  %55 = vadd.xlane.f32.xlu1 %v54_v26 }
  0xa0   :  { %61 = vadd.xlane.f32.xlu1 %v60_v27 }
 0x125   :  { %v53_v34 = vpop.xlane.xlu0 %52 }
 0x126   :  { %v63_v35 = vmul.f32 0.010416667, %v53_v34 }
 0x128   :  { %v67_v36 = vadd.f32 1e-05, %v63_v35 }
 0x129   :  { %v56_v37 = vpop.xlane.xlu1 %55  ;;  %v59_v38 = vpop.xlane.xlu0 %58 }
 0x12a   :  { %263 = vrsqrt.f32 %v67_v36  ;;  %v64_v39 = vmul.f32 0.010416667, %v56_v37  ;;  %v65_v40 = vmul.f32 0.010416667, %v59_v38 }
 0x12c   :  { %v68_v41 = vadd.f32 1e-05, %v64_v39  ;;  %v69_v42 = vadd.f32 1e-05, %v65_v40 }
 0x12d   :  { %v62_v43 = vpop.xlane.xlu1 %61 }
 0x12e   :  { %265 = vrsqrt.f32 %v68_v41  ;;  %v66_v44 = vmul.f32 0.010416667, %v62_v43 }
 0x12f   :  { %267 = vrsqrt.f32 %v69_v42 }
 0x130   :  { %v70_v45 = vadd.f32 1e-05, %v66_v44 }
 0x132   :  { %269 = vrsqrt.f32 %v70_v45 }
 0x134   :  { %v264_v46 = vpop.eup %263 }
 0x135   :  { %v75_v47 = vmul.f32 %v264_v46, %v43_v12 }
 0x137   :  { %v86_v52 = vmul.f32 %v222_v48, %v75_v47 }
 0x138   :  { %v266_v49 = vpop.eup %265 }
 0x139   :  { %v268_v50 = vpop.eup %267  ;;  %v76_v51 = vmul.f32 %v266_v49, %v44_v20  ;;  %v97_v58 = vadd.f32 %v223_v54, %v86_v52 }
 0x13a   :  { %v77_v53 = vmul.f32 %v268_v50, %v317_v13 }
 0x13b   :  { %v87_v55 = vmul.f32 %v222_v48, %v76_v51 }
 0x13c   :  { %v270_v56 = vpop.eup %269  ;;  %v88_v60 = vmul.f32 %v222_v48, %v77_v53 }
 0x13d   :  { %v78_v57 = vmul.f32 %v270_v56, %v46_v21  ;;  %v98_v59 = vadd.f32 %v223_v54, %v87_v55 }
 0x13e   :  { %v99_v63 = vadd.f32 %v223_v54, %v88_v60 }
 0x13f   :  { %v101_v61 = vpack.c.bf16 %v98_v59, %v97_v58  ;;  %v89_v62 = vmul.f32 %v222_v48, %v78_v57 }
 0x141   :  { %253 = vmatprep.mubr.msk.bf16.mxu0 %vm25_vm0, %v101_v61  ;;  %v100_v0 = vadd.f32 %v223_v54, %v89_v62 }
 0x143   :  { %v102_v1 = vpack.c.bf16 %v100_v0, %v99_v63 }
 0x145   :  { %254 = vmatmul.mubr.msk.bf16.vlgmr.msra.gmra.mrb[0].mxu0 %vm25_vm0, %v102_v1 }
 0x218   :  { %v255_v3 = vpop.f32.mrb[0].mxu0 }
 0x219   :  { %v207_v4 = vadd.f32 %v255_v3, %v224_v2  ;;  %v198_v5 = vpop.f32.mrb[1].mxu0 }
 0x21a   :  { %v199_v6 = vadd.f32 %v224_v2, %v198_v5  ;;  %v256_v7 = vpop.f32.mrb[2].mxu0 }
 0x21b   :  { %216 = vst.msk [vmem:[%s372_s5 + $0x10] sm:$0xff] %vm213_vm1, %v207_v4  ;;  %v210_v8 = vadd.f32 %v256_v7, %v224_v2  ;;  %v201_v9 = vpop.f32.mrb[3].mxu0 }
 0x21c   :  { %214 = vst.msk [vmem:[%s372_s5] sm:$0xff] %vm213_vm1, %v199_v6  ;;  %v202_v10 = vadd.f32 %v224_v2, %v201_v9 }
 0x21d   :  { %217 = vst.msk [vmem:[%s372_s5 + $0x18] sm:$0xff] %vm213_vm1, %v210_v8 }
 0x21e   :  { %215 = vst.msk [vmem:[%s372_s5 + $0x8] sm:$0xff] %vm213_vm1, %v202_v10 }

// kernel: _lambda_.22
= control target key start
LH: loop header
LB: loop body
LE: loop exit
PB: predicated region body
PF: predicated region fallthrough
CT: control target
= control target key end

     0   :  { %v214_v1 = vmov 0   ;;  %vm83_vm0 = vcmask 392192   ;;  %v33_v9 = vlaneseq  ;;  %vm167_vm1 = vcmask 1043456   ;;  %s284_s1 = inlined_call_operand.vmem [shape: bf16[48,144], index: 1, kind: input, shape index: {}]   ;;  %s285_s3 = inlined_call_operand.vmem [shape: f32[1,48], index: 3, kind: input, shape index: {}]   ;;  %s286_s4 = inlined_call_operand.vmem [shape: f32[1,48], index: 4, kind: input, shape index: {}]   ;;  %s287_s0 = inlined_call_operand.vmem [shape: bf16[32,48], index: 0, kind: input, shape index: {}]   ;;  %s288_s2 = inlined_call_operand.vmem [shape: f32[1,144], index: 2, kind: input, shape index: {}]   ;;  %s289_s5 = inlined_call_operand.vmem [shape: bf16[32,144], index: 5, kind: output, shape index: {}]  }
   0x1   :  { %v203_v0 = vld [vmem:[%s284_s1 + $0x4] ss:$8 sps:$4 sm:$0xff]   ;;  %122 = vmatprep.mubr.bf16.mxu0 %v214_v1  ;;  %132 = vmatprep.mubr.bf16.mxu1 %v214_v1  ;;  %v205_v2 = vld [vmem:[%s284_s1] ss:$8 sps:$4 sm:$0xff]   ;;  %v206_v3 = vld [vmem:[%s284_s1 + $0x14] ss:$8 sps:$4 sm:$0xff]  }
   0x2   :  { %90 = vmatprep.subr.bf16.mxu0 %v203_v0  ;;  %196 = vmatprep.subr.bf16.mxu1 %v203_v0  ;;  %v208_v4 = vld [vmem:[%s284_s1 + $0x10] ss:$8 sps:$4 sm:$0xff]   ;;  %v209_v5 = vld [vmem:[%s284_s1 + $0x24] ss:$8 sps:$4 sm:$0xff]   ;;  %v211_v6 = vld [vmem:[%s284_s1 + $0x20] ss:$8 sps:$4 sm:$0xff]  }
   0x3   :  { %91 = vmatpush1.bf16.msra.mxu0 %v205_v2  ;;  %199 = vmatpush1.bf16.msra.mxu1 %v205_v2  ;;  %v212_v7 = vld [vmem:[%s287_s0] sm:$0xff]   ;;  %v213_v8 = vld [vmem:[%s287_s0 + $0x8] sm:$0xff]   ;;  %v34_v10 = vshrl.u32 %v33_v9, 7  ;;  %vm168_vm2 = vcmask 130052  }
   0x4   :  { %92 = vmatprep.subr.bf16.mxu0 %v206_v3  ;;  %197 = vmatprep.subr.bf16.mxu1 %v206_v3  ;;  %v31_v12 = vld [vmem:[%s288_s2] sm:$0x3]  ;;  %vm169_vm3 = vmor %vm168_vm2, %vm167_vm1 }
   0x5   :  { %v35_v11 = vsub.s32 0, %v34_v10  ;;  %v39_v13 = vsub.s32 1, %v34_v10 }
   0x7   :  { %93 = vmatpush1.bf16.msra.mxu0 %v208_v4  ;;  %200 = vmatpush1.bf16.msra.mxu1 %v208_v4  ;;  %v36_v14 = vrot.slane %v31_v12, %v35_v11  ;;  %v40_v15 = vrot.slane %v31_v12, %v39_v13 }
   0x8   :  { %94 = vmatprep.subr.bf16.mxu0 %v209_v5  ;;  %198 = vmatprep.subr.bf16.mxu1 %v209_v5 }
   0xb   :  { %95 = vmatpush1.bf16.msra.mxu0 %v211_v6  ;;  %201 = vmatpush1.bf16.msra.mxu1 %v211_v6 }
   0xe   :  { %186 = vmatmul.mubr.msk.bf16.vlgmr.msra.gmra.mrb[0].mxu0 %vm83_vm0, %v212_v7  ;;  %187 = vmatmul.mubr.msk.bf16.vlgmr.msra.gmra.mrb[0].mxu1 %vm83_vm0, %v213_v8 }
  0xe1   :  { %v124_v16 = vpop.f32.mrb[0].mxu0  ;;  %v134_v17 = vpop.f32.mrb[0].mxu1 }
  0xe2   :  { %v125_v18 = vadd.f32 %v124_v16, %v36_v14  ;;  %v135_v19 = vadd.f32 %v134_v17, %v36_v14  ;;  %v126_v20 = vpop.f32.mrb[1].mxu0  ;;  %v136_v21 = vpop.f32.mrb[1].mxu1 }
  0xe3   :  { %v127_v22 = vadd.f32 %v126_v20, %v40_v15  ;;  %v137_v23 = vadd.f32 %v136_v21, %v40_v15  ;;  %v128_v24 = vpop.f32.mrb[2].mxu0  ;;  %v138_v25 = vpop.f32.mrb[2].mxu1 }
  0xe4   :  { %v129_v26 = vadd.f32 %v128_v24, %v36_v14  ;;  %v139_v27 = vadd.f32 %v138_v25, %v36_v14  ;;  %v130_v28 = vpop.f32.mrb[3].mxu0  ;;  %v140_v29 = vpop.f32.mrb[3].mxu1 }
  0xe5   :  { %v192_v30 = vpack.c.bf16 %v127_v22, %v125_v18  ;;  %v194_v31 = vpack.c.bf16 %v137_v23, %v135_v19  ;;  %v131_v32 = vadd.f32 %v130_v28, %v40_v15  ;;  %v141_v33 = vadd.f32 %v140_v29, %v40_v15 }
  0xe7   :  { %170 = vst.msk [vmem:[%s289_s5] sm:$0xff] %vm169_vm3, %v192_v30  ;;  %172 = vst.msk [vmem:[%s289_s5 + $0x10] sm:$0xff] %vm169_vm3, %v194_v31  ;;  %v193_v34 = vpack.c.bf16 %v131_v32, %v129_v26  ;;  %v195_v35 = vpack.c.bf16 %v141_v33, %v139_v27 }
  0xe9   :  { %171 = vst.msk [vmem:[%s289_s5 + $0x8] sm:$0xff] %vm169_vm3, %v193_v34  ;;  %173 = vst.msk [vmem:[%s289_s5 + $0x18] sm:$0xff] %vm169_vm3, %v195_v35 }

// kernel: _lambda_.24
= control target key start
LH: loop header
LB: loop body
LE: loop exit
PB: predicated region body
PF: predicated region fallthrough
CT: control target
= control target key end

     0   :  { %vm25_vm0 = vcmask 392192   ;;  %v287_v34 = vmov 0   ;;  %vm234_vm1 = vcmask 1043456   ;;  %vm235_vm2 = vcmask 523268   ;;  %s396_s0 = inlined_call_operand.vmem [shape: f32[32,48], index: 0, kind: input, shape index: {}]   ;;  %s397_s1 = inlined_call_operand.vmem [shape: bf16[48,192], index: 1, kind: input, shape index: {}]   ;;  %s398_s3 = inlined_call_operand.vmem [shape: f32[1,48], index: 3, kind: input, shape index: {}]   ;;  %s399_s4 = inlined_call_operand.vmem [shape: f32[1,48], index: 4, kind: input, shape index: {}]   ;;  %s400_s2 = inlined_call_operand.vmem [shape: f32[1,192], index: 2, kind: input, shape index: {}]   ;;  %s401_s5 = inlined_call_operand.vmem [shape: bf16[32,192], index: 5, kind: output, shape index: {}]  }
   0x1   :  { %v21_v0 = vld [vmem:[%s396_s0] sm:$0xff]  ;;  %v23_v1 = vld [vmem:[%s396_s0 + $0x10] sm:$0xff]  ;;  %v22_v2 = vld [vmem:[%s396_s0 + $0x8] sm:$0xff]  ;;  %189 = vmatprep.mubr.bf16.mxu0 %v287_v34  ;;  %199 = vmatprep.mubr.bf16.mxu1 %v287_v34 }
   0x2   :  { %v26_v3 = vsel %vm25_vm0, %v21_v0, 0.0  ;;  %v32_v4 = vsel %vm25_vm0, %v23_v1, 0.0  ;;  %v24_v5 = vld [vmem:[%s396_s0 + $0x18] sm:$0xff]  ;;  %v29_v6 = vsel %vm25_vm0, %v22_v2, 0.0  ;;  %v270_v28 = vld [vmem:[%s397_s1 + $0x4] ss:$8 sps:$4 sm:$0xff]   ;;  %vm372_vm3 = vmor %vm235_vm2, %vm234_vm1 }
   0x3   :  { %27 = vadd.xlane.f32.xlu0 %v26_v3  ;;  %33 = vadd.xlane.f32.xlu1 %v32_v4  ;;  %v35_v7 = vsel %vm25_vm0, %v24_v5, 0.0  ;;  %v272_v29 = vld [vmem:[%s397_s1] ss:$8 sps:$4 sm:$0xff]   ;;  %v273_v30 = vld [vmem:[%s397_s1 + $0x14] ss:$8 sps:$4 sm:$0xff]   ;;  %v111_v3 = vlaneseq }
   0x4   :  { %157 = vmatprep.subr.bf16.mxu0 %v270_v28  ;;  %263 = vmatprep.subr.bf16.mxu1 %v270_v28  ;;  %v275_v31 = vld [vmem:[%s397_s1 + $0x10] ss:$8 sps:$4 sm:$0xff]   ;;  %v276_v32 = vld [vmem:[%s397_s1 + $0x24] ss:$8 sps:$4 sm:$0xff]   ;;  %v278_v33 = vld [vmem:[%s397_s1 + $0x20] ss:$8 sps:$4 sm:$0xff]  }
   0x5   :  { %158 = vmatpush1.bf16.msra.mxu0 %v272_v29  ;;  %266 = vmatpush1.bf16.msra.mxu1 %v272_v29  ;;  %v245_v49 = vld [vmem:[%s398_s3] ss:$0 sm:$0xff]  ;;  %v112_v4 = vshrl.u32 %v111_v3, 7 }
   0x6   :  { %159 = vmatprep.subr.bf16.mxu0 %v273_v30  ;;  %264 = vmatprep.subr.bf16.mxu1 %v273_v30  ;;  %v246_v55 = vld [vmem:[%s399_s4] ss:$0 sm:$0xff] }
   0x7   :  { %30 = vadd.xlane.f32.xlu0 %v29_v6  ;;  %36 = vadd.xlane.f32.xlu1 %v35_v7  ;;  %v109_v6 = vld [vmem:[%s400_s2] sm:$0x3]  ;;  %v117_v7 = vsub.s32 1, %v112_v4 }
   0x9   :  { %160 = vmatpush1.bf16.msra.mxu0 %v275_v31  ;;  %267 = vmatpush1.bf16.msra.mxu1 %v275_v31 }
   0xa   :  { %161 = vmatprep.subr.bf16.mxu0 %v276_v32  ;;  %265 = vmatprep.subr.bf16.mxu1 %v276_v32 }
   0xd   :  { %162 = vmatpush1.bf16.msra.mxu0 %v278_v33  ;;  %268 = vmatpush1.bf16.msra.mxu1 %v278_v33 }
  0x90   :  { %v28_v8 = vpop.xlane.xlu0 %27  ;;  %v34_v9 = vpop.xlane.xlu1 %33 }
  0x91   :  { %v39_v10 = vmul.f32 0.020833334, %v28_v8  ;;  %v41_v11 = vmul.f32 0.020833334, %v34_v9  ;;  %v118_v9 = vrot.slane %v109_v6, %v117_v7 }
  0x93   :  { %v43_v12 = vsub.f32 %v21_v0, %v39_v10  ;;  %v334_v13 = vsub.f32 %v23_v1, %v41_v11 }
  0x94   :  { %v31_v14 = vpop.xlane.xlu0 %30  ;;  %v37_v15 = vpop.xlane.xlu1 %36 }
  0x95   :  { %v40_v16 = vmul.f32 0.020833334, %v31_v14  ;;  %v42_v17 = vmul.f32 0.020833334, %v37_v15  ;;  %v47_v18 = vmul.f32 %v43_v12, %v43_v12  ;;  %v49_v19 = vmul.f32 %v334_v13, %v334_v13 }
  0x97   :  { %v44_v20 = vsub.f32 %v22_v2, %v40_v16  ;;  %v46_v21 = vsub.f32 %v24_v5, %v42_v17  ;;  %v51_v22 = vsel %vm25_vm0, %v47_v18, 0.0  ;;  %v57_v23 = vsel %vm25_vm0, %v49_v19, 0.0 }
  0x98   :  { %52 = vadd.xlane.f32.xlu0 %v51_v22  ;;  %v113_v5 = vsub.s32 0, %v112_v4 }
  0x99   :  { %v48_v24 = vmul.f32 %v44_v20, %v44_v20  ;;  %v50_v25 = vmul.f32 %v46_v21, %v46_v21 }
  0x9a   :  { %v114_v8 = vrot.slane %v109_v6, %v113_v5 }
  0x9b   :  { %v54_v26 = vsel %vm25_vm0, %v48_v24, 0.0  ;;  %v60_v27 = vsel %vm25_vm0, %v50_v25, 0.0 }
  0x9c   :  { %58 = vadd.xlane.f32.xlu0 %v57_v23  ;;  %55 = vadd.xlane.f32.xlu1 %v54_v26 }
  0xa0   :  { %61 = vadd.xlane.f32.xlu1 %v60_v27 }
 0x125   :  { %v53_v35 = vpop.xlane.xlu0 %52 }
 0x126   :  { %v63_v36 = vmul.f32 0.020833334, %v53_v35 }
 0x128   :  { %v67_v37 = vadd.f32 1e-05, %v63_v36 }
 0x129   :  { %v56_v38 = vpop.xlane.xlu1 %55  ;;  %v59_v39 = vpop.xlane.xlu0 %58 }
 0x12a   :  { %279 = vrsqrt.f32 %v67_v37  ;;  %v64_v40 = vmul.f32 0.020833334, %v56_v38  ;;  %v65_v41 = vmul.f32 0.020833334, %v59_v39 }
 0x12c   :  { %v68_v42 = vadd.f32 1e-05, %v64_v40  ;;  %v69_v43 = vadd.f32 1e-05, %v65_v41 }
 0x12d   :  { %v62_v44 = vpop.xlane.xlu1 %61 }
 0x12e   :  { %281 = vrsqrt.f32 %v68_v42  ;;  %v66_v45 = vmul.f32 0.020833334, %v62_v44 }
 0x12f   :  { %283 = vrsqrt.f32 %v69_v43 }
 0x130   :  { %v70_v46 = vadd.f32 1e-05, %v66_v45 }
 0x132   :  { %285 = vrsqrt.f32 %v70_v46 }
 0x134   :  { %v280_v47 = vpop.eup %279 }
 0x135   :  { %v75_v48 = vmul.f32 %v280_v47, %v43_v12 }
 0x137   :  { %v86_v53 = vmul.f32 %v245_v49, %v75_v48 }
 0x138   :  { %v282_v50 = vpop.eup %281 }
 0x139   :  { %v284_v51 = vpop.eup %283  ;;  %v76_v52 = vmul.f32 %v282_v50, %v44_v20  ;;  %v97_v59 = vadd.f32 %v246_v55, %v86_v53 }
 0x13a   :  { %v77_v54 = vmul.f32 %v284_v51, %v334_v13 }
 0x13b   :  { %v87_v56 = vmul.f32 %v245_v49, %v76_v52 }
 0x13c   :  { %v286_v57 = vpop.eup %285  ;;  %v88_v61 = vmul.f32 %v245_v49, %v77_v54 }
 0x13d   :  { %v78_v58 = vmul.f32 %v286_v57, %v46_v21  ;;  %v98_v60 = vadd.f32 %v246_v55, %v87_v56 }
 0x13e   :  { %v99_v0 = vadd.f32 %v246_v55, %v88_v61 }
 0x13f   :  { %v101_v62 = vpack.c.bf16 %v98_v60, %v97_v59  ;;  %v89_v63 = vmul.f32 %v245_v49, %v78_v58 }
 0x141   :  { %253 = vmatmul.mubr.msk.bf16.vlgmr.msra.gmra.mrb[0].mxu0 %vm25_vm0, %v101_v62  ;;  %v100_v1 = vadd.f32 %v246_v55, %v89_v63 }
 0x143   :  { %v102_v2 = vpack.c.bf16 %v100_v1, %v99_v0 }
 0x145   :  { %254 = vmatmul.mubr.msk.bf16.vlgmr.msra.gmra.mrb[0].mxu1 %vm25_vm0, %v102_v2 }
 0x214   :  { %v191_v10 = vpop.f32.mrb[0].mxu0 }
 0x215   :  { %v192_v11 = vadd.f32 %v191_v10, %v114_v8  ;;  %v193_v12 = vpop.f32.mrb[1].mxu0 }
 0x216   :  { %v194_v13 = vadd.f32 %v193_v12, %v118_v9  ;;  %v195_v14 = vpop.f32.mrb[2].mxu0 }
 0x217   :  { %v196_v16 = vadd.f32 %v195_v14, %v114_v8  ;;  %v197_v17 = vpop.f32.mrb[3].mxu0 }
 0x218   :  { %v259_v18 = vpack.c.bf16 %v194_v13, %v192_v11  ;;  %v198_v19 = vadd.f32 %v197_v17, %v118_v9  ;;  %v201_v20 = vpop.f32.mrb[0].mxu1 }
 0x219   :  { %v202_v21 = vadd.f32 %v201_v20, %v114_v8  ;;  %v203_v22 = vpop.f32.mrb[1].mxu1 }
 0x21a   :  { %237 = vst.msk [vmem:[%s401_s5] sm:$0xff] %vm372_vm3, %v259_v18  ;;  %v260_v23 = vpack.c.bf16 %v198_v19, %v196_v16  ;;  %v204_v24 = vadd.f32 %v203_v22, %v118_v9  ;;  %v205_v25 = vpop.f32.mrb[2].mxu1 }
 0x21b   :  { %v206_v26 = vadd.f32 %v205_v25, %v114_v8  ;;  %v207_v27 = vpop.f32.mrb[3].mxu1 }
 0x21c   :  { %238 = vst.msk [vmem:[%s401_s5 + $0x8] sm:$0xff] %vm372_vm3, %v260_v23  ;;  %v261_v28 = vpack.c.bf16 %v204_v24, %v202_v21  ;;  %v208_v29 = vadd.f32 %v207_v27, %v118_v9 }
 0x21e   :  { %239 = vst.msk [vmem:[%s401_s5 + $0x10] sm:$0xff] %vm372_vm3, %v261_v28  ;;  %v262_v30 = vpack.c.bf16 %v208_v29, %v206_v26 }
 0x220   :  { %240 = vst.msk [vmem:[%s401_s5 + $0x18] sm:$0xff] %vm372_vm3, %v262_v30 }

// kernel: _lambda_.25
= control target key start
LH: loop header
LB: loop body
LE: loop exit
PB: predicated region body
PF: predicated region fallthrough
CT: control target
= control target key end

     0   :  { %v273_v0 = vmov 0   ;;  %vm146_vm0 = vcmask 523264   ;;  %vm202_vm1 = vcmask 392192   ;;  %s391_s3 = inlined_call_operand.vmem [shape: f32[1,192], index: 3, kind: input, shape index: {}]   ;;  %s392_s4 = inlined_call_operand.vmem [shape: f32[1,192], index: 4, kind: input, shape index: {}]   ;;  %s393_s1 = inlined_call_operand.vmem [shape: bf16[192,48], index: 1, kind: input, shape index: {}]   ;;  %s394_s0 = inlined_call_operand.vmem [shape: bf16[32,192], index: 0, kind: input, shape index: {}]   ;;  %s395_s2 = inlined_call_operand.vmem [shape: f32[1,48], index: 2, kind: input, shape index: {}]   ;;  %s396_s5 = inlined_call_operand.vmem [shape: f32[32,48], index: 5, kind: output, shape index: {}]  }
   0x1   :  { %153 = vmatprep.subr.bf16.mxu0 %v273_v0  ;;  %230 = vmatprep.subr.bf16.mxu1 %v273_v0  ;;  %v255_v1 = vld [vmem:[%s393_s1] sm:$0xff]   ;;  %v256_v2 = vld [vmem:[%s393_s1 + $0x8] sm:$0xff]   ;;  %v257_v3 = vld [vmem:[%s393_s1 + $0x10] sm:$0xff]  }
   0x2   :  { %154 = vmatpush1.bf16.msra.mxu0 %v255_v1  ;;  %242 = vmatpush1.bf16.msra.mxu1 %v255_v1  ;;  %v258_v4 = vld [vmem:[%s393_s1 + $0x18] sm:$0xff]   ;;  %v269_v5 = vld [vmem:[%s394_s0 + $0x4] ss:$8 sps:$4 sm:$0xff]   ;;  %v261_v9 = vld [vmem:[%s393_s1 + $0x30] sm:$0xff]  }
   0x3   :  { %155 = vmatprep.subr.bf16.mxu0 %v273_v0  ;;  %231 = vmatprep.subr.bf16.mxu1 %v273_v0  ;;  %v259_v6 = vld [vmem:[%s393_s1 + $0x20] sm:$0xff]   ;;  %v272_v7 = vld [vmem:[%s394_s0 + $0x14] ss:$8 sps:$4 sm:$0xff]   ;;  %v260_v8 = vld [vmem:[%s393_s1 + $0x28] sm:$0xff]  }
   0x4   :  { %228 = vmatprep.mubr.msk.bf16.mxu0 %vm146_vm0, %v269_v5  ;;  %229 = vmatprep.mubr.msk.bf16.mxu1 %vm146_vm0, %v272_v7  ;;  %v262_v10 = vld [vmem:[%s393_s1 + $0x38] sm:$0xff]   ;;  %v263_v11 = vld [vmem:[%s393_s1 + $0x40] sm:$0xff]   ;;  %v264_v12 = vld [vmem:[%s393_s1 + $0x48] sm:$0xff]  }
   0x5   :  { %v265_v13 = vld [vmem:[%s393_s1 + $0x50] sm:$0xff]   ;;  %v266_v14 = vld [vmem:[%s393_s1 + $0x58] sm:$0xff]   ;;  %v267_v15 = vld [vmem:[%s394_s0] ss:$8 sps:$4 sm:$0xff]  }
   0x6   :  { %156 = vmatpush1.bf16.msra.mxu0 %v256_v2  ;;  %243 = vmatpush1.bf16.msra.mxu1 %v256_v2  ;;  %v270_v16 = vld [vmem:[%s394_s0 + $0x10] ss:$8 sps:$4 sm:$0xff]   ;;  %v211_v17 = vld [vmem:[%s395_s2] ss:$0 sm:$0xff] }
   0x7   :  { %157 = vmatprep.subr.bf16.mxu0 %v273_v0  ;;  %232 = vmatprep.subr.bf16.mxu1 %v273_v0 }
   0xa   :  { %158 = vmatpush1.bf16.msra.mxu0 %v257_v3  ;;  %244 = vmatpush1.bf16.msra.mxu1 %v257_v3 }
   0xb   :  { %159 = vmatprep.subr.bf16.mxu0 %v273_v0  ;;  %233 = vmatprep.subr.bf16.mxu1 %v273_v0 }
   0xe   :  { %160 = vmatpush1.bf16.msra.mxu0 %v258_v4  ;;  %245 = vmatpush1.bf16.msra.mxu1 %v258_v4 }
   0xf   :  { %161 = vmatprep.subr.bf16.mxu0 %v273_v0  ;;  %234 = vmatprep.subr.bf16.mxu1 %v273_v0 }
  0x12   :  { %162 = vmatpush1.bf16.msra.mxu0 %v259_v6  ;;  %246 = vmatpush1.bf16.msra.mxu1 %v259_v6 }
  0x13   :  { %163 = vmatprep.subr.bf16.mxu0 %v273_v0  ;;  %235 = vmatprep.subr.bf16.mxu1 %v273_v0 }
  0x16   :  { %164 = vmatpush1.bf16.msra.mxu0 %v260_v8  ;;  %247 = vmatpush1.bf16.msra.mxu1 %v260_v8 }
  0x17   :  { %165 = vmatprep.subr.bf16.mxu0 %v273_v0  ;;  %236 = vmatprep.subr.bf16.mxu1 %v273_v0 }
  0x1a   :  { %166 = vmatpush1.bf16.msra.mxu0 %v261_v9  ;;  %248 = vmatpush1.bf16.msra.mxu1 %v261_v9 }
  0x1b   :  { %167 = vmatprep.subr.bf16.mxu0 %v273_v0  ;;  %237 = vmatprep.subr.bf16.mxu1 %v273_v0 }
  0x1e   :  { %168 = vmatpush1.bf16.msra.mxu0 %v262_v10  ;;  %249 = vmatpush1.bf16.msra.mxu1 %v262_v10 }
  0x1f   :  { %169 = vmatprep.subr.bf16.mxu0 %v273_v0  ;;  %238 = vmatprep.subr.bf16.mxu1 %v273_v0 }
  0x22   :  { %170 = vmatpush1.bf16.msra.mxu0 %v263_v11  ;;  %250 = vmatpush1.bf16.msra.mxu1 %v263_v11 }
  0x23   :  { %171 = vmatprep.subr.bf16.mxu0 %v273_v0  ;;  %239 = vmatprep.subr.bf16.mxu1 %v273_v0 }
  0x26   :  { %172 = vmatpush1.bf16.msra.mxu0 %v264_v12  ;;  %251 = vmatpush1.bf16.msra.mxu1 %v264_v12 }
  0x27   :  { %173 = vmatprep.subr.bf16.mxu0 %v273_v0  ;;  %240 = vmatprep.subr.bf16.mxu1 %v273_v0 }
  0x2a   :  { %174 = vmatpush1.bf16.msra.mxu0 %v265_v13  ;;  %252 = vmatpush1.bf16.msra.mxu1 %v265_v13 }
  0x2b   :  { %175 = vmatprep.subr.bf16.mxu0 %v273_v0  ;;  %241 = vmatprep.subr.bf16.mxu1 %v273_v0 }
  0x2e   :  { %176 = vmatpush1.bf16.msra.mxu0 %v266_v14  ;;  %253 = vmatpush1.bf16.msra.mxu1 %v266_v14 }
  0x31   :  { %186 = vmatmul.mubr.bf16.vlgmr.msra.gmra.mrb[0].mxu0 %v267_v15  ;;  %194 = vmatmul.mubr.bf16.vlgmr.msra.gmra.mrb[0].mxu1 %v270_v16 }
 0x104   :  { %v187_v18 = vpop.f32.mrb[0].mxu0  ;;  %v195_v19 = vpop.f32.mrb[0].mxu1 }
 0x105   :  { %v188_v20 = vadd.f32 %v211_v17, %v187_v18  ;;  %v196_v21 = vadd.f32 %v211_v17, %v195_v19  ;;  %v189_v22 = vpop.f32.mrb[1].mxu0  ;;  %v197_v23 = vpop.f32.mrb[1].mxu1 }
 0x106   :  { %v190_v24 = vpop.f32.mrb[2].mxu0  ;;  %v198_v25 = vpop.f32.mrb[2].mxu1 }
 0x107   :  { %203 = vst.msk [vmem:[%s396_s5] sm:$0xff] %vm202_vm1, %v188_v20  ;;  %205 = vst.msk [vmem:[%s396_s5 + $0x10] sm:$0xff] %vm202_vm1, %v196_v21  ;;  %v191_v26 = vadd.f32 %v211_v17, %v190_v24  ;;  %v199_v27 = vadd.f32 %v211_v17, %v198_v25  ;;  %v192_v28 = vpop.f32.mrb[3].mxu0  ;;  %v200_v29 = vpop.f32.mrb[3].mxu1 }
 0x109   :  { %204 = vst.msk [vmem:[%s396_s5 + $0x8] sm:$0xff] %vm202_vm1, %v191_v26  ;;  %206 = vst.msk [vmem:[%s396_s5 + $0x18] sm:$0xff] %vm202_vm1, %v199_v27 }

// kernel: _lambda_.23
= control target key start
LH: loop header
LB: loop body
LE: loop exit
PB: predicated region body
PF: predicated region fallthrough
CT: control target
= control target key end

     0   :  { %s2572_s30 = smov 0   ;;  %s3117_s0 = inlined_call_operand.vmem [shape: bf16[2,16,48], index: 0, kind: input, shape index: {}]   ;;  %s3118_s1 = inlined_call_operand.vmem [shape: bf16[2,1,48], index: 1, kind: input, shape index: {}]   ;;  %s3119_s2 = inlined_call_operand.vmem [shape: bf16[2,144,48], index: 2, kind: input, shape index: {}]   ;;  %s3120_s3 = inlined_call_operand.vmem [shape: bf16[2,144,48], index: 3, kind: input, shape index: {}]   ;;  %s3121_s4 = inlined_call_operand.vmem [shape: f32[9,1,6], index: 4, kind: input, shape index: {}]   ;;  %s3122_s5 = inlined_call_operand.vmem [shape: bf16[48,6], index: 5, kind: input, shape index: {}]   ;;  %s3123_s6 = inlined_call_operand.vmem [shape: bf16[6,48], index: 6, kind: input, shape index: {}]   ;;  %s3124_s7 = inlined_call_operand.vmem [shape: bf16[48,48], index: 7, kind: input, shape index: {}]   ;;  %s3125_s8 = inlined_call_operand.vmem [shape: f32[1,48], index: 8, kind: input, shape index: {}]   ;;  %s3126_s9 = inlined_call_operand.vmem [shape: f32[2,16,48], index: 9, kind: output, shape index: {}]  }
   0x1 LB: > { %s1959_s10 = sadd.s32 4294967295, %s2518_s30   ;;  %p1963_p0 = scmp.ge.s32.totalorder %s2518_s30, 1  ;;  %s2518_s30 = sphi %s2572_s30, %s19_s30  }
   0x2   : > { %p315_p1 = scmp.lt.s32.totalorder %s2518_s30, 3 }
   0x4   : > { %p316_p2 = pnand %p1963_p0, %p315_p1 }
   0x5   : > { %v2583_v0 = vld [vmem:[%s3122_s5] sm:$0xff] (!%p316_p2)   ;;  %v2520_v1 = vmov (!%p316_p2), 0.0   ;;  %v2591_v2 = vld [vmem:[%s3122_s5 + $0x8] sm:$0xff] (!%p316_p2)   ;;  %vm2521_vm0 = vmmov (!%p316_p2), 0   ;;  %p364_p3 = scmp.lt.s32.totalorder (!%p316_p2), %s1959_s10, 1  ;;  %v2604_v3 = vld [vmem:[%s3122_s5 + $0x10] sm:$0xff] (!%p316_p2)  }
   0x6   : > { %319 = sbr.rel (%p316_p2) target bundleno = 1524 (0x5f4), region = 56  ;;  %2175 = vmatprep.subr.bf16.mxu0 (!%p316_p2), %v2520_v1  ;;  %2185 = vmatprep.subr.bf16.mxu1 (!%p316_p2), %v2520_v1  ;;  %vm420_vm1 = vcmask (!%p316_p2), 392192   ;;  %v394_v10 = vld [vmem:[%s3123_s6] sm:$0x7] (!%p316_p2)  ;;  %vm490_vm2 = vcmask (!%p316_p2), 1042432   ;;  %vm486_vm7 = vcmask (!%p316_p2), 48128  }
   0x7   : > { %2176 = vmatpush3.bf16.msra.mxu0 (!%p316_p2), %v2583_v0  ;;  %2181 = vmatprep.mubr.msk.bf16.mxu0 (!%p316_p2), %vm2521_vm0, %v2520_v1  ;;  %v2627_v11 = vsel (!%p316_p2), %vm490_vm2, %v394_v10, 0 }
   0x8   : > { %2177 = vmatprep.subr.bf16.mxu0 (!%p316_p2), %v2520_v1  ;;  %2187 = vmatprep.mubr.msk.bf16.mxu1 (!%p316_p2), %vm2521_vm0, %v2520_v1 }
   0x9   : > { %2186 = vmatpush3.bf16.msra.mxu1 (!%p316_p2), %v2627_v11 }
   0xa   : > { %2191 = vmatprep.subr.bf16.mxu1 (!%p316_p2), %v2520_v1 }
   0xb   : > { %2178 = vmatpush3.bf16.msra.mxu0 (!%p316_p2), %v2591_v2 }
   0xc   : > { %2179 = vmatprep.subr.bf16.mxu0 (!%p316_p2), %v2520_v1 }
   0xd   : > { %s3128_s10 = smov (!%p364_p3, %s1959_s10), 1 }
   0xe   : > { %s2027_s17 = sshll.u32 %s3128_s10, 3  ;;  %s2361_s23 = smul.u32 72, %s3128_s10 }
   0xf   : > { %s368_s20 = scalar_lea.vmem %s3117_s0, %s2027_s17  ;;  %2180 = vmatpush3.bf16.msra.mxu0 %v2604_v3  ;;  %s371_s29 = scalar_lea.vmem %s3118_s1, %s3128_s10 }
  0x10   : > { %v2030_v4 = vld [vmem:[%s368_s20] sm:$0xff]   ;;  %2233 = vmatprep.subr.bf16.mxu0 %v2520_v1  ;;  %s2639_s26 = scalar_lea.vmem %s3119_s2, %s2361_s23  ;;  %s3075_s19 = scalar_lea.vmem %s3120_s3, %s2361_s23 }
  0x11   : > { %v2611_v5 = vunpack.c.l.bf16 %v2030_v4  ;;  %v2613_v6 = vunpack.c.h.bf16 %v2030_v4  ;;  %v2034_v30 = vld [vmem:[%s2639_s26] sm:$0xff]   ;;  %v2105_v36 = vld [vmem:[%s2639_s26 + $0x8] sm:$0xff]   ;;  %v2106_v42 = vld [vmem:[%s2639_s26 + $0x10] sm:$0xff]   ;;  %s2028_s23 = sshll.u32 %s3128_s10, 4 }
  0x12   : > { %v2643_v32 = vunpack.c.l.bf16 %v2034_v30  ;;  %v2645_v33 = vunpack.c.h.bf16 %v2034_v30  ;;  %v2658_v38 = vunpack.c.l.bf16 %v2105_v36  ;;  %v2660_v39 = vunpack.c.h.bf16 %v2105_v36  ;;  %v2107_v48 = vld [vmem:[%s2639_s26 + $0x18] sm:$0xff]   ;;  %v2108_v54 = vld [vmem:[%s2639_s26 + $0x20] sm:$0xff]   ;;  %v2109_v60 = vld [vmem:[%s2639_s26 + $0x28] sm:$0xff]   ;;  %s386_s25 = scalar_lea.vmem %s3126_s9, %s2028_s23 }
  0x13   : > { %v399_v7 = vmul.f32 %v2611_v5, %v2611_v5  ;;  %v400_v8 = vmul.f32 %v2613_v6, %v2613_v6  ;;  %v2674_v44 = vunpack.c.l.bf16 %v2106_v42  ;;  %v2676_v45 = vunpack.c.h.bf16 %v2106_v42 }
  0x14   : > { %v583_v34 = vmul.f32 %v2643_v32, %v2643_v32  ;;  %v584_v35 = vmul.f32 %v2645_v33, %v2645_v33  ;;  %v585_v40 = vmul.f32 %v2658_v38, %v2658_v38  ;;  %v586_v41 = vmul.f32 %v2660_v39, %v2660_v39 }
  0x15   : > { %v401_v9 = vpack.c.bf16 %v400_v8, %v399_v7  ;;  %v587_v46 = vmul.f32 %v2674_v44, %v2674_v44  ;;  %v588_v47 = vmul.f32 %v2676_v45, %v2676_v45  ;;  %v2690_v50 = vunpack.c.l.bf16 %v2107_v48 }
  0x16   : > { %v601_v37 = vpack.c.bf16 %v584_v35, %v583_v34  ;;  %v602_v43 = vpack.c.bf16 %v586_v41, %v585_v40  ;;  %v2692_v51 = vunpack.c.h.bf16 %v2107_v48  ;;  %v2702_v56 = vunpack.c.l.bf16 %v2108_v54 }
  0x17   : > { %2182 = vmatmul.mubr.msk.bf16.vlgmr.msra.gmra.mrb[0].mxu0 %vm420_vm1, %v401_v9  ;;  %v603_v49 = vpack.c.bf16 %v588_v47, %v587_v46  ;;  %v589_v52 = vmul.f32 %v2690_v50, %v2690_v50  ;;  %v2704_v57 = vunpack.c.h.bf16 %v2108_v54  ;;  %v2714_v62 = vunpack.c.l.bf16 %v2109_v60 }
  0x18   : > { %2235 = vmatprep.mubr.msk.bf16.mxu0 %vm2521_vm0, %v2520_v1  ;;  %2234 = vmatpush3.bf16.msra.mxu0 %v2627_v11  ;;  %v590_v53 = vmul.f32 %v2692_v51, %v2692_v51  ;;  %v591_v58 = vmul.f32 %v2702_v56, %v2702_v56  ;;  %v2716_v63 = vunpack.c.h.bf16 %v2109_v60 }
  0x19   : > { %2313 = vmatprep.subr.bf16.mxu0 %v2520_v1  ;;  %v592_v59 = vmul.f32 %v2704_v57, %v2704_v57 }
  0x1a   : > { %v604_v55 = vpack.c.bf16 %v590_v53, %v589_v52 }
  0x1b   : > { %v605_v61 = vpack.c.bf16 %v592_v59, %v591_v58 }
  0xea   : > { %v458_v12 = vpop.f32.mrb[0].mxu0 }
  0xeb   : > { %2378 = vrsqrt.f32 %v458_v12  ;;  %v2183_v13 = vpop.f32.mrb[1].mxu0  ;;  %vm467_vm3 = vcmp.eq.f32.partialorder %v458_v12, inf  ;;  %v470_v19 = vand.u32 2147483648, %v458_v12  ;;  %vm469_vm4 = vcmp.eq.f32.partialorder %v458_v12, 0.0 }
  0xec   : > { %v461_v14 = vpop.f32.mrb[2].mxu0 }
  0xed   : > { %2380 = vrsqrt.f32 %v461_v14  ;;  %v2184_v15 = vpop.f32.mrb[3].mxu0  ;;  %vm474_vm5 = vcmp.eq.f32.partialorder %v461_v14, inf  ;;  %v477_v23 = vand.u32 2147483648, %v461_v14  ;;  %vm476_vm6 = vcmp.eq.f32.partialorder %v461_v14, 0.0 }
  0xf5   : > { %v2379_v16 = vpop.eup %2378 }
  0xf6   : > { %v466_v17 = vmul.f32 %v2379_v16, %v458_v12 }
  0xf7   : > { %v2381_v18 = vpop.eup %2380 }
  0xf8   : > { %v468_v20 = vsel %vm467_vm3, %v458_v12, %v466_v17  ;;  %v473_v21 = vmul.f32 %v2381_v18, %v461_v14  ;;  %v2111_v12 = vld [vmem:[%s2639_s26 + $0x38] sm:$0xff]   ;;  %v2112_v18 = vld [vmem:[%s2639_s26 + $0x40] sm:$0xff]  }
  0xf9   : > { %v471_v22 = vsel %vm469_vm4, %v470_v19, %v468_v20  ;;  %v2740_v15 = vunpack.c.h.bf16 %v2111_v12  ;;  %v2750_v20 = vunpack.c.l.bf16 %v2112_v18 }
  0xfa   : > { %v479_v24 = vmax.f32 %v471_v22, 1e-12  ;;  %v475_v25 = vsel %vm474_vm5, %v461_v14, %v473_v21  ;;  %v2738_v14 = vunpack.c.l.bf16 %v2111_v12  ;;  %v2752_v21 = vunpack.c.h.bf16 %v2112_v18 }
  0xfb   : > { %v478_v26 = vsel %vm476_vm6, %v477_v23, %v475_v25  ;;  %v598_v17 = vmul.f32 %v2740_v15, %v2740_v15  ;;  %v599_v22 = vmul.f32 %v2750_v20, %v2750_v20 }
  0xfc   : > { %v480_v27 = vmax.f32 %v478_v26, 1e-12  ;;  %2382 = vrcp.f32 %v479_v24  ;;  %v597_v16 = vmul.f32 %v2738_v14, %v2738_v14  ;;  %v600_v23 = vmul.f32 %v2752_v21, %v2752_v21 }
  0xfe   : > { %2384 = vrcp.f32 %v480_v27  ;;  %v608_v19 = vpack.c.bf16 %v598_v17, %v597_v16  ;;  %v609_v24 = vpack.c.bf16 %v600_v23, %v599_v22 }
 0x106   : > { %v2383_v28 = vpop.eup %2382 }
 0x108   : > { %v2385_v29 = vpop.eup %2384 }
 0x109   : > { %v485_v31 = vpack.c.bf16 %v2385_v29, %v2383_v28 }
 0x10b   : > { %2188 = vmatmul.mubr.msk.bf16.vlgmr.msra.gmra.mrb[0].mxu1 %vm486_vm7, %v485_v31 }
 0x10c   : > { %2192 = vmatpush3.bf16.msra.mxu1 %v2583_v0  ;;  %2197 = vmatprep.mubr.msk.bf16.mxu1 %vm2521_vm0, %v2520_v1 }
 0x10d   : > { %2193 = vmatprep.subr.bf16.mxu1 %v2520_v1 }
 0x110   : > { %2194 = vmatpush3.bf16.msra.mxu1 %v2591_v2 }
 0x111   : > { %2195 = vmatprep.subr.bf16.mxu1 %v2520_v1 }
 0x114   : > { %2196 = vmatpush3.bf16.msra.mxu1 %v2604_v3 }
 0x115   : > { %2271 = vmatprep.subr.bf16.mxu1 %v2520_v1 }
 0x117   : > { %2198 = vmatmul.mubr.msk.bf16.vlgmr.msra.gmra.mrb[4].mxu1 %vm420_vm1, %v601_v37 }
 0x118   : > { %2201 = vmatprep.mubr.msk.bf16.mxu1 %vm2521_vm0, %v2520_v1  ;;  %2272 = vmatpush3.bf16.msra.mxu1 %v2583_v0  ;;  %v593_v0 = vmul.f32 %v2714_v62, %v2714_v62 }
 0x119   : > { %2273 = vmatprep.subr.bf16.mxu1 %v2520_v1 }
 0x11c   : > { %2274 = vmatpush3.bf16.msra.mxu1 %v2591_v2  ;;  %v594_v2 = vmul.f32 %v2716_v63, %v2716_v63 }
 0x11d   : > { %2275 = vmatprep.subr.bf16.mxu1 %v2520_v1 }
 0x11e   : > { %v606_v4 = vpack.c.bf16 %v594_v2, %v593_v0 }
 0x11f   : > { %2202 = vmatmul.mubr.msk.bf16.gmra.mrb[8].mxu1 %vm420_vm1, %v602_v43 }
 0x120   : > { %2205 = vmatprep.mubr.msk.bf16.mxu1 %vm2521_vm0, %v2520_v1  ;;  %2276 = vmatpush3.bf16.msra.mxu1 %v2604_v3  ;;  %v2110_v3 = vld [vmem:[%s2639_s26 + $0x30] sm:$0xff]  }
 0x121   : > { %2351 = vmatprep.subr.bf16.mxu1 %v2520_v1  ;;  %v2726_v7 = vunpack.c.l.bf16 %v2110_v3  ;;  %v2728_v8 = vunpack.c.h.bf16 %v2110_v3 }
 0x123   : > { %v595_v9 = vmul.f32 %v2726_v7, %v2726_v7  ;;  %v596_v10 = vmul.f32 %v2728_v8, %v2728_v8 }
 0x125   : > { %v607_v13 = vpack.c.bf16 %v596_v10, %v595_v9 }
 0x127   : > { %2206 = vmatmul.mubr.msk.bf16.gmra.mrb[12].mxu1 %vm420_vm1, %v603_v49 }
 0x128   : > { %2209 = vmatprep.mubr.msk.bf16.mxu1 %vm2521_vm0, %v2520_v1 }
 0x12f   : > { %2210 = vmatmul.mubr.msk.bf16.gmra.mrb[16].mxu1 %vm420_vm1, %v604_v55 }
 0x130   : > { %2213 = vmatprep.mubr.msk.bf16.mxu1 %vm2521_vm0, %v2520_v1 }
 0x137   : > { %2214 = vmatmul.mubr.msk.bf16.gmra.mrb[20].mxu1 %vm420_vm1, %v605_v61 }
 0x138   : > { %2217 = vmatprep.mubr.msk.bf16.mxu1 %vm2521_vm0, %v2520_v1 }
 0x13f   : > { %2218 = vmatmul.mubr.msk.bf16.gmra.mrb[24].mxu1 %vm420_vm1, %v606_v4 }
 0x140   : > { %2221 = vmatprep.mubr.msk.bf16.mxu1 %vm2521_vm0, %v2520_v1 }
 0x147   : > { %2222 = vmatmul.mubr.msk.bf16.gmra.mrb[28].mxu1 %vm420_vm1, %v607_v13 }
 0x148   : > { %2225 = vmatprep.mubr.msk.bf16.mxu1 %vm2521_vm0, %v2520_v1 }
 0x14f   : > { %2226 = vmatmul.mubr.msk.bf16.gmra.mrb[32].mxu1 %vm420_vm1, %v608_v19 }
 0x150   : > { %2229 = vmatprep.mubr.msk.bf16.mxu1 %vm2521_vm0, %v2520_v1 }
 0x157   : > { %2230 = vmatmul.mubr.msk.bf16.gmra.mrb[36].mxu1 %vm420_vm1, %v609_v24 }
 0x158   : > { %2277 = vmatprep.mubr.msk.bf16.mxu1 %vm2521_vm0, %v2520_v1 }
 0x1de   : > { %v2764_v25 = vpop.f32.mrb[0].mxu1 }
 0x1df   : > { %v2189_v26 = vpop.f32.mrb[1].mxu1 }
 0x1e0   : > { %v2766_v27 = vpop.f32.mrb[2].mxu1 }
 0x1e1   : > { %v2190_v28 = vpop.f32.mrb[3].mxu1 }
 0x1ea   : > { %v671_v29 = vpop.f32.mrb[4].mxu1 }
 0x1eb   : > { %2386 = vrsqrt.f32 %v671_v29  ;;  %v2199_v30 = vpop.f32.mrb[5].mxu1  ;;  %vm744_vm8 = vcmp.eq.f32.partialorder %v671_v29, inf  ;;  %v747_v46 = vand.u32 2147483648, %v671_v29  ;;  %vm746_vm9 = vcmp.eq.f32.partialorder %v671_v29, 0.0 }
 0x1ec   : > { %v674_v31 = vpop.f32.mrb[6].mxu1 }
 0x1ed   : > { %2388 = vrsqrt.f32 %v674_v31  ;;  %v2200_v34 = vpop.f32.mrb[7].mxu1  ;;  %vm751_vm10 = vcmp.eq.f32.partialorder %v674_v31, inf  ;;  %v754_v52 = vand.u32 2147483648, %v674_v31  ;;  %vm753_vm11 = vcmp.eq.f32.partialorder %v674_v31, 0.0 }
 0x1f2   : > { %v679_v35 = vpop.f32.mrb[8].mxu1 }
 0x1f3   : > { %2390 = vrsqrt.f32 %v679_v35  ;;  %v2203_v36 = vpop.f32.mrb[9].mxu1  ;;  %vm758_vm12 = vcmp.eq.f32.partialorder %v679_v35, inf  ;;  %v761_v9 = vand.u32 2147483648, %v679_v35  ;;  %vm760_vm13 = vcmp.eq.f32.partialorder %v679_v35, 0.0 }
 0x1f4   : > { %v682_v37 = vpop.f32.mrb[10].mxu1 }
 0x1f5   : > { %v2387_v40 = vpop.eup %2386  ;;  %2392 = vrsqrt.f32 %v682_v37  ;;  %v2204_v41 = vpop.f32.mrb[11].mxu1  ;;  %vm765_vm14 = vcmp.eq.f32.partialorder %v682_v37, inf  ;;  %v768_v16 = vand.u32 2147483648, %v682_v37  ;;  %vm767_vm15 = vcmp.eq.f32.partialorder %v682_v37, 0.0 }
 0x1f6   : > { %v743_v42 = vmul.f32 %v2387_v40, %v671_v29 }
 0x1f7   : > { %v2389_v43 = vpop.eup %2388 }
 0x1f8   : > { %v745_v47 = vsel %vm744_vm8, %v671_v29, %v743_v42  ;;  %v750_v48 = vmul.f32 %v2389_v43, %v674_v31 }
 0x1f9   : > { %v748_v49 = vsel %vm746_vm9, %v747_v46, %v745_v47 }
 0x1fa   : > { %v868_v53 = vmax.f32 %v748_v49, 1e-12  ;;  %v752_v54 = vsel %vm751_vm10, %v674_v31, %v750_v48  ;;  %v687_v55 = vpop.f32.mrb[12].mxu1 }
 0x1fb   : > { %v755_v58 = vsel %vm753_vm11, %v754_v52, %v752_v54  ;;  %2394 = vrsqrt.f32 %v687_v55  ;;  %v2207_v59 = vpop.f32.mrb[13].mxu1  ;;  %vm772_vm2 = vcmp.eq.f32.partialorder %v687_v55, inf  ;;  %vm774_vm3 = vcmp.eq.f32.partialorder %v687_v55, 0.0 }
 0x1fc   : > { %2396 = vrcp.f32 %v868_v53  ;;  %v869_v60 = vmax.f32 %v755_v58, 1e-12  ;;  %v690_v61 = vpop.f32.mrb[14].mxu1 }
 0x1fd   : > { %v2391_v0 = vpop.eup %2390  ;;  %2398 = vrsqrt.f32 %v690_v61  ;;  %v2208_v2 = vpop.f32.mrb[15].mxu1  ;;  %vm779_vm4 = vcmp.eq.f32.partialorder %v690_v61, inf  ;;  %v782_v42 = vand.u32 2147483648, %v690_v61  ;;  %vm781_vm5 = vcmp.eq.f32.partialorder %v690_v61, 0.0 }
 0x1fe   : > { %2400 = vrcp.f32 %v869_v60  ;;  %v757_v3 = vmul.f32 %v2391_v0, %v679_v35 }
 0x1ff   : > { %v2393_v4 = vpop.eup %2392 }
 0x200   : > { %v759_v10 = vsel %vm758_vm12, %v679_v35, %v757_v3  ;;  %v764_v12 = vmul.f32 %v2393_v4, %v682_v37  ;;  %v775_v35 = vand.u32 2147483648, %v687_v55 }
 0x201   : > { %v762_v13 = vsel %vm760_vm13, %v761_v9, %v759_v10 }
 0x202   : > { %v870_v17 = vmax.f32 %v762_v13, 1e-12  ;;  %v766_v18 = vsel %vm765_vm14, %v682_v37, %v764_v12  ;;  %v695_v19 = vpop.f32.mrb[16].mxu1 }
 0x203   : > { %v769_v22 = vsel %vm767_vm15, %v768_v16, %v766_v18  ;;  %2402 = vrsqrt.f32 %v695_v19  ;;  %v2211_v23 = vpop.f32.mrb[17].mxu1  ;;  %vm786_vm6 = vcmp.eq.f32.partialorder %v695_v19, inf  ;;  %v789_v0 = vand.u32 2147483648, %v695_v19 }
 0x204   : > { %2404 = vrcp.f32 %v870_v17  ;;  %v871_v24 = vmax.f32 %v769_v22, 1e-12  ;;  %v698_v26 = vpop.f32.mrb[18].mxu1  ;;  %vm788_vm8 = vcmp.eq.f32.partialorder %v695_v19, 0.0 }
 0x205   : > { %v2395_v28 = vpop.eup %2394  ;;  %2406 = vrsqrt.f32 %v698_v26  ;;  %v2212_v29 = vpop.f32.mrb[19].mxu1  ;;  %vm793_vm9 = vcmp.eq.f32.partialorder %v698_v26, inf  ;;  %v796_v10 = vand.u32 2147483648, %v698_v26  ;;  %vm795_vm10 = vcmp.eq.f32.partialorder %v698_v26, 0.0 }
 0x206   : > { %v2397_v30 = vpop.eup %2396  ;;  %2408 = vrcp.f32 %v871_v24  ;;  %v771_v31 = vmul.f32 %v2395_v28, %v687_v55 }
 0x207   : > { %v2399_v34 = vpop.eup %2398 }
 0x208   : > { %v2401_v36 = vpop.eup %2400  ;;  %v773_v40 = vsel %vm772_vm2, %v687_v55, %v771_v31  ;;  %v778_v37 = vmul.f32 %v2399_v34, %v690_v61 }
 0x209   : > { %v776_v41 = vsel %vm774_vm3, %v775_v35, %v773_v40  ;;  %v922_v43 = vpack.c.bf16 %v2401_v36, %v2397_v30 }
 0x20a   : > { %v872_v46 = vmax.f32 %v776_v41, 1e-12  ;;  %v780_v47 = vsel %vm779_vm4, %v690_v61, %v778_v37  ;;  %v703_v48 = vpop.f32.mrb[20].mxu1 }
 0x20b   : > { %v783_v49 = vsel %vm781_vm5, %v782_v42, %v780_v47  ;;  %2410 = vrsqrt.f32 %v703_v48  ;;  %v2215_v52 = vpop.f32.mrb[21].mxu1  ;;  %2236 = vmatmul.mubr.msk.bf16.vlgmr.msra.gmra.mrb[4].mxu0 %vm486_vm7, %v922_v43  ;;  %vm800_vm11 = vcmp.eq.f32.partialorder %v703_v48, inf  ;;  %vm802_vm12 = vcmp.eq.f32.partialorder %v703_v48, 0.0 }
 0x20c   : > { %2412 = vrcp.f32 %v872_v46  ;;  %v873_v53 = vmax.f32 %v783_v49, 1e-12  ;;  %v706_v54 = vpop.f32.mrb[22].mxu1  ;;  %2239 = vmatprep.mubr.msk.bf16.mxu0 %vm2521_vm0, %v2520_v1  ;;  %2314 = vmatpush3.bf16.msra.mxu0 %v2627_v11 }
 0x20d   : > { %v2403_v55 = vpop.eup %2402  ;;  %2414 = vrsqrt.f32 %v706_v54  ;;  %v2216_v58 = vpop.f32.mrb[23].mxu1  ;;  %vm807_vm13 = vcmp.eq.f32.partialorder %v706_v54, inf  ;;  %v810_v40 = vand.u32 2147483648, %v706_v54  ;;  %vm809_vm14 = vcmp.eq.f32.partialorder %v706_v54, 0.0 }
 0x20e   : > { %v2405_v59 = vpop.eup %2404  ;;  %2416 = vrcp.f32 %v873_v53  ;;  %v785_v60 = vmul.f32 %v2403_v55, %v695_v19 }
 0x20f   : > { %v2407_v61 = vpop.eup %2406 }
 0x210   : > { %v2409_v2 = vpop.eup %2408  ;;  %v787_v3 = vsel %vm786_vm6, %v695_v19, %v785_v60  ;;  %v792_v4 = vmul.f32 %v2407_v61, %v698_v26 }
 0x211   : > { %v790_v9 = vsel %vm788_vm8, %v789_v0, %v787_v3  ;;  %v923_v12 = vpack.c.bf16 %v2409_v2, %v2405_v59 }
 0x212   : > { %v874_v13 = vmax.f32 %v790_v9, 1e-12  ;;  %v794_v16 = vsel %vm793_vm9, %v698_v26, %v792_v4  ;;  %v711_v11 = vpop.f32.mrb[24].mxu1  ;;  %v803_v26 = vand.u32 2147483648, %v703_v48 }
 0x213   : > { %v797_v17 = vsel %vm795_vm10, %v796_v10, %v794_v16  ;;  %2418 = vrsqrt.f32 %v711_v11  ;;  %v2219_v18 = vpop.f32.mrb[25].mxu1  ;;  %2240 = vmatmul.mubr.msk.bf16.gmra.mrb[8].mxu0 %vm486_vm7, %v923_v12  ;;  %vm814_vm15 = vcmp.eq.f32.partialorder %v711_v11, inf  ;;  %vm816_vm2 = vcmp.eq.f32.partialorder %v711_v11, 0.0 }
 0x214   : > { %2420 = vrcp.f32 %v874_v13  ;;  %v875_v22 = vmax.f32 %v797_v17, 1e-12  ;;  %v714_v23 = vpop.f32.mrb[26].mxu1  ;;  %2243 = vmatprep.mubr.msk.bf16.mxu0 %vm2521_vm0, %v2520_v1 }
 0x215   : > { %v2411_v19 = vpop.eup %2410  ;;  %2422 = vrsqrt.f32 %v714_v23  ;;  %v2220_v24 = vpop.f32.mrb[27].mxu1  ;;  %vm821_vm3 = vcmp.eq.f32.partialorder %v714_v23, inf  ;;  %v824_v3 = vand.u32 2147483648, %v714_v23  ;;  %vm823_vm4 = vcmp.eq.f32.partialorder %v714_v23, 0.0 }
 0x216   : > { %v2413_v28 = vpop.eup %2412  ;;  %2424 = vrcp.f32 %v875_v22  ;;  %v799_v29 = vmul.f32 %v2411_v19, %v703_v48 }
 0x217   : > { %v2415_v30 = vpop.eup %2414 }
 0x218   : > { %v2417_v31 = vpop.eup %2416  ;;  %v801_v34 = vsel %vm800_vm11, %v703_v48, %v799_v29  ;;  %v806_v35 = vmul.f32 %v2415_v30, %v706_v54 }
 0x219   : > { %v804_v36 = vsel %vm802_vm12, %v803_v26, %v801_v34  ;;  %v924_v37 = vpack.c.bf16 %v2417_v31, %v2413_v28 }
 0x21a   : > { %v876_v41 = vmax.f32 %v804_v36, 1e-12  ;;  %v808_v42 = vsel %vm807_vm13, %v706_v54, %v806_v35  ;;  %v719_v43 = vpop.f32.mrb[28].mxu1  ;;  %v817_v54 = vand.u32 2147483648, %v711_v11 }
 0x21b   : > { %v811_v46 = vsel %vm809_vm14, %v810_v40, %v808_v42  ;;  %2426 = vrsqrt.f32 %v719_v43  ;;  %v2223_v47 = vpop.f32.mrb[29].mxu1  ;;  %2244 = vmatmul.mubr.msk.bf16.gmra.mrb[12].mxu0 %vm486_vm7, %v924_v37  ;;  %vm828_vm5 = vcmp.eq.f32.partialorder %v719_v43, inf  ;;  %vm830_vm6 = vcmp.eq.f32.partialorder %v719_v43, 0.0 }
 0x21c   : > { %2428 = vrcp.f32 %v876_v41  ;;  %v877_v49 = vmax.f32 %v811_v46, 1e-12  ;;  %v722_v52 = vpop.f32.mrb[30].mxu1  ;;  %2247 = vmatprep.mubr.msk.bf16.mxu0 %vm2521_vm0, %v2520_v1 }
 0x21d   : > { %v2419_v48 = vpop.eup %2418  ;;  %2430 = vrsqrt.f32 %v722_v52  ;;  %v2224_v53 = vpop.f32.mrb[31].mxu1  ;;  %vm835_vm8 = vcmp.eq.f32.partialorder %v722_v52, inf  ;;  %v838_v34 = vand.u32 2147483648, %v722_v52  ;;  %vm837_vm9 = vcmp.eq.f32.partialorder %v722_v52, 0.0 }
 0x21e   : > { %v2421_v55 = vpop.eup %2420  ;;  %2432 = vrcp.f32 %v877_v49  ;;  %v813_v58 = vmul.f32 %v2419_v48, %v711_v11 }
 0x21f   : > { %v2423_v59 = vpop.eup %2422 }
 0x220   : > { %v2425_v60 = vpop.eup %2424  ;;  %v815_v61 = vsel %vm814_vm15, %v711_v11, %v813_v58  ;;  %v820_v0 = vmul.f32 %v2423_v59, %v714_v23 }
 0x221   : > { %v818_v2 = vsel %vm816_vm2, %v817_v54, %v815_v61  ;;  %v925_v4 = vpack.c.bf16 %v2425_v60, %v2421_v55 }
 0x222   : > { %v878_v9 = vmax.f32 %v818_v2, 1e-12  ;;  %v822_v10 = vsel %vm821_vm3, %v714_v23, %v820_v0  ;;  %v727_v12 = vpop.f32.mrb[32].mxu1  ;;  %v831_v23 = vand.u32 2147483648, %v719_v43 }
 0x223   : > { %v825_v13 = vsel %vm823_vm4, %v824_v3, %v822_v10  ;;  %2434 = vrsqrt.f32 %v727_v12  ;;  %v2227_v16 = vpop.f32.mrb[33].mxu1  ;;  %2248 = vmatmul.mubr.msk.bf16.gmra.mrb[16].mxu0 %vm486_vm7, %v925_v4  ;;  %vm842_vm10 = vcmp.eq.f32.partialorder %v727_v12, inf  ;;  %vm844_vm11 = vcmp.eq.f32.partialorder %v727_v12, 0.0 }
 0x224   : > { %2436 = vrcp.f32 %v878_v9  ;;  %v879_v17 = vmax.f32 %v825_v13, 1e-12  ;;  %v730_v18 = vpop.f32.mrb[34].mxu1  ;;  %2251 = vmatprep.mubr.msk.bf16.mxu0 %vm2521_vm0, %v2520_v1 }
 0x225   : > { %v2427_v11 = vpop.eup %2426  ;;  %2438 = vrsqrt.f32 %v730_v18  ;;  %v2228_v22 = vpop.f32.mrb[35].mxu1  ;;  %vm849_vm12 = vcmp.eq.f32.partialorder %v730_v18, inf  ;;  %v852_v61 = vand.u32 2147483648, %v730_v18  ;;  %vm851_vm13 = vcmp.eq.f32.partialorder %v730_v18, 0.0 }
 0x226   : > { %v2429_v19 = vpop.eup %2428  ;;  %2440 = vrcp.f32 %v879_v17  ;;  %v827_v24 = vmul.f32 %v2427_v11, %v719_v43 }
 0x227   : > { %v2431_v28 = vpop.eup %2430 }
 0x228   : > { %v2433_v29 = vpop.eup %2432  ;;  %v829_v30 = vsel %vm828_vm5, %v719_v43, %v827_v24  ;;  %v834_v26 = vmul.f32 %v2431_v28, %v722_v52 }
 0x229   : > { %v832_v31 = vsel %vm830_vm6, %v831_v23, %v829_v30  ;;  %v926_v35 = vpack.c.bf16 %v2433_v29, %v2429_v19 }
 0x22a   : > { %v880_v36 = vmax.f32 %v832_v31, 1e-12  ;;  %v836_v40 = vsel %vm835_vm8, %v722_v52, %v834_v26  ;;  %v735_v37 = vpop.f32.mrb[36].mxu1  ;;  %v845_v52 = vand.u32 2147483648, %v727_v12 }
 0x22b   : > { %v839_v41 = vsel %vm837_vm9, %v838_v34, %v836_v40  ;;  %2442 = vrsqrt.f32 %v735_v37  ;;  %v2231_v42 = vpop.f32.mrb[37].mxu1  ;;  %2252 = vmatmul.mubr.msk.bf16.gmra.mrb[20].mxu0 %vm486_vm7, %v926_v35  ;;  %vm856_vm14 = vcmp.eq.f32.partialorder %v735_v37, inf  ;;  %v859_v17 = vand.u32 2147483648, %v735_v37 }
 0x22c   : > { %2444 = vrcp.f32 %v880_v36  ;;  %v881_v46 = vmax.f32 %v839_v41, 1e-12  ;;  %v738_v47 = vpop.f32.mrb[38].mxu1  ;;  %2255 = vmatprep.mubr.msk.bf16.mxu0 %vm2521_vm0, %v2520_v1  ;;  %vm858_vm15 = vcmp.eq.f32.partialorder %v735_v37, 0.0  ;;  %v541_v41 = vlaneseq }
 0x22d   : > { %v2435_v43 = vpop.eup %2434  ;;  %2446 = vrsqrt.f32 %v738_v47  ;;  %v2232_v49 = vpop.f32.mrb[39].mxu1  ;;  %vm863_vm2 = vcmp.eq.f32.partialorder %v738_v47, inf  ;;  %v866_v24 = vand.u32 2147483648, %v738_v47  ;;  %vm865_vm3 = vcmp.eq.f32.partialorder %v738_v47, 0.0 }
 0x22e   : > { %v2437_v48 = vpop.eup %2436  ;;  %2448 = vrcp.f32 %v881_v46  ;;  %v841_v53 = vmul.f32 %v2435_v43, %v727_v12  ;;  %v542_v42 = vshrl.u32 %v541_v41, 7  ;;  %v539_v46 = vld [vmem:[%s371_s29] sm:$0x1] }
 0x22f   : > { %v2439_v55 = vpop.eup %2438  ;;  %v540_v43 = vunpack.c.l.bf16 %v539_v46 }
 0x230   : > { %v2441_v58 = vpop.eup %2440  ;;  %v843_v59 = vsel %vm842_vm10, %v727_v12, %v841_v53  ;;  %v848_v54 = vmul.f32 %v2439_v55, %v730_v18  ;;  %v543_v49 = vsub.s32 0, %v542_v42 }
 0x231   : > { %v846_v60 = vsel %vm844_vm11, %v845_v52, %v843_v59  ;;  %v927_v0 = vpack.c.bf16 %v2441_v58, %v2437_v48  ;;  %v536_v48 = vmul.f32 %v2613_v6, %v2766_v27 }
 0x232   : > { %v882_v2 = vmax.f32 %v846_v60, 1e-12  ;;  %v850_v3 = vsel %vm849_vm12, %v730_v18, %v848_v54  ;;  %v544_v55 = vrot.slane %v540_v43, %v543_v49 }
 0x233   : > { %v853_v4 = vsel %vm851_vm13, %v852_v61, %v850_v3  ;;  %2256 = vmatmul.mubr.msk.bf16.gmra.mrb[24].mxu0 %vm486_vm7, %v927_v0  ;;  %v538_v52 = vmul.f32 0.35355338, %v536_v48 }
 0x234   : > { %v883_v9 = vmax.f32 %v853_v4, 1e-12  ;;  %2259 = vmatprep.mubr.msk.bf16.mxu0 %vm2521_vm0, %v2520_v1  ;;  %2450 = vrcp.f32 %v882_v2 }
 0x235   : > { %v2443_v10 = vpop.eup %2442  ;;  %v2807_v0 = vadd.f32 %v544_v55, %v538_v52 }
 0x236   : > { %v2445_v13 = vpop.eup %2444  ;;  %2452 = vrcp.f32 %v883_v9  ;;  %v855_v12 = vmul.f32 %v2443_v10, %v735_v37 }
 0x237   : > { %v2447_v16 = vpop.eup %2446 }
 0x238   : > { %v2449_v11 = vpop.eup %2448  ;;  %v857_v22 = vsel %vm856_vm14, %v735_v37, %v855_v12  ;;  %v862_v19 = vmul.f32 %v2447_v16, %v738_v47 }
 0x239   : > { %v860_v18 = vsel %vm858_vm15, %v859_v17, %v857_v22  ;;  %v928_v28 = vpack.c.bf16 %v2449_v11, %v2445_v13 }
 0x23a   : > { %v884_v23 = vmax.f32 %v860_v18, 1e-12  ;;  %v864_v29 = vsel %vm863_vm2, %v738_v47, %v862_v19  ;;  %v535_v47 = vmul.f32 %v2611_v5, %v2764_v25 }
 0x23b   : > { %v867_v30 = vsel %vm865_vm3, %v866_v24, %v864_v29  ;;  %2260 = vmatmul.mubr.msk.bf16.gmra.mrb[28].mxu0 %vm486_vm7, %v928_v28 }
 0x23c   : > { %v885_v26 = vmax.f32 %v867_v30, 1e-12  ;;  %2263 = vmatprep.mubr.msk.bf16.mxu0 %vm2521_vm0, %v2520_v1  ;;  %2454 = vrcp.f32 %v884_v23  ;;  %v537_v53 = vmul.f32 0.35355338, %v535_v47 }
 0x23e   : > { %2456 = vrcp.f32 %v885_v26  ;;  %v2451_v31 = vpop.eup %2450  ;;  %v2804_v59 = vadd.f32 %v544_v55, %v537_v53 }
 0x240   : > { %v2453_v34 = vpop.eup %2452 }
 0x241   : > { %v929_v35 = vpack.c.bf16 %v2453_v34, %v2451_v31 }
 0x243   : > { %2264 = vmatmul.mubr.msk.bf16.gmra.mrb[32].mxu0 %vm486_vm7, %v929_v35 }
 0x244   : > { %2267 = vmatprep.mubr.msk.bf16.mxu0 %vm2521_vm0, %v2520_v1 }
 0x246   : > { %v2455_v36 = vpop.eup %2454 }
 0x248   : > { %v2457_v40 = vpop.eup %2456 }
 0x249   : > { %v930_v37 = vpack.c.bf16 %v2457_v40, %v2455_v36 }
 0x24b   : > { %2268 = vmatmul.mubr.msk.bf16.gmra.mrb[36].mxu0 %vm486_vm7, %v930_v37 }
 0x24c   : > { %2315 = vmatprep.mubr.msk.bf16.mxu0 %vm2521_vm0, %v2520_v1 }
 0x2de   : > { %v992_v58 = vpop.f32.mrb[4].mxu0 }
 0x2df   : > { %v1063_v54 = vmul.f32 %v2643_v32, %v992_v58  ;;  %v2237_v60 = vpop.f32.mrb[5].mxu0 }
 0x2e0   : > { %v995_v61 = vpop.f32.mrb[6].mxu0 }
 0x2e1   : > { %v1081_v2 = vmul.f32 %v1063_v54, %v2804_v59  ;;  %v1064_v5 = vmul.f32 %v2645_v33, %v995_v61  ;;  %v2238_v25 = vpop.f32.mrb[7].mxu0 }
 0x2e3   : > { %v1082_v3 = vmul.f32 %v1064_v5, %v2807_v0 }
 0x2e5   : > { %v1099_v6 = vpack.c.bf16 %v1082_v3, %v1081_v2 }
 0x2e6   : > { %v1000_v27 = vpop.f32.mrb[8].mxu0 }
 0x2e7   : > { %v1065_v4 = vmul.f32 %v2658_v38, %v1000_v27  ;;  %v2241_v9 = vpop.f32.mrb[9].mxu0  ;;  %2278 = vmatmul.mubr.msk.bf16.vlgmr.msra.gmra.mrb[40].mxu1 %vm420_vm1, %v1099_v6 }
 0x2e8   : > { %v1003_v10 = vpop.f32.mrb[10].mxu0  ;;  %2281 = vmatprep.mubr.msk.bf16.mxu1 %vm2521_vm0, %v2520_v1 }
 0x2e9   : > { %v1083_v32 = vmul.f32 %v1065_v4, %v2804_v59  ;;  %v1066_v13 = vmul.f32 %v2660_v39, %v1003_v10  ;;  %v2242_v12 = vpop.f32.mrb[11].mxu0 }
 0x2eb   : > { %v1084_v33 = vmul.f32 %v1066_v13, %v2807_v0 }
 0x2ed   : > { %v1100_v16 = vpack.c.bf16 %v1084_v33, %v1083_v32 }
 0x2ee   : > { %v1008_v17 = vpop.f32.mrb[12].mxu0 }
 0x2ef   : > { %v1067_v11 = vmul.f32 %v2674_v44, %v1008_v17  ;;  %v2245_v22 = vpop.f32.mrb[13].mxu0  ;;  %2282 = vmatmul.mubr.msk.bf16.gmra.mrb[44].mxu1 %vm420_vm1, %v1100_v16 }
 0x2f0   : > { %v1011_v38 = vpop.f32.mrb[14].mxu0  ;;  %2285 = vmatprep.mubr.msk.bf16.mxu1 %vm2521_vm0, %v2520_v1 }
 0x2f1   : > { %v1085_v19 = vmul.f32 %v1067_v11, %v2804_v59  ;;  %v1068_v18 = vmul.f32 %v2676_v45, %v1011_v38  ;;  %v2246_v24 = vpop.f32.mrb[15].mxu0 }
 0x2f3   : > { %v1086_v39 = vmul.f32 %v1068_v18, %v2807_v0 }
 0x2f5   : > { %v1101_v28 = vpack.c.bf16 %v1086_v39, %v1085_v19 }
 0x2f6   : > { %v1016_v23 = vpop.f32.mrb[16].mxu0 }
 0x2f7   : > { %v1069_v29 = vmul.f32 %v2690_v50, %v1016_v23  ;;  %v2249_v30 = vpop.f32.mrb[17].mxu0  ;;  %2286 = vmatmul.mubr.msk.bf16.gmra.mrb[48].mxu1 %vm420_vm1, %v1101_v28 }
 0x2f8   : > { %v1019_v44 = vpop.f32.mrb[18].mxu0  ;;  %2289 = vmatprep.mubr.msk.bf16.mxu1 %vm2521_vm0, %v2520_v1 }
 0x2f9   : > { %v1087_v26 = vmul.f32 %v1069_v29, %v2804_v59  ;;  %v1070_v31 = vmul.f32 %v2692_v51, %v1019_v44  ;;  %v2250_v34 = vpop.f32.mrb[19].mxu0  ;;  %v2003_v29 = vld [vmem:[%s3121_s4 + $0x1] ss:$0 sm:$0xff] }
 0x2fb   : > { %v1088_v45 = vmul.f32 %v1070_v31, %v2807_v0 }
 0x2fd   : > { %v1102_v35 = vpack.c.bf16 %v1088_v45, %v1087_v26 }
 0x2fe   : > { %v1024_v36 = vpop.f32.mrb[20].mxu0 }
 0x2ff   : > { %v1071_v40 = vmul.f32 %v2702_v56, %v1024_v36  ;;  %v2253_v37 = vpop.f32.mrb[21].mxu0  ;;  %2290 = vmatmul.mubr.msk.bf16.gmra.mrb[52].mxu1 %vm420_vm1, %v1102_v35 }
 0x300   : > { %v1027_v50 = vpop.f32.mrb[22].mxu0  ;;  %2293 = vmatprep.mubr.msk.bf16.mxu1 %vm2521_vm0, %v2520_v1 }
 0x301   : > { %v1089_v41 = vmul.f32 %v1071_v40, %v2804_v59  ;;  %v1072_v42 = vmul.f32 %v2704_v57, %v1027_v50  ;;  %v2254_v46 = vpop.f32.mrb[23].mxu0 }
 0x302   : > { %v2004_v46 = vld [vmem:[%s3121_s4 + $0x2] ss:$0 sm:$0xff] }
 0x303   : > { %v1090_v51 = vmul.f32 %v1072_v42, %v2807_v0 }
 0x305   : > { %v1103_v47 = vpack.c.bf16 %v1090_v51, %v1089_v41 }
 0x306   : > { %v1032_v43 = vpop.f32.mrb[24].mxu0 }
 0x307   : > { %v1073_v49 = vmul.f32 %v2714_v62, %v1032_v43  ;;  %v2257_v48 = vpop.f32.mrb[25].mxu0  ;;  %2294 = vmatmul.mubr.msk.bf16.gmra.mrb[56].mxu1 %vm420_vm1, %v1103_v47 }
 0x308   : > { %v1035_v56 = vpop.f32.mrb[26].mxu0  ;;  %2297 = vmatprep.mubr.msk.bf16.mxu1 %vm2521_vm0, %v2520_v1 }
 0x309   : > { %v1091_v53 = vmul.f32 %v1073_v49, %v2804_v59  ;;  %v1074_v55 = vmul.f32 %v2716_v63, %v1035_v56  ;;  %v2258_v52 = vpop.f32.mrb[27].mxu0 }
 0x30b   : > { %v1092_v57 = vmul.f32 %v1074_v55, %v2807_v0 }
 0x30d   : > { %v1104_v58 = vpack.c.bf16 %v1092_v57, %v1091_v53 }
 0x30e   : > { %v1040_v54 = vpop.f32.mrb[28].mxu0 }
 0x30f   : > { %v1075_v60 = vmul.f32 %v2726_v7, %v1040_v54  ;;  %v2261_v61 = vpop.f32.mrb[29].mxu0  ;;  %2298 = vmatmul.mubr.msk.bf16.gmra.mrb[60].mxu1 %vm420_vm1, %v1104_v58 }
 0x310   : > { %v1043_v62 = vpop.f32.mrb[30].mxu0  ;;  %2301 = vmatprep.mubr.msk.bf16.mxu1 %vm2521_vm0, %v2520_v1 }
 0x311   : > { %v1093_v2 = vmul.f32 %v1075_v60, %v2804_v59  ;;  %v1076_v5 = vmul.f32 %v2728_v8, %v1043_v62  ;;  %v2262_v25 = vpop.f32.mrb[31].mxu0 }
 0x313   : > { %v1094_v63 = vmul.f32 %v1076_v5, %v2807_v0 }
 0x315   : > { %v1105_v3 = vpack.c.bf16 %v1094_v63, %v1093_v2 }
 0x316   : > { %v1048_v6 = vpop.f32.mrb[32].mxu0 }
 0x317   : > { %v1077_v27 = vmul.f32 %v2738_v14, %v1048_v6  ;;  %v2265_v4 = vpop.f32.mrb[33].mxu0  ;;  %2302 = vmatmul.mubr.msk.bf16.gmra.mrb[64].mxu1 %vm420_vm1, %v1105_v3  ;;  %v2005_v3 = vld [vmem:[%s3121_s4 + $0x3] ss:$0 sm:$0xff] }
 0x318   : > { %v1051_v7 = vpop.f32.mrb[34].mxu0  ;;  %2305 = vmatprep.mubr.msk.bf16.mxu1 %vm2521_vm0, %v2520_v1 }
 0x319   : > { %v1095_v9 = vmul.f32 %v1077_v27, %v2804_v59  ;;  %v1078_v10 = vmul.f32 %v2740_v15, %v1051_v7  ;;  %v2266_v32 = vpop.f32.mrb[35].mxu0 }
 0x31b   : > { %v1096_v8 = vmul.f32 %v1078_v10, %v2807_v0 }
 0x31d   : > { %v1106_v13 = vpack.c.bf16 %v1096_v8, %v1095_v9 }
 0x31e   : > { %v1056_v12 = vpop.f32.mrb[36].mxu0 }
 0x31f   : > { %v1079_v33 = vmul.f32 %v2750_v20, %v1056_v12  ;;  %v2269_v16 = vpop.f32.mrb[37].mxu0  ;;  %2306 = vmatmul.mubr.msk.bf16.gmra.mrb[68].mxu1 %vm420_vm1, %v1106_v13  ;;  %v2002_v20 = vld [vmem:[%s3121_s4] ss:$0 sm:$0xff] }
 0x320   : > { %v1059_v14 = vpop.f32.mrb[38].mxu0  ;;  %2309 = vmatprep.mubr.msk.bf16.mxu1 %vm2521_vm0, %v2520_v1 }
 0x321   : > { %v1097_v17 = vmul.f32 %v1079_v33, %v2804_v59  ;;  %v1080_v11 = vmul.f32 %v2752_v21, %v1059_v14  ;;  %v2270_v22 = vpop.f32.mrb[39].mxu0 }
 0x323   : > { %v1098_v15 = vmul.f32 %v1080_v11, %v2807_v0 }
 0x325   : > { %v1107_v38 = vpack.c.bf16 %v1098_v15, %v1097_v17 }
 0x327   : > { %2310 = vmatmul.mubr.msk.bf16.gmra.mrb[72].mxu1 %vm420_vm1, %v1107_v38 }
 0x328   : > { %2357 = vmatprep.mubr.msk.bf16.mxu1 %vm2521_vm0, %v2520_v1 }
 0x3ba   : > { %v1169_v19 = vpop.f32.mrb[40].mxu1 }
 0x3bb   : > { %v1303_v18 = vadd.f32 %v2002_v20, %v1169_v19  ;;  %v2279_v24 = vpop.f32.mrb[41].mxu1  ;;  %v2006_v19 = vld [vmem:[%s3121_s4 + $0x4] ss:$0 sm:$0xff] }
 0x3bc   : > { %v1172_v39 = vpop.f32.mrb[42].mxu1 }
 0x3bd   : > { %v1304_v59 = vadd.f32 %v2002_v20, %v1172_v39  ;;  %v2280_v28 = vpop.f32.mrb[43].mxu1  ;;  %v1321_v21 = vsel %vm486_vm7, %v1303_v18, -inf }
 0x3bf   : > { %v1322_v0 = vsel %vm486_vm7, %v1304_v59, -inf }
 0x3c0   : > { %v1323_v23 = vmax.f32 %v1321_v21, %v1322_v0 }
 0x3c2   : > { %v1324_v30 = vrot.slane %v1323_v23, 4  ;;  %v1177_v44 = vpop.f32.mrb[44].mxu1 }
 0x3c3   : > { %v1305_v26 = vadd.f32 %v2003_v29, %v1177_v44  ;;  %v2283_v31 = vpop.f32.mrb[45].mxu1 }
 0x3c4   : > { %v1325_v34 = vmax.f32 %v1323_v23, %v1324_v30  ;;  %v1180_v45 = vpop.f32.mrb[46].mxu1 }
 0x3c5   : > { %v1306_v35 = vadd.f32 %v2003_v29, %v1180_v45  ;;  %v2284_v36 = vpop.f32.mrb[47].mxu1  ;;  %v1330_v37 = vsel %vm486_vm7, %v1305_v26, -inf }
 0x3c6   : > { %v1326_v40 = vrot.slane %v1325_v34, 2 }
 0x3c7   : > { %v1331_v50 = vsel %vm486_vm7, %v1306_v35, -inf }
 0x3c8   : > { %v1327_v41 = vmax.f32 %v1325_v34, %v1326_v40  ;;  %v1332_v42 = vmax.f32 %v1330_v37, %v1331_v50 }
 0x3ca   : > { %v1328_v51 = vrot.slane %v1327_v41, 1  ;;  %v1333_v47 = vrot.slane %v1332_v42, 4  ;;  %v1185_v43 = vpop.f32.mrb[48].mxu1 }
 0x3cb   : > { %v1307_v49 = vadd.f32 %v2004_v46, %v1185_v43  ;;  %v2287_v48 = vpop.f32.mrb[49].mxu1 }
 0x3cc   : > { %v1329_v56 = vmax.f32 %v1327_v41, %v1328_v51  ;;  %v1334_v53 = vmax.f32 %v1332_v42, %v1333_v47  ;;  %v1188_v55 = vpop.f32.mrb[50].mxu1  ;;  %v2007_v47 = vld [vmem:[%s3121_s4 + $0x5] ss:$0 sm:$0xff] }
 0x3cd   : > { %v1308_v52 = vadd.f32 %v2004_v46, %v1188_v55  ;;  %v2288_v57 = vpop.f32.mrb[51].mxu1  ;;  %v1339_v61 = vsel %vm486_vm7, %v1307_v49, -inf }
 0x3ce   : > { %v1402_v58 = vsub.f32 %v1303_v18, %v1329_v56  ;;  %v1403_v54 = vsub.f32 %v1304_v59, %v1329_v56  ;;  %v1335_v60 = vrot.slane %v1334_v53, 2 }
 0x3cf   : > { %v1340_v62 = vsel %vm486_vm7, %v1308_v52, -inf }
 0x3d0   : > { %v1420_v2 = vmul.f32 1.442695, %v1402_v58  ;;  %v1422_v5 = vmul.f32 1.442695, %v1403_v54  ;;  %v1336_v25 = vmax.f32 %v1334_v53, %v1335_v60  ;;  %v1341_v63 = vmax.f32 %v1339_v61, %v1340_v62 }
 0x3d2   : > { %2458 = vpow2.f32 %v1420_v2  ;;  %v1337_v6 = vrot.slane %v1336_v25, 1  ;;  %v1342_v27 = vrot.slane %v1341_v63, 4  ;;  %v1193_v4 = vpop.f32.mrb[52].mxu1 }
 0x3d3   : > { %2460 = vpow2.f32 %v1422_v5  ;;  %v2889_v7 = vadd.f32 %v2005_v3, %v1193_v4  ;;  %v2291_v9 = vpop.f32.mrb[53].mxu1 }
 0x3d4   : > { %v1338_v10 = vmax.f32 %v1336_v25, %v1337_v6  ;;  %v1343_v32 = vmax.f32 %v1341_v63, %v1342_v27  ;;  %v1196_v8 = vpop.f32.mrb[54].mxu1 }
 0x3d5   : > { %v2891_v13 = vadd.f32 %v2005_v3, %v1196_v8  ;;  %v2292_v12 = vpop.f32.mrb[55].mxu1  ;;  %v1348_v17 = vsel %vm486_vm7, %v2889_v7, -inf }
 0x3d6   : > { %v1404_v33 = vsub.f32 %v1305_v26, %v1338_v10  ;;  %v1405_v16 = vsub.f32 %v1306_v35, %v1338_v10  ;;  %v1344_v14 = vrot.slane %v1343_v32, 2 }
 0x3d7   : > { %v1349_v11 = vsel %vm486_vm7, %v2891_v13, -inf }
 0x3d8   : > { %v1424_v22 = vmul.f32 1.442695, %v1404_v33  ;;  %v1426_v15 = vmul.f32 1.442695, %v1405_v16  ;;  %v1345_v38 = vmax.f32 %v1343_v32, %v1344_v14  ;;  %v1350_v20 = vmax.f32 %v1348_v17, %v1349_v11 }
 0x3da   : > { %2462 = vpow2.f32 %v1424_v22  ;;  %v1346_v18 = vrot.slane %v1345_v38, 1  ;;  %v1351_v24 = vrot.slane %v1350_v20, 4  ;;  %v1201_v39 = vpop.f32.mrb[56].mxu1 }
 0x3db   : > { %2464 = vpow2.f32 %v1426_v15  ;;  %v2900_v59 = vadd.f32 %v2006_v19, %v1201_v39  ;;  %v2295_v28 = vpop.f32.mrb[57].mxu1 }
 0x3dc   : > { %v2902_v21 = vpop.eup %2458  ;;  %v1347_v0 = vmax.f32 %v1345_v38, %v1346_v18  ;;  %v1352_v23 = vmax.f32 %v1350_v20, %v1351_v24  ;;  %v1204_v29 = vpop.f32.mrb[58].mxu1 }
 0x3dd   : > { %v2904_v30 = vpop.eup %2460  ;;  %v1456_v44 = vsel %vm486_vm7, %v2902_v21, 0.0  ;;  %v2908_v26 = vadd.f32 %v2006_v19, %v1204_v29  ;;  %v2296_v31 = vpop.f32.mrb[59].mxu1  ;;  %v1357_v37 = vsel %vm486_vm7, %v2900_v59, -inf }
 0x3de   : > { %v1457_v34 = vsel %vm486_vm7, %v2904_v30, 0.0  ;;  %v1406_v45 = vsub.f32 %v1307_v49, %v1347_v0  ;;  %v1407_v35 = vsub.f32 %v1308_v52, %v1347_v0  ;;  %v1353_v36 = vrot.slane %v1352_v23, 2 }
 0x3df   : > { %v1458_v40 = vadd.f32 %v1457_v34, %v1456_v44  ;;  %v1358_v50 = vsel %vm486_vm7, %v2908_v26, -inf }
 0x3e0   : > { %v1428_v41 = vmul.f32 1.442695, %v1406_v45  ;;  %v1430_v42 = vmul.f32 1.442695, %v1407_v35  ;;  %v1354_v46 = vmax.f32 %v1352_v23, %v1353_v36  ;;  %v1359_v51 = vmax.f32 %v1357_v37, %v1358_v50 }
 0x3e1   : > { %v1459_v43 = vrot.slane %v1458_v40, 4 }
 0x3e2   : > { %2466 = vpow2.f32 %v1428_v41  ;;  %v1355_v49 = vrot.slane %v1354_v46, 1  ;;  %v1360_v48 = vrot.slane %v1359_v51, 4  ;;  %v1209_v56 = vpop.f32.mrb[60].mxu1 }
 0x3e3   : > { %v1460_v53 = vadd.f32 %v1459_v43, %v1458_v40  ;;  %2468 = vpow2.f32 %v1430_v42  ;;  %v2919_v55 = vadd.f32 %v2007_v47, %v1209_v56  ;;  %v2299_v52 = vpop.f32.mrb[61].mxu1 }
 0x3e4   : > { %v2921_v57 = vpop.eup %2462  ;;  %v1356_v58 = vmax.f32 %v1354_v46, %v1355_v49  ;;  %v1361_v54 = vmax.f32 %v1359_v51, %v1360_v48  ;;  %v1212_v60 = vpop.f32.mrb[62].mxu1  ;;  %v2009_v46 = vld [vmem:[%s3121_s4 + $0x7] ss:$0 sm:$0xff] }
 0x3e5   : > { %v2923_v61 = vpop.eup %2464  ;;  %v1461_v62 = vrot.slane %v1460_v53, 2  ;;  %v1465_v2 = vsel %vm486_vm7, %v2921_v57, 0.0  ;;  %v2927_v5 = vadd.f32 %v2007_v47, %v1212_v60  ;;  %v2300_v25 = vpop.f32.mrb[63].mxu1  ;;  %v1366_v10 = vsel %vm486_vm7, %v2919_v55, -inf }
 0x3e6   : > { %v1466_v63 = vsel %vm486_vm7, %v2923_v61, 0.0  ;;  %v1408_v3 = vsub.f32 %v2889_v7, %v1356_v58  ;;  %v1409_v6 = vsub.f32 %v2891_v13, %v1356_v58  ;;  %v1362_v27 = vrot.slane %v1361_v54, 2  ;;  %v2008_v13 = vld [vmem:[%s3121_s4 + $0x6] ss:$0 sm:$0xff] }
 0x3e7   : > { %v1462_v4 = vadd.f32 %v1461_v62, %v1460_v53  ;;  %v1467_v9 = vadd.f32 %v1466_v63, %v1465_v2  ;;  %v1367_v32 = vsel %vm486_vm7, %v2927_v5, -inf }
 0x3e8   : > { %v1432_v8 = vmul.f32 1.442695, %v1408_v3  ;;  %v1434_v12 = vmul.f32 1.442695, %v1409_v6  ;;  %v1363_v33 = vmax.f32 %v1361_v54, %v1362_v27  ;;  %v1368_v16 = vmax.f32 %v1366_v10, %v1367_v32 }
 0x3e9   : > { %v1463_v14 = vrot.slane %v1462_v4, 1  ;;  %v1468_v17 = vrot.slane %v1467_v9, 4 }
 0x3ea   : > { %2470 = vpow2.f32 %v1432_v8  ;;  %v1364_v11 = vrot.slane %v1363_v33, 1  ;;  %v1369_v7 = vrot.slane %v1368_v16, 4  ;;  %v1217_v22 = vpop.f32.mrb[64].mxu1 }
 0x3eb   : > { %v1464_v15 = vadd.f32 %v1463_v14, %v1462_v4  ;;  %v1469_v38 = vadd.f32 %v1468_v17, %v1467_v9  ;;  %2472 = vpow2.f32 %v1434_v12  ;;  %v2303_v20 = vpop.f32.mrb[65].mxu1  ;;  %v2946_v29 = vadd.f32 %v2008_v13, %v1217_v22 }
 0x3ec   : > { %v2940_v19 = vpop.eup %2466  ;;  %v1365_v18 = vmax.f32 %v1363_v33, %v1364_v11  ;;  %v1370_v24 = vmax.f32 %v1368_v16, %v1369_v7  ;;  %v1220_v39 = vpop.f32.mrb[66].mxu1 }
 0x3ed   : > { %v2942_v28 = vpop.eup %2468  ;;  %2474 = vrcp.f32 %v1464_v15  ;;  %v1470_v0 = vrot.slane %v1469_v38, 2  ;;  %v1474_v23 = vsel %vm486_vm7, %v2940_v19, 0.0  ;;  %v2304_v44 = vpop.f32.mrb[67].mxu1  ;;  %v2952_v37 = vadd.f32 %v2008_v13, %v1220_v39 }
 0x3ee   : > { %v1475_v31 = vsel %vm486_vm7, %v2942_v28, 0.0  ;;  %v1410_v34 = vsub.f32 %v2900_v59, %v1365_v18  ;;  %v1411_v45 = vsub.f32 %v2908_v26, %v1365_v18  ;;  %v1371_v35 = vrot.slane %v1370_v24, 2 }
 0x3ef   : > { %v1471_v36 = vadd.f32 %v1470_v0, %v1469_v38  ;;  %v1476_v40 = vadd.f32 %v1475_v31, %v1474_v23  ;;  %v1375_v43 = vsel %vm486_vm7, %v2946_v29, -inf  ;;  %v1376_v59 = vsel %vm486_vm7, %v2952_v37, -inf }
 0x3f0   : > { %v1436_v50 = vmul.f32 1.442695, %v1410_v34  ;;  %v1438_v41 = vmul.f32 1.442695, %v1411_v45  ;;  %v1372_v42 = vmax.f32 %v1370_v24, %v1371_v35  ;;  %v1377_v49 = vmax.f32 %v1375_v43, %v1376_v59 }
 0x3f1   : > { %v1472_v51 = vrot.slane %v1471_v36, 1  ;;  %v1477_v47 = vrot.slane %v1476_v40, 4 }
 0x3f2   : > { %2476 = vpow2.f32 %v1436_v50  ;;  %v1373_v26 = vrot.slane %v1372_v42, 1  ;;  %v1225_v48 = vpop.f32.mrb[68].mxu1  ;;  %v1378_v62 = vrot.slane %v1377_v49, 4 }
 0x3f3   : > { %v1478_v56 = vadd.f32 %v1477_v47, %v1476_v40  ;;  %2478 = vpow2.f32 %v1438_v41  ;;  %v2961_v53 = vadd.f32 %v2009_v46, %v1225_v48  ;;  %v2307_v52 = vpop.f32.mrb[69].mxu1  ;;  %v1473_v58 = vadd.f32 %v1472_v51, %v1471_v36 }
 0x3f4   : > { %v2963_v54 = vpop.eup %2470  ;;  %v1374_v60 = vmax.f32 %v1372_v42, %v1373_v26  ;;  %v1228_v2 = vpop.f32.mrb[70].mxu1  ;;  %v1379_v8 = vmax.f32 %v1377_v49, %v1378_v62 }
 0x3f5   : > { %v2965_v25 = vpop.eup %2472  ;;  %v1479_v63 = vrot.slane %v1478_v56, 2  ;;  %v1483_v3 = vsel %vm486_vm7, %v2963_v54, 0.0  ;;  %v1384_v6 = vsel %vm486_vm7, %v2961_v53, -inf  ;;  %v2971_v27 = vadd.f32 %v2009_v46, %v1228_v2  ;;  %v2308_v4 = vpop.f32.mrb[71].mxu1 }
 0x3f6   : > { %v1484_v9 = vsel %vm486_vm7, %v2965_v25, 0.0  ;;  %v1412_v10 = vsub.f32 %v2919_v55, %v1374_v60  ;;  %v1413_v32 = vsub.f32 %v2927_v5, %v1374_v60  ;;  %2480 = vrcp.f32 %v1473_v58  ;;  %v2010_v5 = vld [vmem:[%s3121_s4 + $0x8] ss:$0 sm:$0xff] }
 0x3f7   : > { %v2475_v12 = vpop.eup %2474  ;;  %v1480_v33 = vadd.f32 %v1479_v63, %v1478_v56  ;;  %v1485_v16 = vadd.f32 %v1484_v9, %v1483_v3  ;;  %v1385_v14 = vsel %vm486_vm7, %v2971_v27, -inf  ;;  %v1380_v38 = vrot.slane %v1379_v8, 2 }
 0x3f8   : > { %v1546_v17 = vmul.f32 %v2475_v12, %v2902_v21  ;;  %v1547_v11 = vmul.f32 %v2475_v12, %v2904_v30  ;;  %v1440_v7 = vmul.f32 1.442695, %v1412_v10  ;;  %v1442_v22 = vmul.f32 1.442695, %v1413_v32 }
 0x3f9   : > { %v1481_v13 = vrot.slane %v1480_v33, 1  ;;  %v1486_v15 = vrot.slane %v1485_v16, 4  ;;  %v1386_v55 = vmax.f32 %v1384_v6, %v1385_v14  ;;  %v1381_v39 = vmax.f32 %v1379_v8, %v1380_v38 }
 0x3fa   : > { %v1564_v20 = vpack.c.bf16 %v1547_v11, %v1546_v17  ;;  %2482 = vpow2.f32 %v1440_v7  ;;  %v1233_v18 = vpop.f32.mrb[72].mxu1 }
 0x3fb   : > { %v1487_v24 = vadd.f32 %v1486_v15, %v1485_v16  ;;  %2484 = vpow2.f32 %v1442_v22  ;;  %v1387_v0 = vrot.slane %v1386_v55, 4  ;;  %v2311_v21 = vpop.f32.mrb[73].mxu1  ;;  %v2986_v30 = vadd.f32 %v2010_v5, %v1233_v18 }
 0x3fc   : > { %v2984_v23 = vpop.eup %2476  ;;  %2316 = vmatmul.mubr.msk.bf16.vlgmr.msra.gmra.mrb[40].mxu0 %vm486_vm7, %v1564_v20  ;;  %v1236_v44 = vpop.f32.mrb[74].mxu1  ;;  %v1482_v31 = vadd.f32 %v1481_v13, %v1480_v33  ;;  %v1382_v36 = vrot.slane %v1381_v39, 1 }
 0x3fd   : > { %v2989_v34 = vpop.eup %2478  ;;  %v1488_v45 = vrot.slane %v1487_v24, 2  ;;  %v1492_v35 = vsel %vm486_vm7, %v2984_v23, 0.0  ;;  %v1388_v40 = vmax.f32 %v1386_v55, %v1387_v0  ;;  %v2312_v50 = vpop.f32.mrb[75].mxu1  ;;  %2319 = vmatprep.mubr.msk.bf16.mxu0 %vm2521_vm0, %v2520_v1  ;;  %v2997_v42 = vadd.f32 %v2010_v5, %v1236_v44 }
 0x3fe   : > { %v1493_v41 = vsel %vm486_vm7, %v2989_v34, 0.0  ;;  %2486 = vrcp.f32 %v1482_v31  ;;  %v1383_v47 = vmax.f32 %v1381_v39, %v1382_v36  ;;  %v1393_v59 = vsel %vm486_vm7, %v2986_v30, -inf }
 0x3ff   : > { %v1489_v46 = vadd.f32 %v1488_v45, %v1487_v24  ;;  %v1494_v51 = vadd.f32 %v1493_v41, %v1492_v35  ;;  %v1389_v43 = vrot.slane %v1388_v40, 2  ;;  %v1394_v26 = vsel %vm486_vm7, %v2997_v42, -inf }
 0x400   : > { %v2481_v49 = vpop.eup %2480  ;;  %v1414_v52 = vsub.f32 %v2946_v29, %v1383_v47  ;;  %v1415_v58 = vsub.f32 %v2952_v37, %v1383_v47  ;;  %v1395_v62 = vmax.f32 %v1393_v59, %v1394_v26 }
 0x401   : > { %v1490_v48 = vrot.slane %v1489_v46, 1  ;;  %v1495_v56 = vrot.slane %v1494_v51, 4  ;;  %v1390_v60 = vmax.f32 %v1388_v40, %v1389_v43  ;;  %v1548_v2 = vmul.f32 %v2481_v49, %v2921_v57 }
 0x402   : > { %v1549_v63 = vmul.f32 %v2481_v49, %v2923_v61  ;;  %v1444_v6 = vmul.f32 1.442695, %v1414_v52  ;;  %v1446_v4 = vmul.f32 1.442695, %v1415_v58  ;;  %v1396_v8 = vrot.slane %v1395_v62, 4 }
 0x403   : > { %v1496_v3 = vadd.f32 %v1495_v56, %v1494_v51  ;;  %v1491_v9 = vadd.f32 %v1490_v48, %v1489_v46  ;;  %v1391_v32 = vrot.slane %v1390_v60, 1 }
 0x404   : > { %v3007_v10 = vpop.eup %2482  ;;  %v1565_v12 = vpack.c.bf16 %v1549_v63, %v1548_v2  ;;  %2488 = vpow2.f32 %v1444_v6  ;;  %v1397_v16 = vmax.f32 %v1395_v62, %v1396_v8 }
 0x405   : > { %v3009_v33 = vpop.eup %2484  ;;  %v1497_v29 = vrot.slane %v1496_v3, 2  ;;  %v1501_v37 = vsel %vm486_vm7, %v3007_v10, 0.0  ;;  %2490 = vpow2.f32 %v1446_v4  ;;  %v1392_v61 = vmax.f32 %v1390_v60, %v1391_v32 }
 0x406   : > { %v1502_v57 = vsel %vm486_vm7, %v3009_v33, 0.0  ;;  %2320 = vmatmul.mubr.msk.bf16.gmra.mrb[44].mxu0 %vm486_vm7, %v1565_v12  ;;  %2492 = vrcp.f32 %v1491_v9  ;;  %v1398_v13 = vrot.slane %v1397_v16, 2 }
 0x407   : > { %v1498_v14 = vadd.f32 %v1497_v29, %v1496_v3  ;;  %v1503_v17 = vadd.f32 %v1502_v57, %v1501_v37  ;;  %2323 = vmatprep.mubr.msk.bf16.mxu0 %vm2521_vm0, %v2520_v1  ;;  %v1416_v7 = vsub.f32 %v2961_v53, %v1392_v61  ;;  %v1417_v22 = vsub.f32 %v2971_v27, %v1392_v61 }
 0x408   : > { %v2487_v11 = vpop.eup %2486  ;;  %v1399_v24 = vmax.f32 %v1397_v16, %v1398_v13 }
 0x409   : > { %v1499_v15 = vrot.slane %v1498_v14, 1  ;;  %v1504_v38 = vrot.slane %v1503_v17, 4  ;;  %v1550_v55 = vmul.f32 %v2487_v11, %v2940_v19  ;;  %v1551_v5 = vmul.f32 %v2487_v11, %v2942_v28 }
 0x40a   : > { %v1448_v20 = vmul.f32 1.442695, %v1416_v7  ;;  %v1450_v18 = vmul.f32 1.442695, %v1417_v22  ;;  %v1400_v44 = vrot.slane %v1399_v24, 1 }
 0x40b   : > { %v1505_v39 = vadd.f32 %v1504_v38, %v1503_v17  ;;  %v1566_v0 = vpack.c.bf16 %v1551_v5, %v1550_v55  ;;  %v1500_v21 = vadd.f32 %v1499_v15, %v1498_v14 }
 0x40c   : > { %2494 = vpow2.f32 %v1448_v20  ;;  %v1401_v53 = vmax.f32 %v1399_v24, %v1400_v44 }
 0x40d   : > { %v1506_v31 = vrot.slane %v1505_v39, 2  ;;  %2496 = vpow2.f32 %v1450_v18 }
 0x40e   : > { %2324 = vmatmul.mubr.msk.bf16.gmra.mrb[48].mxu0 %vm486_vm7, %v1566_v0  ;;  %2498 = vrcp.f32 %v1500_v21  ;;  %v3023_v27 = vpop.eup %2488  ;;  %v1418_v35 = vsub.f32 %v2986_v30, %v1401_v53  ;;  %v1419_v36 = vsub.f32 %v2997_v42, %v1401_v53 }
 0x40f   : > { %v1507_v45 = vadd.f32 %v1506_v31, %v1505_v39  ;;  %2327 = vmatprep.mubr.msk.bf16.mxu0 %vm2521_vm0, %v2520_v1  ;;  %v2491_v19 = vpop.eup %2490  ;;  %v1510_v28 = vsel %vm486_vm7, %v3023_v27, 0.0 }
 0x410   : > { %v2493_v40 = vpop.eup %2492  ;;  %v1511_v41 = vsel %vm486_vm7, %v2491_v19, 0.0  ;;  %v1452_v51 = vmul.f32 1.442695, %v1418_v35  ;;  %v1454_v47 = vmul.f32 1.442695, %v1419_v36 }
 0x411   : > { %v1508_v50 = vrot.slane %v1507_v45, 1  ;;  %v1512_v46 = vadd.f32 %v1511_v41, %v1510_v28  ;;  %v1552_v43 = vmul.f32 %v2493_v40, %v2963_v54  ;;  %v1553_v59 = vmul.f32 %v2493_v40, %v2965_v25  ;;  %v2377_v28 = vld [vmem:[%s3124_s7 + $0x10] sm:$0xff]   ;;  %v2070_v40 = vld [vmem:[%s3075_s19] sm:$0xff]  }
 0x412   : > { %2500 = vpow2.f32 %v1452_v51  ;;  %v2072_v51 = vunpack.c.h.bf16 %v2070_v40 }
 0x413   : > { %v1509_v26 = vadd.f32 %v1508_v50, %v1507_v45  ;;  %v1513_v49 = vrot.slane %v1512_v46, 4  ;;  %2502 = vpow2.f32 %v1454_v47  ;;  %v1567_v48 = vpack.c.bf16 %v1553_v59, %v1552_v43  ;;  %v2375_v45 = vld [vmem:[%s3124_s7] sm:$0xff]  }
 0x414   : > { %2352 = vmatpush3.bf16.msra.mxu1 %v2375_v45 }
 0x415   : > { %v1514_v30 = vadd.f32 %v1513_v49, %v1512_v46  ;;  %2504 = vrcp.f32 %v1509_v26  ;;  %2353 = vmatprep.subr.bf16.mxu1 %v2520_v1  ;;  %v2071_v46 = vunpack.c.l.bf16 %v2070_v40 }
 0x416   : > { %v2495_v56 = vpop.eup %2494  ;;  %2328 = vmatmul.mubr.msk.bf16.gmra.mrb[52].mxu0 %vm486_vm7, %v1567_v48 }
 0x417   : > { %v2497_v42 = vpop.eup %2496  ;;  %v1519_v52 = vsel %vm486_vm7, %v2495_v56, 0.0  ;;  %v1515_v60 = vrot.slane %v1514_v30, 2  ;;  %2331 = vmatprep.mubr.msk.bf16.mxu0 %vm2521_vm0, %v2520_v1 }
 0x418   : > { %v2499_v58 = vpop.eup %2498  ;;  %v1520_v62 = vsel %vm486_vm7, %v2497_v42, 0.0 }
 0x419   : > { %v1521_v54 = vadd.f32 %v1520_v62, %v1519_v52  ;;  %v1554_v25 = vmul.f32 %v2499_v58, %v2984_v23  ;;  %v1555_v2 = vmul.f32 %v2499_v58, %v2989_v34  ;;  %v1516_v63 = vadd.f32 %v1515_v60, %v1514_v30 }
 0x41b   : > { %v1522_v3 = vrot.slane %v1521_v54, 4  ;;  %v1568_v6 = vpack.c.bf16 %v1555_v2, %v1554_v25  ;;  %v1517_v4 = vrot.slane %v1516_v63, 1 }
 0x41c   : > { %v2501_v32 = vpop.eup %2500 }
 0x41d   : > { %v1523_v9 = vadd.f32 %v1522_v3, %v1521_v54  ;;  %v1518_v8 = vadd.f32 %v1517_v4, %v1516_v63  ;;  %v2503_v12 = vpop.eup %2502  ;;  %v1528_v37 = vsel %vm486_vm7, %v2501_v32, 0.0 }
 0x41e   : > { %2332 = vmatmul.mubr.msk.bf16.gmra.mrb[56].mxu0 %vm486_vm7, %v1568_v6  ;;  %v1529_v61 = vsel %vm486_vm7, %v2503_v12, 0.0 }
 0x41f   : > { %v1524_v29 = vrot.slane %v1523_v9, 2  ;;  %v2505_v57 = vpop.eup %2504  ;;  %2335 = vmatprep.mubr.msk.bf16.mxu0 %vm2521_vm0, %v2520_v1  ;;  %2506 = vrcp.f32 %v1518_v8  ;;  %v1530_v34 = vadd.f32 %v1529_v61, %v1528_v37 }
 0x420   : > { %v1556_v16 = vmul.f32 %v2505_v57, %v3007_v10  ;;  %v1557_v14 = vmul.f32 %v2505_v57, %v3009_v33  ;;  %v2115_v57 = vld [vmem:[%s3075_s19 + $0x18] sm:$0xff]  }
 0x421   : > { %v1525_v23 = vadd.f32 %v1524_v29, %v1523_v9  ;;  %v1531_v11 = vrot.slane %v1530_v34, 4 }
 0x422   : > { %v1569_v7 = vpack.c.bf16 %v1557_v14, %v1556_v16  ;;  %v2083_v16 = vunpack.c.l.bf16 %v2115_v57  ;;  %v2084_v14 = vunpack.c.h.bf16 %v2115_v57 }
 0x423   : > { %v1526_v17 = vrot.slane %v1525_v23, 1  ;;  %v1532_v22 = vadd.f32 %v1531_v11, %v1530_v34 }
 0x425   : > { %v1527_v13 = vadd.f32 %v1526_v17, %v1525_v23  ;;  %v1533_v15 = vrot.slane %v1532_v22, 2 }
 0x426   : > { %2336 = vmatmul.mubr.msk.bf16.gmra.mrb[60].mxu0 %vm486_vm7, %v1569_v7 }
 0x427   : > { %2508 = vrcp.f32 %v1527_v13  ;;  %2339 = vmatprep.mubr.msk.bf16.mxu0 %vm2521_vm0, %v2520_v1  ;;  %v1534_v38 = vadd.f32 %v1533_v15, %v1532_v22  ;;  %v2116_v13 = vld [vmem:[%s3075_s19 + $0x20] sm:$0xff]  }
 0x429   : > { %v2507_v55 = vpop.eup %2506  ;;  %v1535_v5 = vrot.slane %v1534_v38, 1 }
 0x42a   : > { %v1558_v20 = vmul.f32 %v2507_v55, %v3023_v27  ;;  %v1559_v10 = vmul.f32 %v2507_v55, %v2491_v19  ;;  %v2376_v19 = vld [vmem:[%s3124_s7 + $0x8] sm:$0xff]  }
 0x42b   : > { %v1536_v33 = vadd.f32 %v1535_v5, %v1534_v38  ;;  %2354 = vmatpush3.bf16.msra.mxu1 %v2376_v19 }
 0x42c   : > { %v1570_v18 = vpack.c.bf16 %v1559_v10, %v1558_v20  ;;  %2355 = vmatprep.subr.bf16.mxu1 %v2520_v1  ;;  %v2087_v10 = vunpack.c.l.bf16 %v2116_v13 }
 0x42d   : > { %2510 = vrcp.f32 %v1536_v33  ;;  %v2088_v33 = vunpack.c.h.bf16 %v2116_v13 }
 0x42e   : > { %2340 = vmatmul.mubr.msk.bf16.gmra.mrb[64].mxu0 %vm486_vm7, %v1570_v18 }
 0x42f   : > { %2343 = vmatprep.mubr.msk.bf16.mxu0 %vm2521_vm0, %v2520_v1  ;;  %2356 = vmatpush3.bf16.msra.mxu1 %v2377_v28 }
 0x431   : > { %v2509_v24 = vpop.eup %2508 }
 0x432   : > { %v1560_v39 = vmul.f32 %v2509_v24, %v2495_v56  ;;  %v1561_v0 = vmul.f32 %v2509_v24, %v2497_v42  ;;  %v2114_v42 = vld [vmem:[%s3075_s19 + $0x10] sm:$0xff]  }
 0x433   : > { %v2079_v63 = vunpack.c.l.bf16 %v2114_v42  ;;  %v2080_v6 = vunpack.c.h.bf16 %v2114_v42 }
 0x434   : > { %v1571_v21 = vpack.c.bf16 %v1561_v0, %v1560_v39 }
 0x436   : > { %2344 = vmatmul.mubr.msk.bf16.gmra.mrb[68].mxu0 %vm486_vm7, %v1571_v21 }
 0x437   : > { %2347 = vmatprep.mubr.msk.bf16.mxu0 %vm2521_vm0, %v2520_v1  ;;  %v2511_v44 = vpop.eup %2510  ;;  %v2113_v1 = vld [vmem:[%s3075_s19 + $0x8] sm:$0xff]  }
 0x438   : > { %v1562_v31 = vmul.f32 %v2511_v44, %v2501_v32  ;;  %v1563_v53 = vmul.f32 %v2511_v44, %v2503_v12  ;;  %v2075_v47 = vunpack.c.l.bf16 %v2113_v1  ;;  %v2076_v59 = vunpack.c.h.bf16 %v2113_v1  ;;  %v2117_v44 = vld [vmem:[%s3075_s19 + $0x28] sm:$0xff]  }
 0x439   : > { %v2091_v28 = vunpack.c.l.bf16 %v2117_v44 }
 0x43a   : > { %v1572_v27 = vpack.c.bf16 %v1563_v53, %v1562_v31 }
 0x43e   : > { %2348 = vmatmul.mubr.msk.bf16.gmra.mrb[72].mxu0 %vm486_vm7, %v1572_v27 }
 0x4cf   : > { %v1634_v35 = vpop.f32.mrb[40].mxu0 }
 0x4d0   : > { %v2317_v36 = vpop.f32.mrb[41].mxu0  ;;  %v1741_v43 = vmul.f32 %v2071_v46, %v1634_v35  ;;  %v2118_v46 = vld [vmem:[%s3075_s19 + $0x30] sm:$0xff]  }
 0x4d1   : > { %v1637_v50 = vpop.f32.mrb[42].mxu0  ;;  %v2092_v36 = vunpack.c.h.bf16 %v2117_v44 }
 0x4d2   : > { %v2318_v41 = vpop.f32.mrb[43].mxu0  ;;  %v1742_v49 = vmul.f32 %v2072_v51, %v1637_v50  ;;  %v1759_v52 = vsel %vm420_vm1, %v1741_v43, 0.0 }
 0x4d4   : > { %v1776_v25 = vsel %vm420_vm1, %v1742_v49, 0.0  ;;  %v2095_v49 = vunpack.c.l.bf16 %v2118_v46 }
 0x4d9   : > { %v1642_v26 = vpop.f32.mrb[44].mxu0 }
 0x4da   : > { %v1743_v48 = vmul.f32 %v2075_v47, %v1642_v26  ;;  %v2321_v56 = vpop.f32.mrb[45].mxu0 }
 0x4db   : > { %v1645_v30 = vpop.f32.mrb[46].mxu0  ;;  %v2096_v56 = vunpack.c.h.bf16 %v2118_v46 }
 0x4dc   : > { %v1760_v58 = vsel %vm420_vm1, %v1743_v48, 0.0  ;;  %v1744_v60 = vmul.f32 %v2076_v59, %v1645_v30  ;;  %v2322_v62 = vpop.f32.mrb[47].mxu0 }
 0x4dd   : > { %v1761_v54 = vadd.f32 %v1760_v58, %v1759_v52 }
 0x4de   : > { %v1777_v2 = vsel %vm420_vm1, %v1744_v60, 0.0  ;;  %v2119_v60 = vld [vmem:[%s3075_s19 + $0x38] sm:$0xff]  }
 0x4df   : > { %v1778_v3 = vadd.f32 %v1777_v2, %v1776_v25 }
 0x4e1   : > { %v1650_v4 = vpop.f32.mrb[48].mxu0 }
 0x4e2   : > { %v1745_v9 = vmul.f32 %v2079_v63, %v1650_v4  ;;  %v2325_v32 = vpop.f32.mrb[49].mxu0  ;;  %v2100_v4 = vunpack.c.h.bf16 %v2119_v60 }
 0x4e3   : > { %v1653_v8 = vpop.f32.mrb[50].mxu0 }
 0x4e4   : > { %v1762_v12 = vsel %vm420_vm1, %v1745_v9, 0.0  ;;  %v1746_v29 = vmul.f32 %v2080_v6, %v1653_v8  ;;  %v2326_v37 = vpop.f32.mrb[51].mxu0 }
 0x4e5   : > { %v1763_v61 = vadd.f32 %v1762_v12, %v1761_v54 }
 0x4e6   : > { %v1779_v23 = vsel %vm420_vm1, %v1746_v29, 0.0  ;;  %v2120_v29 = vld [vmem:[%s3075_s19 + $0x40] sm:$0xff]  }
 0x4e7   : > { %v1780_v34 = vadd.f32 %v1779_v23, %v1778_v3  ;;  %v2099_v3 = vunpack.c.l.bf16 %v2119_v60 }
 0x4e9   : > { %v1658_v17 = vpop.f32.mrb[52].mxu0 }
 0x4ea   : > { %v1747_v11 = vmul.f32 %v2083_v16, %v1658_v17  ;;  %v2329_v7 = vpop.f32.mrb[53].mxu0  ;;  %v2103_v16 = vunpack.c.l.bf16 %v2120_v29  ;;  %v2104_v17 = vunpack.c.h.bf16 %v2120_v29 }
 0x4eb   : > { %v1661_v22 = vpop.f32.mrb[54].mxu0 }
 0x4ec   : > { %v1764_v15 = vsel %vm420_vm1, %v1747_v11, 0.0  ;;  %v1748_v38 = vmul.f32 %v2084_v14, %v1661_v22  ;;  %v2330_v55 = vpop.f32.mrb[55].mxu0 }
 0x4ed   : > { %v1765_v5 = vadd.f32 %v1764_v15, %v1763_v61 }
 0x4ee   : > { %v1781_v20 = vsel %vm420_vm1, %v1748_v38, 0.0 }
 0x4ef   : > { %v1782_v18 = vadd.f32 %v1781_v20, %v1780_v34 }
 0x4f1   : > { %v1666_v24 = vpop.f32.mrb[56].mxu0 }
 0x4f2   : > { %v1749_v39 = vmul.f32 %v2087_v10, %v1666_v24  ;;  %v2333_v0 = vpop.f32.mrb[57].mxu0 }
 0x4f3   : > { %v1669_v21 = vpop.f32.mrb[58].mxu0 }
 0x4f4   : > { %v1766_v31 = vsel %vm420_vm1, %v1749_v39, 0.0  ;;  %v1750_v53 = vmul.f32 %v2088_v33, %v1669_v21  ;;  %v2334_v27 = vpop.f32.mrb[59].mxu0  ;;  %v2020_v33 = vld [vmem:[%s3125_s8] ss:$0 sm:$0xff] }
 0x4f5   : > { %v1767_v45 = vadd.f32 %v1766_v31, %v1765_v5 }
 0x4f6   : > { %v1783_v19 = vsel %vm420_vm1, %v1750_v53, 0.0 }
 0x4f7   : > { %v1784_v35 = vadd.f32 %v1783_v19, %v1782_v18 }
 0x4f9   : > { %v1674_v40 = vpop.f32.mrb[60].mxu0 }
 0x4fa   : > { %v1751_v50 = vmul.f32 %v2091_v28, %v1674_v40  ;;  %v2337_v41 = vpop.f32.mrb[61].mxu0 }
 0x4fb   : > { %v1677_v1 = vpop.f32.mrb[62].mxu0 }
 0x4fc   : > { %v1768_v51 = vsel %vm420_vm1, %v1751_v50, 0.0  ;;  %v1752_v47 = vmul.f32 %v2092_v36, %v1677_v1  ;;  %v2338_v43 = vpop.f32.mrb[63].mxu0 }
 0x4fd   : > { %v1769_v59 = vadd.f32 %v1768_v51, %v1767_v45 }
 0x4fe   : > { %v1785_v26 = vsel %vm420_vm1, %v1752_v47, 0.0 }
 0x4ff   : > { %v1786_v48 = vadd.f32 %v1785_v26, %v1784_v35 }
 0x501   : > { %v1682_v30 = vpop.f32.mrb[64].mxu0 }
 0x502   : > { %v1753_v42 = vmul.f32 %v2095_v49, %v1682_v30  ;;  %v2341_v52 = vpop.f32.mrb[65].mxu0 }
 0x503   : > { %v1685_v58 = vpop.f32.mrb[66].mxu0 }
 0x504   : > { %v1770_v62 = vsel %vm420_vm1, %v1753_v42, 0.0  ;;  %v1754_v54 = vmul.f32 %v2096_v56, %v1685_v58  ;;  %v2342_v25 = vpop.f32.mrb[67].mxu0 }
 0x505   : > { %v1771_v2 = vadd.f32 %v1770_v62, %v1769_v59 }
 0x506   : > { %v1787_v63 = vsel %vm420_vm1, %v1754_v54, 0.0 }
 0x507   : > { %v1788_v6 = vadd.f32 %v1787_v63, %v1786_v48 }
 0x509   : > { %v1690_v9 = vpop.f32.mrb[68].mxu0 }
 0x50a   : > { %v1755_v32 = vmul.f32 %v2099_v3, %v1690_v9  ;;  %v2345_v8 = vpop.f32.mrb[69].mxu0 }
 0x50b   : > { %v1693_v12 = vpop.f32.mrb[70].mxu0 }
 0x50c   : > { %v1772_v37 = vsel %vm420_vm1, %v1755_v32, 0.0  ;;  %v1756_v57 = vmul.f32 %v2100_v4, %v1693_v12  ;;  %v2346_v61 = vpop.f32.mrb[71].mxu0 }
 0x50d   : > { %v1773_v23 = vadd.f32 %v1772_v37, %v1771_v2 }
 0x50e   : > { %v1789_v34 = vsel %vm420_vm1, %v1756_v57, 0.0 }
 0x50f   : > { %v1790_v14 = vadd.f32 %v1789_v34, %v1788_v6 }
 0x511   : > { %v1698_v11 = vpop.f32.mrb[72].mxu0 }
 0x512   : > { %v1757_v7 = vmul.f32 %v2103_v16, %v1698_v11  ;;  %v2349_v22 = vpop.f32.mrb[73].mxu0 }
 0x513   : > { %v1701_v13 = vpop.f32.mrb[74].mxu0 }
 0x514   : > { %v1774_v15 = vsel %vm420_vm1, %v1757_v7, 0.0  ;;  %v1758_v38 = vmul.f32 %v2104_v17, %v1701_v13  ;;  %v2350_v55 = vpop.f32.mrb[75].mxu0 }
 0x515   : > { %v1775_v5 = vadd.f32 %v1774_v15, %v1773_v23 }
 0x516   : > { %v1791_v20 = vsel %vm420_vm1, %v1758_v38, 0.0 }
 0x517   : > { %v1792_v10 = vadd.f32 %v1791_v20, %v1790_v14 }
 0x519   : > { %v1793_v18 = vpack.c.bf16 %v1792_v10, %v1775_v5 }
 0x51b   : > { %2358 = vmatmul.mubr.msk.bf16.vlgmr.msra.gmra.mrb[76].mxu1 %vm420_vm1, %v1793_v18 }
 0x5ee   : > { %v1862_v24 = vpop.f32.mrb[76].mxu1 }
 0x5ef   : > { %v1863_v39 = vadd.f32 %v2020_v33, %v1862_v24  ;;  %v2359_v0 = vpop.f32.mrb[77].mxu1 }
 0x5f0   : > { %v1865_v21 = vpop.f32.mrb[78].mxu1 }
 0x5f1   : > { %1869 = vst.msk [vmem:[%s386_s25] sm:$0xff] %vm420_vm1, %v1863_v39  ;;  %v1866_v44 = vadd.f32 %v2020_v33, %v1865_v21  ;;  %v2360_v31 = vpop.f32.mrb[79].mxu1 }
 0x5f3   : > { %1870 = vst.msk [vmem:[%s386_s25 + $0x8] sm:$0xff] %vm420_vm1, %v1866_v44 }
 0x5f4 PF: > { %s19_s30 = sadd.s32 1, %s2518_s30  }
 0x5f5   : > { %p16_p4 = scmp.ge.s32.totalorder %s19_s30, 4  }
 0x5f7   :  { %18 = sbr.rel (!%p16_p4) target bundleno = 1 (0x1), region = 95 }

</bundles_post_ra>
